<compile_context>
chip_gen: v5e
topology: v5e:2x2
jax: 0.10.0
libtpu: 0.0.40
codegen_flags: <defaults>
</compile_context>

<pallas_src>
import functools

import jax
import jax.numpy as jnp
from jax import lax
from jax.experimental import pallas as pl
from jax.experimental.pallas import tpu as pltpu


def _fused_sepconv_kernel(x_ref, dw1_ref, pw1_ref, b1_ref,
                          dw2_ref, pw2_ref, b2_ref,
                          out_ref, xp1_ref, xp2_ref,
                          *, k, stride, padding, wl,
                          H, W, C, Co, Ho1, Wo1, Ho2, Wo2, Bb):
    """Fused: ReLU->dwconv->1x1(BN-scaled)->(+shift)->ReLU->dwconv->1x1->(+shift).

    Block shapes (per grid step = Bb batch elements):
      x_ref   : (Bb, H, W, C)        unpadded input
      dw*_ref : (k*k, C)             depthwise taps (per-channel)
      pw*_ref : (C, C) / (C, Co)     pointwise weights with BN scale folded in
      b*_ref  : (1, C) / (1, Co)     folded BN shift
      out_ref : (Bb, Ho2, Wo2, Co)
      xp1_ref : (Bb, H+2p,  wl+W+p,  C)  VMEM scratch (padded relu(x))
      xp2_ref : (Bb, Ho1+2p, wl+Wo1+p, C) VMEM scratch (padded relu(stage1))
    `wl` is the left W-pad rounded up to a multiple of 8 so the interior store
    lands on an aligned sublane offset.
    """
    p = padding

    def depthwise(xp_ref, dw, Ho, Wo, s):
        acc = jnp.zeros((Bb, Ho, Wo, C), jnp.float32)
        xp_full = xp_ref[...] if s != 1 else None
        for kh in range(k):
            for kw in range(k):
                c0 = wl - p + kw
                if s == 1:
                    # window read straight from VMEM scratch (keeps vreg
                    # pressure down vs. materializing the whole padded array)
                    win = xp_ref[:, kh:kh + Ho, c0:c0 + Wo, :]
                else:
                    win = lax.slice(
                        xp_full,
                        (0, kh, c0, 0),
                        (Bb, kh + s * (Ho - 1) + 1, c0 + s * (Wo - 1) + 1, C),
                        (1, s, s, 1))
                acc = acc + win * dw[kh * k + kw]
        return acc

    # ------------------ stage 1: ReLU -> pad -> dw conv --------------------
    xp1_ref[...] = jnp.zeros_like(xp1_ref)
    xp1_ref[:, p:p + H, wl:wl + W, :] = jnp.maximum(
        x_ref[...].astype(jnp.float32), 0.0)

    dw1 = dw1_ref[...].astype(jnp.float32)                    # (k*k, C)
    acc1 = depthwise(xp1_ref, dw1, Ho1, Wo1, stride)          # (Bb,Ho1,Wo1,C)

    # pointwise 1x1 conv (BN scale already folded into pw1) on the MXU.
    y1 = jnp.dot(acc1.reshape(Bb * Ho1 * Wo1, C), pw1_ref[...],
                 preferred_element_type=jnp.float32)
    y1 = y1 + b1_ref[...]                                     # (Bb*Ho1*Wo1, C)

    # ------------------ stage 2: ReLU -> pad -> dw conv --------------------
    xp2_ref[...] = jnp.zeros_like(xp2_ref)
    xp2_ref[:, p:p + Ho1, wl:wl + Wo1, :] = jnp.maximum(
        y1, 0.0).reshape(Bb, Ho1, Wo1, C)

    dw2 = dw2_ref[...].astype(jnp.float32)
    acc2 = depthwise(xp2_ref, dw2, Ho2, Wo2, 1)               # (Bb,Ho2,Wo2,C)

    y2 = jnp.dot(acc2.reshape(Bb * Ho2 * Wo2, C), pw2_ref[...],
                 preferred_element_type=jnp.float32)
    y2 = y2 + b2_ref[...]                                     # (Bb*Ho2*Wo2, Co)

    out_ref[...] = y2.reshape(Bb, Ho2, Wo2, Co).astype(out_ref.dtype)


def _fold_bn(gamma, beta, running_mean, running_var, eps=1e-5):
    scale = gamma / jnp.sqrt(running_var + eps)
    shift = beta - running_mean * scale
    return scale, shift


def _pick_batch_block(n, max_b=8):
    b = 1
    for cand in range(1, min(n, max_b) + 1):
        if n % cand == 0:
            b = cand
    return b


def sep_conv_forward(x_nchw, params, cfg):
    """Pallas implementation of SepConvOperation.forward. Input/output: NCHW."""
    k = cfg['kernel_size']
    stride = cfg['stride']
    p = cfg['padding']
    N, C, H, W = x_nchw.shape
    Co = params['pw2'].shape[1]

    Ho1 = (H + 2 * p - k) // stride + 1
    Wo1 = (W + 2 * p - k) // stride + 1
    Ho2 = Ho1 + 2 * p - k + 1
    Wo2 = Wo1 + 2 * p - k + 1

    x = jnp.transpose(x_nchw, (0, 2, 3, 1))                   # NCHW -> NHWC

    # Fold BN (inference running stats) into the pointwise weights: one-time
    # wrapper-side prep, kernel only adds the shift.
    s1, sh1 = _fold_bn(params['bn1_gamma'], params['bn1_beta'],
                       params['bn1_mean'], params['bn1_var'])
    s2, sh2 = _fold_bn(params['bn2_gamma'], params['bn2_beta'],
                       params['bn2_mean'], params['bn2_var'])
    pw1 = params['pw1'] * s1[None, :]
    pw2 = params['pw2'] * s2[None, :]
    sh1 = sh1[None, :]                                        # (1, C)
    sh2 = sh2[None, :]                                        # (1, Co)
    dw1 = params['dw1'].reshape(k * k, C)
    dw2 = params['dw2'].reshape(k * k, C)

    Bb = _pick_batch_block(N)
    wl = 0 if p == 0 else -(-p // 8) * 8                      # aligned left W-pad

    Hp1, Wp1 = H + 2 * p, wl + W + p
    Hp2, Wp2 = Ho1 + 2 * p, wl + Wo1 + p

    kernel = functools.partial(
        _fused_sepconv_kernel, k=k, stride=stride, padding=p, wl=wl,
        H=H, W=W, C=C, Co=Co, Ho1=Ho1, Wo1=Wo1, Ho2=Ho2, Wo2=Wo2, Bb=Bb)

    # Rough VMEM budget: double-buffered in/out blocks + scratch + headroom.
    def _nbytes(shape, itemsize=4):
        n = itemsize
        for d in shape:
            n *= d
        return n
    vmem_bytes = (2 * (_nbytes((Bb, H, W, C)) + 2 * _nbytes((k * k, C))
                       + _nbytes((C, C)) + _nbytes((C, Co))
                       + _nbytes((1, C)) + _nbytes((1, Co)))
                  + 2 * _nbytes((Bb, Ho2, Wo2, Co))
                  + _nbytes((Bb, Hp1, Wp1, C)) + _nbytes((Bb, Hp2, Wp2, C))
                  + (4 << 20))
    vmem_bytes = int(min(max(vmem_bytes, 32 << 20), 100 << 20))

    y = pl.pallas_call(
        kernel,
        out_shape=jax.ShapeDtypeStruct((N, Ho2, Wo2, Co), x.dtype),
        grid_spec=pltpu.PrefetchScalarGridSpec(
            num_scalar_prefetch=0,
            grid=(N // Bb,),
            in_specs=[
                pl.BlockSpec((Bb, H, W, C), lambda n: (n, 0, 0, 0)),
                pl.BlockSpec((k * k, C), lambda n: (0, 0)),
                pl.BlockSpec((C, C), lambda n: (0, 0)),
                pl.BlockSpec((1, C), lambda n: (0, 0)),
                pl.BlockSpec((k * k, C), lambda n: (0, 0)),
                pl.BlockSpec((C, Co), lambda n: (0, 0)),
                pl.BlockSpec((1, Co), lambda n: (0, 0)),
            ],
            out_specs=pl.BlockSpec((Bb, Ho2, Wo2, Co), lambda n: (n, 0, 0, 0)),
            scratch_shapes=[
                pltpu.VMEM((Bb, Hp1, Wp1, C), jnp.float32),
                pltpu.VMEM((Bb, Hp2, Wp2, C), jnp.float32),
            ]),
        compiler_params=pltpu.CompilerParams(
            dimension_semantics=("parallel",),
            vmem_limit_bytes=vmem_bytes),
    )(x, dw1, pw1, sh1, dw2, pw2, sh2)

    return jnp.transpose(y, (0, 3, 1, 2))                     # NHWC -> NCHW


# ----------------------------- params / reference ---------------------------
def make_params(key, cfg):
    C = cfg['inplane']
    Co = cfg['outplane']
    k = cfg['kernel_size']
    k1, k2, k3, k4 = jax.random.split(key, 4)
    params = {
        # depthwise weights stored as (k, k, C)   (PyTorch: (C, 1, k, k))
        'dw1': 0.2 * jax.random.normal(k1, (k, k, C), jnp.float32),
        # pointwise weights stored as (Cin, Cout) (PyTorch: (Cout, Cin, 1, 1))
        'pw1': 0.2 * jax.random.normal(k2, (C, C), jnp.float32),
        'dw2': 0.2 * jax.random.normal(k3, (k, k, C), jnp.float32),
        'pw2': 0.2 * jax.random.normal(k4, (C, Co), jnp.float32),
        # BatchNorm (affine=True), inference-mode running stats
        'bn1_gamma': jnp.linspace(0.9, 1.1, C, dtype=jnp.float32),
        'bn1_beta': jnp.linspace(-0.1, 0.1, C, dtype=jnp.float32),
        'bn1_mean': jnp.linspace(-0.05, 0.05, C, dtype=jnp.float32),
        'bn1_var': jnp.linspace(0.8, 1.2, C, dtype=jnp.float32),
        'bn2_gamma': jnp.linspace(1.1, 0.9, Co, dtype=jnp.float32),
        'bn2_beta': jnp.linspace(0.1, -0.1, Co, dtype=jnp.float32),
        'bn2_mean': jnp.linspace(0.05, -0.05, Co, dtype=jnp.float32),
        'bn2_var': jnp.linspace(1.2, 0.8, Co, dtype=jnp.float32),
    }
    return params


def _ref_stage(x_nhwc, dw, pw, scale, shift, *, k, stride, padding):
    C = x_nhwc.shape[-1]
    x = jnp.maximum(x_nhwc, 0.0)
    dn = ('NHWC', 'HWIO', 'NHWC')
    y = lax.conv_general_dilated(
        x, dw.reshape(k, k, 1, C), (stride, stride),
        ((padding, padding), (padding, padding)),
        dimension_numbers=dn, feature_group_count=C)
    y = lax.conv_general_dilated(
        y, pw.reshape(1, 1, pw.shape[0], pw.shape[1]), (1, 1),
        ((0, 0), (0, 0)), dimension_numbers=dn)
    return y * scale + shift


def sep_conv_reference(x_nchw, params, cfg):
    k, stride, padding = cfg['kernel_size'], cfg['stride'], cfg['padding']
    x = jnp.transpose(x_nchw, (0, 2, 3, 1))
    s1, b1 = _fold_bn(params['bn1_gamma'], params['bn1_beta'],
                      params['bn1_mean'], params['bn1_var'])
    s2, b2 = _fold_bn(params['bn2_gamma'], params['bn2_beta'],
                      params['bn2_mean'], params['bn2_var'])
    y = _ref_stage(x, params['dw1'], params['pw1'], s1, b1,
                   k=k, stride=stride, padding=padding)
    y = _ref_stage(y, params['dw2'], params['pw2'], s2, b2,
                   k=k, stride=1, padding=padding)
    return jnp.transpose(y, (0, 3, 1, 2))


if __name__ == "__main__":
    cfg = dict(inplane=8, outplane=16, kernel_size=3, stride=1, padding=1,
               affine=True)
    N, H, W = 2, 16, 16

    key = jax.random.PRNGKey(0)
    kx, kp = jax.random.split(key)
    x = jax.random.normal(kx, (N, cfg['inplane'], H, W), jnp.float32)
    params = make_params(kp, cfg)

    out = sep_conv_forward(x, params, cfg)
    out = jax.block_until_ready(out)

    ref = sep_conv_reference(x, params, cfg)
    assert out.shape == (N, cfg['outplane'], H, W), out.shape
    assert jnp.allclose(out, ref, atol=1e-4, rtol=1e-4), \
        float(jnp.max(jnp.abs(out - ref)))

    print("KERNEL_OK")
</pallas_src>

<mosaic_0001>
module attributes {stable_mosaic.version = 11 : i64} {
  func.func @_fused_sepconv_kernel(%arg0: i32, %arg1: memref<2x16x16x8xf32, #tpu.memory_space<vmem>>, %arg2: memref<9x8xf32, #tpu.memory_space<vmem>>, %arg3: memref<8x8xf32, #tpu.memory_space<vmem>>, %arg4: memref<1x8xf32, #tpu.memory_space<vmem>>, %arg5: memref<9x8xf32, #tpu.memory_space<vmem>>, %arg6: memref<8x16xf32, #tpu.memory_space<vmem>>, %arg7: memref<1x16xf32, #tpu.memory_space<vmem>>, %arg8: memref<2x16x16x16xf32, #tpu.memory_space<vmem>>, %arg9: memref<2x18x25x8xf32, #tpu.memory_space<vmem>>, %arg10: memref<2x18x25x8xf32, #tpu.memory_space<vmem>>) attributes {dimension_semantics = [#tpu.dimension_semantics<parallel>], iteration_bounds = array<i64: 1>, scalar_prefetch = 0 : i64, scratch_operands = 2 : i64, tpu.core_type = #tpu.core_type<tc>, window_params = [{transform_indices = @transform_0, window_bounds = array<i64: 2, 16, 16, 8>}, {pipeline_mode = #tpu.pipeline_mode<synchronous>, transform_indices = @transform_1, window_bounds = array<i64: 9, 8>}, {pipeline_mode = #tpu.pipeline_mode<synchronous>, transform_indices = @transform_2, window_bounds = array<i64: 8, 8>}, {pipeline_mode = #tpu.pipeline_mode<synchronous>, transform_indices = @transform_3, window_bounds = array<i64: 1, 8>}, {pipeline_mode = #tpu.pipeline_mode<synchronous>, transform_indices = @transform_4, window_bounds = array<i64: 9, 8>}, {pipeline_mode = #tpu.pipeline_mode<synchronous>, transform_indices = @transform_5, window_bounds = array<i64: 8, 16>}, {pipeline_mode = #tpu.pipeline_mode<synchronous>, transform_indices = @transform_6, window_bounds = array<i64: 1, 16>}, {transform_indices = @transform_7, window_bounds = array<i64: 2, 16, 16, 16>}]} {
    %cst = arith.constant 0.000000e+00 : f32
    %0 = vector.broadcast %cst : f32 to vector<2x18x25x8xf32>
    %c0 = arith.constant 0 : index
    %c0_0 = arith.constant 0 : index
    %c0_1 = arith.constant 0 : index
    %c0_2 = arith.constant 0 : index
    %1 = vector.load %arg9[%c0, %c0_0, %c0_1, %c0_2] : memref<2x18x25x8xf32, #tpu.memory_space<vmem>>, vector<2x18x25x8xf32>
    tpu.vector_store %arg9[%c0, %c0_0, %c0_1, %c0_2], %0 {strides = array<i32>} : memref<2x18x25x8xf32, #tpu.memory_space<vmem>>, vector<2x18x25x8xf32>,
    %c0_3 = arith.constant 0 : index
    %c0_4 = arith.constant 0 : index
    %c0_5 = arith.constant 0 : index
    %c0_6 = arith.constant 0 : index
    %2 = vector.load %arg1[%c0_3, %c0_4, %c0_5, %c0_6] : memref<2x16x16x8xf32, #tpu.memory_space<vmem>>, vector<2x16x16x8xf32>
    %cst_7 = arith.constant 0.000000e+00 : f32
    %3 = vector.broadcast %cst_7 : f32 to vector<2x16x16x8xf32>
    %4 = arith.maximumf %2, %3 : vector<2x16x16x8xf32>
    %c0_8 = arith.constant 0 : index
    %c1 = arith.constant 1 : index
    %c8 = arith.constant 8 : index
    %c0_9 = arith.constant 0 : index
    %5 = vector.load %arg9[%c0_8, %c1, %c8, %c0_9] : memref<2x18x25x8xf32, #tpu.memory_space<vmem>>, vector<2x16x16x8xf32>
    tpu.vector_store %arg9[%c0_8, %c1, %c8, %c0_9], %4 {strides = array<i32>} : memref<2x18x25x8xf32, #tpu.memory_space<vmem>>, vector<2x16x16x8xf32>,
    %c0_10 = arith.constant 0 : index
    %c0_11 = arith.constant 0 : index
    %6 = vector.load %arg2[%c0_10, %c0_11] : memref<9x8xf32, #tpu.memory_space<vmem>>, vector<9x8xf32>
    %cst_12 = arith.constant 0.000000e+00 : f32
    %7 = vector.broadcast %cst_12 : f32 to vector<2x16x16x8xf32>
    %c0_13 = arith.constant 0 : index
    %c0_14 = arith.constant 0 : index
    %c7 = arith.constant 7 : index
    %c0_15 = arith.constant 0 : index
    %8 = vector.load %arg9[%c0_13, %c0_14, %c7, %c0_15] : memref<2x18x25x8xf32, #tpu.memory_space<vmem>>, vector<2x16x16x8xf32>
    %9 = vector.extract_strided_slice %6 {offsets = [0, 0], sizes = [1, 8], strides = [1, 1]} : vector<9x8xf32> to vector<1x8xf32>
    %10 = vector.shape_cast %9 : vector<1x8xf32> to vector<8xf32>
    %11 = vector.shape_cast %10 : vector<8xf32> to vector<1x1x1x8xf32>
    %12 = vector.broadcast %11 : vector<1x1x1x8xf32> to vector<2x16x16x8xf32>
    %13 = arith.mulf %8, %12 : vector<2x16x16x8xf32>
    %14 = arith.addf %7, %13 : vector<2x16x16x8xf32>
    %c0_16 = arith.constant 0 : index
    %c0_17 = arith.constant 0 : index
    %c8_18 = arith.constant 8 : index
    %c0_19 = arith.constant 0 : index
    %15 = vector.load %arg9[%c0_16, %c0_17, %c8_18, %c0_19] : memref<2x18x25x8xf32, #tpu.memory_space<vmem>>, vector<2x16x16x8xf32>
    %16 = vector.extract_strided_slice %6 {offsets = [1, 0], sizes = [1, 8], strides = [1, 1]} : vector<9x8xf32> to vector<1x8xf32>
    %17 = vector.shape_cast %16 : vector<1x8xf32> to vector<8xf32>
    %18 = vector.shape_cast %17 : vector<8xf32> to vector<1x1x1x8xf32>
    %19 = vector.broadcast %18 : vector<1x1x1x8xf32> to vector<2x16x16x8xf32>
    %20 = arith.mulf %15, %19 : vector<2x16x16x8xf32>
    %21 = arith.addf %14, %20 : vector<2x16x16x8xf32>
    %c0_20 = arith.constant 0 : index
    %c0_21 = arith.constant 0 : index
    %c9 = arith.constant 9 : index
    %c0_22 = arith.constant 0 : index
    %22 = vector.load %arg9[%c0_20, %c0_21, %c9, %c0_22] : memref<2x18x25x8xf32, #tpu.memory_space<vmem>>, vector<2x16x16x8xf32>
    %23 = vector.extract_strided_slice %6 {offsets = [2, 0], sizes = [1, 8], strides = [1, 1]} : vector<9x8xf32> to vector<1x8xf32>
    %24 = vector.shape_cast %23 : vector<1x8xf32> to vector<8xf32>
    %25 = vector.shape_cast %24 : vector<8xf32> to vector<1x1x1x8xf32>
    %26 = vector.broadcast %25 : vector<1x1x1x8xf32> to vector<2x16x16x8xf32>
    %27 = arith.mulf %22, %26 : vector<2x16x16x8xf32>
    %28 = arith.addf %21, %27 : vector<2x16x16x8xf32>
    %c0_23 = arith.constant 0 : index
    %c1_24 = arith.constant 1 : index
    %c7_25 = arith.constant 7 : index
    %c0_26 = arith.constant 0 : index
    %29 = vector.load %arg9[%c0_23, %c1_24, %c7_25, %c0_26] : memref<2x18x25x8xf32, #tpu.memory_space<vmem>>, vector<2x16x16x8xf32>
    %30 = vector.extract_strided_slice %6 {offsets = [3, 0], sizes = [1, 8], strides = [1, 1]} : vector<9x8xf32> to vector<1x8xf32>
    %31 = vector.shape_cast %30 : vector<1x8xf32> to vector<8xf32>
    %32 = vector.shape_cast %31 : vector<8xf32> to vector<1x1x1x8xf32>
    %33 = vector.broadcast %32 : vector<1x1x1x8xf32> to vector<2x16x16x8xf32>
    %34 = arith.mulf %29, %33 : vector<2x16x16x8xf32>
    %35 = arith.addf %28, %34 : vector<2x16x16x8xf32>
    %c0_27 = arith.constant 0 : index
    %c1_28 = arith.constant 1 : index
    %c8_29 = arith.constant 8 : index
    %c0_30 = arith.constant 0 : index
    %36 = vector.load %arg9[%c0_27, %c1_28, %c8_29, %c0_30] : memref<2x18x25x8xf32, #tpu.memory_space<vmem>>, vector<2x16x16x8xf32>
    %37 = vector.extract_strided_slice %6 {offsets = [4, 0], sizes = [1, 8], strides = [1, 1]} : vector<9x8xf32> to vector<1x8xf32>
    %38 = vector.shape_cast %37 : vector<1x8xf32> to vector<8xf32>
    %39 = vector.shape_cast %38 : vector<8xf32> to vector<1x1x1x8xf32>
    %40 = vector.broadcast %39 : vector<1x1x1x8xf32> to vector<2x16x16x8xf32>
    %41 = arith.mulf %36, %40 : vector<2x16x16x8xf32>
    %42 = arith.addf %35, %41 : vector<2x16x16x8xf32>
    %c0_31 = arith.constant 0 : index
    %c1_32 = arith.constant 1 : index
    %c9_33 = arith.constant 9 : index
    %c0_34 = arith.constant 0 : index
    %43 = vector.load %arg9[%c0_31, %c1_32, %c9_33, %c0_34] : memref<2x18x25x8xf32, #tpu.memory_space<vmem>>, vector<2x16x16x8xf32>
    %44 = vector.extract_strided_slice %6 {offsets = [5, 0], sizes = [1, 8], strides = [1, 1]} : vector<9x8xf32> to vector<1x8xf32>
    %45 = vector.shape_cast %44 : vector<1x8xf32> to vector<8xf32>
    %46 = vector.shape_cast %45 : vector<8xf32> to vector<1x1x1x8xf32>
    %47 = vector.broadcast %46 : vector<1x1x1x8xf32> to vector<2x16x16x8xf32>
    %48 = arith.mulf %43, %47 : vector<2x16x16x8xf32>
    %49 = arith.addf %42, %48 : vector<2x16x16x8xf32>
    %c0_35 = arith.constant 0 : index
    %c2 = arith.constant 2 : index
    %c7_36 = arith.constant 7 : index
    %c0_37 = arith.constant 0 : index
    %50 = vector.load %arg9[%c0_35, %c2, %c7_36, %c0_37] : memref<2x18x25x8xf32, #tpu.memory_space<vmem>>, vector<2x16x16x8xf32>
    %51 = vector.extract_strided_slice %6 {offsets = [6, 0], sizes = [1, 8], strides = [1, 1]} : vector<9x8xf32> to vector<1x8xf32>
    %52 = vector.shape_cast %51 : vector<1x8xf32> to vector<8xf32>
    %53 = vector.shape_cast %52 : vector<8xf32> to vector<1x1x1x8xf32>
    %54 = vector.broadcast %53 : vector<1x1x1x8xf32> to vector<2x16x16x8xf32>
    %55 = arith.mulf %50, %54 : vector<2x16x16x8xf32>
    %56 = arith.addf %49, %55 : vector<2x16x16x8xf32>
    %c0_38 = arith.constant 0 : index
    %c2_39 = arith.constant 2 : index
    %c8_40 = arith.constant 8 : index
    %c0_41 = arith.constant 0 : index
    %57 = vector.load %arg9[%c0_38, %c2_39, %c8_40, %c0_41] : memref<2x18x25x8xf32, #tpu.memory_space<vmem>>, vector<2x16x16x8xf32>
    %58 = vector.extract_strided_slice %6 {offsets = [7, 0], sizes = [1, 8], strides = [1, 1]} : vector<9x8xf32> to vector<1x8xf32>
    %59 = vector.shape_cast %58 : vector<1x8xf32> to vector<8xf32>
    %60 = vector.shape_cast %59 : vector<8xf32> to vector<1x1x1x8xf32>
    %61 = vector.broadcast %60 : vector<1x1x1x8xf32> to vector<2x16x16x8xf32>
    %62 = arith.mulf %57, %61 : vector<2x16x16x8xf32>
    %63 = arith.addf %56, %62 : vector<2x16x16x8xf32>
    %c0_42 = arith.constant 0 : index
    %c2_43 = arith.constant 2 : index
    %c9_44 = arith.constant 9 : index
    %c0_45 = arith.constant 0 : index
    %64 = vector.load %arg9[%c0_42, %c2_43, %c9_44, %c0_45] : memref<2x18x25x8xf32, #tpu.memory_space<vmem>>, vector<2x16x16x8xf32>
    %65 = vector.extract_strided_slice %6 {offsets = [8, 0], sizes = [1, 8], strides = [1, 1]} : vector<9x8xf32> to vector<1x8xf32>
    %66 = vector.shape_cast %65 : vector<1x8xf32> to vector<8xf32>
    %67 = vector.shape_cast %66 : vector<8xf32> to vector<1x1x1x8xf32>
    %68 = vector.broadcast %67 : vector<1x1x1x8xf32> to vector<2x16x16x8xf32>
    %69 = arith.mulf %64, %68 : vector<2x16x16x8xf32>
    %70 = arith.addf %63, %69 : vector<2x16x16x8xf32>
    %71 = vector.shape_cast %70 : vector<2x16x16x8xf32> to vector<512x8xf32>
    %c0_46 = arith.constant 0 : index
    %c0_47 = arith.constant 0 : index
    %72 = vector.load %arg3[%c0_46, %c0_47] : memref<8x8xf32, #tpu.memory_space<vmem>>, vector<8x8xf32>
    %cst_48 = arith.constant dense<0.000000e+00> : vector<512x8xf32>
    %73 = tpu.matmul %71, %72, %cst_48 {dimension_numbers = #tpu.dot_dimension_numbers<[1], [0], [0], [1], [0, 0, 1, 1], [], []>} : vector<512x8xf32>, vector<8x8xf32>, vector<512x8xf32> -> vector<512x8xf32>
    %c0_49 = arith.constant 0 : index
    %c0_50 = arith.constant 0 : index
    %74 = vector.load %arg4[%c0_49, %c0_50] : memref<1x8xf32, #tpu.memory_space<vmem>>, vector<1x8xf32>
    %75 = vector.broadcast %74 : vector<1x8xf32> to vector<512x8xf32>
    %76 = arith.addf %73, %75 : vector<512x8xf32>
    %cst_51 = arith.constant 0.000000e+00 : f32
    %77 = vector.broadcast %cst_51 : f32 to vector<2x18x25x8xf32>
    %c0_52 = arith.constant 0 : index
    %c0_53 = arith.constant 0 : index
    %c0_54 = arith.constant 0 : index
    %c0_55 = arith.constant 0 : index
    %78 = vector.load %arg10[%c0_52, %c0_53, %c0_54, %c0_55] : memref<2x18x25x8xf32, #tpu.memory_space<vmem>>, vector<2x18x25x8xf32>
    tpu.vector_store %arg10[%c0_52, %c0_53, %c0_54, %c0_55], %77 {strides = array<i32>} : memref<2x18x25x8xf32, #tpu.memory_space<vmem>>, vector<2x18x25x8xf32>,
    %cst_56 = arith.constant 0.000000e+00 : f32
    %79 = vector.broadcast %cst_56 : f32 to vector<512x8xf32>
    %80 = arith.maximumf %76, %79 : vector<512x8xf32>
    %81 = vector.shape_cast %80 : vector<512x8xf32> to vector<2x16x16x8xf32>
    %c0_57 = arith.constant 0 : index
    %c1_58 = arith.constant 1 : index
    %c8_59 = arith.constant 8 : index
    %c0_60 = arith.constant 0 : index
    %82 = vector.load %arg10[%c0_57, %c1_58, %c8_59, %c0_60] : memref<2x18x25x8xf32, #tpu.memory_space<vmem>>, vector<2x16x16x8xf32>
    tpu.vector_store %arg10[%c0_57, %c1_58, %c8_59, %c0_60], %81 {strides = array<i32>} : memref<2x18x25x8xf32, #tpu.memory_space<vmem>>, vector<2x16x16x8xf32>,
    %c0_61 = arith.constant 0 : index
    %c0_62 = arith.constant 0 : index
    %83 = vector.load %arg5[%c0_61, %c0_62] : memref<9x8xf32, #tpu.memory_space<vmem>>, vector<9x8xf32>
    %cst_63 = arith.constant 0.000000e+00 : f32
    %84 = vector.broadcast %cst_63 : f32 to vector<2x16x16x8xf32>
    %c0_64 = arith.constant 0 : index
    %c0_65 = arith.constant 0 : index
    %c7_66 = arith.constant 7 : index
    %c0_67 = arith.constant 0 : index
    %85 = vector.load %arg10[%c0_64, %c0_65, %c7_66, %c0_67] : memref<2x18x25x8xf32, #tpu.memory_space<vmem>>, vector<2x16x16x8xf32>
    %86 = vector.extract_strided_slice %83 {offsets = [0, 0], sizes = [1, 8], strides = [1, 1]} : vector<9x8xf32> to vector<1x8xf32>
    %87 = vector.shape_cast %86 : vector<1x8xf32> to vector<8xf32>
    %88 = vector.shape_cast %87 : vector<8xf32> to vector<1x1x1x8xf32>
    %89 = vector.broadcast %88 : vector<1x1x1x8xf32> to vector<2x16x16x8xf32>
    %90 = arith.mulf %85, %89 : vector<2x16x16x8xf32>
    %91 = arith.addf %84, %90 : vector<2x16x16x8xf32>
    %c0_68 = arith.constant 0 : index
    %c0_69 = arith.constant 0 : index
    %c8_70 = arith.constant 8 : index
    %c0_71 = arith.constant 0 : index
    %92 = vector.load %arg10[%c0_68, %c0_69, %c8_70, %c0_71] : memref<2x18x25x8xf32, #tpu.memory_space<vmem>>, vector<2x16x16x8xf32>
    %93 = vector.extract_strided_slice %83 {offsets = [1, 0], sizes = [1, 8], strides = [1, 1]} : vector<9x8xf32> to vector<1x8xf32>
    %94 = vector.shape_cast %93 : vector<1x8xf32> to vector<8xf32>
    %95 = vector.shape_cast %94 : vector<8xf32> to vector<1x1x1x8xf32>
    %96 = vector.broadcast %95 : vector<1x1x1x8xf32> to vector<2x16x16x8xf32>
    %97 = arith.mulf %92, %96 : vector<2x16x16x8xf32>
    %98 = arith.addf %91, %97 : vector<2x16x16x8xf32>
    %c0_72 = arith.constant 0 : index
    %c0_73 = arith.constant 0 : index
    %c9_74 = arith.constant 9 : index
    %c0_75 = arith.constant 0 : index
    %99 = vector.load %arg10[%c0_72, %c0_73, %c9_74, %c0_75] : memref<2x18x25x8xf32, #tpu.memory_space<vmem>>, vector<2x16x16x8xf32>
    %100 = vector.extract_strided_slice %83 {offsets = [2, 0], sizes = [1, 8], strides = [1, 1]} : vector<9x8xf32> to vector<1x8xf32>
    %101 = vector.shape_cast %100 : vector<1x8xf32> to vector<8xf32>
    %102 = vector.shape_cast %101 : vector<8xf32> to vector<1x1x1x8xf32>
    %103 = vector.broadcast %102 : vector<1x1x1x8xf32> to vector<2x16x16x8xf32>
    %104 = arith.mulf %99, %103 : vector<2x16x16x8xf32>
    %105 = arith.addf %98, %104 : vector<2x16x16x8xf32>
    %c0_76 = arith.constant 0 : index
    %c1_77 = arith.constant 1 : index
    %c7_78 = arith.constant 7 : index
    %c0_79 = arith.constant 0 : index
    %106 = vector.load %arg10[%c0_76, %c1_77, %c7_78, %c0_79] : memref<2x18x25x8xf32, #tpu.memory_space<vmem>>, vector<2x16x16x8xf32>
    %107 = vector.extract_strided_slice %83 {offsets = [3, 0], sizes = [1, 8], strides = [1, 1]} : vector<9x8xf32> to vector<1x8xf32>
    %108 = vector.shape_cast %107 : vector<1x8xf32> to vector<8xf32>
    %109 = vector.shape_cast %108 : vector<8xf32> to vector<1x1x1x8xf32>
    %110 = vector.broadcast %109 : vector<1x1x1x8xf32> to vector<2x16x16x8xf32>
    %111 = arith.mulf %106, %110 : vector<2x16x16x8xf32>
    %112 = arith.addf %105, %111 : vector<2x16x16x8xf32>
    %c0_80 = arith.constant 0 : index
    %c1_81 = arith.constant 1 : index
    %c8_82 = arith.constant 8 : index
    %c0_83 = arith.constant 0 : index
    %113 = vector.load %arg10[%c0_80, %c1_81, %c8_82, %c0_83] : memref<2x18x25x8xf32, #tpu.memory_space<vmem>>, vector<2x16x16x8xf32>
    %114 = vector.extract_strided_slice %83 {offsets = [4, 0], sizes = [1, 8], strides = [1, 1]} : vector<9x8xf32> to vector<1x8xf32>
    %115 = vector.shape_cast %114 : vector<1x8xf32> to vector<8xf32>
    %116 = vector.shape_cast %115 : vector<8xf32> to vector<1x1x1x8xf32>
    %117 = vector.broadcast %116 : vector<1x1x1x8xf32> to vector<2x16x16x8xf32>
    %118 = arith.mulf %113, %117 : vector<2x16x16x8xf32>
    %119 = arith.addf %112, %118 : vector<2x16x16x8xf32>
    %c0_84 = arith.constant 0 : index
    %c1_85 = arith.constant 1 : index
    %c9_86 = arith.constant 9 : index
    %c0_87 = arith.constant 0 : index
    %120 = vector.load %arg10[%c0_84, %c1_85, %c9_86, %c0_87] : memref<2x18x25x8xf32, #tpu.memory_space<vmem>>, vector<2x16x16x8xf32>
    %121 = vector.extract_strided_slice %83 {offsets = [5, 0], sizes = [1, 8], strides = [1, 1]} : vector<9x8xf32> to vector<1x8xf32>
    %122 = vector.shape_cast %121 : vector<1x8xf32> to vector<8xf32>
    %123 = vector.shape_cast %122 : vector<8xf32> to vector<1x1x1x8xf32>
    %124 = vector.broadcast %123 : vector<1x1x1x8xf32> to vector<2x16x16x8xf32>
    %125 = arith.mulf %120, %124 : vector<2x16x16x8xf32>
    %126 = arith.addf %119, %125 : vector<2x16x16x8xf32>
    %c0_88 = arith.constant 0 : index
    %c2_89 = arith.constant 2 : index
    %c7_90 = arith.constant 7 : index
    %c0_91 = arith.constant 0 : index
    %127 = vector.load %arg10[%c0_88, %c2_89, %c7_90, %c0_91] : memref<2x18x25x8xf32, #tpu.memory_space<vmem>>, vector<2x16x16x8xf32>
    %128 = vector.extract_strided_slice %83 {offsets = [6, 0], sizes = [1, 8], strides = [1, 1]} : vector<9x8xf32> to vector<1x8xf32>
    %129 = vector.shape_cast %128 : vector<1x8xf32> to vector<8xf32>
    %130 = vector.shape_cast %129 : vector<8xf32> to vector<1x1x1x8xf32>
    %131 = vector.broadcast %130 : vector<1x1x1x8xf32> to vector<2x16x16x8xf32>
    %132 = arith.mulf %127, %131 : vector<2x16x16x8xf32>
    %133 = arith.addf %126, %132 : vector<2x16x16x8xf32>
    %c0_92 = arith.constant 0 : index
    %c2_93 = arith.constant 2 : index
    %c8_94 = arith.constant 8 : index
    %c0_95 = arith.constant 0 : index
    %134 = vector.load %arg10[%c0_92, %c2_93, %c8_94, %c0_95] : memref<2x18x25x8xf32, #tpu.memory_space<vmem>>, vector<2x16x16x8xf32>
    %135 = vector.extract_strided_slice %83 {offsets = [7, 0], sizes = [1, 8], strides = [1, 1]} : vector<9x8xf32> to vector<1x8xf32>
    %136 = vector.shape_cast %135 : vector<1x8xf32> to vector<8xf32>
    %137 = vector.shape_cast %136 : vector<8xf32> to vector<1x1x1x8xf32>
    %138 = vector.broadcast %137 : vector<1x1x1x8xf32> to vector<2x16x16x8xf32>
    %139 = arith.mulf %134, %138 : vector<2x16x16x8xf32>
    %140 = arith.addf %133, %139 : vector<2x16x16x8xf32>
    %c0_96 = arith.constant 0 : index
    %c2_97 = arith.constant 2 : index
    %c9_98 = arith.constant 9 : index
    %c0_99 = arith.constant 0 : index
    %141 = vector.load %arg10[%c0_96, %c2_97, %c9_98, %c0_99] : memref<2x18x25x8xf32, #tpu.memory_space<vmem>>, vector<2x16x16x8xf32>
    %142 = vector.extract_strided_slice %83 {offsets = [8, 0], sizes = [1, 8], strides = [1, 1]} : vector<9x8xf32> to vector<1x8xf32>
    %143 = vector.shape_cast %142 : vector<1x8xf32> to vector<8xf32>
    %144 = vector.shape_cast %143 : vector<8xf32> to vector<1x1x1x8xf32>
    %145 = vector.broadcast %144 : vector<1x1x1x8xf32> to vector<2x16x16x8xf32>
    %146 = arith.mulf %141, %145 : vector<2x16x16x8xf32>
    %147 = arith.addf %140, %146 : vector<2x16x16x8xf32>
    %148 = vector.shape_cast %147 : vector<2x16x16x8xf32> to vector<512x8xf32>
    %c0_100 = arith.constant 0 : index
    %c0_101 = arith.constant 0 : index
    %149 = vector.load %arg6[%c0_100, %c0_101] : memref<8x16xf32, #tpu.memory_space<vmem>>, vector<8x16xf32>
    %cst_102 = arith.constant dense<0.000000e+00> : vector<512x16xf32>
    %150 = tpu.matmul %148, %149, %cst_102 {dimension_numbers = #tpu.dot_dimension_numbers<[1], [0], [0], [1], [0, 0, 1, 1], [], []>} : vector<512x8xf32>, vector<8x16xf32>, vector<512x16xf32> -> vector<512x16xf32>
    %c0_103 = arith.constant 0 : index
    %c0_104 = arith.constant 0 : index
    %151 = vector.load %arg7[%c0_103, %c0_104] : memref<1x16xf32, #tpu.memory_space<vmem>>, vector<1x16xf32>
    %152 = vector.broadcast %151 : vector<1x16xf32> to vector<512x16xf32>
    %153 = arith.addf %150, %152 : vector<512x16xf32>
    %154 = vector.shape_cast %153 : vector<512x16xf32> to vector<2x16x16x16xf32>
    %c0_105 = arith.constant 0 : index
    %c0_106 = arith.constant 0 : index
    %c0_107 = arith.constant 0 : index
    %c0_108 = arith.constant 0 : index
    %155 = vector.load %arg8[%c0_105, %c0_106, %c0_107, %c0_108] : memref<2x16x16x16xf32, #tpu.memory_space<vmem>>, vector<2x16x16x16xf32>
    tpu.vector_store %arg8[%c0_105, %c0_106, %c0_107, %c0_108], %154 {strides = array<i32>} : memref<2x16x16x16xf32, #tpu.memory_space<vmem>>, vector<2x16x16x16xf32>,
    return
  }
  func.func @transform_0(%arg0: i32) -> (i32, i32, i32, i32) {
    %c0_i32 = arith.constant 0 : i32
    %c0_i32_0 = arith.constant 0 : i32
    %c0_i32_1 = arith.constant 0 : i32
    %c0_i32_2 = arith.constant 0 : i32
    return %arg0, %c0_i32, %c0_i32_0, %c0_i32_1 : i32, i32, i32, i32
  }
  func.func @transform_1(%arg0: i32) -> (i32, i32) {
    %c0_i32 = arith.constant 0 : i32
    %c0_i32_0 = arith.constant 0 : i32
    %c0_i32_1 = arith.constant 0 : i32
    return %c0_i32, %c0_i32_0 : i32, i32
  }
  func.func @transform_2(%arg0: i32) -> (i32, i32) {
    %c0_i32 = arith.constant 0 : i32
    %c0_i32_0 = arith.constant 0 : i32
    %c0_i32_1 = arith.constant 0 : i32
    return %c0_i32, %c0_i32_0 : i32, i32
  }
  func.func @transform_3(%arg0: i32) -> (i32, i32) {
    %c0_i32 = arith.constant 0 : i32
    %c0_i32_0 = arith.constant 0 : i32
    %c0_i32_1 = arith.constant 0 : i32
    return %c0_i32, %c0_i32_0 : i32, i32
  }
  func.func @transform_4(%arg0: i32) -> (i32, i32) {
    %c0_i32 = arith.constant 0 : i32
    %c0_i32_0 = arith.constant 0 : i32
    %c0_i32_1 = arith.constant 0 : i32
    return %c0_i32, %c0_i32_0 : i32, i32
  }
  func.func @transform_5(%arg0: i32) -> (i32, i32) {
    %c0_i32 = arith.constant 0 : i32
    %c0_i32_0 = arith.constant 0 : i32
    %c0_i32_1 = arith.constant 0 : i32
    return %c0_i32, %c0_i32_0 : i32, i32
  }
  func.func @transform_6(%arg0: i32) -> (i32, i32) {
    %c0_i32 = arith.constant 0 : i32
    %c0_i32_0 = arith.constant 0 : i32
    %c0_i32_1 = arith.constant 0 : i32
    return %c0_i32, %c0_i32_0 : i32, i32
  }
  func.func @transform_7(%arg0: i32) -> (i32, i32, i32, i32) {
    %c0_i32 = arith.constant 0 : i32
    %c0_i32_0 = arith.constant 0 : i32
    %c0_i32_1 = arith.constant 0 : i32
    %c0_i32_2 = arith.constant 0 : i32
    return %arg0, %c0_i32, %c0_i32_0, %c0_i32_1 : i32, i32, i32, i32
  }
}

</mosaic_0001>

<bundles_post_ra>
// kernel: tpu_custom_call.1
= control target key start
LH: loop header
LB: loop body
LE: loop exit
PB: predicated region body
PF: predicated region fallthrough
CT: control target
= control target key end

     0   :  { %vm27_vm0 = vcmask 64512   ;;  %v5191_v1 = vmov 0.0   ;;  %s9731_s0 = inlined_call_operand.vmem [shape: f32[2,16,16,8], index: 0, kind: input, shape index: {}]   ;;  %s9732_s1 = inlined_call_operand.vmem [shape: f32[9,8], index: 1, kind: input, shape index: {}]   ;;  %s9733_s2 = inlined_call_operand.vmem [shape: f32[8,8], index: 2, kind: input, shape index: {}]   ;;  %s9734_s3 = inlined_call_operand.vmem [shape: f32[1,8], index: 3, kind: input, shape index: {}]   ;;  %s9735_s4 = inlined_call_operand.vmem [shape: f32[9,8], index: 4, kind: input, shape index: {}]   ;;  %s9736_s5 = inlined_call_operand.vmem [shape: f32[8,16], index: 5, kind: input, shape index: {}]   ;;  %s9737_s6 = inlined_call_operand.vmem [shape: f32[1,16], index: 6, kind: input, shape index: {}]   ;;  %s9738_s7 = inlined_call_operand.hbm [shape: f32[2,16,16,16], index: 7, kind: output, shape index: {}]  }
   0x1   :  { %v2106_v0 = vld [vmem:[%s9733_s2] sm:$0xff]  ;;  %28 = vst.msk [vmem:[#allocation2] sm:$0xff] %vm27_vm0, %v5191_v1  ;;  %v174_v4 = vld [vmem:[%s9731_s0 + $0x8] sm:$0xff]  ;;  %v175_v5 = vld [vmem:[%s9731_s0 + $0x10] sm:$0xff] }
   0x2   :  { %2318 = vmatpush.msra.mxu0 %v2106_v0  ;;  %5142 = vmatpush.msra.mxu2 %v2106_v0  ;;  %v173_v2 = vld [vmem:[%s9731_s0] sm:$0xff]  ;;  %29 = vst.msk [vmem:[#allocation2 + $0x8] sm:$0xff] %vm27_vm0, %v5191_v1  ;;  %v176_v6 = vld [vmem:[%s9731_s0 + $0x18] sm:$0xff] }
   0x3   :  { %v366_v3 = vld [vmem:[%s9732_s1] sm:$0xff]  ;;  %30 = vst.msk [vmem:[#allocation2 + $0x10] sm:$0xff] %vm27_vm0, %v5191_v1  ;;  %v237_v7 = vmax.f32 %v173_v2, 0.0 }
   0x4   :  { %33 = vst.msk [vmem:[#allocation2 + $0x20] sm:$0xff] %vm27_vm0, %v5191_v1  ;;  %v5263_v8 = vperm.slane %v366_v3, 0  ;;  %v5267_v9 = vperm.slane %v366_v3, 1 }
   0x5   :  { %34 = vst.msk [vmem:[#allocation2 + $0x28] sm:$0xff] %vm27_vm0, %v5191_v1 }
   0x6   :  { %35 = vst.msk [vmem:[#allocation2 + $0x30] sm:$0xff] %vm27_vm0, %v5191_v1 }
   0x7   :  { %12 = vsyncpa [#allocation5], 0  ;;  %37 = vst.msk [vmem:[#allocation2 + $0x40] sm:$0xff] %vm27_vm0, %v5191_v1  ;;  %v238_v10 = vmax.f32 %v174_v4, 0.0  ;;  %v239_v11 = vmax.f32 %v175_v5, 0.0  ;;  %v5273_v12 = vperm.slane %v366_v3, 2 }
   0x8   :  { %38 = vst.msk [vmem:[#allocation2 + $0x48] sm:$0xff] %vm27_vm0, %v5191_v1  ;;  %v240_v13 = vmax.f32 %v176_v6, 0.0  ;;  %v5284_v21 = vperm.slane %v366_v3, 3  ;;  %v5286_v22 = vperm.slane %v366_v3, 4  ;;  %v5292_v24 = vperm.slane %v366_v3, 5  ;;  %v205_v46 = vld [vmem:[%s9731_s0 + $0x100] sm:$0xff] }
   0x9   :  { %39 = vst.msk [vmem:[#allocation2 + $0x50] sm:$0xff] %vm27_vm0, %v5191_v1  ;;  %v368_v14 = vld [vmem:[#allocation2 + $0x7] sm:$0xff]  ;;  %v5308_v30 = vperm.slane %v366_v3, 6  ;;  %v5318_v34 = vperm.slane %v366_v3, 7  ;;  %v207_v48 = vld [vmem:[%s9731_s0 + $0x110] sm:$0xff]  ;;  %v208_v51 = vld [vmem:[%s9731_s0 + $0x118] sm:$0xff] }
   0xa   :  { %v561_v15 = vld [vmem:[#allocation2 + $0x8] sm:$0xff]  ;;  %302 = vst.msk [vmem:[#allocation2 + $0x28] sm:$0xff] %vm27_vm0, %v237_v7  ;;  %v433_v16 = vmul.f32 %v5263_v8, %v368_v14  ;;  %v269_v52 = vmax.f32 %v205_v46, 0.0  ;;  %v271_v54 = vmax.f32 %v207_v48, 0.0  ;;  %v272_v57 = vmax.f32 %v208_v51, 0.0  ;;  %v562_v62 = vld [vmem:[#allocation2 + $0x10] sm:$0xff] }
   0xb   :  { %v626_v17 = vmul.f32 %v5267_v9, %v561_v15  ;;  %v754_v18 = vld [vmem:[#allocation2 + $0x9] sm:$0xff]  ;;  %303 = vst.msk [vmem:[#allocation2 + $0x30] sm:$0xff] %vm27_vm0, %v238_v10  ;;  %v5331_v38 = vld [vmem:[%s9732_s1 + $0x8] ss:$0 sm:$0xff]  ;;  %vm31_vm1 = vcmask 57344   ;;  %v627_v2 = vmul.f32 %v5267_v9, %v562_v62  ;;  %vm4931_vm2 = vcmask 130048  }
   0xc   :  { %304 = vst.msk [vmem:[#allocation2 + $0x48] sm:$0xff] %vm27_vm0, %v239_v11  ;;  %v819_v20 = vmul.f32 %v5273_v12, %v754_v18  ;;  %v206_v47 = vld [vmem:[%s9731_s0 + $0x108] sm:$0xff]  ;;  %s5002_s22 = sshll.u32 %s9738_s7, 4  ;;  %s5193_s23 = smov 128   ;;  %s5003_s22 = int_to_ptr.hbm [resolvable:$true] %s5002_s22 }
   0xd   :  { %v690_v19 = vadd.f32 %v626_v17, %v433_v16  ;;  %305 = vst.msk [vmem:[#allocation2 + $0x50] sm:$0xff] %vm27_vm0, %v240_v13  ;;  %v270_v53 = vmax.f32 %v206_v47, 0.0  ;;  %v369_v61 = vld [vmem:[#allocation2 + $0xf] sm:$0xff]  ;;  %s5194_s24 = smov 8  }
   0xe   :  { %41 = vst.msk [vmem:[#allocation2 + $0x60] sm:$0xff] %vm27_vm0, %v5191_v1  ;;  %v434_v0 = vmul.f32 %v5263_v8, %v369_v61 }
   0xf   :  { %42 = vst.msk [vmem:[#allocation2 + $0x68] sm:$0xff] %vm27_vm0, %v5191_v1  ;;  %v883_v23 = vadd.f32 %v819_v20, %v690_v19 }
  0x10   :  { %43 = vst.msk [vmem:[#allocation2 + $0x70] sm:$0xff] %vm27_vm0, %v5191_v1  ;;  %v691_v15 = vadd.f32 %v627_v2, %v434_v0 }
  0x11   :  { %v5296_v25 = vld [vmem:[#allocation2 + $0x27] sm:$0xff]  ;;  %45 = vst.msk [vmem:[#allocation2 + $0x80] sm:$0xff] %vm27_vm0, %v5191_v1 }
  0x12   :  { %v5298_v26 = vld [vmem:[#allocation2 + $0x28] sm:$0xff]  ;;  %v1012_v27 = vmul.f32 %v5284_v21, %v5296_v25  ;;  %46 = vst.msk [vmem:[#allocation2 + $0x88] sm:$0xff] %vm27_vm0, %v5191_v1  ;;  %v5791_v18 = vld [vmem:[#allocation2 + $0x30] sm:$0xff] }
  0x13   :  { %v1205_v28 = vmul.f32 %v5286_v22, %v5298_v26  ;;  %v5306_v29 = vld [vmem:[#allocation2 + $0x29] sm:$0xff]  ;;  %47 = vst.msk [vmem:[#allocation2 + $0x90] sm:$0xff] %vm27_vm0, %v5191_v1 }
  0x14   :  { %v5312_v31 = vld [vmem:[#allocation2 + $0x47] sm:$0xff]  ;;  %v1076_v32 = vadd.f32 %v1012_v27, %v883_v23  ;;  %v1398_v33 = vmul.f32 %v5292_v24, %v5306_v29  ;;  %49 = vst.msk [vmem:[#allocation2 + $0xa0] sm:$0xff] %vm27_vm0, %v5191_v1  ;;  %v5781_v11 = vld [vmem:[#allocation2 + $0x2f] sm:$0xff] }
  0x15   :  { %v5322_v35 = vld [vmem:[#allocation2 + $0x48] sm:$0xff]  ;;  %50 = vst.msk [vmem:[#allocation2 + $0xa8] sm:$0xff] %vm27_vm0, %v5191_v1  ;;  %v1592_v37 = vmul.f32 %v5308_v30, %v5312_v31  ;;  %v1013_v27 = vmul.f32 %v5284_v21, %v5781_v11  ;;  %v5824_v46 = vld [vmem:[#allocation2 + $0x50] sm:$0xff] }
  0x16   :  { %v1269_v36 = vadd.f32 %v1205_v28, %v1076_v32  ;;  %51 = vst.msk [vmem:[#allocation2 + $0xb0] sm:$0xff] %vm27_vm0, %v5191_v1  ;;  %v5335_v39 = vld [vmem:[#allocation2 + $0x49] sm:$0xff]  ;;  %v1785_v41 = vmul.f32 %v5318_v34, %v5322_v35 }
  0x17   :  { %53 = vst.msk [vmem:[#allocation2 + $0xc0] sm:$0xff] %vm27_vm0, %v5191_v1  ;;  %v1978_v43 = vmul.f32 %v5331_v38, %v5335_v39 }
  0x18   :  { %v1462_v40 = vadd.f32 %v1398_v33, %v1269_v36  ;;  %54 = vst.msk [vmem:[#allocation2 + $0xc8] sm:$0xff] %vm27_vm0, %v5191_v1 }
  0x19   :  { %55 = vst.msk [vmem:[#allocation2 + $0xd0] sm:$0xff] %vm27_vm0, %v5191_v1 }
  0x1a   :  { %v1656_v42 = vadd.f32 %v1592_v37, %v1462_v40  ;;  %57 = vst.msk [vmem:[#allocation2 + $0xe0] sm:$0xff] %vm27_vm0, %v5191_v1  ;;  %v1206_v40 = vmul.f32 %v5286_v22, %v5791_v18 }
  0x1b   :  { %58 = vst.msk [vmem:[#allocation2 + $0xe8] sm:$0xff] %vm27_vm0, %v5191_v1 }
  0x1c   :  { %v1849_v44 = vadd.f32 %v1785_v41, %v1656_v42  ;;  %59 = vst.msk [vmem:[#allocation2 + $0xf0] sm:$0xff] %vm27_vm0, %v5191_v1  ;;  %v5814_v41 = vld [vmem:[#allocation2 + $0x4f] sm:$0xff] }
  0x1d   :  { %61 = vst.msk [vmem:[#allocation2 + $0x100] sm:$0xff] %vm27_vm0, %v5191_v1 }
  0x1e   :  { %v2042_v45 = vadd.f32 %v1978_v43, %v1849_v44  ;;  %62 = vst.msk [vmem:[#allocation2 + $0x108] sm:$0xff] %vm27_vm0, %v5191_v1 }
  0x1f   :  { %63 = vst.msk [vmem:[#allocation2 + $0x110] sm:$0xff] %vm27_vm0, %v5191_v1 }
  0x20   :  { %5014 = vmatmul.msk.f32.vlgmr.msra.gmra.mxu0 %vm27_vm0, %v2042_v45  ;;  %65 = vst.msk [vmem:[#allocation2 + $0x120] sm:$0xff] %vm27_vm0, %v5191_v1 }
  0x21   :  { %66 = vst.msk [vmem:[#allocation2 + $0x128] sm:$0xff] %vm27_vm0, %v5191_v1 }
  0x22   :  { %67 = vst.msk [vmem:[#allocation2 + $0x130] sm:$0xff] %vm27_vm0, %v5191_v1 }
  0x23   :  { %69 = vst.msk [vmem:[#allocation2 + $0x140] sm:$0xff] %vm27_vm0, %v5191_v1 }
  0x24   :  { %70 = vst.msk [vmem:[#allocation2 + $0x148] sm:$0xff] %vm27_vm0, %v5191_v1 }
  0x25   :  { %71 = vst.msk [vmem:[#allocation2 + $0x150] sm:$0xff] %vm27_vm0, %v5191_v1 }
  0x26   :  { %73 = vst.msk [vmem:[#allocation2 + $0x160] sm:$0xff] %vm27_vm0, %v5191_v1 }
  0x27   :  { %74 = vst.msk [vmem:[#allocation2 + $0x168] sm:$0xff] %vm27_vm0, %v5191_v1 }
  0x28   :  { %75 = vst.msk [vmem:[#allocation2 + $0x170] sm:$0xff] %vm27_vm0, %v5191_v1 }
  0x29   :  { %77 = vst.msk [vmem:[#allocation2 + $0x180] sm:$0xff] %vm27_vm0, %v5191_v1 }
  0x2a   :  { %78 = vst.msk [vmem:[#allocation2 + $0x188] sm:$0xff] %vm27_vm0, %v5191_v1 }
  0x2b   :  { %79 = vst.msk [vmem:[#allocation2 + $0x190] sm:$0xff] %vm27_vm0, %v5191_v1 }
  0x2c   :  { %81 = vst.msk [vmem:[#allocation2 + $0x1a0] sm:$0xff] %vm27_vm0, %v5191_v1 }
  0x2d   :  { %82 = vst.msk [vmem:[#allocation2 + $0x1a8] sm:$0xff] %vm27_vm0, %v5191_v1 }
  0x2e   :  { %83 = vst.msk [vmem:[#allocation2 + $0x1b0] sm:$0xff] %vm27_vm0, %v5191_v1 }
  0x2f   :  { %85 = vst.msk [vmem:[#allocation2 + $0x1c0] sm:$0xff] %vm27_vm0, %v5191_v1 }
  0x30   :  { %86 = vst.msk [vmem:[#allocation2 + $0x1c8] sm:$0xff] %vm27_vm0, %v5191_v1 }
  0x31   :  { %87 = vst.msk [vmem:[#allocation2 + $0x1d0] sm:$0xff] %vm27_vm0, %v5191_v1 }
  0x32   :  { %89 = vst.msk [vmem:[#allocation2 + $0x1e0] sm:$0xff] %vm27_vm0, %v5191_v1 }
  0x33   :  { %90 = vst.msk [vmem:[#allocation2 + $0x1e8] sm:$0xff] %vm27_vm0, %v5191_v1 }
  0x34   :  { %91 = vst.msk [vmem:[#allocation2 + $0x1f0] sm:$0xff] %vm27_vm0, %v5191_v1 }
  0x35   :  { %93 = vst.msk [vmem:[#allocation2 + $0x200] sm:$0xff] %vm27_vm0, %v5191_v1 }
  0x36   :  { %94 = vst.msk [vmem:[#allocation2 + $0x208] sm:$0xff] %vm27_vm0, %v5191_v1 }
  0x37   :  { %95 = vst.msk [vmem:[#allocation2 + $0x210] sm:$0xff] %vm27_vm0, %v5191_v1 }
  0x38   :  { %97 = vst.msk [vmem:[#allocation2 + $0x220] sm:$0xff] %vm27_vm0, %v5191_v1 }
  0x39   :  { %98 = vst.msk [vmem:[#allocation2 + $0x228] sm:$0xff] %vm27_vm0, %v5191_v1 }
  0x3a   :  { %99 = vst.msk [vmem:[#allocation2 + $0x230] sm:$0xff] %vm27_vm0, %v5191_v1 }
  0x3b   :  { %101 = vst.msk [vmem:[#allocation2 + $0x240] sm:$0xff] %vm27_vm0, %v5191_v1 }
  0x3c   :  { %102 = vst.msk [vmem:[#allocation2 + $0x248] sm:$0xff] %vm27_vm0, %v5191_v1 }
  0x3d   :  { %103 = vst.msk [vmem:[#allocation2 + $0x250] sm:$0xff] %vm27_vm0, %v5191_v1 }
  0x3e   :  { %105 = vst.msk [vmem:[#allocation2 + $0x260] sm:$0xff] %vm27_vm0, %v5191_v1 }
  0x3f   :  { %106 = vst.msk [vmem:[#allocation2 + $0x268] sm:$0xff] %vm27_vm0, %v5191_v1 }
  0x40   :  { %107 = vst.msk [vmem:[#allocation2 + $0x270] sm:$0xff] %vm27_vm0, %v5191_v1 }
  0x41   :  { %109 = vst.msk [vmem:[#allocation2 + $0x280] sm:$0xff] %vm27_vm0, %v5191_v1 }
  0x42   :  { %110 = vst.msk [vmem:[#allocation2 + $0x288] sm:$0xff] %vm27_vm0, %v5191_v1 }
  0x43   :  { %111 = vst.msk [vmem:[#allocation2 + $0x290] sm:$0xff] %vm27_vm0, %v5191_v1  ;;  %v400_v49 = vld [vmem:[#allocation2 + $0x247] sm:$0xff] }
  0x44   :  { %113 = vst.msk [vmem:[#allocation2 + $0x2a0] sm:$0xff] %vm27_vm0, %v5191_v1  ;;  %v593_v50 = vld [vmem:[#allocation2 + $0x248] sm:$0xff]  ;;  %v465_v55 = vmul.f32 %v5263_v8, %v400_v49  ;;  %v1593_v49 = vmul.f32 %v5308_v30, %v5814_v41 }
  0x45   :  { %114 = vst.msk [vmem:[#allocation2 + $0x2a8] sm:$0xff] %vm27_vm0, %v5191_v1  ;;  %v658_v56 = vmul.f32 %v5267_v9, %v593_v50  ;;  %v786_v58 = vld [vmem:[#allocation2 + $0x249] sm:$0xff] }
  0x46   :  { %115 = vst.msk [vmem:[#allocation2 + $0x2b0] sm:$0xff] %vm27_vm0, %v5191_v1  ;;  %v851_v60 = vmul.f32 %v5273_v12, %v786_v58 }
  0x47   :  { %117 = vst.msk [vmem:[#allocation2 + $0x2c0] sm:$0xff] %vm27_vm0, %v5191_v1  ;;  %v722_v59 = vadd.f32 %v658_v56, %v465_v55  ;;  %v594_v55 = vld [vmem:[#allocation2 + $0x250] sm:$0xff] }
  0x48   :  { %118 = vst.msk [vmem:[#allocation2 + $0x2c8] sm:$0xff] %vm27_vm0, %v5191_v1 }
  0x49   :  { %119 = vst.msk [vmem:[#allocation2 + $0x2d0] sm:$0xff] %vm27_vm0, %v5191_v1  ;;  %v915_v63 = vadd.f32 %v851_v60, %v722_v59  ;;  %v659_v60 = vmul.f32 %v5267_v9, %v594_v55  ;;  %v629_v55 = vmul.f32 %v5791_v18, %v5267_v9  ;;  %v1015_v18 = vmul.f32 %v5814_v41, %v5284_v21 }
  0x4a   :  { %121 = vst.msk [vmem:[#allocation2 + $0x2e0] sm:$0xff] %vm27_vm0, %v5191_v1 }
  0x4b   :  { %122 = vst.msk [vmem:[#allocation2 + $0x2e8] sm:$0xff] %vm27_vm0, %v5191_v1 }
  0x4c   :  { %123 = vst.msk [vmem:[#allocation2 + $0x2f0] sm:$0xff] %vm27_vm0, %v5191_v1 }
  0x4d   :  { %125 = vst.msk [vmem:[#allocation2 + $0x300] sm:$0xff] %vm27_vm0, %v5191_v1 }
  0x4e   :  { %126 = vst.msk [vmem:[#allocation2 + $0x308] sm:$0xff] %vm27_vm0, %v5191_v1 }
  0x4f   :  { %127 = vst.msk [vmem:[#allocation2 + $0x310] sm:$0xff] %vm27_vm0, %v5191_v1 }
  0x50   :  { %129 = vst.msk [vmem:[#allocation2 + $0x320] sm:$0xff] %vm27_vm0, %v5191_v1 }
  0x51   :  { %130 = vst.msk [vmem:[#allocation2 + $0x328] sm:$0xff] %vm27_vm0, %v5191_v1 }
  0x52   :  { %131 = vst.msk [vmem:[#allocation2 + $0x330] sm:$0xff] %vm27_vm0, %v5191_v1 }
  0x53   :  { %133 = vst.msk [vmem:[#allocation2 + $0x340] sm:$0xff] %vm27_vm0, %v5191_v1 }
  0x54   :  { %134 = vst.msk [vmem:[#allocation2 + $0x348] sm:$0xff] %vm27_vm0, %v5191_v1 }
  0x55   :  { %135 = vst.msk [vmem:[#allocation2 + $0x350] sm:$0xff] %vm27_vm0, %v5191_v1 }
  0x56   :  { %137 = vst.msk [vmem:[#allocation2 + $0x360] sm:$0xff] %vm27_vm0, %v5191_v1 }
  0x57   :  { %138 = vst.msk [vmem:[#allocation2 + $0x368] sm:$0xff] %vm27_vm0, %v5191_v1 }
  0x58   :  { %139 = vst.msk [vmem:[#allocation2 + $0x370] sm:$0xff] %vm27_vm0, %v5191_v1 }
  0x59   :  { %141 = vst.msk [vmem:[#allocation2 + $0x380] sm:$0xff] %vm27_vm0, %v5191_v1 }
  0x5a   :  { %142 = vst.msk [vmem:[#allocation2 + $0x388] sm:$0xff] %vm27_vm0, %v5191_v1 }
  0x5b   :  { %143 = vst.msk [vmem:[#allocation2 + $0x390] sm:$0xff] %vm27_vm0, %v5191_v1 }
  0x5c   :  { %145 = vst.msk [vmem:[#allocation2 + $0x3a0] sm:$0xff] %vm27_vm0, %v5191_v1 }
  0x5d   :  { %146 = vst.msk [vmem:[#allocation2 + $0x3a8] sm:$0xff] %vm27_vm0, %v5191_v1 }
  0x5e   :  { %147 = vst.msk [vmem:[#allocation2 + $0x3b0] sm:$0xff] %vm27_vm0, %v5191_v1 }
  0x5f   :  { %149 = vst.msk [vmem:[#allocation2 + $0x3c0] sm:$0xff] %vm27_vm0, %v5191_v1 }
  0x60   :  { %150 = vst.msk [vmem:[#allocation2 + $0x3c8] sm:$0xff] %vm27_vm0, %v5191_v1 }
  0x61   :  { %151 = vst.msk [vmem:[#allocation2 + $0x3d0] sm:$0xff] %vm27_vm0, %v5191_v1 }
  0x62   :  { %153 = vst.msk [vmem:[#allocation2 + $0x3e0] sm:$0xff] %vm27_vm0, %v5191_v1 }
  0x63   :  { %154 = vst.msk [vmem:[#allocation2 + $0x3e8] sm:$0xff] %vm27_vm0, %v5191_v1 }
  0x64   :  { %155 = vst.msk [vmem:[#allocation2 + $0x3f0] sm:$0xff] %vm27_vm0, %v5191_v1 }
  0x65   :  { %157 = vst.msk [vmem:[#allocation2 + $0x400] sm:$0xff] %vm27_vm0, %v5191_v1 }
  0x66   :  { %158 = vst.msk [vmem:[#allocation2 + $0x408] sm:$0xff] %vm27_vm0, %v5191_v1 }
  0x67   :  { %159 = vst.msk [vmem:[#allocation2 + $0x410] sm:$0xff] %vm27_vm0, %v5191_v1 }
  0x68   :  { %161 = vst.msk [vmem:[#allocation2 + $0x420] sm:$0xff] %vm27_vm0, %v5191_v1 }
  0x69   :  { %162 = vst.msk [vmem:[#allocation2 + $0x428] sm:$0xff] %vm27_vm0, %v5191_v1 }
  0x6a   :  { %163 = vst.msk [vmem:[#allocation2 + $0x430] sm:$0xff] %vm27_vm0, %v5191_v1 }
  0x6b   :  { %165 = vst.msk [vmem:[#allocation2 + $0x440] sm:$0xff] %vm27_vm0, %v5191_v1 }
  0x6c   :  { %166 = vst.msk [vmem:[#allocation2 + $0x448] sm:$0xff] %vm27_vm0, %v5191_v1 }
  0x6d   :  { %167 = vst.msk [vmem:[#allocation2 + $0x450] sm:$0xff] %vm27_vm0, %v5191_v1 }
  0x6e   :  { %169 = vst.msk [vmem:[#allocation2 + $0x460] sm:$0xff] %vm27_vm0, %v5191_v1 }
  0x6f   :  { %170 = vst.msk [vmem:[#allocation2 + $0x468] sm:$0xff] %vm27_vm0, %v5191_v1 }
  0x70   :  { %171 = vst.msk [vmem:[#allocation2 + $0x470] sm:$0xff] %vm27_vm0, %v5191_v1 }
  0x71   :  { %2512 = vst.msk [vmem:[#allocation3] sm:$0xff] %vm27_vm0, %v5191_v1 }
  0x72   :  { %2513 = vst.msk [vmem:[#allocation3 + $0x8] sm:$0xff] %vm27_vm0, %v5191_v1 }
  0x73   :  { %2514 = vst.msk [vmem:[#allocation3 + $0x10] sm:$0xff] %vm27_vm0, %v5191_v1 }
  0x74   :  { %2516 = vst.msk [vmem:[#allocation3 + $0x20] sm:$0xff] %vm27_vm0, %v5191_v1 }
  0x75   :  { %2517 = vst.msk [vmem:[#allocation3 + $0x28] sm:$0xff] %vm27_vm0, %v5191_v1 }
  0x76   :  { %2518 = vst.msk [vmem:[#allocation3 + $0x30] sm:$0xff] %vm27_vm0, %v5191_v1 }
  0x77   :  { %2520 = vst.msk [vmem:[#allocation3 + $0x40] sm:$0xff] %vm27_vm0, %v5191_v1 }
  0x78   :  { %2521 = vst.msk [vmem:[#allocation3 + $0x48] sm:$0xff] %vm27_vm0, %v5191_v1 }
  0x79   :  { %2522 = vst.msk [vmem:[#allocation3 + $0x50] sm:$0xff] %vm27_vm0, %v5191_v1 }
  0x7a   :  { %2524 = vst.msk [vmem:[#allocation3 + $0x60] sm:$0xff] %vm27_vm0, %v5191_v1 }
  0x7b   :  { %2525 = vst.msk [vmem:[#allocation3 + $0x68] sm:$0xff] %vm27_vm0, %v5191_v1 }
  0x7c   :  { %2526 = vst.msk [vmem:[#allocation3 + $0x70] sm:$0xff] %vm27_vm0, %v5191_v1 }
  0x7d   :  { %2528 = vst.msk [vmem:[#allocation3 + $0x80] sm:$0xff] %vm27_vm0, %v5191_v1 }
  0x7e   :  { %2529 = vst.msk [vmem:[#allocation3 + $0x88] sm:$0xff] %vm27_vm0, %v5191_v1 }
  0x7f   :  { %2530 = vst.msk [vmem:[#allocation3 + $0x90] sm:$0xff] %vm27_vm0, %v5191_v1 }
  0x80   :  { %2532 = vst.msk [vmem:[#allocation3 + $0xa0] sm:$0xff] %vm27_vm0, %v5191_v1 }
  0x81   :  { %2533 = vst.msk [vmem:[#allocation3 + $0xa8] sm:$0xff] %vm27_vm0, %v5191_v1 }
  0x82   :  { %2534 = vst.msk [vmem:[#allocation3 + $0xb0] sm:$0xff] %vm27_vm0, %v5191_v1 }
  0x83   :  { %2536 = vst.msk [vmem:[#allocation3 + $0xc0] sm:$0xff] %vm27_vm0, %v5191_v1 }
  0x84   :  { %2537 = vst.msk [vmem:[#allocation3 + $0xc8] sm:$0xff] %vm27_vm0, %v5191_v1 }
  0x85   :  { %2538 = vst.msk [vmem:[#allocation3 + $0xd0] sm:$0xff] %vm27_vm0, %v5191_v1 }
  0x86   :  { %2540 = vst.msk [vmem:[#allocation3 + $0xe0] sm:$0xff] %vm27_vm0, %v5191_v1 }
  0x87   :  { %2541 = vst.msk [vmem:[#allocation3 + $0xe8] sm:$0xff] %vm27_vm0, %v5191_v1 }
  0x88   :  { %2542 = vst.msk [vmem:[#allocation3 + $0xf0] sm:$0xff] %vm27_vm0, %v5191_v1 }
  0x89   :  { %2544 = vst.msk [vmem:[#allocation3 + $0x100] sm:$0xff] %vm27_vm0, %v5191_v1 }
  0x8a   :  { %2545 = vst.msk [vmem:[#allocation3 + $0x108] sm:$0xff] %vm27_vm0, %v5191_v1 }
  0x8b   :  { %2546 = vst.msk [vmem:[#allocation3 + $0x110] sm:$0xff] %vm27_vm0, %v5191_v1 }
  0x8c   :  { %2548 = vst.msk [vmem:[#allocation3 + $0x120] sm:$0xff] %vm27_vm0, %v5191_v1 }
  0x8d   :  { %2549 = vst.msk [vmem:[#allocation3 + $0x128] sm:$0xff] %vm27_vm0, %v5191_v1 }
  0x8e   :  { %2550 = vst.msk [vmem:[#allocation3 + $0x130] sm:$0xff] %vm27_vm0, %v5191_v1 }
  0x8f   :  { %2552 = vst.msk [vmem:[#allocation3 + $0x140] sm:$0xff] %vm27_vm0, %v5191_v1 }
  0x90   :  { %2553 = vst.msk [vmem:[#allocation3 + $0x148] sm:$0xff] %vm27_vm0, %v5191_v1 }
  0x91   :  { %2554 = vst.msk [vmem:[#allocation3 + $0x150] sm:$0xff] %vm27_vm0, %v5191_v1 }
  0x92   :  { %2556 = vst.msk [vmem:[#allocation3 + $0x160] sm:$0xff] %vm27_vm0, %v5191_v1 }
  0x93   :  { %2557 = vst.msk [vmem:[#allocation3 + $0x168] sm:$0xff] %vm27_vm0, %v5191_v1 }
  0x94   :  { %2558 = vst.msk [vmem:[#allocation3 + $0x170] sm:$0xff] %vm27_vm0, %v5191_v1 }
  0x95   :  { %2560 = vst.msk [vmem:[#allocation3 + $0x180] sm:$0xff] %vm27_vm0, %v5191_v1 }
  0x96   :  { %2561 = vst.msk [vmem:[#allocation3 + $0x188] sm:$0xff] %vm27_vm0, %v5191_v1 }
  0x97   :  { %2562 = vst.msk [vmem:[#allocation3 + $0x190] sm:$0xff] %vm27_vm0, %v5191_v1 }
  0x98   :  { %2564 = vst.msk [vmem:[#allocation3 + $0x1a0] sm:$0xff] %vm27_vm0, %v5191_v1 }
  0x99   :  { %2565 = vst.msk [vmem:[#allocation3 + $0x1a8] sm:$0xff] %vm27_vm0, %v5191_v1 }
  0x9a   :  { %2566 = vst.msk [vmem:[#allocation3 + $0x1b0] sm:$0xff] %vm27_vm0, %v5191_v1 }
  0x9b   :  { %2568 = vst.msk [vmem:[#allocation3 + $0x1c0] sm:$0xff] %vm27_vm0, %v5191_v1 }
  0x9c   :  { %2569 = vst.msk [vmem:[#allocation3 + $0x1c8] sm:$0xff] %vm27_vm0, %v5191_v1 }
  0x9d   :  { %2570 = vst.msk [vmem:[#allocation3 + $0x1d0] sm:$0xff] %vm27_vm0, %v5191_v1 }
  0x9e   :  { %2572 = vst.msk [vmem:[#allocation3 + $0x1e0] sm:$0xff] %vm27_vm0, %v5191_v1 }
  0x9f   :  { %2573 = vst.msk [vmem:[#allocation3 + $0x1e8] sm:$0xff] %vm27_vm0, %v5191_v1 }
  0xa0   :  { %2574 = vst.msk [vmem:[#allocation3 + $0x1f0] sm:$0xff] %vm27_vm0, %v5191_v1 }
  0xa1   :  { %2576 = vst.msk [vmem:[#allocation3 + $0x200] sm:$0xff] %vm27_vm0, %v5191_v1 }
  0xa2   :  { %2577 = vst.msk [vmem:[#allocation3 + $0x208] sm:$0xff] %vm27_vm0, %v5191_v1 }
  0xa3   :  { %2578 = vst.msk [vmem:[#allocation3 + $0x210] sm:$0xff] %vm27_vm0, %v5191_v1 }
  0xa4   :  { %2580 = vst.msk [vmem:[#allocation3 + $0x220] sm:$0xff] %vm27_vm0, %v5191_v1 }
  0xa5   :  { %2581 = vst.msk [vmem:[#allocation3 + $0x228] sm:$0xff] %vm27_vm0, %v5191_v1 }
  0xa6   :  { %2582 = vst.msk [vmem:[#allocation3 + $0x230] sm:$0xff] %vm27_vm0, %v5191_v1 }
  0xa7   :  { %2584 = vst.msk [vmem:[#allocation3 + $0x240] sm:$0xff] %vm27_vm0, %v5191_v1 }
  0xa8   :  { %2585 = vst.msk [vmem:[#allocation3 + $0x248] sm:$0xff] %vm27_vm0, %v5191_v1 }
  0xa9   :  { %2586 = vst.msk [vmem:[#allocation3 + $0x250] sm:$0xff] %vm27_vm0, %v5191_v1 }
  0xaa   :  { %2588 = vst.msk [vmem:[#allocation3 + $0x260] sm:$0xff] %vm27_vm0, %v5191_v1 }
  0xab   :  { %2589 = vst.msk [vmem:[#allocation3 + $0x268] sm:$0xff] %vm27_vm0, %v5191_v1 }
  0xac   :  { %2590 = vst.msk [vmem:[#allocation3 + $0x270] sm:$0xff] %vm27_vm0, %v5191_v1 }
  0xad   :  { %2592 = vst.msk [vmem:[#allocation3 + $0x280] sm:$0xff] %vm27_vm0, %v5191_v1 }
  0xae   :  { %2593 = vst.msk [vmem:[#allocation3 + $0x288] sm:$0xff] %vm27_vm0, %v5191_v1 }
  0xaf   :  { %2594 = vst.msk [vmem:[#allocation3 + $0x290] sm:$0xff] %vm27_vm0, %v5191_v1 }
  0xb0   :  { %2596 = vst.msk [vmem:[#allocation3 + $0x2a0] sm:$0xff] %vm27_vm0, %v5191_v1 }
  0xb1   :  { %2597 = vst.msk [vmem:[#allocation3 + $0x2a8] sm:$0xff] %vm27_vm0, %v5191_v1 }
  0xb2   :  { %2598 = vst.msk [vmem:[#allocation3 + $0x2b0] sm:$0xff] %vm27_vm0, %v5191_v1 }
  0xb3   :  { %2600 = vst.msk [vmem:[#allocation3 + $0x2c0] sm:$0xff] %vm27_vm0, %v5191_v1 }
  0xb4   :  { %2601 = vst.msk [vmem:[#allocation3 + $0x2c8] sm:$0xff] %vm27_vm0, %v5191_v1 }
  0xb5   :  { %2602 = vst.msk [vmem:[#allocation3 + $0x2d0] sm:$0xff] %vm27_vm0, %v5191_v1 }
  0xb6   :  { %2604 = vst.msk [vmem:[#allocation3 + $0x2e0] sm:$0xff] %vm27_vm0, %v5191_v1 }
  0xb7   :  { %2605 = vst.msk [vmem:[#allocation3 + $0x2e8] sm:$0xff] %vm27_vm0, %v5191_v1 }
  0xb8   :  { %2606 = vst.msk [vmem:[#allocation3 + $0x2f0] sm:$0xff] %vm27_vm0, %v5191_v1 }
  0xb9   :  { %2608 = vst.msk [vmem:[#allocation3 + $0x300] sm:$0xff] %vm27_vm0, %v5191_v1 }
  0xba   :  { %2609 = vst.msk [vmem:[#allocation3 + $0x308] sm:$0xff] %vm27_vm0, %v5191_v1 }
  0xbb   :  { %2610 = vst.msk [vmem:[#allocation3 + $0x310] sm:$0xff] %vm27_vm0, %v5191_v1 }
  0xbc   :  { %2612 = vst.msk [vmem:[#allocation3 + $0x320] sm:$0xff] %vm27_vm0, %v5191_v1 }
  0xbd   :  { %2613 = vst.msk [vmem:[#allocation3 + $0x328] sm:$0xff] %vm27_vm0, %v5191_v1 }
  0xbe   :  { %2614 = vst.msk [vmem:[#allocation3 + $0x330] sm:$0xff] %vm27_vm0, %v5191_v1 }
  0xbf   :  { %2616 = vst.msk [vmem:[#allocation3 + $0x340] sm:$0xff] %vm27_vm0, %v5191_v1 }
  0xc0   :  { %2617 = vst.msk [vmem:[#allocation3 + $0x348] sm:$0xff] %vm27_vm0, %v5191_v1 }
  0xc1   :  { %2618 = vst.msk [vmem:[#allocation3 + $0x350] sm:$0xff] %vm27_vm0, %v5191_v1 }
  0xc2   :  { %2620 = vst.msk [vmem:[#allocation3 + $0x360] sm:$0xff] %vm27_vm0, %v5191_v1 }
  0xc3   :  { %2621 = vst.msk [vmem:[#allocation3 + $0x368] sm:$0xff] %vm27_vm0, %v5191_v1 }
  0xc4   :  { %2622 = vst.msk [vmem:[#allocation3 + $0x370] sm:$0xff] %vm27_vm0, %v5191_v1 }
  0xc5   :  { %2624 = vst.msk [vmem:[#allocation3 + $0x380] sm:$0xff] %vm27_vm0, %v5191_v1 }
  0xc6   :  { %2625 = vst.msk [vmem:[#allocation3 + $0x388] sm:$0xff] %vm27_vm0, %v5191_v1 }
  0xc7   :  { %2626 = vst.msk [vmem:[#allocation3 + $0x390] sm:$0xff] %vm27_vm0, %v5191_v1 }
  0xc8   :  { %2628 = vst.msk [vmem:[#allocation3 + $0x3a0] sm:$0xff] %vm27_vm0, %v5191_v1 }
  0xc9   :  { %2629 = vst.msk [vmem:[#allocation3 + $0x3a8] sm:$0xff] %vm27_vm0, %v5191_v1 }
  0xca   :  { %2630 = vst.msk [vmem:[#allocation3 + $0x3b0] sm:$0xff] %vm27_vm0, %v5191_v1 }
  0xcb   :  { %2632 = vst.msk [vmem:[#allocation3 + $0x3c0] sm:$0xff] %vm27_vm0, %v5191_v1 }
  0xcc   :  { %2633 = vst.msk [vmem:[#allocation3 + $0x3c8] sm:$0xff] %vm27_vm0, %v5191_v1 }
  0xcd   :  { %2634 = vst.msk [vmem:[#allocation3 + $0x3d0] sm:$0xff] %vm27_vm0, %v5191_v1 }
  0xce   :  { %2636 = vst.msk [vmem:[#allocation3 + $0x3e0] sm:$0xff] %vm27_vm0, %v5191_v1 }
  0xcf   :  { %2637 = vst.msk [vmem:[#allocation3 + $0x3e8] sm:$0xff] %vm27_vm0, %v5191_v1 }
  0xd0   :  { %2638 = vst.msk [vmem:[#allocation3 + $0x3f0] sm:$0xff] %vm27_vm0, %v5191_v1 }
  0xd1   :  { %2640 = vst.msk [vmem:[#allocation3 + $0x400] sm:$0xff] %vm27_vm0, %v5191_v1 }
  0xd2   :  { %2641 = vst.msk [vmem:[#allocation3 + $0x408] sm:$0xff] %vm27_vm0, %v5191_v1 }
  0xd3   :  { %2642 = vst.msk [vmem:[#allocation3 + $0x410] sm:$0xff] %vm27_vm0, %v5191_v1 }
  0xd4   :  { %2644 = vst.msk [vmem:[#allocation3 + $0x420] sm:$0xff] %vm27_vm0, %v5191_v1 }
  0xd5   :  { %2645 = vst.msk [vmem:[#allocation3 + $0x428] sm:$0xff] %vm27_vm0, %v5191_v1 }
  0xd6   :  { %2646 = vst.msk [vmem:[#allocation3 + $0x430] sm:$0xff] %vm27_vm0, %v5191_v1 }
  0xd7   :  { %2648 = vst.msk [vmem:[#allocation3 + $0x440] sm:$0xff] %vm27_vm0, %v5191_v1 }
  0xd8   :  { %2649 = vst.msk [vmem:[#allocation3 + $0x448] sm:$0xff] %vm27_vm0, %v5191_v1 }
  0xd9   :  { %2650 = vst.msk [vmem:[#allocation3 + $0x450] sm:$0xff] %vm27_vm0, %v5191_v1 }
  0xda   :  { %2652 = vst.msk [vmem:[#allocation3 + $0x460] sm:$0xff] %vm27_vm0, %v5191_v1 }
  0xdb   :  { %2653 = vst.msk [vmem:[#allocation3 + $0x468] sm:$0xff] %vm27_vm0, %v5191_v1 }
  0xdc   :  { %2654 = vst.msk [vmem:[#allocation3 + $0x470] sm:$0xff] %vm27_vm0, %v5191_v1 }
  0xdd   :  { %334 = vst.msk [vmem:[#allocation2 + $0x268] sm:$0xff] %vm27_vm0, %v269_v52 }
  0xde   :  { %335 = vst.msk [vmem:[#allocation2 + $0x270] sm:$0xff] %vm27_vm0, %v270_v53  ;;  %v1786_v53 = vmul.f32 %v5318_v34, %v5824_v46 }
  0xdf   :  { %336 = vst.msk [vmem:[#allocation2 + $0x288] sm:$0xff] %vm27_vm0, %v271_v54  ;;  %v401_v54 = vld [vmem:[#allocation2 + $0x24f] sm:$0xff] }
  0xe0   :  { %337 = vst.msk [vmem:[#allocation2 + $0x290] sm:$0xff] %vm27_vm0, %v272_v57  ;;  %v466_v59 = vmul.f32 %v5263_v8, %v401_v54  ;;  %v436_v54 = vmul.f32 %v5781_v11, %v5263_v8 }
  0xe1   :  { %32 = vst.msk [vmem:[#allocation2 + $0x18] sm:$0x1] %vm31_vm1, %v5191_v1 }
  0xe2   :  { %36 = vst.msk [vmem:[#allocation2 + $0x38] sm:$0x1] %vm31_vm1, %v5191_v1 }
  0xe3   :  { %40 = vst.msk [vmem:[#allocation2 + $0x58] sm:$0x1] %vm31_vm1, %v5191_v1 }
  0xe4   :  { %v5765_v3 = vld [vmem:[#allocation2 + $0x267] sm:$0xff]  ;;  %44 = vst.msk [vmem:[#allocation2 + $0x78] sm:$0x1] %vm31_vm1, %v5191_v1 }
  0xe5   :  { %v5767_v4 = vld [vmem:[#allocation2 + $0x268] sm:$0xff]  ;;  %v1044_v5 = vmul.f32 %v5284_v21, %v5765_v3  ;;  %48 = vst.msk [vmem:[#allocation2 + $0x98] sm:$0x1] %vm31_vm1, %v5191_v1  ;;  %v5866_v2 = vld [vmem:[#allocation2 + $0x270] sm:$0xff] }
  0xe6   :  { %v1237_v6 = vmul.f32 %v5286_v22, %v5767_v4  ;;  %v5775_v7 = vld [vmem:[#allocation2 + $0x269] sm:$0xff]  ;;  %52 = vst.msk [vmem:[#allocation2 + $0xb8] sm:$0x1] %vm31_vm1, %v5191_v1 }
  0xe7   :  { %v5779_v10 = vld [vmem:[#allocation2 + $0x287] sm:$0xff]  ;;  %v1108_v13 = vadd.f32 %v1044_v5, %v915_v63  ;;  %v1430_v14 = vmul.f32 %v5292_v24, %v5775_v7  ;;  %56 = vst.msk [vmem:[#allocation2 + $0xd8] sm:$0x1] %vm31_vm1, %v5191_v1  ;;  %v5859_v62 = vld [vmem:[#allocation2 + $0x26f] sm:$0xff]  ;;  %v723_v63 = vadd.f32 %v659_v60, %v466_v59 }
  0xe8   :  { %v5789_v16 = vld [vmem:[#allocation2 + $0x288] sm:$0xff]  ;;  %v755_v17 = vld [vmem:[#allocation2 + $0x11] sm:$0xff]  ;;  %60 = vst.msk [vmem:[#allocation2 + $0xf8] sm:$0x1] %vm31_vm1, %v5191_v1  ;;  %v1624_v20 = vmul.f32 %v5308_v30, %v5779_v10 }
  0xe9   :  { %v1301_v19 = vadd.f32 %v1237_v6, %v1108_v13  ;;  %v820_v23 = vmul.f32 %v5273_v12, %v755_v17  ;;  %64 = vst.msk [vmem:[#allocation2 + $0x118] sm:$0x1] %vm31_vm1, %v5191_v1  ;;  %v5802_v28 = vld [vmem:[#allocation2 + $0x289] sm:$0xff]  ;;  %v5804_v32 = vld [vmem:[#allocation2 + $0x31] sm:$0xff]  ;;  %v1817_v36 = vmul.f32 %v5318_v34, %v5789_v16  ;;  %v1045_v6 = vmul.f32 %v5284_v21, %v5859_v62 }
  0xea   :  { %68 = vst.msk [vmem:[#allocation2 + $0x138] sm:$0x1] %vm31_vm1, %v5191_v1  ;;  %v2010_v43 = vmul.f32 %v5331_v38, %v5802_v28  ;;  %v1399_v45 = vmul.f32 %v5292_v24, %v5804_v32  ;;  %v5832_v50 = vld [vmem:[#allocation2 + $0x51] sm:$0xff] }
  0xeb   :  { %v1494_v33 = vadd.f32 %v1430_v14, %v1301_v19  ;;  %v884_v37 = vadd.f32 %v820_v23, %v691_v15  ;;  %72 = vst.msk [vmem:[#allocation2 + $0x158] sm:$0x1] %vm31_vm1, %v5191_v1  ;;  %v1979_v57 = vmul.f32 %v5331_v38, %v5832_v50  ;;  %v1238_v15 = vmul.f32 %v5286_v22, %v5866_v2  ;;  %v5883_v17 = vld [vmem:[#allocation2 + $0x28f] sm:$0xff] }
  0xec   :  { %76 = vst.msk [vmem:[#allocation2 + $0x178] sm:$0x1] %vm31_vm1, %v5191_v1  ;;  %v5891_v23 = vld [vmem:[#allocation2 + $0x290] sm:$0xff] }
  0xed   :  { %v1688_v42 = vadd.f32 %v1624_v20, %v1494_v33  ;;  %v1077_v44 = vadd.f32 %v1013_v27, %v884_v37  ;;  %80 = vst.msk [vmem:[#allocation2 + $0x198] sm:$0x1] %vm31_vm1, %v5191_v1  ;;  %v1625_v33 = vmul.f32 %v5308_v30, %v5883_v17 }
  0xee   :  { %84 = vst.msk [vmem:[#allocation2 + $0x1b8] sm:$0x1] %vm31_vm1, %v5191_v1 }
  0xef   :  { %v1881_v47 = vadd.f32 %v1817_v36, %v1688_v42  ;;  %v1270_v48 = vadd.f32 %v1206_v40, %v1077_v44  ;;  %88 = vst.msk [vmem:[#allocation2 + $0x1d8] sm:$0x1] %vm31_vm1, %v5191_v1  ;;  %v1818_v40 = vmul.f32 %v5318_v34, %v5891_v23 }
  0xf0   :  { %92 = vst.msk [vmem:[#allocation2 + $0x1f8] sm:$0x1] %vm31_vm1, %v5191_v1 }
  0xf1   :  { %v2074_v51 = vadd.f32 %v2010_v43, %v1881_v47  ;;  %v1463_v52 = vadd.f32 %v1399_v45, %v1270_v48  ;;  %96 = vst.msk [vmem:[#allocation2 + $0x218] sm:$0x1] %vm31_vm1, %v5191_v1  ;;  %v467_v47 = vmul.f32 %v5765_v3, %v5263_v8  ;;  %v660_v48 = vmul.f32 %v5767_v4, %v5267_v9 }
  0xf2   :  { %100 = vst.msk [vmem:[#allocation2 + $0x238] sm:$0x1] %vm31_vm1, %v5191_v1  ;;  %v1046_v3 = vmul.f32 %v5779_v10, %v5284_v21 }
  0xf3   :  { %5046 = vmatmul.msk.f32.vlgmr.msra.gmra.mxu2 %vm27_vm0, %v2074_v51  ;;  %v1657_v56 = vadd.f32 %v1593_v49, %v1463_v52  ;;  %104 = vst.msk [vmem:[#allocation2 + $0x258] sm:$0x1] %vm31_vm1, %v5191_v1  ;;  %v853_v49 = vmul.f32 %v5775_v7, %v5273_v12  ;;  %v724_v51 = vadd.f32 %v660_v48, %v467_v47 }
  0xf4   :  { %108 = vst.msk [vmem:[#allocation2 + $0x278] sm:$0x1] %vm31_vm1, %v5191_v1  ;;  %v1239_v7 = vmul.f32 %v5789_v16, %v5286_v22  ;;  %v1207_v48 = vmul.f32 %v5322_v35, %v5286_v22 }
  0xf5   :  { %v1850_v58 = vadd.f32 %v1786_v53, %v1657_v56  ;;  %112 = vst.msk [vmem:[#allocation2 + $0x298] sm:$0x1] %vm31_vm1, %v5191_v1  ;;  %v917_v4 = vadd.f32 %v853_v49, %v724_v51  ;;  %v1432_v53 = vmul.f32 %v5802_v28, %v5292_v24  ;;  %v179_v49 = vld [vmem:[%s9731_s0 + $0x30] sm:$0xff] }
  0xf6   :  { %116 = vst.msk [vmem:[#allocation2 + $0x2b8] sm:$0x1] %vm31_vm1, %v5191_v1 }
  0xf7   :  { %v2043_v61 = vadd.f32 %v1979_v57, %v1850_v58  ;;  %120 = vst.msk [vmem:[#allocation2 + $0x2d8] sm:$0x1] %vm31_vm1, %v5191_v1  ;;  %v1110_v52 = vadd.f32 %v1046_v3, %v917_v4  ;;  %v693_v57 = vadd.f32 %v629_v55, %v436_v54  ;;  %v822_v58 = vmul.f32 %v5804_v32, %v5273_v12  ;;  %v211_v55 = vld [vmem:[%s9731_s0 + $0x130] sm:$0xff] }
  0xf8   :  { %124 = vst.msk [vmem:[#allocation2 + $0x2f8] sm:$0x1] %vm31_vm1, %v5191_v1  ;;  %v1208_v32 = vmul.f32 %v5824_v46, %v5286_v22  ;;  %v630_v54 = vmul.f32 %v5322_v35, %v5267_v9  ;;  %v663_v35 = vmul.f32 %v5891_v23, %v5267_v9 }
  0xf9   :  { %5015 = vmatmul.msk.f32.gmra.mxu0 %vm27_vm0, %v2043_v61  ;;  %128 = vst.msk [vmem:[#allocation2 + $0x318] sm:$0x1] %vm31_vm1, %v5191_v1  ;;  %v1303_v56 = vadd.f32 %v1239_v7, %v1110_v52  ;;  %v886_v11 = vadd.f32 %v822_v58, %v693_v57  ;;  %v1240_v7 = vmul.f32 %v5891_v23, %v5286_v22  ;;  %v180_v52 = vld [vmem:[%s9731_s0 + $0x38] sm:$0xff]  ;;  %v243_v58 = vmax.f32 %v179_v49, 0.0 }
  0xfa   :  { %132 = vst.msk [vmem:[#allocation2 + $0x338] sm:$0x1] %vm31_vm1, %v5191_v1  ;;  %v787_v0 = vld [vmem:[#allocation2 + $0x251] sm:$0xff]  ;;  %v631_v57 = vmul.f32 %v5824_v46, %v5267_v9  ;;  %v244_v46 = vmax.f32 %v180_v52, 0.0  ;;  %v823_v23 = vmul.f32 %v5335_v39, %v5273_v12 }
  0xfb   :  { %136 = vst.msk [vmem:[#allocation2 + $0x358] sm:$0x1] %vm31_vm1, %v5191_v1  ;;  %v852_v5 = vmul.f32 %v5273_v12, %v787_v0  ;;  %v5875_v13 = vld [vmem:[#allocation2 + $0x271] sm:$0xff]  ;;  %v5960_v59 = vadd.f32 %v1432_v53, %v1303_v56  ;;  %v1079_v60 = vadd.f32 %v1015_v18, %v886_v11  ;;  %v435_v0 = vmul.f32 %v5296_v25, %v5263_v8  ;;  %v181_v18 = vld [vmem:[%s9731_s0 + $0x40] sm:$0xff] }
  0xfc   :  { %140 = vst.msk [vmem:[#allocation2 + $0x378] sm:$0x1] %vm31_vm1, %v5191_v1  ;;  %v1431_v20 = vmul.f32 %v5292_v24, %v5875_v13  ;;  %v5899_v36 = vld [vmem:[#allocation2 + $0x291] sm:$0xff]  ;;  %v662_v25 = vmul.f32 %v5789_v16, %v5267_v9  ;;  %v437_v53 = vmul.f32 %v5312_v31, %v5263_v8  ;;  %v438_v56 = vmul.f32 %v5814_v41, %v5263_v8 }
  0xfd   :  { %144 = vst.msk [vmem:[#allocation2 + $0x398] sm:$0x1] %vm31_vm1, %v5191_v1  ;;  %v916_v14 = vadd.f32 %v852_v5, %v723_v63  ;;  %v2011_v43 = vmul.f32 %v5331_v38, %v5899_v36  ;;  %v1272_v61 = vadd.f32 %v1208_v32, %v1079_v60  ;;  %v1401_v63 = vmul.f32 %v5832_v50, %v5292_v24 }
  0xfe   :  { %148 = vst.msk [vmem:[#allocation2 + $0x3b8] sm:$0x1] %vm31_vm1, %v5191_v1  ;;  %v628_v5 = vmul.f32 %v5298_v26, %v5267_v9  ;;  %v855_v26 = vmul.f32 %v5802_v28, %v5273_v12  ;;  %v1400_v41 = vmul.f32 %v5335_v39, %v5292_v24  ;;  %v275_v32 = vmax.f32 %v211_v55, 0.0 }
  0xff   :  { %152 = vst.msk [vmem:[#allocation2 + $0x3d8] sm:$0x1] %vm31_vm1, %v5191_v1  ;;  %v1109_v19 = vadd.f32 %v1045_v6, %v916_v14  ;;  %v468_v6 = vmul.f32 %v5859_v62, %v5263_v8  ;;  %v5988_v14 = vadd.f32 %v1401_v63, %v1272_v61  ;;  %v694_v61 = vadd.f32 %v630_v54, %v437_v53 }
 0x100   :  { %156 = vst.msk [vmem:[#allocation2 + $0x3f8] sm:$0x1] %vm31_vm1, %v5191_v1 }
 0x101   :  { %160 = vst.msk [vmem:[#allocation2 + $0x418] sm:$0x1] %vm31_vm1, %v5191_v1  ;;  %v1302_v27 = vadd.f32 %v1238_v15, %v1109_v19  ;;  %v661_v15 = vmul.f32 %v5866_v2, %v5267_v9  ;;  %v469_v19 = vmul.f32 %v5779_v10, %v5263_v8  ;;  %v692_v2 = vadd.f32 %v628_v5, %v435_v0 }
 0x102   :  { %164 = vst.msk [vmem:[#allocation2 + $0x438] sm:$0x1] %vm31_vm1, %v5191_v1  ;;  %v821_v10 = vmul.f32 %v5306_v29, %v5273_v12  ;;  %v177_v29 = vld [vmem:[%s9731_s0 + $0x20] sm:$0xff]  ;;  %v695_v0 = vadd.f32 %v631_v57, %v438_v56  ;;  %v824_v5 = vmul.f32 %v5832_v50, %v5273_v12 }
 0x103   :  { %168 = vst.msk [vmem:[#allocation2 + $0x458] sm:$0x1] %vm31_vm1, %v5191_v1  ;;  %v1495_v37 = vadd.f32 %v1431_v20, %v1302_v27  ;;  %v726_v62 = vadd.f32 %v662_v25, %v469_v19  ;;  %v725_v16 = vadd.f32 %v661_v15, %v468_v6  ;;  %v854_v20 = vmul.f32 %v5875_v13, %v5273_v12  ;;  %v178_v13 = vld [vmem:[%s9731_s0 + $0x28] sm:$0xff]  ;;  %v213_v15 = vld [vmem:[%s9731_s0 + $0x140] sm:$0xff] }
 0x104   :  { %172 = vst.msk [vmem:[#allocation2 + $0x478] sm:$0x1] %vm31_vm1, %v5191_v1  ;;  %v885_v28 = vadd.f32 %v821_v10, %v692_v2  ;;  %v182_v6 = vld [vmem:[%s9731_s0 + $0x48] sm:$0xff]  ;;  %v856_v19 = vmul.f32 %v5899_v36, %v5273_v12  ;;  %v245_v25 = vmax.f32 %v181_v18, 0.0  ;;  %v277_v2 = vmax.f32 %v213_v15, 0.0 }
 0x105   :  { %2515 = vst.msk [vmem:[#allocation3 + $0x18] sm:$0x1] %vm31_vm1, %v5191_v1  ;;  %v1689_v42 = vadd.f32 %v1625_v33, %v1495_v37  ;;  %v6010_v27 = vadd.f32 %v855_v26, %v726_v62  ;;  %v1014_v33 = vmul.f32 %v5312_v31, %v5284_v21  ;;  %v918_v37 = vadd.f32 %v854_v20, %v725_v16  ;;  %v214_v26 = vld [vmem:[%s9731_s0 + $0x148] sm:$0xff] }
 0x106   :  { %2519 = vst.msk [vmem:[#allocation3 + $0x38] sm:$0x1] %vm31_vm1, %v5191_v1  ;;  %v470_v31 = vmul.f32 %v5883_v17, %v5263_v8  ;;  %v246_v50 = vmax.f32 %v182_v6, 0.0 }
 0x107   :  { %2523 = vst.msk [vmem:[#allocation3 + $0x58] sm:$0x1] %vm31_vm1, %v5191_v1  ;;  %v1882_v44 = vadd.f32 %v1818_v40, %v1689_v42  ;;  %v1047_v40 = vmul.f32 %v5883_v17, %v5284_v21  ;;  %v209_v42 = vld [vmem:[%s9731_s0 + $0x120] sm:$0xff]  ;;  %v1078_v47 = vadd.f32 %v1014_v33, %v885_v28  ;;  %v1433_v17 = vmul.f32 %v5899_v36, %v5292_v24 }
 0x108   :  { %2527 = vst.msk [vmem:[#allocation3 + $0x78] sm:$0x1] %vm31_vm1, %v5191_v1  ;;  %v273_v51 = vmax.f32 %v209_v42, 0.0  ;;  %v727_v39 = vadd.f32 %v663_v35, %v470_v31  ;;  %v6108_v36 = vadd.f32 %v824_v5, %v695_v0  ;;  %v278_v28 = vmax.f32 %v214_v26, 0.0  ;;  %v6185_v26 = vld [vmem:[%s9732_s1 + $0x8] ss:$0 sm:$0xff] }
 0x109   :  { %2531 = vst.msk [vmem:[#allocation3 + $0x98] sm:$0x1] %vm31_vm1, %v5191_v1  ;;  %v2075_v45 = vadd.f32 %v2011_v43, %v1882_v44  ;;  %v210_v43 = vld [vmem:[%s9731_s0 + $0x128] sm:$0xff]  ;;  %v241_v44 = vmax.f32 %v177_v29, 0.0  ;;  %v1111_v4 = vadd.f32 %v1047_v40, %v918_v37  ;;  %v1271_v11 = vadd.f32 %v1207_v48, %v1078_v47 }
 0x10a   :  { %2535 = vst.msk [vmem:[#allocation3 + $0xb8] sm:$0x1] %vm31_vm1, %v5191_v1  ;;  %v274_v3 = vmax.f32 %v210_v43, 0.0  ;;  %v887_v29 = vadd.f32 %v823_v23, %v694_v61 }
 0x10b   :  { %2539 = vst.msk [vmem:[#allocation3 + $0xd8] sm:$0x1] %vm31_vm1, %v5191_v1  ;;  %5047 = vmatmul.msk.f32.gmra.mxu2 %vm27_vm0, %v2075_v45  ;;  %v242_v45 = vmax.f32 %v178_v13, 0.0  ;;  %v1304_v60 = vadd.f32 %v1240_v7, %v1111_v4  ;;  %v1464_v62 = vadd.f32 %v1400_v41, %v1271_v11 }
 0x10c   :  { %2543 = vst.msk [vmem:[#allocation3 + $0xf8] sm:$0x1] %vm31_vm1, %v5191_v1 }
 0x10d   :  { %2547 = vst.msk [vmem:[#allocation3 + $0x118] sm:$0x1] %vm31_vm1, %v5191_v1  ;;  %v1497_v20 = vadd.f32 %v1433_v17, %v1304_v60 }
 0x10e   :  { %2551 = vst.msk [vmem:[#allocation3 + $0x138] sm:$0x1] %vm31_vm1, %v5191_v1 }
 0x10f   :  { %2555 = vst.msk [vmem:[#allocation3 + $0x158] sm:$0x1] %vm31_vm1, %v5191_v1 }
 0x110   :  { %2559 = vst.msk [vmem:[#allocation3 + $0x178] sm:$0x1] %vm31_vm1, %v5191_v1 }
 0x111   :  { %2563 = vst.msk [vmem:[#allocation3 + $0x198] sm:$0x1] %vm31_vm1, %v5191_v1 }
 0x112   :  { %2567 = vst.msk [vmem:[#allocation3 + $0x1b8] sm:$0x1] %vm31_vm1, %v5191_v1 }
 0x113   :  { %2571 = vst.msk [vmem:[#allocation3 + $0x1d8] sm:$0x1] %vm31_vm1, %v5191_v1 }
 0x114   :  { %2575 = vst.msk [vmem:[#allocation3 + $0x1f8] sm:$0x1] %vm31_vm1, %v5191_v1 }
 0x115   :  { %2579 = vst.msk [vmem:[#allocation3 + $0x218] sm:$0x1] %vm31_vm1, %v5191_v1 }
 0x116   :  { %2583 = vst.msk [vmem:[#allocation3 + $0x238] sm:$0x1] %vm31_vm1, %v5191_v1 }
 0x117   :  { %2587 = vst.msk [vmem:[#allocation3 + $0x258] sm:$0x1] %vm31_vm1, %v5191_v1 }
 0x118   :  { %2591 = vst.msk [vmem:[#allocation3 + $0x278] sm:$0x1] %vm31_vm1, %v5191_v1 }
 0x119   :  { %2595 = vst.msk [vmem:[#allocation3 + $0x298] sm:$0x1] %vm31_vm1, %v5191_v1 }
 0x11a   :  { %2599 = vst.msk [vmem:[#allocation3 + $0x2b8] sm:$0x1] %vm31_vm1, %v5191_v1 }
 0x11b   :  { %2603 = vst.msk [vmem:[#allocation3 + $0x2d8] sm:$0x1] %vm31_vm1, %v5191_v1 }
 0x11c   :  { %2607 = vst.msk [vmem:[#allocation3 + $0x2f8] sm:$0x1] %vm31_vm1, %v5191_v1 }
 0x11d   :  { %2611 = vst.msk [vmem:[#allocation3 + $0x318] sm:$0x1] %vm31_vm1, %v5191_v1 }
 0x11e   :  { %2615 = vst.msk [vmem:[#allocation3 + $0x338] sm:$0x1] %vm31_vm1, %v5191_v1 }
 0x11f   :  { %2619 = vst.msk [vmem:[#allocation3 + $0x358] sm:$0x1] %vm31_vm1, %v5191_v1 }
 0x120   :  { %2623 = vst.msk [vmem:[#allocation3 + $0x378] sm:$0x1] %vm31_vm1, %v5191_v1 }
 0x121   :  { %2627 = vst.msk [vmem:[#allocation3 + $0x398] sm:$0x1] %vm31_vm1, %v5191_v1 }
 0x122   :  { %2631 = vst.msk [vmem:[#allocation3 + $0x3b8] sm:$0x1] %vm31_vm1, %v5191_v1 }
 0x123   :  { %2635 = vst.msk [vmem:[#allocation3 + $0x3d8] sm:$0x1] %vm31_vm1, %v5191_v1 }
 0x124   :  { %2639 = vst.msk [vmem:[#allocation3 + $0x3f8] sm:$0x1] %vm31_vm1, %v5191_v1 }
 0x125   :  { %2643 = vst.msk [vmem:[#allocation3 + $0x418] sm:$0x1] %vm31_vm1, %v5191_v1 }
 0x126   :  { %2647 = vst.msk [vmem:[#allocation3 + $0x438] sm:$0x1] %vm31_vm1, %v5191_v1 }
 0x127   :  { %2651 = vst.msk [vmem:[#allocation3 + $0x458] sm:$0x1] %vm31_vm1, %v5191_v1 }
 0x128   :  { %2655 = vst.msk [vmem:[#allocation3 + $0x478] sm:$0x1] %vm31_vm1, %v5191_v1  ;;  %v212_v1 = vld [vmem:[%s9731_s0 + $0x138] sm:$0xff] }
 0x129   :  { %306 = vst.msk [vmem:[#allocation2 + $0x68] sm:$0xff] %vm27_vm0, %v241_v44  ;;  %v276_v63 = vmax.f32 %v212_v1, 0.0  ;;  %v6122_v44 = vadd.f32 %v856_v19, %v727_v39 }
 0x12a   :  { %307 = vst.msk [vmem:[#allocation2 + $0x70] sm:$0xff] %vm27_vm0, %v242_v45 }
 0x12b   :  { %338 = vst.msk [vmem:[#allocation2 + $0x2a8] sm:$0xff] %vm27_vm0, %v273_v51 }
 0x12c   :  { %339 = vst.msk [vmem:[#allocation2 + $0x2b0] sm:$0xff] %vm27_vm0, %v274_v3 }
 0x12d   :  { %308 = vst.msk [vmem:[#allocation2 + $0x88] sm:$0xff] %vm27_vm0, %v243_v58 }
 0x12e   :  { %309 = vst.msk [vmem:[#allocation2 + $0x90] sm:$0xff] %vm27_vm0, %v244_v46 }
 0x12f   :  { %340 = vst.msk [vmem:[#allocation2 + $0x2c8] sm:$0xff] %vm27_vm0, %v275_v32 }
 0x130   :  { %v6103_v10 = vld [vmem:[#allocation2 + $0x67] sm:$0xff]  ;;  %341 = vst.msk [vmem:[#allocation2 + $0x2d0] sm:$0xff] %vm27_vm0, %v276_v63 }
 0x131   :  { %v6105_v16 = vld [vmem:[#allocation2 + $0x68] sm:$0xff]  ;;  %v1594_v33 = vmul.f32 %v5308_v30, %v6103_v10  ;;  %v6118_v42 = vld [vmem:[#allocation2 + $0x70] sm:$0xff]  ;;  %v1016_v43 = vmul.f32 %v6103_v10, %v5284_v21  ;;  %310 = vst.msk [vmem:[#allocation2 + $0xa8] sm:$0xff] %vm27_vm0, %v245_v25 }
 0x132   :  { %v1787_v13 = vmul.f32 %v5318_v34, %v6105_v16  ;;  %v6114_v37 = vld [vmem:[#allocation2 + $0x69] sm:$0xff]  ;;  %v1788_v51 = vmul.f32 %v5318_v34, %v6118_v42  ;;  %v6135_v3 = vld [vmem:[#allocation2 + $0x71] sm:$0xff]  ;;  %v1209_v4 = vmul.f32 %v6105_v16, %v5286_v22  ;;  %311 = vst.msk [vmem:[#allocation2 + $0xb0] sm:$0xff] %vm27_vm0, %v246_v50 }
 0x133   :  { %v6116_v40 = vld [vmem:[#allocation2 + $0x6f] sm:$0xff]  ;;  %v1980_v45 = vmul.f32 %v5331_v38, %v6114_v37  ;;  %v6127_v47 = vld [vmem:[#allocation2 + $0x2a7] sm:$0xff]  ;;  %v1658_v7 = vadd.f32 %v1594_v33, %v1464_v62  ;;  %v1402_v57 = vmul.f32 %v6114_v37, %v5292_v24  ;;  %342 = vst.msk [vmem:[#allocation2 + $0x2e8] sm:$0xff] %vm27_vm0, %v277_v2  ;;  %v1981_v1 = vmul.f32 %v5331_v38, %v6135_v3 }
 0x134   :  { %v6129_v48 = vld [vmem:[#allocation2 + $0x2a8] sm:$0xff]  ;;  %v1595_v49 = vmul.f32 %v5308_v30, %v6116_v40  ;;  %v1626_v52 = vmul.f32 %v5308_v30, %v6127_v47  ;;  %v6148_v56 = vld [vmem:[#allocation2 + $0x2b0] sm:$0xff]  ;;  %343 = vst.msk [vmem:[#allocation2 + $0x2f0] sm:$0xff] %vm27_vm0, %v278_v28  ;;  %v1080_v17 = vadd.f32 %v1016_v43, %v887_v29  ;;  %v1048_v50 = vmul.f32 %v6127_v47, %v5284_v21 }
 0x135   :  { %v1819_v53 = vmul.f32 %v5318_v34, %v6129_v48  ;;  %v6144_v54 = vld [vmem:[#allocation2 + $0x2a9] sm:$0xff]  ;;  %v1820_v35 = vmul.f32 %v5318_v34, %v6148_v56  ;;  %v6160_v11 = vld [vmem:[#allocation2 + $0x2b1] sm:$0xff]  ;;  %v1851_v18 = vadd.f32 %v1787_v13, %v1658_v7  ;;  %v1241_v62 = vmul.f32 %v6129_v48, %v5286_v22 }
 0x136   :  { %v6146_v55 = vld [vmem:[#allocation2 + $0x2af] sm:$0xff]  ;;  %v1659_v58 = vadd.f32 %v1595_v49, %v5988_v14  ;;  %v6162_v41 = vld [vmem:[#allocation2 + $0x87] sm:$0xff]  ;;  %v1690_v14 = vadd.f32 %v1626_v52, %v5960_v59  ;;  %v2012_v60 = vmul.f32 %v5331_v38, %v6144_v54  ;;  %v2013_v63 = vmul.f32 %v5331_v38, %v6160_v11 }
 0x137   :  { %v1627_v31 = vmul.f32 %v5308_v30, %v6146_v55  ;;  %v6164_v46 = vld [vmem:[#allocation2 + $0x88] sm:$0xff]  ;;  %v1596_v0 = vmul.f32 %v5308_v30, %v6162_v41  ;;  %v2044_v5 = vadd.f32 %v1980_v45, %v1851_v18  ;;  %v1273_v15 = vadd.f32 %v1209_v4, %v1080_v17  ;;  %v6200_v43 = vld [vmem:[#allocation2 + $0x90] sm:$0xff] }
 0x138   :  { %v6170_v23 = vld [vmem:[#allocation2 + $0x89] sm:$0xff]  ;;  %v1852_v32 = vadd.f32 %v1788_v51, %v1659_v58  ;;  %v1883_v6 = vadd.f32 %v1819_v53, %v1690_v14  ;;  %v1789_v59 = vmul.f32 %v5318_v34, %v6164_v46  ;;  %v1434_v33 = vmul.f32 %v6144_v54, %v5292_v24  ;;  %v6214_v58 = vld [vmem:[#allocation2 + $0x91] sm:$0xff] }
 0x139   :  { %v1691_v61 = vadd.f32 %v1627_v31, %v1497_v20  ;;  %v6178_v39 = vld [vmem:[#allocation2 + $0x2c7] sm:$0xff]  ;;  %v1982_v38 = vmul.f32 %v6185_v26, %v6170_v23  ;;  %5016 = vmatmul.msk.f32.gmra.mxu0 %vm27_vm0, %v2044_v5  ;;  %v1466_v28 = vadd.f32 %v1402_v57, %v1273_v15  ;;  %v6198_v13 = vld [vmem:[#allocation2 + $0x8f] sm:$0xff]  ;;  %v1112_v49 = vadd.f32 %v1048_v50, %v6010_v27 }
 0x13a   :  { %v6180_v19 = vld [vmem:[#allocation2 + $0x2c8] sm:$0xff]  ;;  %v2076_v20 = vadd.f32 %v2012_v60, %v1883_v6  ;;  %v2045_v29 = vadd.f32 %v1981_v1, %v1852_v32  ;;  %v1628_v51 = vmul.f32 %v5308_v30, %v6178_v39  ;;  %v1017_v53 = vmul.f32 %v6116_v40, %v5284_v21  ;;  %v6224_v14 = vld [vmem:[#allocation2 + $0x2d0] sm:$0xff] }
 0x13b   :  { %v1884_v25 = vadd.f32 %v1820_v35, %v1691_v61  ;;  %v6193_v2 = vld [vmem:[#allocation2 + $0x2c9] sm:$0xff]  ;;  %v1821_v4 = vmul.f32 %v5318_v34, %v6180_v19  ;;  %v1660_v7 = vadd.f32 %v1596_v0, %v1466_v28  ;;  %v1210_v57 = vmul.f32 %v6118_v42, %v5286_v22  ;;  %v6237_v15 = vld [vmem:[#allocation2 + $0x2d1] sm:$0xff] }
 0x13c   :  { %5048 = vmatmul.msk.f32.gmra.mxu2 %vm27_vm0, %v2076_v20  ;;  %v2014_v52 = vmul.f32 %v6185_v26, %v6193_v2  ;;  %v6216_v27 = vld [vmem:[#allocation2 + $0x2cf] sm:$0xff]  ;;  %v1305_v1 = vadd.f32 %v1241_v62, %v1112_v49  ;;  %v1403_v31 = vmul.f32 %v6135_v3, %v5292_v24  ;;  %v1597_v35 = vmul.f32 %v5308_v30, %v6198_v13  ;;  %v6248_v49 = vld [vmem:[#allocation2 + $0xa7] sm:$0xff] }
 0x13d   :  { %v2077_v45 = vadd.f32 %v2013_v63, %v1884_v25  ;;  %v1790_v18 = vmul.f32 %v5318_v34, %v6200_v43  ;;  %v1853_v60 = vadd.f32 %v1789_v59, %v1660_v7  ;;  %v1081_v17 = vadd.f32 %v1017_v53, %v6108_v36  ;;  %v6250_v7 = vld [vmem:[#allocation2 + $0xa8] sm:$0xff] }
 0x13e   :  { %v1049_v32 = vmul.f32 %v6146_v55, %v5284_v21  ;;  %v1242_v61 = vmul.f32 %v6148_v56, %v5286_v22  ;;  %v1498_v63 = vadd.f32 %v1434_v33, %v1305_v1  ;;  %v1983_v0 = vmul.f32 %v6185_v26, %v6214_v58  ;;  %v6257_v53 = vld [vmem:[#allocation2 + $0xa9] sm:$0xff] }
 0x13f   :  { %v1435_v5 = vmul.f32 %v6160_v11, %v5292_v24  ;;  %v1629_v6 = vmul.f32 %v5308_v30, %v6216_v27  ;;  %v2046_v59 = vadd.f32 %v1982_v38, %v1853_v60  ;;  %v1274_v36 = vadd.f32 %v1210_v57, %v1081_v17 }
 0x140   :  { %v1113_v25 = vadd.f32 %v1049_v32, %v6122_v44  ;;  %v1822_v50 = vmul.f32 %v5318_v34, %v6224_v14  ;;  %v1692_v62 = vadd.f32 %v1628_v51, %v1498_v63  ;;  %v439_v20 = vmul.f32 %v6103_v10, %v5263_v8 }
 0x141   :  { %v632_v28 = vmul.f32 %v6105_v16, %v5267_v9  ;;  %v825_v33 = vmul.f32 %v6114_v37, %v5273_v12  ;;  %5017 = vmatmul.msk.f32.gmra.mxu0 %vm27_vm0, %v2045_v29  ;;  %v1467_v44 = vadd.f32 %v1403_v31, %v1274_v36  ;;  %v2015_v51 = vmul.f32 %v6185_v26, %v6237_v15 }
 0x142   :  { %v1306_v38 = vadd.f32 %v1242_v61, %v1113_v25  ;;  %v1018_v10 = vmul.f32 %v6162_v41, %v5284_v21  ;;  %v1885_v16 = vadd.f32 %v1821_v4, %v1692_v62  ;;  %v1211_v37 = vmul.f32 %v6164_v46, %v5286_v22  ;;  %v6280_v62 = vld [vmem:[#allocation2 + $0x2e8] sm:$0xff] }
 0x143   :  { %v696_v57 = vadd.f32 %v632_v28, %v439_v20  ;;  %v1404_v1 = vmul.f32 %v6170_v23, %v5292_v24  ;;  %v1661_v29 = vadd.f32 %v1597_v35, %v1467_v44  ;;  %v1598_v60 = vmul.f32 %v5308_v30, %v6248_v49  ;;  %v6286_v44 = vld [vmem:[#allocation2 + $0x2e9] sm:$0xff] }
 0x144   :  { %5049 = vmatmul.msk.f32.gmra.mxu2 %vm27_vm0, %v2077_v45  ;;  %v1499_v31 = vadd.f32 %v1435_v5, %v1306_v38  ;;  %v1791_v17 = vmul.f32 %v5318_v34, %v6250_v7  ;;  %v6270_v4 = vmul.f32 %v6185_v26, %v6257_v53  ;;  %v471_v61 = vmul.f32 %v6127_v47, %v5263_v8  ;;  %v6276_v45 = vld [vmem:[#allocation2 + $0x2e7] sm:$0xff] }
 0x145   :  { %v889_v32 = vadd.f32 %v825_v33, %v696_v57  ;;  %v664_v63 = vmul.f32 %v6129_v48, %v5267_v9  ;;  %v2078_v35 = vadd.f32 %v2014_v52, %v1885_v16  ;;  %v1854_v5 = vadd.f32 %v1790_v18, %v1661_v29  ;;  %v6296_v57 = vld [vmem:[#allocation2 + $0xaf] sm:$0xff] }
 0x146   :  { %v1693_v36 = vadd.f32 %v1629_v6, %v1499_v31  ;;  %v857_v25 = vmul.f32 %v6144_v54, %v5273_v12  ;;  %v1050_v33 = vmul.f32 %v6178_v39, %v5284_v21  ;;  %v1243_v47 = vmul.f32 %v6180_v19, %v5286_v22  ;;  %v6298_v29 = vld [vmem:[#allocation2 + $0xb0] sm:$0xff] }
 0x147   :  { %v1082_v20 = vadd.f32 %v1018_v10, %v889_v32  ;;  %v728_v28 = vadd.f32 %v664_v63, %v471_v61  ;;  %v2047_v48 = vadd.f32 %v1983_v0, %v1854_v5  ;;  %v1436_v52 = vmul.f32 %v6193_v2, %v5292_v24  ;;  %v6311_v5 = vld [vmem:[#allocation2 + $0xb1] sm:$0xff] }
 0x148   :  { %v1886_v38 = vadd.f32 %v1822_v50, %v1693_v36  ;;  %v1630_v54 = vmul.f32 %v5308_v30, %v6276_v45  ;;  %v1823_v10 = vmul.f32 %v5318_v34, %v6280_v62  ;;  %v440_v16 = vmul.f32 %v6116_v40, %v5263_v8 }
 0x149   :  { %v1275_v18 = vadd.f32 %v1211_v37, %v1082_v20  ;;  %v921_v6 = vadd.f32 %v857_v25, %v728_v28  ;;  %5018 = vmatmul.msk.f32.gmra.mxu0 %vm27_vm0, %v2046_v59  ;;  %v2016_v50 = vmul.f32 %v6185_v26, %v6286_v44  ;;  %v633_v37 = vmul.f32 %v6118_v42, %v5267_v9  ;;  %v6324_v28 = vld [vmem:[#allocation2 + $0x2ef] sm:$0xff] }
 0x14a   :  { %v2079_v0 = vadd.f32 %v2015_v51, %v1886_v38  ;;  %v826_v31 = vmul.f32 %v6135_v3, %v5273_v12  ;;  %v1019_v40 = vmul.f32 %v6198_v13, %v5284_v21  ;;  %v1212_v63 = vmul.f32 %v6200_v43, %v5286_v22 }
 0x14b   :  { %v1468_v32 = vadd.f32 %v1404_v1, %v1275_v18  ;;  %v1114_v61 = vadd.f32 %v1050_v33, %v921_v6  ;;  %v697_v59 = vadd.f32 %v633_v37, %v440_v16  ;;  %v1405_v51 = vmul.f32 %v6214_v58, %v5292_v24 }
 0x14c   :  { %5050 = vmatmul.msk.f32.gmra.mxu2 %vm27_vm0, %v2078_v35  ;;  %v1599_v42 = vmul.f32 %v5308_v30, %v6296_v57  ;;  %v1792_v3 = vmul.f32 %v5318_v34, %v6298_v29  ;;  %v472_v25 = vmul.f32 %v6146_v55, %v5263_v8  ;;  %v665_v20 = vmul.f32 %v6148_v56, %v5267_v9  ;;  %v6326_v35 = vld [vmem:[#allocation2 + $0x2f0] sm:$0xff] }
 0x14d   :  { %v1662_v1 = vadd.f32 %v1598_v60, %v1468_v32  ;;  %v1307_v36 = vadd.f32 %v1243_v47, %v1114_v61  ;;  %9918 = vst [vmem:[#allocation7_spill] sm:$0xff] %v6326_v35  ;;  %v890_v33 = vadd.f32 %v826_v31, %v697_v59  ;;  %v1985_v38 = vmul.f32 %v6185_v26, %v6311_v5  ;;  %v6334_v47 = vld [vmem:[#allocation2 + $0x2f1] sm:$0xff] }
 0x14e   :  { %v858_v18 = vmul.f32 %v6160_v11, %v5273_v12  ;;  %v1051_v60 = vmul.f32 %v6216_v27, %v5284_v21  ;;  %v183_v55 = vld [vmem:[%s9731_s0 + $0x50] sm:$0xff]  ;;  %v729_v16 = vadd.f32 %v665_v20, %v472_v25  ;;  %v1244_v37 = vmul.f32 %v6224_v14, %v5286_v22  ;;  %v184_v31 = vld [vmem:[%s9731_s0 + $0x58] sm:$0xff] }
 0x14f   :  { %v1855_v56 = vadd.f32 %v1791_v17, %v1662_v1  ;;  %v1500_v6 = vadd.f32 %v1436_v52, %v1307_v36  ;;  %v1083_v11 = vadd.f32 %v1019_v40, %v890_v33  ;;  %v1437_v32 = vmul.f32 %v6237_v15, %v5292_v24  ;;  %v215_v25 = vld [vmem:[%s9731_s0 + $0x150] sm:$0xff] }
 0x150   :  { %v1631_v61 = vmul.f32 %v5308_v30, %v6324_v28  ;;  %v1824_v59 = vmul.f32 %v5318_v34, %v6326_v35  ;;  %v922_v52 = vadd.f32 %v858_v18, %v729_v16  ;;  %v2017_v1 = vmul.f32 %v6185_v26, %v6334_v47 }
 0x151   :  { %v1694_v17 = vadd.f32 %v1630_v54, %v1500_v6  ;;  %v247_v36 = vmax.f32 %v183_v55, 0.0  ;;  %5019 = vmatmul.msk.f32.gmra.mxu0 %vm27_vm0, %v2047_v48  ;;  %v1276_v40 = vadd.f32 %v1212_v63, %v1083_v11  ;;  %v248_v20 = vmax.f32 %v184_v31, 0.0  ;;  %v216_v54 = vld [vmem:[%s9731_s0 + $0x158] sm:$0xff] }
 0x152   :  { %v441_v33 = vmul.f32 %v6162_v41, %v5263_v8  ;;  %v634_v35 = vmul.f32 %v6164_v46, %v5267_v9  ;;  %v2048_v18 = vadd.f32 %v6270_v4, %v1855_v56  ;;  %v1115_v6 = vadd.f32 %v1051_v60, %v922_v52 }
 0x153   :  { %v1887_v55 = vadd.f32 %v1823_v10, %v1694_v17  ;;  %312 = vst.msk [vmem:[#allocation2 + $0xc8] sm:$0xff] %vm27_vm0, %v247_v36  ;;  %v827_v48 = vmul.f32 %v6170_v23, %v5273_v12  ;;  %v1469_v63 = vadd.f32 %v1405_v51, %v1276_v40  ;;  %v1020_v46 = vmul.f32 %v6248_v49, %v5284_v21 }
 0x154   :  { %5051 = vmatmul.msk.f32.gmra.mxu2 %vm27_vm0, %v2079_v0  ;;  %313 = vst.msk [vmem:[#allocation2 + $0xd0] sm:$0xff] %vm27_vm0, %v248_v20  ;;  %v698_v41 = vadd.f32 %v634_v35, %v441_v33  ;;  %v279_v16 = vmax.f32 %v215_v25, 0.0  ;;  %v1308_v11 = vadd.f32 %v1244_v37, %v1115_v6  ;;  %v1213_v4 = vmul.f32 %v6250_v7, %v5286_v22 }
 0x155   :  { %v2080_v31 = vadd.f32 %v2016_v50, %v1887_v55  ;;  %v280_v10 = vmax.f32 %v216_v54, 0.0  ;;  %v1663_v60 = vadd.f32 %v1599_v42, %v1469_v63  ;;  %v473_v23 = vmul.f32 %v6178_v39, %v5263_v8 }
 0x156   :  { %v891_v56 = vadd.f32 %v827_v48, %v698_v41  ;;  %344 = vst.msk [vmem:[#allocation2 + $0x308] sm:$0xff] %vm27_vm0, %v279_v16  ;;  %v666_v0 = vmul.f32 %v6180_v19, %v5267_v9  ;;  %v1501_v51 = vadd.f32 %v1437_v32, %v1308_v11  ;;  %v1406_v35 = vmul.f32 %v6257_v53, %v5292_v24 }
 0x157   :  { %345 = vst.msk [vmem:[#allocation2 + $0x310] sm:$0xff] %vm27_vm0, %v280_v10  ;;  %v859_v50 = vmul.f32 %v6193_v2, %v5273_v12  ;;  %v1052_v42 = vmul.f32 %v6276_v45, %v5284_v21  ;;  %v1856_v37 = vadd.f32 %v1792_v3, %v1663_v60  ;;  %v1245_v39 = vmul.f32 %v6280_v62, %v5286_v22 }
 0x158   :  { %v1084_v17 = vadd.f32 %v1020_v46, %v891_v56  ;;  %v730_v52 = vadd.f32 %v666_v0, %v473_v23  ;;  %v1695_v36 = vadd.f32 %v1631_v61, %v1501_v51  ;;  %v442_v19 = vmul.f32 %v6198_v13, %v5263_v8 }
 0x159   :  { %v635_v32 = vmul.f32 %v6200_v43, %v5267_v9  ;;  %v828_v25 = vmul.f32 %v6214_v58, %v5273_v12  ;;  %5020 = vmatmul.msk.f32.gmra.mxu0 %vm27_vm0, %v2048_v18  ;;  %v2049_v2 = vadd.f32 %v1985_v38, %v1856_v37  ;;  %v1438_v61 = vmul.f32 %v6286_v44, %v5292_v24 }
 0x15a   :  { %v1277_v40 = vadd.f32 %v1213_v4, %v1084_v17  ;;  %v6394_v3 = vld [vmem:[#allocation2 + $0xc7] sm:$0xff]  ;;  %v923_v33 = vadd.f32 %v859_v50, %v730_v52  ;;  %v1888_v54 = vadd.f32 %v1824_v59, %v1695_v36  ;;  %v1021_v58 = vmul.f32 %v6296_v57, %v5284_v21 }
 0x15b   :  { %v6396_v20 = vld [vmem:[#allocation2 + $0xc8] sm:$0xff]  ;;  %v1600_v13 = vmul.f32 %v5308_v30, %v6394_v3  ;;  %v699_v55 = vadd.f32 %v635_v32, %v442_v19  ;;  %v6413_v63 = vld [vmem:[#allocation2 + $0xd0] sm:$0xff]  ;;  %v1214_v4 = vmul.f32 %v6298_v29, %v5286_v22  ;;  %v474_v52 = vmul.f32 %v6216_v27, %v5263_v8  ;;  %v185_v27 = vld [vmem:[%s9731_s0 + $0x60] sm:$0xff] }
 0x15c   :  { %v6402_v43 = vld [vmem:[#allocation2 + $0xc9] sm:$0xff]  ;;  %5052 = vmatmul.msk.f32.gmra.mxu2 %vm27_vm0, %v2080_v31  ;;  %v1470_v18 = vadd.f32 %v1406_v35, %v1277_v40  ;;  %v1793_v6 = vmul.f32 %v5318_v34, %v6396_v20  ;;  %v1116_v48 = vadd.f32 %v1052_v42, %v923_v33  ;;  %v2081_v41 = vadd.f32 %v2017_v1, %v1888_v54  ;;  %v6429_v0 = vld [vmem:[#allocation2 + $0xd1] sm:$0xff] }
 0x15d   :  { %v6406_v38 = vld [vmem:[#allocation2 + $0xcf] sm:$0xff]  ;;  %v1986_v59 = vmul.f32 %v6185_v26, %v6402_v43  ;;  %v6415_v46 = vld [vmem:[#allocation2 + $0x307] sm:$0xff]  ;;  %v892_v11 = vadd.f32 %v828_v25, %v699_v55  ;;  %v1407_v31 = vmul.f32 %v6311_v5, %v5292_v24  ;;  %v1794_v42 = vmul.f32 %v5318_v34, %v6413_v63 }
 0x15e   :  { %v6417_v16 = vld [vmem:[#allocation2 + $0x308] sm:$0xff]  ;;  %v1664_v10 = vadd.f32 %v1600_v13, %v1470_v18  ;;  %v1309_v60 = vadd.f32 %v1245_v39, %v1116_v48  ;;  %v1632_v56 = vmul.f32 %v5308_v30, %v6415_v46  ;;  %v1601_v1 = vmul.f32 %v5308_v30, %v6406_v38  ;;  %v6443_v19 = vld [vmem:[#allocation2 + $0x310] sm:$0xff]  ;;  %v9919_v55 = vld [vmem:[#allocation7_spill] sm:$0xff] }
 0x15f   :  { %v6425_v23 = vld [vmem:[#allocation2 + $0x309] sm:$0xff]  ;;  %v1825_v51 = vmul.f32 %v5318_v34, %v6417_v16  ;;  %v1085_v50 = vadd.f32 %v1021_v58, %v892_v11  ;;  %v667_v39 = vmul.f32 %v6224_v14, %v5267_v9  ;;  %v1987_v25 = vmul.f32 %v6185_v26, %v6429_v0  ;;  %v6466_v11 = vld [vmem:[#allocation2 + $0x311] sm:$0xff] }
 0x160   :  { %v2018_v35 = vmul.f32 %v6185_v26, %v6425_v23  ;;  %v1857_v37 = vadd.f32 %v1793_v6, %v1664_v10  ;;  %v1502_v17 = vadd.f32 %v1438_v61, %v1309_v60  ;;  %v6441_v36 = vld [vmem:[#allocation2 + $0x30f] sm:$0xff]  ;;  %v860_v40 = vmul.f32 %v6237_v15, %v5273_v12 }
 0x161   :  { %v1278_v32 = vadd.f32 %v1214_v4, %v1085_v50  ;;  %v1053_v33 = vmul.f32 %v6324_v28, %v5284_v21  ;;  %v186_v14 = vld [vmem:[%s9731_s0 + $0x68] sm:$0xff]  ;;  %5021 = vmatmul.msk.f32.gmra.mxu0 %vm27_vm0, %v2049_v2  ;;  %v731_v13 = vadd.f32 %v667_v39, %v474_v52  ;;  %v1246_v58 = vmul.f32 %v9919_v55, %v5286_v22 }
 0x162   :  { %v2050_v61 = vadd.f32 %v1986_v59, %v1857_v37  ;;  %v1696_v54 = vadd.f32 %v1632_v56, %v1502_v17  ;;  %v1439_v18 = vmul.f32 %v6334_v47, %v5292_v24  ;;  %v1633_v6 = vmul.f32 %v5308_v30, %v6441_v36 }
 0x163   :  { %v1471_v15 = vadd.f32 %v1407_v31, %v1278_v32  ;;  %v1826_v48 = vmul.f32 %v5318_v34, %v6443_v19  ;;  %v924_v59 = vadd.f32 %v860_v40, %v731_v13  ;;  %v249_v4 = vmax.f32 %v185_v27, 0.0  ;;  %v217_v31 = vld [vmem:[%s9731_s0 + $0x160] sm:$0xff] }
 0x164   :  { %5053 = vmatmul.msk.f32.gmra.mxu2 %vm27_vm0, %v2081_v41  ;;  %v1889_v2 = vadd.f32 %v1825_v51, %v1696_v54  ;;  %v250_v10 = vmax.f32 %v186_v14, 0.0  ;;  %v443_v56 = vmul.f32 %v6248_v49, %v5263_v8  ;;  %v636_v50 = vmul.f32 %v6250_v7, %v5267_v9  ;;  %v218_v41 = vld [vmem:[%s9731_s0 + $0x168] sm:$0xff] }
 0x165   :  { %v1665_v60 = vadd.f32 %v1601_v1, %v1471_v15  ;;  %v829_v37 = vmul.f32 %v6257_v53, %v5273_v12  ;;  %v1117_v17 = vadd.f32 %v1053_v33, %v924_v59  ;;  %v2019_v52 = vmul.f32 %v6185_v26, %v6466_v11  ;;  %314 = vst.msk [vmem:[#allocation2 + $0xe8] sm:$0xff] %vm27_vm0, %v249_v4 }
 0x166   :  { %v2082_v51 = vadd.f32 %v2018_v35, %v1889_v2  ;;  %v1022_v49 = vmul.f32 %v6394_v3, %v5284_v21  ;;  %315 = vst.msk [vmem:[#allocation2 + $0xf0] sm:$0xff] %vm27_vm0, %v250_v10  ;;  %v700_v7 = vadd.f32 %v636_v50, %v443_v56  ;;  %v1215_v53 = vmul.f32 %v6396_v20, %v5286_v22  ;;  %v187_v35 = vld [vmem:[%s9731_s0 + $0x70] sm:$0xff] }
 0x167   :  { %v1858_v1 = vadd.f32 %v1794_v42, %v1665_v60  ;;  %v281_v39 = vmax.f32 %v217_v31, 0.0  ;;  %v1310_v32 = vadd.f32 %v1246_v58, %v1117_v17  ;;  %v282_v40 = vmax.f32 %v218_v41, 0.0 }
 0x168   :  { %v475_v33 = vmul.f32 %v6276_v45, %v5263_v8  ;;  %v668_v27 = vmul.f32 %v6280_v62, %v5267_v9  ;;  %v893_v14 = vadd.f32 %v829_v37, %v700_v7  ;;  %v1408_v54 = vmul.f32 %v6402_v43, %v5292_v24 }
 0x169   :  { %v2051_v42 = vadd.f32 %v1987_v25, %v1858_v1  ;;  %346 = vst.msk [vmem:[#allocation2 + $0x328] sm:$0xff] %vm27_vm0, %v281_v39  ;;  %v861_v13 = vmul.f32 %v6286_v44, %v5273_v12  ;;  %5022 = vmatmul.msk.f32.gmra.mxu0 %vm27_vm0, %v2050_v61  ;;  %v1503_v58 = vadd.f32 %v1439_v18, %v1310_v32  ;;  %v251_v62 = vmax.f32 %v187_v35, 0.0 }
 0x16a   :  { %347 = vst.msk [vmem:[#allocation2 + $0x330] sm:$0xff] %vm27_vm0, %v282_v40  ;;  %v732_v15 = vadd.f32 %v668_v27, %v475_v33  ;;  %v1054_v45 = vmul.f32 %v6415_v46, %v5284_v21  ;;  %v1086_v25 = vadd.f32 %v1022_v49, %v893_v14  ;;  %v1247_v2 = vmul.f32 %v6417_v16, %v5286_v22 }
 0x16b   :  { %v444_v59 = vmul.f32 %v6296_v57, %v5263_v8  ;;  %v637_v44 = vmul.f32 %v6298_v29, %v5267_v9  ;;  %v1697_v61 = vadd.f32 %v1633_v6, %v1503_v58  ;;  %v1440_v4 = vmul.f32 %v6425_v23, %v5292_v24  ;;  %316 = vst.msk [vmem:[#allocation2 + $0x108] sm:$0xff] %vm27_vm0, %v251_v62 }
 0x16c   :  { %5054 = vmatmul.msk.f32.gmra.mxu2 %vm27_vm0, %v2082_v51  ;;  %v925_v18 = vadd.f32 %v861_v13, %v732_v15  ;;  %v830_v10 = vmul.f32 %v6311_v5, %v5273_v12  ;;  %v1279_v31 = vadd.f32 %v1215_v53, %v1086_v25  ;;  %v6516_v60 = vld [vmem:[#allocation2 + $0xe7] sm:$0xff]  ;;  %v1023_v57 = vmul.f32 %v6406_v38, %v5284_v21 }
 0x16d   :  { %v6518_v56 = vld [vmem:[#allocation2 + $0xe8] sm:$0xff]  ;;  %v701_v50 = vadd.f32 %v637_v44, %v444_v59  ;;  %v1216_v29 = vmul.f32 %v6413_v63, %v5286_v22  ;;  %v1890_v6 = vadd.f32 %v1826_v48, %v1697_v61  ;;  %v1602_v37 = vmul.f32 %v5308_v30, %v6516_v60  ;;  %v6533_v49 = vld [vmem:[#allocation2 + $0xf0] sm:$0xff] }
 0x16e   :  { %v6527_v41 = vld [vmem:[#allocation2 + $0xe9] sm:$0xff]  ;;  %v1118_v5 = vadd.f32 %v1054_v45, %v925_v18  ;;  %v1409_v51 = vmul.f32 %v6429_v0, %v5292_v24  ;;  %v1472_v1 = vadd.f32 %v1408_v54, %v1279_v31  ;;  %v1795_v7 = vmul.f32 %v5318_v34, %v6518_v56  ;;  %v6539_v39 = vld [vmem:[#allocation2 + $0xf1] sm:$0xff] }
 0x16f   :  { %v6531_v17 = vld [vmem:[#allocation2 + $0xef] sm:$0xff]  ;;  %v1988_v48 = vmul.f32 %v6185_v26, %v6527_v41  ;;  %v894_v53 = vadd.f32 %v830_v10, %v701_v50  ;;  %v2083_v35 = vadd.f32 %v2019_v52, %v1890_v6  ;;  %v1796_v14 = vmul.f32 %v5318_v34, %v6533_v49  ;;  %v188_v10 = vld [vmem:[%s9731_s0 + $0x78] sm:$0xff] }
 0x170   :  { %v1311_v32 = vadd.f32 %v1247_v2, %v1118_v5  ;;  %v6541_v40 = vld [vmem:[#allocation2 + $0x327] sm:$0xff]  ;;  %v1603_v27 = vmul.f32 %v5308_v30, %v6531_v17  ;;  %v1666_v54 = vadd.f32 %v1602_v37, %v1472_v1  ;;  %v1989_v52 = vmul.f32 %v6185_v26, %v6539_v39 }
 0x171   :  { %v6543_v33 = vld [vmem:[#allocation2 + $0x328] sm:$0xff]  ;;  %v1634_v13 = vmul.f32 %v5308_v30, %v6541_v40  ;;  %v1087_v15 = vadd.f32 %v1023_v57, %v894_v53  ;;  %5023 = vmatmul.msk.f32.gmra.mxu0 %vm27_vm0, %v2051_v42  ;;  %v476_v25 = vmul.f32 %v6324_v28, %v5263_v8  ;;  %v669_v2 = vmul.f32 %v9919_v55, %v5267_v9  ;;  %v6582_v37 = vld [vmem:[#allocation2 + $0x331] sm:$0xff] }
 0x172   :  { %v6551_v58 = vld [vmem:[#allocation2 + $0x329] sm:$0xff]  ;;  %v1504_v45 = vadd.f32 %v1440_v4, %v1311_v32  ;;  %v1827_v62 = vmul.f32 %v5318_v34, %v6543_v33  ;;  %v1859_v44 = vadd.f32 %v1795_v7, %v1666_v54  ;;  %v862_v42 = vmul.f32 %v6334_v47, %v5273_v12 }
 0x173   :  { %v6562_v59 = vld [vmem:[#allocation2 + $0x32f] sm:$0xff]  ;;  %v2020_v61 = vmul.f32 %v6185_v26, %v6551_v58  ;;  %v1280_v18 = vadd.f32 %v1216_v29, %v1087_v15  ;;  %v733_v55 = vadd.f32 %v669_v2, %v476_v25  ;;  %v1055_v31 = vmul.f32 %v6441_v36, %v5284_v21  ;;  %v6592_v54 = vld [vmem:[#allocation2 + $0x107] sm:$0xff]  ;;  %v220_v15 = vld [vmem:[%s9731_s0 + $0x178] sm:$0xff] }
 0x174   :  { %v6568_v4 = vld [vmem:[#allocation2 + $0x330] sm:$0xff]  ;;  %5055 = vmatmul.msk.f32.gmra.mxu2 %vm27_vm0, %v2083_v35  ;;  %v1698_v28 = vadd.f32 %v1634_v13, %v1504_v45  ;;  %v1248_v50 = vmul.f32 %v6443_v19, %v5286_v22  ;;  %v2052_v57 = vadd.f32 %v1988_v48, %v1859_v44  ;;  %v1441_v47 = vmul.f32 %v6466_v11, %v5292_v24 }
 0x175   :  { %v1473_v29 = vadd.f32 %v1409_v51, %v1280_v18  ;;  %v1635_v6 = vmul.f32 %v5308_v30, %v6562_v59  ;;  %v926_v1 = vadd.f32 %v862_v42, %v733_v55  ;;  %v1828_v7 = vmul.f32 %v5318_v34, %v6568_v4  ;;  %v219_v13 = vld [vmem:[%s9731_s0 + $0x170] sm:$0xff] }
 0x176   :  { %v1891_v5 = vadd.f32 %v1827_v62, %v1698_v28  ;;  %v252_v53 = vmax.f32 %v188_v10, 0.0  ;;  %v445_v32 = vmul.f32 %v6394_v3, %v5263_v8  ;;  %v638_v51 = vmul.f32 %v6396_v20, %v5267_v9 }
 0x177   :  { %v1667_v35 = vadd.f32 %v1603_v27, %v1473_v29  ;;  %v831_v48 = vmul.f32 %v6402_v43, %v5273_v12  ;;  %v1119_v45 = vadd.f32 %v1055_v31, %v926_v1  ;;  %v2021_v3 = vmul.f32 %v6185_v26, %v6582_v37  ;;  %v6605_v43 = vld [vmem:[#allocation2 + $0x108] sm:$0xff] }
 0x178   :  { %v2084_v27 = vadd.f32 %v2020_v61, %v1891_v5  ;;  %317 = vst.msk [vmem:[#allocation2 + $0x110] sm:$0xff] %vm27_vm0, %v252_v53  ;;  %v1024_v20 = vmul.f32 %v6516_v60, %v5284_v21  ;;  %v702_v25 = vadd.f32 %v638_v51, %v445_v32  ;;  %v1217_v2 = vmul.f32 %v6518_v56, %v5286_v22  ;;  %v189_v61 = vld [vmem:[%s9731_s0 + $0x80] sm:$0xff] }
 0x179   :  { %v1860_v62 = vadd.f32 %v1796_v14, %v1667_v35  ;;  %v1410_v44 = vmul.f32 %v6527_v41, %v5292_v24  ;;  %5024 = vmatmul.msk.f32.gmra.mxu0 %vm27_vm0, %v2052_v57  ;;  %v1312_v18 = vadd.f32 %v1248_v50, %v1119_v45  ;;  %v1604_v42 = vmul.f32 %v5308_v30, %v6592_v54 }
 0x17a   :  { %v283_v10 = vmax.f32 %v219_v13, 0.0  ;;  %v284_v28 = vmax.f32 %v220_v15, 0.0  ;;  %v895_v14 = vadd.f32 %v831_v48, %v702_v25  ;;  %v1797_v55 = vmul.f32 %v5318_v34, %v6605_v43 }
 0x17b   :  { %v477_v31 = vmul.f32 %v6415_v46, %v5263_v8  ;;  %v670_v29 = vmul.f32 %v6417_v16, %v5267_v9  ;;  %v2053_v5 = vadd.f32 %v1989_v52, %v1860_v62  ;;  %v1505_v57 = vadd.f32 %v1441_v47, %v1312_v18 }
 0x17c   :  { %5056 = vmatmul.msk.f32.gmra.mxu2 %vm27_vm0, %v2084_v27  ;;  %348 = vst.msk [vmem:[#allocation2 + $0x348] sm:$0xff] %vm27_vm0, %v283_v10  ;;  %v863_v50 = vmul.f32 %v6425_v23, %v5273_v12  ;;  %v253_v1 = vmax.f32 %v189_v61, 0.0  ;;  %v1088_v53 = vadd.f32 %v1024_v20, %v895_v14  ;;  %v1056_v46 = vmul.f32 %v6541_v40, %v5284_v21 }
 0x17d   :  { %349 = vst.msk [vmem:[#allocation2 + $0x350] sm:$0xff] %vm27_vm0, %v284_v28  ;;  %v734_v35 = vadd.f32 %v670_v29, %v477_v31  ;;  %v1249_v16 = vmul.f32 %v6543_v33, %v5286_v22  ;;  %v1699_v32 = vadd.f32 %v1635_v6, %v1505_v57  ;;  %v446_v52 = vmul.f32 %v6406_v38, %v5263_v8 }
 0x17e   :  { %v639_v47 = vmul.f32 %v6413_v63, %v5267_v9  ;;  %v832_v23 = vmul.f32 %v6429_v0, %v5273_v12  ;;  %318 = vst.msk [vmem:[#allocation2 + $0x128] sm:$0xff] %vm27_vm0, %v253_v1  ;;  %v1281_v51 = vadd.f32 %v1217_v2, %v1088_v53  ;;  %v1442_v15 = vmul.f32 %v6551_v58, %v5292_v24 }
 0x17f   :  { %v6639_v48 = vld [vmem:[#allocation2 + $0x109] sm:$0xff]  ;;  %v927_v13 = vadd.f32 %v863_v50, %v734_v35  ;;  %v1025_v6 = vmul.f32 %v6531_v17, %v5284_v21  ;;  %v1892_v63 = vadd.f32 %v1828_v7, %v1699_v32  ;;  %v1218_v20 = vmul.f32 %v6533_v49, %v5286_v22  ;;  %v6657_v18 = vld [vmem:[#allocation2 + $0x111] sm:$0xff] }
 0x180   :  { %v6645_v27 = vld [vmem:[#allocation2 + $0x10f] sm:$0xff]  ;;  %v1990_v0 = vmul.f32 %v6185_v26, %v6639_v48  ;;  %v703_v45 = vadd.f32 %v639_v47, %v446_v52  ;;  %v1474_v62 = vadd.f32 %v1410_v44, %v1281_v51  ;;  %v1411_v2 = vmul.f32 %v6539_v39, %v5292_v24 }
 0x181   :  { %v6647_v38 = vld [vmem:[#allocation2 + $0x110] sm:$0xff]  ;;  %v1120_v25 = vadd.f32 %v1056_v46, %v927_v13  ;;  %v1605_v61 = vmul.f32 %v5308_v30, %v6645_v27  ;;  %5025 = vmatmul.msk.f32.gmra.mxu0 %vm27_vm0, %v2053_v5  ;;  %v2085_v7 = vadd.f32 %v2021_v3, %v1892_v63  ;;  %v478_v14 = vmul.f32 %v6441_v36, %v5263_v8  ;;  %v190_v52 = vld [vmem:[%s9731_s0 + $0x88] sm:$0xff] }
 0x182   :  { %v896_v10 = vadd.f32 %v832_v23, %v703_v45  ;;  %v1798_v28 = vmul.f32 %v5318_v34, %v6647_v38  ;;  %v1668_v44 = vadd.f32 %v1604_v42, %v1474_v62  ;;  %v671_v50 = vmul.f32 %v6443_v19, %v5267_v9  ;;  %v221_v62 = vld [vmem:[%s9731_s0 + $0x180] sm:$0xff] }
 0x183   :  { %v1313_v31 = vadd.f32 %v1249_v16, %v1120_v25  ;;  %v6664_v29 = vld [vmem:[#allocation2 + $0x347] sm:$0xff]  ;;  %v864_v5 = vmul.f32 %v6466_v11, %v5273_v12  ;;  %v1991_v53 = vmul.f32 %v6185_v26, %v6657_v18  ;;  %v1057_v11 = vmul.f32 %v6562_v59, %v5284_v21 }
 0x184   :  { %v6666_v57 = vld [vmem:[#allocation2 + $0x348] sm:$0xff]  ;;  %5057 = vmatmul.msk.f32.gmra.mxu2 %vm27_vm0, %v2085_v7  ;;  %v1636_v3 = vmul.f32 %v5308_v30, %v6664_v29  ;;  %v1089_v1 = vadd.f32 %v1025_v6, %v896_v10  ;;  %v1861_v19 = vadd.f32 %v1797_v55, %v1668_v44  ;;  %v735_v16 = vadd.f32 %v671_v50, %v478_v14  ;;  %v6685_v32 = vld [vmem:[#allocation2 + $0x350] sm:$0xff] }
 0x185   :  { %v1829_v36 = vmul.f32 %v5318_v34, %v6666_v57  ;;  %v6677_v42 = vld [vmem:[#allocation2 + $0x349] sm:$0xff]  ;;  %v1506_v46 = vadd.f32 %v1442_v15, %v1313_v31  ;;  %v1250_v51 = vmul.f32 %v6568_v4, %v5286_v22  ;;  %v1443_v55 = vmul.f32 %v6582_v37, %v5292_v24  ;;  %v6698_v45 = vld [vmem:[#allocation2 + $0x351] sm:$0xff] }
 0x186   :  { %v6681_v35 = vld [vmem:[#allocation2 + $0x34f] sm:$0xff]  ;;  %v2022_v47 = vmul.f32 %v6185_v26, %v6677_v42  ;;  %v1282_v23 = vadd.f32 %v1218_v20, %v1089_v1  ;;  %v2054_v13 = vadd.f32 %v1990_v0, %v1861_v19  ;;  %v928_v6 = vadd.f32 %v864_v5, %v735_v16  ;;  %v6711_v50 = vld [vmem:[#allocation2 + $0x127] sm:$0xff] }
 0x187   :  { %v1700_v15 = vadd.f32 %v1636_v3, %v1506_v46  ;;  %v1637_v63 = vmul.f32 %v5308_v30, %v6681_v35  ;;  %v1830_v20 = vmul.f32 %v5318_v34, %v6685_v32  ;;  %v254_v7 = vmax.f32 %v190_v52, 0.0  ;;  %v6724_v46 = vld [vmem:[#allocation2 + $0x128] sm:$0xff] }
 0x188   :  { %v1475_v25 = vadd.f32 %v1411_v2, %v1282_v23  ;;  %v447_v10 = vmul.f32 %v6516_v60, %v5263_v8  ;;  %v1121_v14 = vadd.f32 %v1057_v11, %v928_v6  ;;  %v640_v44 = vmul.f32 %v6518_v56, %v5267_v9  ;;  %v222_v2 = vld [vmem:[%s9731_s0 + $0x188] sm:$0xff] }
 0x189   :  { %v1893_v0 = vadd.f32 %v1829_v36, %v1700_v15  ;;  %v833_v31 = vmul.f32 %v6527_v41, %v5273_v12  ;;  %5026 = vmatmul.msk.f32.gmra.mxu0 %vm27_vm0, %v2054_v13  ;;  %v2023_v60 = vmul.f32 %v6185_v26, %v6698_v45  ;;  %319 = vst.msk [vmem:[#allocation2 + $0x130] sm:$0xff] %vm27_vm0, %v254_v7  ;;  %v285_v3 = vmax.f32 %v221_v62, 0.0 }
 0x18a   :  { %v1669_v5 = vadd.f32 %v1605_v61, %v1475_v25  ;;  %v1026_v56 = vmul.f32 %v6592_v54, %v5284_v21  ;;  %v1314_v41 = vadd.f32 %v1250_v51, %v1121_v14  ;;  %v704_v1 = vadd.f32 %v640_v44, %v447_v10 }
 0x18b   :  { %v2086_v36 = vadd.f32 %v2022_v47, %v1893_v0  ;;  %v1219_v19 = vmul.f32 %v6605_v43, %v5286_v22  ;;  %v1412_v61 = vmul.f32 %v6639_v48, %v5292_v24  ;;  %v1606_v11 = vmul.f32 %v5308_v30, %v6711_v50  ;;  %350 = vst.msk [vmem:[#allocation2 + $0x368] sm:$0xff] %vm27_vm0, %v285_v3 }
 0x18c   :  { %v1862_v16 = vadd.f32 %v1798_v28, %v1669_v5  ;;  %v286_v52 = vmax.f32 %v222_v2, 0.0  ;;  %v1507_v47 = vadd.f32 %v1443_v55, %v1314_v41  ;;  %v897_v23 = vadd.f32 %v833_v31, %v704_v1 }
 0x18d   :  { %5058 = vmatmul.msk.f32.gmra.mxu2 %vm27_vm0, %v2086_v36  ;;  %v479_v51 = vmul.f32 %v6541_v40, %v5263_v8  ;;  %v672_v13 = vmul.f32 %v6543_v33, %v5267_v9  ;;  %v1799_v15 = vmul.f32 %v5318_v34, %v6724_v46  ;;  %v865_v6 = vmul.f32 %v6551_v58, %v5273_v12 }
 0x18e   :  { %v2055_v28 = vadd.f32 %v1991_v53, %v1862_v16  ;;  %351 = vst.msk [vmem:[#allocation2 + $0x370] sm:$0xff] %vm27_vm0, %v286_v52  ;;  %v1058_v62 = vmul.f32 %v6664_v29, %v5284_v21  ;;  %v1701_v55 = vadd.f32 %v1637_v63, %v1507_v47  ;;  %v1090_v25 = vadd.f32 %v1026_v56, %v897_v23 }
 0x18f   :  { %v736_v7 = vadd.f32 %v672_v13, %v479_v51  ;;  %v1251_v40 = vmul.f32 %v6666_v57, %v5286_v22  ;;  %v1444_v33 = vmul.f32 %v6677_v42, %v5292_v24  ;;  %v448_v53 = vmul.f32 %v6531_v17, %v5263_v8 }
 0x190   :  { %v641_v10 = vmul.f32 %v6533_v49, %v5267_v9  ;;  %v834_v58 = vmul.f32 %v6539_v39, %v5273_v12  ;;  %v1894_v0 = vadd.f32 %v1830_v20, %v1701_v55  ;;  %v1283_v14 = vadd.f32 %v1219_v19, %v1090_v25  ;;  %v6753_v63 = vld [vmem:[#allocation2 + $0x129] sm:$0xff]  ;;  %v6774_v16 = vld [vmem:[#allocation2 + $0x131] sm:$0xff] }
 0x191   :  { %v929_v44 = vadd.f32 %v865_v6, %v736_v7  ;;  %v1027_v31 = vmul.f32 %v6645_v27, %v5284_v21  ;;  %v6757_v2 = vld [vmem:[#allocation2 + $0x12f] sm:$0xff]  ;;  %5027 = vmatmul.msk.f32.gmra.mxu0 %vm27_vm0, %v2055_v28  ;;  %v1992_v17 = vmul.f32 %v6185_v26, %v6753_v63  ;;  %v1220_v39 = vmul.f32 %v6647_v38, %v5286_v22 }
 0x192   :  { %v6759_v5 = vld [vmem:[#allocation2 + $0x130] sm:$0xff]  ;;  %v705_v49 = vadd.f32 %v641_v10, %v448_v53  ;;  %v1413_v20 = vmul.f32 %v6657_v18, %v5292_v24  ;;  %v2087_v56 = vadd.f32 %v2023_v60, %v1894_v0  ;;  %v1476_v3 = vadd.f32 %v1412_v61, %v1283_v14  ;;  %v6768_v41 = vld [vmem:[#allocation2 + $0x367] sm:$0xff] }
 0x193   :  { %v1122_v36 = vadd.f32 %v1058_v62, %v929_v44  ;;  %v6770_v1 = vld [vmem:[#allocation2 + $0x368] sm:$0xff]  ;;  %v1607_v19 = vmul.f32 %v5308_v30, %v6757_v2  ;;  %v1638_v52 = vmul.f32 %v5308_v30, %v6768_v41  ;;  %v1800_v60 = vmul.f32 %v5318_v34, %v6759_v5  ;;  %v191_v0 = vld [vmem:[%s9731_s0 + $0x90] sm:$0xff]  ;;  %v6816_v44 = vld [vmem:[%s9734_s3] ss:$0 sm:$0xff] }
 0x194   :  { %v1831_v47 = vmul.f32 %v5318_v34, %v6770_v1  ;;  %v898_v23 = vadd.f32 %v834_v58, %v705_v49  ;;  %v1670_v61 = vadd.f32 %v1606_v11, %v1476_v3  ;;  %v480_v28 = vmul.f32 %v6562_v59, %v5263_v8  ;;  %v2320_v58 = vpop.f32.mrf.mxu0 }
 0x195   :  { %5059 = vmatmul.msk.f32.gmra.mxu2 %vm27_vm0, %v2087_v56  ;;  %v1315_v51 = vadd.f32 %v1251_v40, %v1122_v36  ;;  %v6783_v13 = vld [vmem:[#allocation2 + $0x369] sm:$0xff]  ;;  %v673_v6 = vmul.f32 %v6568_v4, %v5267_v9  ;;  %v1993_v7 = vmul.f32 %v6185_v26, %v6774_v16  ;;  %v866_v11 = vmul.f32 %v6582_v37, %v5273_v12  ;;  %v6820_v3 = vld [vmem:[#allocation2 + $0x371] sm:$0xff] }
 0x196   :  { %v6789_v62 = vld [vmem:[#allocation2 + $0x36f] sm:$0xff]  ;;  %v2024_v55 = vmul.f32 %v6185_v26, %v6783_v13  ;;  %v1091_v25 = vadd.f32 %v1027_v31, %v898_v23  ;;  %v1863_v53 = vadd.f32 %v1799_v15, %v1670_v61  ;;  %v1059_v4 = vmul.f32 %v6681_v35, %v5284_v21  ;;  %v192_v26 = vld [vmem:[%s9731_s0 + $0x98] sm:$0xff] }
 0x197   :  { %v6797_v40 = vld [vmem:[#allocation2 + $0x370] sm:$0xff]  ;;  %v1508_v10 = vadd.f32 %v1444_v33, %v1315_v51  ;;  %v737_v59 = vadd.f32 %v673_v6, %v480_v28  ;;  %v1252_v37 = vmul.f32 %v6685_v32, %v5286_v22  ;;  %v1445_v15 = vmul.f32 %v6698_v45, %v5292_v24 }
 0x198   :  { %v1284_v14 = vadd.f32 %v1220_v39, %v1091_v25  ;;  %v1639_v33 = vmul.f32 %v5308_v30, %v6789_v62  ;;  %v2056_v31 = vadd.f32 %v1992_v17, %v1863_v53  ;;  %v1832_v39 = vmul.f32 %v5318_v34, %v6797_v40 }
 0x199   :  { %v1702_v49 = vadd.f32 %v1638_v52, %v1508_v10  ;;  %v930_v56 = vadd.f32 %v866_v11, %v737_v59  ;;  %v2321_v23 = vadd.f32 %v6816_v44, %v2320_v58  ;;  %v255_v61 = vmax.f32 %v191_v0, 0.0  ;;  %v223_v52 = vld [vmem:[%s9731_s0 + $0x190] sm:$0xff] }
 0x19a   :  { %v1477_v36 = vadd.f32 %v1413_v20, %v1284_v14  ;;  %v256_v51 = vmax.f32 %v192_v26, 0.0  ;;  %5028 = vmatmul.msk.f32.gmra.mxu0 %vm27_vm0, %v2056_v31  ;;  %v449_v25 = vmul.f32 %v6592_v54, %v5263_v8  ;;  %v642_v17 = vmul.f32 %v6605_v43, %v5267_v9  ;;  %v224_v20 = vld [vmem:[%s9731_s0 + $0x198] sm:$0xff] }
 0x19b   :  { %v1895_v28 = vadd.f32 %v1831_v47, %v1702_v49  ;;  %v1123_v6 = vadd.f32 %v1059_v4, %v930_v56  ;;  %v6837_v47 = vld [vmem:[%s9732_s1 + $0x8] ss:$0 sm:$0xff]  ;;  %v2656_v53 = vmax.f32 %v2321_v23, 0.0  ;;  %320 = vst.msk [vmem:[#allocation2 + $0x148] sm:$0xff] %vm27_vm0, %v255_v61  ;;  %v835_v43 = vmul.f32 %v6639_v48, %v5273_v12  ;;  %v2416_v49 = vpop.f32.mrf.mxu2 }
 0x19c   :  { %v1671_v11 = vadd.f32 %v1607_v19, %v1477_v36  ;;  %v2025_v54 = vmul.f32 %v6837_v47, %v6820_v3  ;;  %321 = vst.msk [vmem:[#allocation2 + $0x150] sm:$0xff] %vm27_vm0, %v256_v51  ;;  %v706_v4 = vadd.f32 %v642_v17, %v449_v25  ;;  %v1028_v19 = vmul.f32 %v6711_v50, %v5284_v21 }
 0x19d   :  { %v2088_v10 = vadd.f32 %v2024_v55, %v1895_v28  ;;  %v1316_v59 = vadd.f32 %v1252_v37, %v1123_v6  ;;  %2721 = vst.msk [vmem:[#allocation3 + $0x28] sm:$0xff] %vm27_vm0, %v2656_v53  ;;  %v1221_v0 = vmul.f32 %v6724_v46, %v5286_v22  ;;  %v287_v26 = vmax.f32 %v223_v52, 0.0 }
 0x19e   :  { %v1864_v58 = vadd.f32 %v1800_v60, %v1671_v11  ;;  %v288_v14 = vmax.f32 %v224_v20, 0.0  ;;  %v899_v48 = vadd.f32 %v835_v43, %v706_v4  ;;  %v481_v55 = vmul.f32 %v6664_v29, %v5263_v8 }
 0x19f   :  { %5060 = vmatmul.msk.f32.gmra.mxu2 %vm27_vm0, %v2088_v10  ;;  %v1509_v31 = vadd.f32 %v1445_v15, %v1316_v59  ;;  %v674_v37 = vmul.f32 %v6666_v57, %v5267_v9  ;;  %v1414_v60 = vmul.f32 %v6753_v63, %v5292_v24  ;;  %352 = vst.msk [vmem:[#allocation2 + $0x388] sm:$0xff] %vm27_vm0, %v287_v26 }
 0x1a0   :  { %v2057_v56 = vadd.f32 %v1993_v7, %v1864_v58  ;;  %v867_v36 = vmul.f32 %v6677_v42, %v5273_v12  ;;  %v1060_v15 = vmul.f32 %v6768_v41, %v5284_v21  ;;  %v1092_v61 = vadd.f32 %v1028_v19, %v899_v48  ;;  %353 = vst.msk [vmem:[#allocation2 + $0x390] sm:$0xff] %vm27_vm0, %v288_v14  ;;  %v2323_v7 = vpop.f32.mrf.mxu0 }
 0x1a1   :  { %v1703_v23 = vadd.f32 %v1639_v33, %v1509_v31  ;;  %v738_v29 = vadd.f32 %v674_v37, %v481_v55  ;;  %v1253_v57 = vmul.f32 %v6770_v1, %v5286_v22  ;;  %v2417_v51 = vadd.f32 %v6816_v44, %v2416_v49 }
 0x1a2   :  { %v2324_v28 = vadd.f32 %v6816_v44, %v2323_v7  ;;  %v450_v6 = vmul.f32 %v6645_v27, %v5263_v8  ;;  %v643_v42 = vmul.f32 %v6647_v38, %v5267_v9  ;;  %5029 = vmatmul.msk.f32.gmra.mxu0 %vm27_vm0, %v2057_v56  ;;  %v1285_v25 = vadd.f32 %v1221_v0, %v1092_v61  ;;  %v6872_v17 = vld [vmem:[#allocation2 + $0x147] sm:$0xff] }
 0x1a3   :  { %v1896_v33 = vadd.f32 %v1832_v39, %v1703_v23  ;;  %v6874_v52 = vld [vmem:[#allocation2 + $0x148] sm:$0xff]  ;;  %v931_v20 = vadd.f32 %v867_v36, %v738_v29  ;;  %v1446_v11 = vmul.f32 %v6783_v13, %v5292_v24  ;;  %v1608_v53 = vmul.f32 %v5308_v30, %v6872_v17  ;;  %v193_v39 = vld [vmem:[%s9731_s0 + $0xa0] sm:$0xff] }
 0x1a4   :  { %v6880_v43 = vld [vmem:[#allocation2 + $0x149] sm:$0xff]  ;;  %v2688_v27 = vmax.f32 %v2417_v51, 0.0  ;;  %v2657_v10 = vmax.f32 %v2324_v28, 0.0  ;;  %v836_v38 = vmul.f32 %v6657_v18, %v5273_v12  ;;  %v1478_v4 = vadd.f32 %v1414_v60, %v1285_v25 }
 0x1a5   :  { %v2089_v59 = vadd.f32 %v2025_v54, %v1896_v33  ;;  %v1801_v19 = vmul.f32 %v5318_v34, %v6874_v52  ;;  %v1124_v58 = vadd.f32 %v1060_v15, %v931_v20  ;;  %v6889_v0 = vld [vmem:[#allocation2 + $0x14f] sm:$0xff]  ;;  %v1994_v26 = vmul.f32 %v6837_v47, %v6880_v43 }
 0x1a6   :  { %2753 = vst.msk [vmem:[#allocation3 + $0x268] sm:$0xff] %vm27_vm0, %v2688_v27  ;;  %v707_v14 = vadd.f32 %v643_v42, %v450_v6  ;;  %v1029_v18 = vmul.f32 %v6757_v2, %v5284_v21  ;;  %v1222_v31 = vmul.f32 %v6759_v5, %v5286_v22  ;;  %v6898_v54 = vld [vmem:[#allocation2 + $0x150] sm:$0xff]  ;;  %v1672_v48 = vadd.f32 %v1608_v53, %v1478_v4  ;;  %v6901_v37 = vld [vmem:[#allocation2 + $0x387] sm:$0xff]  ;;  %v2419_v27 = vpop.f32.mrf.mxu2 }
 0x1a7   :  { %5061 = vmatmul.msk.f32.gmra.mxu2 %vm27_vm0, %v2089_v59  ;;  %v1317_v55 = vadd.f32 %v1253_v57, %v1124_v58  ;;  %v6903_v49 = vld [vmem:[#allocation2 + $0x388] sm:$0xff]  ;;  %2722 = vst.msk [vmem:[#allocation3 + $0x30] sm:$0xff] %vm27_vm0, %v2657_v10  ;;  %v1415_v56 = vmul.f32 %v6774_v16, %v5292_v24  ;;  %v257_v60 = vmax.f32 %v193_v39, 0.0  ;;  %v1640_v36 = vmul.f32 %v5308_v30, %v6901_v37  ;;  %v6916_v57 = vld [vmem:[#allocation2 + $0x151] sm:$0xff] }
 0x1a8   :  { %v1833_v15 = vmul.f32 %v5318_v34, %v6903_v49  ;;  %v6912_v23 = vld [vmem:[#allocation2 + $0x389] sm:$0xff]  ;;  %v900_v61 = vadd.f32 %v836_v38, %v707_v14  ;;  %v1609_v29 = vmul.f32 %v5308_v30, %v6889_v0  ;;  %v1865_v7 = vadd.f32 %v1801_v19, %v1672_v48 }
 0x1a9   :  { %v1510_v51 = vadd.f32 %v1446_v11, %v1317_v55  ;;  %v2026_v28 = vmul.f32 %v6837_v47, %v6912_v23  ;;  %v1802_v6 = vmul.f32 %v5318_v34, %v6898_v54  ;;  %322 = vst.msk [vmem:[#allocation2 + $0x168] sm:$0xff] %vm27_vm0, %v257_v60  ;;  %v482_v33 = vmul.f32 %v6681_v35, %v5263_v8  ;;  %v6929_v53 = vld [vmem:[#allocation2 + $0x38f] sm:$0xff] }
 0x1aa   :  { %v1093_v42 = vadd.f32 %v1029_v18, %v900_v61  ;;  %v675_v25 = vmul.f32 %v6685_v32, %v5267_v9  ;;  %v868_v20 = vmul.f32 %v6698_v45, %v5273_v12  ;;  %v6931_v11 = vld [vmem:[#allocation2 + $0x390] sm:$0xff]  ;;  %v2058_v10 = vadd.f32 %v1994_v26, %v1865_v7  ;;  %v194_v35 = vld [vmem:[%s9731_s0 + $0xa8] sm:$0xff] }
 0x1ab   :  { %v1704_v38 = vadd.f32 %v1640_v36, %v1510_v51  ;;  %v1995_v39 = vmul.f32 %v6837_v47, %v6916_v57  ;;  %v1061_v59 = vmul.f32 %v6789_v62, %v5284_v21  ;;  %v1254_v45 = vmul.f32 %v6797_v40, %v5286_v22  ;;  %v6949_v18 = vld [vmem:[#allocation2 + $0x391] sm:$0xff] }
 0x1ac   :  { %v1286_v32 = vadd.f32 %v1222_v31, %v1093_v42  ;;  %v739_v4 = vadd.f32 %v675_v25, %v482_v33  ;;  %v1447_v19 = vmul.f32 %v6820_v3, %v5292_v24  ;;  %5030 = vmatmul.msk.f32.gmra.mxu0 %vm27_vm0, %v2058_v10  ;;  %v1641_v26 = vmul.f32 %v5308_v30, %v6929_v53 }
 0x1ad   :  { %v1897_v58 = vadd.f32 %v1833_v15, %v1704_v38  ;;  %v1834_v14 = vmul.f32 %v5318_v34, %v6931_v11  ;;  %v2420_v31 = vadd.f32 %v6816_v44, %v2419_v27  ;;  %v258_v60 = vmax.f32 %v194_v35, 0.0  ;;  %v225_v15 = vld [vmem:[%s9731_s0 + $0x1a0] sm:$0xff] }
 0x1ae   :  { %v1479_v48 = vadd.f32 %v1415_v56, %v1286_v32  ;;  %v932_v55 = vadd.f32 %v868_v20, %v739_v4  ;;  %v451_v36 = vmul.f32 %v6711_v50, %v5263_v8  ;;  %v644_v51 = vmul.f32 %v6724_v46, %v5267_v9  ;;  %v226_v56 = vld [vmem:[%s9731_s0 + $0x1a8] sm:$0xff] }
 0x1af   :  { %v2090_v61 = vadd.f32 %v2026_v28, %v1897_v58  ;;  %v2689_v7 = vmax.f32 %v2420_v31, 0.0  ;;  %v837_v42 = vmul.f32 %v6753_v63, %v5273_v12  ;;  %v2027_v50 = vmul.f32 %v6837_v47, %v6949_v18  ;;  %323 = vst.msk [vmem:[#allocation2 + $0x170] sm:$0xff] %vm27_vm0, %v258_v60 }
 0x1b0   :  { %v1673_v33 = vadd.f32 %v1609_v29, %v1479_v48  ;;  %v1125_v25 = vadd.f32 %v1061_v59, %v932_v55  ;;  %v1030_v28 = vmul.f32 %v6872_v17, %v5284_v21  ;;  %v6969_v20 = vld [vmem:[#allocation2 + $0x167] sm:$0xff]  ;;  %v708_v46 = vadd.f32 %v644_v51, %v451_v36 }
 0x1b1   :  { %5062 = vmatmul.msk.f32.gmra.mxu2 %vm27_vm0, %v2090_v61  ;;  %2754 = vst.msk [vmem:[#allocation3 + $0x270] sm:$0xff] %vm27_vm0, %v2689_v7  ;;  %v1223_v63 = vmul.f32 %v6874_v52, %v5286_v22  ;;  %v1416_v29 = vmul.f32 %v6880_v43, %v5292_v24  ;;  %v6977_v27 = vld [vmem:[#allocation2 + $0x168] sm:$0xff]  ;;  %v289_v10 = vmax.f32 %v225_v15, 0.0  ;;  %v1610_v35 = vmul.f32 %v5308_v30, %v6969_v20 }
 0x1b2   :  { %v1866_v38 = vadd.f32 %v1802_v6, %v1673_v33  ;;  %v1318_v59 = vadd.f32 %v1254_v45, %v1125_v25  ;;  %v290_v32 = vmax.f32 %v226_v56, 0.0  ;;  %v901_v4 = vadd.f32 %v837_v42, %v708_v46 }
 0x1b3   :  { %354 = vst.msk [vmem:[#allocation2 + $0x3a8] sm:$0xff] %vm27_vm0, %v289_v10  ;;  %v483_v58 = vmul.f32 %v6768_v41, %v5263_v8  ;;  %v676_v31 = vmul.f32 %v6770_v1, %v5267_v9  ;;  %v869_v48 = vmul.f32 %v6783_v13, %v5273_v12  ;;  %v1803_v6 = vmul.f32 %v5318_v34, %v6977_v27 }
 0x1b4   :  { %v2059_v55 = vadd.f32 %v1995_v39, %v1866_v38  ;;  %v1511_v60 = vadd.f32 %v1447_v19, %v1318_v59  ;;  %355 = vst.msk [vmem:[#allocation2 + $0x3b0] sm:$0xff] %vm27_vm0, %v290_v32  ;;  %v1062_v45 = vmul.f32 %v6901_v37, %v5284_v21  ;;  %v1094_v36 = vadd.f32 %v1030_v28, %v901_v4  ;;  %v4525_v4 = vld [vmem:[%s9736_s5] sm:$0xff] }
 0x1b5   :  { %v740_v15 = vadd.f32 %v676_v31, %v483_v58  ;;  %v1255_v41 = vmul.f32 %v6903_v49, %v5286_v22  ;;  %v452_v1 = vmul.f32 %v6757_v2, %v5263_v8  ;;  %v1448_v39 = vmul.f32 %v6912_v23, %v5292_v24  ;;  %4737 = vmatpush.msra.mxu1 %v4525_v4 }
 0x1b6   :  { %5031 = vmatmul.msk.f32.gmra.mxu0 %vm27_vm0, %v2059_v55  ;;  %v1705_v13 = vadd.f32 %v1641_v26, %v1511_v60  ;;  %v645_v19 = vmul.f32 %v6759_v5, %v5267_v9  ;;  %v838_v61 = vmul.f32 %v6774_v16, %v5273_v12  ;;  %v2326_v7 = vpop.f32.mrf.mxu0  ;;  %v1287_v51 = vadd.f32 %v1223_v63, %v1094_v36  ;;  %v7004_v42 = vld [vmem:[#allocation2 + $0x169] sm:$0xff]  ;;  %v7017_v63 = vld [vmem:[#allocation2 + $0x171] sm:$0xff] }
 0x1b7   :  { %v933_v56 = vadd.f32 %v869_v48, %v740_v15  ;;  %v1031_v2 = vmul.f32 %v6889_v0, %v5284_v21  ;;  %v1224_v26 = vmul.f32 %v6898_v54, %v5286_v22  ;;  %v7010_v33 = vld [vmem:[#allocation2 + $0x16f] sm:$0xff]  ;;  %v2327_v5 = vadd.f32 %v6816_v44, %v2326_v7  ;;  %9922 = vst [vmem:[#allocation9_spill] sm:$0xff] %v7017_v63 }
 0x1b8   :  { %9920 = vst [vmem:[#allocation7_spill] sm:$0xff] %v7010_v33  ;;  %v7012_v25 = vld [vmem:[#allocation2 + $0x170] sm:$0xff]  ;;  %v1898_v28 = vadd.f32 %v1834_v14, %v1705_v13  ;;  %v709_v46 = vadd.f32 %v645_v19, %v452_v1  ;;  %v1417_v16 = vmul.f32 %v6916_v57, %v5292_v24  ;;  %v1480_v10 = vadd.f32 %v1416_v29, %v1287_v51 }
 0x1b9   :  { %9921 = vst [vmem:[#allocation8_spill] sm:$0xff] %v7012_v25  ;;  %v1996_v38 = vmul.f32 %v6837_v47, %v7004_v42  ;;  %v1126_v59 = vadd.f32 %v1062_v45, %v933_v56  ;;  %v1611_v32 = vmul.f32 %v5308_v30, %v7010_v33  ;;  %v195_v14 = vld [vmem:[%s9731_s0 + $0xb0] sm:$0xff]  ;;  %v2658_v31 = vmax.f32 %v2327_v5, 0.0  ;;  %5143 = vmatpush.msra.mxu3 %v4525_v4 }
 0x1ba   :  { %v2091_v58 = vadd.f32 %v2027_v50, %v1898_v28  ;;  %v7029_v48 = vld [vmem:[#allocation2 + $0x3a7] sm:$0xff]  ;;  %v902_v55 = vadd.f32 %v838_v61, %v709_v46  ;;  %v1804_v60 = vmul.f32 %v5318_v34, %v7012_v25  ;;  %v1674_v45 = vadd.f32 %v1610_v35, %v1480_v10 }
 0x1bb   :  { %v7031_v29 = vld [vmem:[#allocation2 + $0x3a8] sm:$0xff]  ;;  %v1319_v36 = vadd.f32 %v1255_v41, %v1126_v59  ;;  %v1642_v15 = vmul.f32 %v5308_v30, %v7029_v48  ;;  %v1997_v50 = vmul.f32 %v6837_v47, %v7017_v63  ;;  %2723 = vst.msk [vmem:[#allocation3 + $0x48] sm:$0xff] %vm27_vm0, %v2658_v31  ;;  %v484_v35 = vmul.f32 %v6789_v62, %v5263_v8 }
 0x1bc   :  { %v7037_v1 = vld [vmem:[#allocation2 + $0x3a9] sm:$0xff]  ;;  %5063 = vmatmul.msk.f32.gmra.mxu2 %vm27_vm0, %v2091_v58  ;;  %v1835_v13 = vmul.f32 %v5318_v34, %v7031_v29  ;;  %v1095_v19 = vadd.f32 %v1031_v2, %v902_v55  ;;  %v259_v41 = vmax.f32 %v195_v14, 0.0  ;;  %v1867_v61 = vadd.f32 %v1803_v6, %v1674_v45 }
 0x1bd   :  { %9923 = vst [vmem:[#allocation10_spill] sm:$0xff] %v7037_v1  ;;  %v1512_v7 = vadd.f32 %v1448_v39, %v1319_v36  ;;  %v677_v51 = vmul.f32 %v6797_v40, %v5267_v9  ;;  %v870_v56 = vmul.f32 %v6820_v3, %v5273_v12  ;;  %v7051_v28 = vld [vmem:[#allocation2 + $0x3af] sm:$0xff]  ;;  %v2028_v5 = vmul.f32 %v6837_v47, %v7037_v1  ;;  %v196_v40 = vld [vmem:[%s9731_s0 + $0xb8] sm:$0xff] }
 0x1be   :  { %9924 = vst [vmem:[#allocation11_spill] sm:$0xff] %v7051_v28  ;;  %v1288_v46 = vadd.f32 %v1224_v26, %v1095_v19  ;;  %v1063_v2 = vmul.f32 %v6929_v53, %v5284_v21  ;;  %v1256_v62 = vmul.f32 %v6931_v11, %v5286_v22  ;;  %v7059_v6 = vld [vmem:[#allocation2 + $0x3b0] sm:$0xff]  ;;  %v2060_v3 = vadd.f32 %v1996_v38, %v1867_v61  ;;  %v2329_v59 = vpop.f32.mrf.mxu0 }
 0x1bf   :  { %9925 = vst [vmem:[#allocation12_spill] sm:$0xff] %v7059_v6  ;;  %v1706_v39 = vadd.f32 %v1642_v15, %v1512_v7  ;;  %v2422_v10 = vpop.f32.mrf.mxu2  ;;  %v741_v14 = vadd.f32 %v677_v51, %v484_v35  ;;  %v1449_v26 = vmul.f32 %v6949_v18, %v5292_v24  ;;  %v2330_v58 = vadd.f32 %v6816_v44, %v2329_v59  ;;  %v7074_v15 = vld [vmem:[#allocation2 + $0x3b1] sm:$0xff] }
 0x1c0   :  { %324 = vst.msk [vmem:[#allocation2 + $0x188] sm:$0xff] %vm27_vm0, %v259_v41  ;;  %v2423_v4 = vadd.f32 %v6816_v44, %v2422_v10  ;;  %v1481_v31 = vadd.f32 %v1417_v16, %v1288_v46  ;;  %v1643_v55 = vmul.f32 %v5308_v30, %v7051_v28  ;;  %5032 = vmatmul.msk.f32.gmra.mxu0 %vm27_vm0, %v2060_v3  ;;  %v260_v19 = vmax.f32 %v196_v40, 0.0  ;;  %v227_v16 = vld [vmem:[%s9731_s0 + $0x1b0] sm:$0xff] }
 0x1c1   :  { %v1899_v45 = vadd.f32 %v1835_v13, %v1706_v39  ;;  %v934_v36 = vadd.f32 %v870_v56, %v741_v14  ;;  %v1836_v38 = vmul.f32 %v5318_v34, %v7059_v6  ;;  %9926 = vst [vmem:[#allocation13_spill] sm:$0xff] %v7074_v15  ;;  %v2659_v41 = vmax.f32 %v2330_v58, 0.0  ;;  %v228_v13 = vld [vmem:[%s9731_s0 + $0x1b8] sm:$0xff] }
 0x1c2   :  { %v2690_v35 = vmax.f32 %v2423_v4, 0.0  ;;  %v1675_v61 = vadd.f32 %v1611_v32, %v1481_v31  ;;  %v453_v7 = vmul.f32 %v6872_v17, %v5263_v8  ;;  %325 = vst.msk [vmem:[#allocation2 + $0x190] sm:$0xff] %vm27_vm0, %v260_v19  ;;  %v646_v46 = vmul.f32 %v6874_v52, %v5267_v9 }
 0x1c3   :  { %v2092_v51 = vadd.f32 %v2028_v5, %v1899_v45  ;;  %v1127_v56 = vadd.f32 %v1063_v2, %v934_v36  ;;  %v839_v32 = vmul.f32 %v6880_v43, %v5273_v12  ;;  %v2029_v40 = vmul.f32 %v6837_v47, %v7074_v15  ;;  %2724 = vst.msk [vmem:[#allocation3 + $0x50] sm:$0xff] %vm27_vm0, %v2659_v41 }
 0x1c4   :  { %2755 = vst.msk [vmem:[#allocation3 + $0x288] sm:$0xff] %vm27_vm0, %v2690_v35  ;;  %v1868_v17 = vadd.f32 %v1804_v60, %v1675_v61  ;;  %v1032_v3 = vmul.f32 %v6969_v20, %v5284_v21  ;;  %v1225_v5 = vmul.f32 %v6977_v27, %v5286_v22  ;;  %v710_v2 = vadd.f32 %v646_v46, %v453_v7  ;;  %v7116_v35 = vld [vmem:[%s9735_s4] sm:$0xff] }
 0x1c5   :  { %5064 = vmatmul.msk.f32.gmra.mxu2 %vm27_vm0, %v2092_v51  ;;  %v1320_v52 = vadd.f32 %v1256_v62, %v1127_v56  ;;  %v291_v60 = vmax.f32 %v227_v16, 0.0  ;;  %v292_v10 = vmax.f32 %v228_v13, 0.0  ;;  %v1418_v14 = vmul.f32 %v7004_v42, %v5292_v24  ;;  %v2787_v13 = vld [vmem:[#allocation3 + $0x7] sm:$0xff] }
 0x1c6   :  { %v2061_v59 = vadd.f32 %v1997_v50, %v1868_v17  ;;  %v485_v58 = vmul.f32 %v6901_v37, %v5263_v8  ;;  %v2332_v62 = vpop.f32.mrf.mxu0  ;;  %v903_v36 = vadd.f32 %v839_v32, %v710_v2  ;;  %v678_v19 = vmul.f32 %v6903_v49, %v5267_v9  ;;  %v2980_v51 = vld [vmem:[#allocation3 + $0x8] sm:$0xff] }
 0x1c7   :  { %v7098_v39 = vld [vmem:[#allocation2 + $0x187] sm:$0xff]  ;;  %v1513_v31 = vadd.f32 %v1449_v26, %v1320_v52  ;;  %v2425_v45 = vpop.f32.mrf.mxu2  ;;  %356 = vst.msk [vmem:[#allocation2 + $0x3c8] sm:$0xff] %vm27_vm0, %v291_v60  ;;  %v871_v50 = vmul.f32 %v6912_v23, %v5273_v12  ;;  %v2333_v37 = vadd.f32 %v6816_v44, %v2332_v62  ;;  %v1064_v49 = vmul.f32 %v7029_v48, %v5284_v21 }
 0x1c8   :  { %v7100_v43 = vld [vmem:[#allocation2 + $0x188] sm:$0xff]  ;;  %v1612_v4 = vmul.f32 %v5308_v30, %v7098_v39  ;;  %v2426_v41 = vadd.f32 %v6816_v44, %v2425_v45  ;;  %357 = vst.msk [vmem:[#allocation2 + $0x3d0] sm:$0xff] %vm27_vm0, %v292_v10  ;;  %5033 = vmatmul.msk.f32.gmra.mxu0 %vm27_vm0, %v2061_v59  ;;  %v1096_v61 = vadd.f32 %v1032_v3, %v903_v36  ;;  %v7131_v17 = vperm.slane %v7116_v35, 0 }
 0x1c9   :  { %v1805_v26 = vmul.f32 %v5318_v34, %v7100_v43  ;;  %v1707_v23 = vadd.f32 %v1643_v55, %v1513_v31  ;;  %v742_v7 = vadd.f32 %v678_v19, %v485_v58  ;;  %v1257_v16 = vmul.f32 %v7031_v29, %v5286_v22  ;;  %v7128_v32 = vld [vmem:[#allocation2 + $0x189] sm:$0xff] }
 0x1ca   :  { %v2691_v56 = vmax.f32 %v2426_v41, 0.0  ;;  %v2660_v46 = vmax.f32 %v2333_v37, 0.0  ;;  %9927 = vst [vmem:[#allocation14_spill] sm:$0xff] %v7128_v32  ;;  %v7134_v52 = vperm.slane %v7116_v35, 1  ;;  %v1289_v60 = vadd.f32 %v1225_v5, %v1096_v61  ;;  %v3173_v10 = vld [vmem:[#allocation3 + $0x9] sm:$0xff] }
 0x1cb   :  { %v1900_v2 = vadd.f32 %v1836_v38, %v1707_v23  ;;  %v935_v55 = vadd.f32 %v871_v50, %v742_v7  ;;  %v1450_v3 = vmul.f32 %v7037_v1, %v5292_v24  ;;  %v7138_v59 = vld [vmem:[#allocation3 + $0x27] sm:$0xff]  ;;  %v2852_v58 = vmul.f32 %v7131_v17, %v2787_v13 }
 0x1cc   :  { %9928 = vst [vmem:[#allocation15_spill] sm:$0xff] %v7138_v59  ;;  %v3045_v31 = vmul.f32 %v7134_v52, %v2980_v51  ;;  %v7144_v45 = vperm.slane %v7116_v35, 2  ;;  %v7147_v62 = vperm.slane %v7116_v35, 3  ;;  %v1482_v5 = vadd.f32 %v1418_v14, %v1289_v60  ;;  %v7152_v50 = vld [vmem:[#allocation3 + $0x28] sm:$0xff] }
 0x1cd   :  { %2756 = vst.msk [vmem:[#allocation3 + $0x290] sm:$0xff] %vm27_vm0, %v2691_v56  ;;  %v2093_v38 = vadd.f32 %v2029_v40, %v1900_v2  ;;  %v1998_v36 = vmul.f32 %v6837_v47, %v7128_v32  ;;  %v1128_v19 = vadd.f32 %v1064_v49, %v935_v55  ;;  %v7161_v40 = vld [vmem:[#allocation3 + $0x29] sm:$0xff]  ;;  %v7164_v14 = vperm.slane %v7116_v35, 5 }
 0x1ce   :  { %2725 = vst.msk [vmem:[#allocation3 + $0x68] sm:$0xff] %vm27_vm0, %v2660_v46  ;;  %v7154_v41 = vld [vmem:[#allocation2 + $0x3c7] sm:$0xff]  ;;  %v3109_v23 = vadd.f32 %v3045_v31, %v2852_v58  ;;  %v3238_v61 = vmul.f32 %v7144_v45, %v3173_v10  ;;  %v3431_v7 = vmul.f32 %v7147_v62, %v7138_v59  ;;  %v1676_v49 = vadd.f32 %v1612_v4, %v1482_v5  ;;  %v2335_v46 = vpop.f32.mrf.mxu0 }
 0x1cf   :  { %9929 = vst [vmem:[#allocation16_spill] sm:$0xff] %v7154_v41  ;;  %v7156_v37 = vld [vmem:[#allocation2 + $0x3c8] sm:$0xff]  ;;  %5065 = vmatmul.msk.f32.gmra.mxu2 %vm27_vm0, %v2093_v38  ;;  %v1321_v13 = vadd.f32 %v1257_v16, %v1128_v19  ;;  %v1644_v51 = vmul.f32 %v5308_v30, %v7154_v41  ;;  %v2428_v56 = vpop.f32.mrf.mxu2  ;;  %v7170_v2 = vperm.slane %v7116_v35, 4  ;;  %v2336_v58 = vadd.f32 %v6816_v44, %v2335_v46 }
 0x1d0   :  { %9930 = vst [vmem:[#allocation17_spill] sm:$0xff] %v7156_v37  ;;  %v1837_v60 = vmul.f32 %v5318_v34, %v7156_v37  ;;  %v7174_v55 = vld [vmem:[#allocation2 + $0x3c9] sm:$0xff]  ;;  %v2429_v10 = vadd.f32 %v6816_v44, %v2428_v56  ;;  %v3302_v31 = vadd.f32 %v3238_v61, %v3109_v23  ;;  %v1869_v4 = vadd.f32 %v1805_v26, %v1676_v49  ;;  %v197_v23 = vld [vmem:[%s9731_s0 + $0xc0] sm:$0xff] }
 0x1d1   :  { %9931 = vst [vmem:[#allocation18_spill] sm:$0xff] %v7174_v55  ;;  %v1514_v16 = vadd.f32 %v1450_v3, %v1321_v13  ;;  %v3624_v38 = vmul.f32 %v7170_v2, %v7152_v50  ;;  %v3817_v5 = vmul.f32 %v7164_v14, %v7161_v40  ;;  %v7182_v19 = vld [vmem:[#allocation3 + $0x47] sm:$0xff]  ;;  %v2661_v41 = vmax.f32 %v2336_v58, 0.0 }
 0x1d2   :  { %9932 = vst [vmem:[#allocation19_spill] sm:$0xff] %v7182_v19  ;;  %v2692_v59 = vmax.f32 %v2429_v10, 0.0  ;;  %v3495_v37 = vadd.f32 %v3431_v7, %v3302_v31  ;;  %v7185_v1 = vperm.slane %v7116_v35, 6  ;;  %v2062_v26 = vadd.f32 %v1998_v36, %v1869_v4  ;;  %v7192_v49 = vld [vmem:[#allocation3 + $0x48] sm:$0xff] }
 0x1d3   :  { %v1708_v3 = vadd.f32 %v1644_v51, %v1514_v16  ;;  %v2030_v61 = vmul.f32 %v6837_v47, %v7174_v55  ;;  %9933 = vst [vmem:[#allocation20_spill] sm:$0xff] %v7192_v49  ;;  %v7195_v13 = vperm.slane %v7116_v35, 7  ;;  %v7200_v7 = vld [vmem:[%s9735_s4 + $0x8] ss:$0 sm:$0xff]  ;;  %v7205_v51 = vld [vmem:[#allocation3 + $0x49] sm:$0xff]  ;;  %v454_v46 = vmul.f32 %v6889_v0, %v5263_v8 }
 0x1d4   :  { %2757 = vst.msk [vmem:[#allocation3 + $0x2a8] sm:$0xff] %vm27_vm0, %v2692_v59  ;;  %v3688_v56 = vadd.f32 %v3624_v38, %v3495_v37  ;;  %v4011_v36 = vmul.f32 %v7185_v1, %v7182_v19  ;;  %v647_v35 = vmul.f32 %v6898_v54, %v5267_v9  ;;  %5034 = vmatmul.msk.f32.gmra.mxu0 %vm27_vm0, %v2062_v26  ;;  %v7215_v37 = vld [vmem:[#allocation2 + $0x18f] sm:$0xff]  ;;  %v261_v58 = vmax.f32 %v197_v23, 0.0 }
 0x1d5   :  { %9934 = vst [vmem:[#allocation21_spill] sm:$0xff] %v7205_v51  ;;  %v1901_v10 = vadd.f32 %v1837_v60, %v1708_v3  ;;  %v840_v59 = vmul.f32 %v6916_v57, %v5273_v12  ;;  %v4204_v4 = vmul.f32 %v7195_v13, %v7192_v49  ;;  %v1033_v0 = vmul.f32 %v7010_v33, %v5284_v21  ;;  %v7221_v54 = vld [vmem:[#allocation2 + $0x190] sm:$0xff]  ;;  %v7266_v33 = vld [vmem:[#allocation3 + $0x268] sm:$0xff] }
 0x1d6   :  { %2726 = vst.msk [vmem:[#allocation3 + $0x70] sm:$0xff] %vm27_vm0, %v2661_v41  ;;  %v3881_v31 = vadd.f32 %v3817_v5, %v3688_v56  ;;  %v711_v16 = vadd.f32 %v647_v35, %v454_v46  ;;  %v7223_v38 = vld [vmem:[#allocation2 + $0x191] sm:$0xff]  ;;  %v4397_v41 = vmul.f32 %v7200_v7, %v7205_v51  ;;  %v1226_v57 = vmul.f32 %v7012_v25, %v5286_v22  ;;  %v2338_v49 = vpop.f32.mrf.mxu0 }
 0x1d7   :  { %9935 = vst [vmem:[#allocation22_spill] sm:$0xff] %v7215_v37  ;;  %v2094_v60 = vadd.f32 %v2030_v61, %v1901_v10  ;;  %v1419_v5 = vmul.f32 %v7017_v63, %v5292_v24  ;;  %v1613_v3 = vmul.f32 %v5308_v30, %v7215_v37  ;;  %v486_v56 = vmul.f32 %v6929_v53, %v5263_v8  ;;  %v7236_v61 = vld [vmem:[#allocation2 + $0x3cf] sm:$0xff]  ;;  %v2431_v46 = vpop.f32.mrf.mxu2 }
 0x1d8   :  { %9936 = vst [vmem:[#allocation23_spill] sm:$0xff] %v7221_v54  ;;  %v4075_v23 = vadd.f32 %v4011_v36, %v3881_v31  ;;  %v904_v26 = vadd.f32 %v840_v59, %v711_v16  ;;  %v1806_v35 = vmul.f32 %v5318_v34, %v7221_v54  ;;  %v7243_v10 = vmul.f32 %v6837_v47, %v7223_v38  ;;  %v3012_v53 = vld [vmem:[#allocation3 + $0x248] sm:$0xff]  ;;  %v7253_v37 = vld [vmem:[#allocation2 + $0x3d0] sm:$0xff] }
 0x1d9   :  { %9937 = vst [vmem:[#allocation24_spill] sm:$0xff] %v7223_v38  ;;  %5066 = vmatmul.msk.f32.gmra.mxu2 %vm27_vm0, %v2094_v60  ;;  %v679_v36 = vmul.f32 %v6931_v11, %v5267_v9  ;;  %v872_v59 = vmul.f32 %v6949_v18, %v5273_v12  ;;  %v1065_v60 = vmul.f32 %v7051_v28, %v5284_v21  ;;  %v3205_v38 = vld [vmem:[#allocation3 + $0x249] sm:$0xff]  ;;  %v7259_v25 = vld [vmem:[#allocation2 + $0x3d1] sm:$0xff] }
 0x1da   :  { %326 = vst.msk [vmem:[#allocation2 + $0x1a8] sm:$0xff] %vm27_vm0, %v261_v58  ;;  %v2819_v58 = vld [vmem:[#allocation3 + $0x247] sm:$0xff]  ;;  %v4268_v31 = vadd.f32 %v4204_v4, %v4075_v23  ;;  %v1097_v16 = vadd.f32 %v1033_v0, %v904_v26  ;;  %v1258_v54 = vmul.f32 %v7059_v6, %v5286_v22  ;;  %v1451_v11 = vmul.f32 %v7074_v15, %v5292_v24 }
 0x1db   :  { %9938 = vst [vmem:[#allocation25_spill] sm:$0xff] %v7236_v61  ;;  %v743_v63 = vadd.f32 %v679_v36, %v486_v56  ;;  %v1645_v18 = vmul.f32 %v5308_v30, %v7236_v61  ;;  %v2432_v4 = vadd.f32 %v6816_v44, %v2431_v46  ;;  %v7262_v0 = vld [vmem:[#allocation3 + $0x267] sm:$0xff]  ;;  %v2884_v6 = vmul.f32 %v7131_v17, %v2819_v58 }
 0x1dc   :  { %9939 = vst [vmem:[#allocation26_spill] sm:$0xff] %v7253_v37  ;;  %v4461_v23 = vadd.f32 %v4397_v41, %v4268_v31  ;;  %v1290_v26 = vadd.f32 %v1226_v57, %v1097_v16  ;;  %v3077_v28 = vmul.f32 %v7134_v52, %v3012_v53  ;;  %v7268_v56 = vld [vmem:[#allocation3 + $0x269] sm:$0xff]  ;;  %v1838_v61 = vmul.f32 %v5318_v34, %v7253_v37 }
 0x1dd   :  { %9940 = vst [vmem:[#allocation27_spill] sm:$0xff] %v7259_v25  ;;  %v7270_v36 = vld [vmem:[#allocation3 + $0x287] sm:$0xff]  ;;  %v936_v15 = vadd.f32 %v872_v59, %v743_v63  ;;  %v2693_v51 = vmax.f32 %v2432_v4, 0.0  ;;  %v3270_v46 = vmul.f32 %v7144_v45, %v3205_v38  ;;  %v2788_v41 = vld [vmem:[#allocation3 + $0xf] sm:$0xff]  ;;  %v2031_v58 = vmul.f32 %v6837_v47, %v7259_v25 }
 0x1de   :  { %9941 = vst [vmem:[#allocation28_spill] sm:$0xff] %v7262_v0  ;;  %5078 = vmatmul.msk.f32.vlgmr.msra.gmra.mxu1 %vm27_vm0, %v4461_v23  ;;  %v1483_v57 = vadd.f32 %v1419_v5, %v1290_v26  ;;  %v3141_v53 = vadd.f32 %v3077_v28, %v2884_v6  ;;  %v3463_v31 = vmul.f32 %v7147_v62, %v7262_v0  ;;  %v7280_v16 = vld [vmem:[#allocation3 + $0x288] sm:$0xff]  ;;  %v2981_v63 = vld [vmem:[#allocation3 + $0x10] sm:$0xff] }
 0x1df   :  { %9942 = vst [vmem:[#allocation29_spill] sm:$0xff] %v7266_v33  ;;  %v3174_v59 = vld [vmem:[#allocation3 + $0x11] sm:$0xff]  ;;  %v1129_v37 = vadd.f32 %v1065_v60, %v936_v15  ;;  %v3656_v38 = vmul.f32 %v7170_v2, %v7266_v33  ;;  %v3849_v5 = vmul.f32 %v7164_v14, %v7268_v56  ;;  %v4043_v4 = vmul.f32 %v7185_v1, %v7270_v36  ;;  %v7289_v28 = vld [vmem:[#allocation3 + $0x289] sm:$0xff] }
 0x1e0   :  { %9943 = vst [vmem:[#allocation30_spill] sm:$0xff] %v7268_v56  ;;  %v1677_v6 = vadd.f32 %v1613_v3, %v1483_v57  ;;  %v3334_v23 = vadd.f32 %v3270_v46, %v3141_v53  ;;  %v2339_v26 = vadd.f32 %v6816_v44, %v2338_v49  ;;  %v2853_v0 = vmul.f32 %v7131_v17, %v2788_v41  ;;  %v7293_v15 = vld [vmem:[#allocation3 + $0x2f] sm:$0xff] }
 0x1e1   :  { %9944 = vst [vmem:[#allocation31_spill] sm:$0xff] %v7270_v36  ;;  %v4236_v60 = vmul.f32 %v7195_v13, %v7280_v16  ;;  %v3046_v33 = vmul.f32 %v7134_v52, %v2981_v63  ;;  %v3239_v56 = vmul.f32 %v7144_v45, %v3174_v59  ;;  %v7299_v25 = vld [vmem:[#allocation3 + $0x4f] sm:$0xff]  ;;  %v4429_v3 = vmul.f32 %v7200_v7, %v7289_v28 }
 0x1e2   :  { %2758 = vst.msk [vmem:[#allocation3 + $0x2b0] sm:$0xff] %vm27_vm0, %v2693_v51  ;;  %v1322_v51 = vadd.f32 %v1258_v54, %v1129_v37  ;;  %v1870_v36 = vadd.f32 %v1806_v35, %v1677_v6  ;;  %v3527_v19 = vadd.f32 %v3463_v31, %v3334_v23  ;;  %v2662_v49 = vmax.f32 %v2339_v26, 0.0  ;;  %v7303_v46 = vld [vmem:[#allocation3 + $0x30] sm:$0xff]  ;;  %v198_v37 = vld [vmem:[%s9731_s0 + $0xc8] sm:$0xff] }
 0x1e3   :  { %v3110_v41 = vadd.f32 %v3046_v33, %v2853_v0  ;;  %v3432_v57 = vmul.f32 %v7147_v62, %v7293_v15  ;;  %v3625_v53 = vmul.f32 %v7170_v2, %v7303_v46  ;;  %v7312_v35 = vld [vmem:[#allocation3 + $0x31] sm:$0xff]  ;;  %v4012_v33 = vmul.f32 %v7185_v1, %v7299_v25 }
 0x1e4   :  { %v1515_v54 = vadd.f32 %v1451_v11, %v1322_v51  ;;  %v7314_v31 = vld [vmem:[#allocation3 + $0x50] sm:$0xff]  ;;  %v2063_v63 = vadd.f32 %v7243_v10, %v1870_v36  ;;  %v3720_v59 = vadd.f32 %v3656_v38, %v3527_v19  ;;  %2727 = vst.msk [vmem:[#allocation3 + $0x88] sm:$0xff] %vm27_vm0, %v2662_v49  ;;  %v3818_v6 = vmul.f32 %v7164_v14, %v7312_v35 }
 0x1e5   :  { %v7322_v11 = vld [vmem:[#allocation3 + $0x51] sm:$0xff]  ;;  %v3303_v23 = vadd.f32 %v3239_v56, %v3110_v41  ;;  %v262_v26 = vmax.f32 %v198_v37, 0.0  ;;  %v455_v51 = vmul.f32 %v6969_v20, %v5263_v8  ;;  %v4205_v19 = vmul.f32 %v7195_v13, %v7314_v31  ;;  %v230_v20 = vld [vmem:[%s9731_s0 + $0x1c8] sm:$0xff] }
 0x1e6   :  { %9945 = vst [vmem:[#allocation32_spill] sm:$0xff] %v7322_v11  ;;  %v1709_v0 = vadd.f32 %v1645_v18, %v1515_v54  ;;  %5035 = vmatmul.msk.f32.gmra.mxu0 %vm27_vm0, %v2063_v63  ;;  %v3913_v10 = vadd.f32 %v3849_v5, %v3720_v59  ;;  %v648_v36 = vmul.f32 %v6977_v27, %v5267_v9  ;;  %v229_v18 = vld [vmem:[%s9731_s0 + $0x1c0] sm:$0xff] }
 0x1e7   :  { %v841_v38 = vmul.f32 %v7004_v42, %v5273_v12  ;;  %v3496_v49 = vadd.f32 %v3432_v57, %v3303_v23  ;;  %v4398_v5 = vmul.f32 %v7200_v7, %v7322_v11  ;;  %327 = vst.msk [vmem:[#allocation2 + $0x1b0] sm:$0xff] %vm27_vm0, %v262_v26  ;;  %v1034_v27 = vmul.f32 %v7098_v39, %v5284_v21  ;;  %v7348_v63 = vld [vmem:[#allocation2 + $0x1a7] sm:$0xff] }
 0x1e8   :  { %v1902_v56 = vadd.f32 %v1838_v61, %v1709_v0  ;;  %v4107_v37 = vadd.f32 %v4043_v4, %v3913_v10  ;;  %v712_v42 = vadd.f32 %v648_v36, %v455_v51  ;;  %v1227_v54 = vmul.f32 %v7100_v43, %v5286_v22  ;;  %v2434_v51 = vpop.f32.mrf.mxu2  ;;  %v2820_v10 = vld [vmem:[#allocation3 + $0x24f] sm:$0xff] }
 0x1e9   :  { %v1420_v41 = vmul.f32 %v7128_v32, %v5292_v24  ;;  %v3689_v57 = vadd.f32 %v3625_v53, %v3496_v49  ;;  %v293_v59 = vmax.f32 %v229_v18, 0.0  ;;  %v294_v0 = vmax.f32 %v230_v20, 0.0  ;;  %v3013_v53 = vld [vmem:[#allocation3 + $0x250] sm:$0xff]  ;;  %v7360_v20 = vld [vmem:[#allocation2 + $0x1a8] sm:$0xff] }
 0x1ea   :  { %v2095_v61 = vadd.f32 %v2031_v58, %v1902_v56  ;;  %v4300_v23 = vadd.f32 %v4236_v60, %v4107_v37  ;;  %v905_v11 = vadd.f32 %v841_v38, %v712_v42  ;;  %v487_v26 = vmul.f32 %v7029_v48, %v5263_v8  ;;  %v9946_v58 = vld [vmem:[#allocation10_spill] sm:$0xff]  ;;  %v9948_v56 = vld [vmem:[#allocation16_spill] sm:$0xff]  ;;  %v9949_v37 = vld [vmem:[#allocation17_spill] sm:$0xff] }
 0x1eb   :  { %v680_v4 = vmul.f32 %v7031_v29, %v5267_v9  ;;  %v3882_v36 = vadd.f32 %v3818_v6, %v3689_v57  ;;  %v1614_v32 = vmul.f32 %v5308_v30, %v7348_v63  ;;  %358 = vst.msk [vmem:[#allocation2 + $0x3e8] sm:$0xff] %vm27_vm0, %v293_v59  ;;  %v873_v60 = vmul.f32 %v9946_v58, %v5273_v12  ;;  %v3206_v38 = vld [vmem:[#allocation3 + $0x251] sm:$0xff] }
 0x1ec   :  { %5067 = vmatmul.msk.f32.gmra.mxu2 %vm27_vm0, %v2095_v61  ;;  %v4493_v18 = vadd.f32 %v4429_v3, %v4300_v23  ;;  %v1098_v48 = vadd.f32 %v1034_v27, %v905_v11  ;;  %9947 = vst [vmem:[#allocation10_spill] sm:$0xff] %v7360_v20  ;;  %v1066_v6 = vmul.f32 %v9948_v56, %v5284_v21  ;;  %v7369_v59 = vld [vmem:[#allocation3 + $0x26f] sm:$0xff] }
 0x1ed   :  { %359 = vst.msk [vmem:[#allocation2 + $0x3f0] sm:$0xff] %vm27_vm0, %v294_v0  ;;  %v744_v29 = vadd.f32 %v680_v4, %v487_v26  ;;  %v4076_v49 = vadd.f32 %v4012_v33, %v3882_v36  ;;  %v1259_v42 = vmul.f32 %v9949_v37, %v5286_v22  ;;  %v2435_v61 = vadd.f32 %v6816_v44, %v2434_v51  ;;  %v7376_v33 = vld [vmem:[#allocation3 + $0x270] sm:$0xff] }
 0x1ee   :  { %v2885_v57 = vmul.f32 %v7131_v17, %v2820_v10  ;;  %9950 = vst [vmem:[#allocation16_spill] sm:$0xff] %v7369_v59  ;;  %5110 = vmatmul.msk.f32.vlgmr.msra.gmra.mxu3 %vm27_vm0, %v4493_v18  ;;  %v1291_v3 = vadd.f32 %v1227_v54, %v1098_v48  ;;  %v7372_v11 = vld [vmem:[#allocation2 + $0x1a9] sm:$0xff]  ;;  %v3078_v0 = vmul.f32 %v7134_v52, %v3013_v53  ;;  %v7378_v26 = vld [vmem:[#allocation3 + $0x271] sm:$0xff]  ;;  %v2341_v18 = vpop.f32.mrf.mxu0 }
 0x1ef   :  { %9951 = vst [vmem:[#allocation17_spill] sm:$0xff] %v7372_v11  ;;  %v937_v27 = vadd.f32 %v873_v60, %v744_v29  ;;  %v3271_v23 = vmul.f32 %v7144_v45, %v3206_v38  ;;  %v4269_v4 = vadd.f32 %v4205_v19, %v4076_v49  ;;  %v1807_v44 = vmul.f32 %v5318_v34, %v7360_v20  ;;  %v7384_v54 = vld [vmem:[#allocation3 + $0x28f] sm:$0xff] }
 0x1f0   :  { %9952 = vst [vmem:[#allocation33_spill] sm:$0xff] %v7376_v33  ;;  %v1452_v51 = vmul.f32 %v7174_v55, %v5292_v24  ;;  %v2694_v10 = vmax.f32 %v2435_v61, 0.0  ;;  %v1484_v36 = vadd.f32 %v1420_v41, %v1291_v3  ;;  %v3142_v60 = vadd.f32 %v3078_v0, %v2885_v57  ;;  %v7388_v38 = vld [vmem:[#allocation3 + $0x290] sm:$0xff] }
 0x1f1   :  { %9953 = vst [vmem:[#allocation34_spill] sm:$0xff] %v7378_v26  ;;  %v1130_v58 = vadd.f32 %v1066_v6, %v937_v27  ;;  %v3464_v53 = vmul.f32 %v7147_v62, %v7369_v59  ;;  %v4462_v48 = vadd.f32 %v4398_v5, %v4269_v4  ;;  %v2000_v19 = vmul.f32 %v6837_v47, %v7372_v11  ;;  %v7403_v27 = vld [vmem:[#allocation3 + $0x291] sm:$0xff]  ;;  %v9960_v4 = vld [vmem:[#allocation15_spill] sm:$0xff] }
 0x1f2   :  { %9954 = vst [vmem:[#allocation35_spill] sm:$0xff] %v7384_v54  ;;  %v3657_v29 = vmul.f32 %v7170_v2, %v7376_v33  ;;  %v3850_v41 = vmul.f32 %v7164_v14, %v7378_v26  ;;  %v1678_v6 = vadd.f32 %v1614_v32, %v1484_v36  ;;  %v7397_v61 = vld [vmem:[#allocation2 + $0x3e7] sm:$0xff]  ;;  %v3335_v3 = vadd.f32 %v3271_v23, %v3142_v60 }
 0x1f3   :  { %9955 = vst [vmem:[#allocation36_spill] sm:$0xff] %v7388_v38  ;;  %v1323_v49 = vadd.f32 %v1259_v42, %v1130_v58  ;;  %v7399_v57 = vld [vmem:[#allocation2 + $0x3e8] sm:$0xff]  ;;  %v4044_v5 = vmul.f32 %v7185_v1, %v7384_v54  ;;  %5079 = vmatmul.msk.f32.gmra.mxu1 %vm27_vm0, %v4462_v48  ;;  %v1646_v47 = vmul.f32 %v5308_v30, %v7397_v61  ;;  %v7415_v42 = vld [vmem:[%s9734_s3] ss:$0 sm:$0xff] }
 0x1f4   :  { %2759 = vst.msk [vmem:[#allocation3 + $0x2c8] sm:$0xff] %vm27_vm0, %v2694_v10  ;;  %v7408_v0 = vld [vmem:[#allocation2 + $0x3e9] sm:$0xff]  ;;  %v4237_v32 = vmul.f32 %v7195_v13, %v7388_v38  ;;  %v2342_v23 = vadd.f32 %v7415_v42, %v2341_v18  ;;  %v2854_v10 = vmul.f32 %v9960_v4, %v7131_v17  ;;  %v1871_v36 = vadd.f32 %v1807_v44, %v1678_v6  ;;  %v7433_v44 = vld [vmem:[%s9732_s1 + $0x8] ss:$0 sm:$0xff]  ;;  %v7496_v55 = vld [vmem:[#allocation2 + $0x3f1] sm:$0xff] }
 0x1f5   :  { %9956 = vst [vmem:[#allocation37_spill] sm:$0xff] %v7397_v61  ;;  %v1516_v58 = vadd.f32 %v1452_v51, %v1323_v49  ;;  %v1839_v60 = vmul.f32 %v5318_v34, %v7399_v57  ;;  %v3528_v48 = vadd.f32 %v3464_v53, %v3335_v3  ;;  %v4430_v54 = vmul.f32 %v7200_v7, %v7403_v27  ;;  %v7428_v18 = vld [vmem:[#allocation3 + $0x67] sm:$0xff]  ;;  %v7471_v61 = vld [vmem:[#allocation2 + $0x1b1] sm:$0xff] }
 0x1f6   :  { %9957 = vst [vmem:[#allocation38_spill] sm:$0xff] %v7399_v57  ;;  %v2663_v38 = vmax.f32 %v2342_v23, 0.0  ;;  %v3047_v26 = vmul.f32 %v7152_v50, %v7134_v52  ;;  %v3240_v33 = vmul.f32 %v7161_v40, %v7144_v45  ;;  %v2064_v59 = vadd.f32 %v2000_v19, %v1871_v36  ;;  %v7437_v6 = vld [vmem:[#allocation3 + $0x68] sm:$0xff]  ;;  %v9963_v40 = vld [vmem:[#allocation19_spill] sm:$0xff] }
 0x1f7   :  { %9958 = vst [vmem:[#allocation39_spill] sm:$0xff] %v7403_v27  ;;  %v1710_v4 = vadd.f32 %v1646_v47, %v1516_v58  ;;  %v2032_v51 = vmul.f32 %v7433_v44, %v7408_v0  ;;  %v3721_v53 = vadd.f32 %v3657_v29, %v3528_v48  ;;  %v3433_v49 = vmul.f32 %v9963_v40, %v7147_v62  ;;  %v9964_v19 = vld [vmem:[#allocation20_spill] sm:$0xff]  ;;  %v9965_v47 = vld [vmem:[#allocation21_spill] sm:$0xff] }
 0x1f8   :  { %9959 = vst [vmem:[#allocation40_spill] sm:$0xff] %v7408_v0  ;;  %v3111_v50 = vadd.f32 %v3047_v26, %v2854_v10  ;;  %v3626_v3 = vmul.f32 %v9964_v19, %v7170_v2  ;;  %v3819_v23 = vmul.f32 %v9965_v47, %v7164_v14  ;;  %v7446_v36 = vld [vmem:[#allocation3 + $0x69] sm:$0xff]  ;;  %5036 = vmatmul.msk.f32.gmra.mxu0 %vm27_vm0, %v2064_v59  ;;  %v9967_v26 = vld [vmem:[#allocation7_spill] sm:$0xff] }
 0x1f9   :  { %9961 = vst [vmem:[#allocation15_spill] sm:$0xff] %v7428_v18  ;;  %v1903_v58 = vadd.f32 %v1839_v60, %v1710_v4  ;;  %v3914_v29 = vadd.f32 %v3850_v41, %v3721_v53  ;;  %v4013_v48 = vmul.f32 %v7185_v1, %v7428_v18  ;;  %v4206_v40 = vmul.f32 %v7195_v13, %v7437_v6  ;;  %v9968_v19 = vld [vmem:[#allocation8_spill] sm:$0xff]  ;;  %v9969_v47 = vld [vmem:[#allocation9_spill] sm:$0xff]  ;;  %v9971_v4 = vld [vmem:[#allocation22_spill] sm:$0xff] }
 0x1fa   :  { %9962 = vst [vmem:[#allocation41_spill] sm:$0xff] %v7437_v6  ;;  %v3304_v10 = vadd.f32 %v3240_v33, %v3111_v50  ;;  %v649_v27 = vmul.f32 %v9968_v19, %v5267_v9  ;;  %v842_v0 = vmul.f32 %v9969_v47, %v5273_v12  ;;  %v7459_v57 = vld [vmem:[#allocation2 + $0x1af] sm:$0xff]  ;;  %v4399_v60 = vmul.f32 %v7200_v7, %v7446_v36  ;;  %v9973_v6 = vld [vmem:[#allocation23_spill] sm:$0xff] }
 0x1fb   :  { %2728 = vst.msk [vmem:[#allocation3 + $0x90] sm:$0xff] %vm27_vm0, %v2663_v38  ;;  %v456_v38 = vmul.f32 %v9967_v26, %v5263_v8  ;;  %v2096_v59 = vadd.f32 %v2032_v51, %v1903_v58  ;;  %v4108_v41 = vadd.f32 %v4044_v5, %v3914_v29  ;;  %v1035_v53 = vmul.f32 %v9971_v4, %v5284_v21  ;;  %v7465_v33 = vld [vmem:[#allocation2 + $0x1b0] sm:$0xff]  ;;  %v9974_v18 = vld [vmem:[#allocation24_spill] sm:$0xff]  ;;  %v9976_v58 = vld [vmem:[#allocation11_spill] sm:$0xff] }
 0x1fc   :  { %9966 = vst [vmem:[#allocation42_spill] sm:$0xff] %v7446_v36  ;;  %v3497_v50 = vadd.f32 %v3433_v49, %v3304_v10  ;;  %v1228_v19 = vmul.f32 %v9973_v6, %v5286_v22  ;;  %v1421_v47 = vmul.f32 %v9974_v18, %v5292_v24  ;;  %v1615_v51 = vmul.f32 %v5308_v30, %v7459_v57  ;;  %v9977_v49 = vld [vmem:[#allocation12_spill] sm:$0xff]  ;;  %v9978_v18 = vld [vmem:[#allocation13_spill] sm:$0xff] }
 0x1fd   :  { %9970 = vst [vmem:[#allocation7_spill] sm:$0xff] %v7459_v57  ;;  %v713_v26 = vadd.f32 %v649_v27, %v456_v38  ;;  %5068 = vmatmul.msk.f32.gmra.mxu2 %vm27_vm0, %v2096_v59  ;;  %v4301_v5 = vadd.f32 %v4237_v32, %v4108_v41  ;;  %v488_v29 = vmul.f32 %v9976_v58, %v5263_v8  ;;  %v7484_v36 = vld [vmem:[#allocation2 + $0x3ef] sm:$0xff]  ;;  %v2437_v32 = vpop.f32.mrf.mxu2 }
 0x1fe   :  { %9972 = vst [vmem:[#allocation8_spill] sm:$0xff] %v7465_v33  ;;  %v681_v27 = vmul.f32 %v9977_v49, %v5267_v9  ;;  %v3690_v38 = vadd.f32 %v3626_v3, %v3497_v50  ;;  %v1808_v6 = vmul.f32 %v5318_v34, %v7465_v33  ;;  %v874_v4 = vmul.f32 %v9978_v18, %v5273_v12  ;;  %v9980_v58 = vld [vmem:[#allocation25_spill] sm:$0xff] }
 0x1ff   :  { %9975 = vst [vmem:[#allocation9_spill] sm:$0xff] %v7471_v61  ;;  %v906_v10 = vadd.f32 %v842_v0, %v713_v26  ;;  %v4494_v59 = vadd.f32 %v4430_v54, %v4301_v5  ;;  %v2001_v41 = vmul.f32 %v7433_v44, %v7471_v61  ;;  %v1067_v11 = vmul.f32 %v9980_v58, %v5284_v21  ;;  %v9981_v0 = vld [vmem:[#allocation26_spill] sm:$0xff]  ;;  %v9982_v26 = vld [vmem:[#allocation27_spill] sm:$0xff]  ;;  %v7494_v18 = vld [vmem:[#allocation2 + $0x3f0] sm:$0xff] }
 0x200   :  { %9979 = vst [vmem:[#allocation11_spill] sm:$0xff] %v7484_v36  ;;  %v745_v57 = vadd.f32 %v681_v27, %v488_v29  ;;  %v3883_v49 = vadd.f32 %v3819_v23, %v3690_v38  ;;  %v1260_v50 = vmul.f32 %v9981_v0, %v5286_v22  ;;  %v1453_v33 = vmul.f32 %v9982_v26, %v5292_v24  ;;  %v9984_v23 = vld [vmem:[#allocation28_spill] sm:$0xff]  ;;  %v9986_v0 = vld [vmem:[#allocation30_spill] sm:$0xff] }
 0x201   :  { %v1099_v3 = vadd.f32 %v1035_v53, %v906_v10  ;;  %9983 = vst [vmem:[#allocation12_spill] sm:$0xff] %v7496_v55  ;;  %5111 = vmatmul.msk.f32.gmra.mxu3 %vm27_vm0, %v4494_v59  ;;  %v1647_v5 = vmul.f32 %v5308_v30, %v7484_v36  ;;  %v2438_v29 = vadd.f32 %v7415_v42, %v2437_v32  ;;  %v9985_v10 = vld [vmem:[#allocation29_spill] sm:$0xff]  ;;  %v7508_v61 = vld [vmem:[#allocation3 + $0x2a7] sm:$0xff]  ;;  %v2344_v36 = vpop.f32.mrf.mxu0 }
 0x202   :  { %v938_v54 = vadd.f32 %v874_v4, %v745_v57  ;;  %v2886_v53 = vmul.f32 %v9984_v23, %v7131_v17  ;;  %v4077_v27 = vadd.f32 %v4013_v48, %v3883_v49  ;;  %v3079_v26 = vmul.f32 %v9985_v10, %v7134_v52  ;;  %9987 = vst [vmem:[#allocation13_spill] sm:$0xff] %v7508_v61  ;;  %v9988_v49 = vld [vmem:[#allocation31_spill] sm:$0xff] }
 0x203   :  { %v1292_v38 = vadd.f32 %v1228_v19, %v1099_v3  ;;  %v3272_v58 = vmul.f32 %v9986_v0, %v7144_v45  ;;  %v1840_v57 = vmul.f32 %v5318_v34, %v7494_v18  ;;  %v2033_v4 = vmul.f32 %v7433_v44, %v7496_v55 }
 0x204   :  { %v1131_v59 = vadd.f32 %v1067_v11, %v938_v54  ;;  %v2695_v32 = vmax.f32 %v2438_v29, 0.0  ;;  %v4270_v23 = vadd.f32 %v4206_v40, %v4077_v27  ;;  %v3143_v19 = vadd.f32 %v3079_v26, %v2886_v53  ;;  %v7523_v29 = vld [vmem:[#allocation3 + $0x2a8] sm:$0xff] }
 0x205   :  { %v1485_v48 = vadd.f32 %v1421_v47, %v1292_v38  ;;  %v3465_v3 = vmul.f32 %v9988_v49, %v7147_v62  ;;  %v3658_v11 = vmul.f32 %v7280_v16, %v7170_v2  ;;  %v3851_v0 = vmul.f32 %v7289_v28, %v7164_v14  ;;  %v7525_v53 = vld [vmem:[#allocation3 + $0x2a9] sm:$0xff] }
 0x206   :  { %v1324_v10 = vadd.f32 %v1260_v50, %v1131_v59  ;;  %2760 = vst.msk [vmem:[#allocation3 + $0x2d0] sm:$0xff] %vm27_vm0, %v2695_v32  ;;  %v4045_v54 = vmul.f32 %v7185_v1, %v7508_v61  ;;  %v4463_v40 = vadd.f32 %v4399_v60, %v4270_v23  ;;  %v3336_v26 = vadd.f32 %v3272_v58, %v3143_v19  ;;  %v7537_v23 = vld [vmem:[#allocation3 + $0x6f] sm:$0xff] }
 0x207   :  { %v1679_v47 = vadd.f32 %v1615_v51, %v1485_v48  ;;  %v2345_v50 = vadd.f32 %v7415_v42, %v2344_v36  ;;  %v2855_v38 = vmul.f32 %v7293_v15, %v7131_v17  ;;  %v3048_v59 = vmul.f32 %v7303_v46, %v7134_v52  ;;  %v199_v15 = vld [vmem:[%s9731_s0 + $0xd0] sm:$0xff] }
 0x208   :  { %v1517_v27 = vadd.f32 %v1453_v33, %v1324_v10  ;;  %v3241_v32 = vmul.f32 %v7312_v35, %v7144_v45  ;;  %5080 = vmatmul.msk.f32.gmra.mxu1 %vm27_vm0, %v4463_v40  ;;  %v3529_v60 = vadd.f32 %v3465_v3, %v3336_v26  ;;  %v4238_v51 = vmul.f32 %v7195_v13, %v7523_v29  ;;  %v7554_v40 = vld [vmem:[#allocation3 + $0x70] sm:$0xff] }
 0x209   :  { %v1872_v61 = vadd.f32 %v1808_v6, %v1679_v47  ;;  %v2664_v58 = vmax.f32 %v2345_v50, 0.0  ;;  %v4431_v46 = vmul.f32 %v7200_v7, %v7525_v53  ;;  %v3112_v33 = vadd.f32 %v3048_v59, %v2855_v38  ;;  %v200_v6 = vld [vmem:[%s9731_s0 + $0xd8] sm:$0xff]  ;;  %v231_v59 = vld [vmem:[%s9731_s0 + $0x1d0] sm:$0xff] }
 0x20a   :  { %v1711_v36 = vadd.f32 %v1647_v5, %v1517_v27  ;;  %v3434_v35 = vmul.f32 %v7299_v25, %v7147_v62  ;;  %v3722_v19 = vadd.f32 %v3658_v11, %v3529_v60  ;;  %v3627_v3 = vmul.f32 %v7314_v31, %v7170_v2  ;;  %v9989_v5 = vld [vmem:[#allocation32_spill] sm:$0xff] }
 0x20b   :  { %v2065_v48 = vadd.f32 %v2001_v41, %v1872_v61  ;;  %2729 = vst.msk [vmem:[#allocation3 + $0xa8] sm:$0xff] %vm27_vm0, %v2664_v58  ;;  %v3820_v10 = vmul.f32 %v9989_v5, %v7164_v14  ;;  %v3305_v26 = vadd.f32 %v3241_v32, %v3112_v33  ;;  %v4014_v50 = vmul.f32 %v7185_v1, %v7537_v23 }
 0x20c   :  { %v1904_v47 = vadd.f32 %v1840_v57, %v1711_v36  ;;  %v263_v27 = vmax.f32 %v199_v15, 0.0  ;;  %v3915_v61 = vadd.f32 %v3851_v0, %v3722_v19  ;;  %v264_v41 = vmax.f32 %v200_v6, 0.0  ;;  %v232_v57 = vld [vmem:[%s9731_s0 + $0x1d8] sm:$0xff] }
 0x20d   :  { %5037 = vmatmul.msk.f32.gmra.mxu0 %vm27_vm0, %v2065_v48  ;;  %v457_v11 = vmul.f32 %v7098_v39, %v5263_v8  ;;  %v650_v38 = vmul.f32 %v7100_v43, %v5267_v9  ;;  %v3498_v60 = vadd.f32 %v3434_v35, %v3305_v26  ;;  %v4207_v0 = vmul.f32 %v7195_v13, %v7554_v40  ;;  %v9990_v39 = vld [vmem:[#allocation14_spill] sm:$0xff] }
 0x20e   :  { %v2097_v32 = vadd.f32 %v2033_v4, %v1904_v47  ;;  %328 = vst.msk [vmem:[#allocation2 + $0x1c8] sm:$0xff] %vm27_vm0, %v263_v27  ;;  %v843_v58 = vmul.f32 %v9990_v39, %v5273_v12  ;;  %v4109_v15 = vadd.f32 %v4045_v54, %v3915_v61  ;;  %v7574_v43 = vld [vmem:[#allocation3 + $0x71] sm:$0xff]  ;;  %v1036_v33 = vmul.f32 %v7348_v63, %v5284_v21  ;;  %v2440_v54 = vpop.f32.mrf.mxu2 }
 0x20f   :  { %329 = vst.msk [vmem:[#allocation2 + $0x1d0] sm:$0xff] %vm27_vm0, %v264_v41  ;;  %v714_v36 = vadd.f32 %v650_v38, %v457_v11  ;;  %v1229_v4 = vmul.f32 %v7360_v20, %v5286_v22  ;;  %v3691_v35 = vadd.f32 %v3627_v3, %v3498_v60  ;;  %v295_v6 = vmax.f32 %v231_v59, 0.0  ;;  %v9991_v61 = vld [vmem:[#allocation18_spill] sm:$0xff]  ;;  %v9992_v3 = vld [vmem:[#allocation17_spill] sm:$0xff] }
 0x210   :  { %5069 = vmatmul.msk.f32.gmra.mxu2 %vm27_vm0, %v2097_v32  ;;  %v296_v48 = vmax.f32 %v232_v57, 0.0  ;;  %v489_v19 = vmul.f32 %v9948_v56, %v5263_v8  ;;  %v4302_v47 = vadd.f32 %v4238_v51, %v4109_v15  ;;  %v682_v27 = vmul.f32 %v9949_v37, %v5267_v9  ;;  %v9993_v56 = vld [vmem:[#allocation37_spill] sm:$0xff]  ;;  %v9995_v15 = vld [vmem:[#allocation16_spill] sm:$0xff] }
 0x211   :  { %v907_v26 = vadd.f32 %v843_v58, %v714_v36  ;;  %v875_v41 = vmul.f32 %v9991_v61, %v5273_v12  ;;  %v3884_v11 = vadd.f32 %v3820_v10, %v3691_v35  ;;  %v4400_v38 = vmul.f32 %v7200_v7, %v7574_v43  ;;  %360 = vst.msk [vmem:[#allocation2 + $0x408] sm:$0xff] %vm27_vm0, %v295_v6  ;;  %v9994_v10 = vld [vmem:[#allocation38_spill] sm:$0xff]  ;;  %v9996_v35 = vld [vmem:[#allocation33_spill] sm:$0xff] }
 0x212   :  { %v1422_v59 = vmul.f32 %v9992_v3, %v5292_v24  ;;  %v1068_v57 = vmul.f32 %v9993_v56, %v5284_v21  ;;  %v4495_v51 = vadd.f32 %v4431_v46, %v4302_v47  ;;  %361 = vst.msk [vmem:[#allocation2 + $0x410] sm:$0xff] %vm27_vm0, %v296_v48  ;;  %v746_v37 = vadd.f32 %v682_v27, %v489_v19 }
 0x213   :  { %v1100_v32 = vadd.f32 %v1036_v33, %v907_v26  ;;  %v2441_v60 = vadd.f32 %v7415_v42, %v2440_v54  ;;  %v4078_v39 = vadd.f32 %v4014_v50, %v3884_v11  ;;  %v1261_v58 = vmul.f32 %v9994_v10, %v5286_v22  ;;  %v9999_v50 = vld [vmem:[#allocation34_spill] sm:$0xff] }
 0x214   :  { %v2887_v36 = vmul.f32 %v9995_v15, %v7131_v17  ;;  %v3080_v6 = vmul.f32 %v9996_v35, %v7134_v52  ;;  %5112 = vmatmul.msk.f32.gmra.mxu3 %vm27_vm0, %v4495_v51  ;;  %v939_v48 = vadd.f32 %v875_v41, %v746_v37  ;;  %v3273_v54 = vmul.f32 %v9999_v50, %v7144_v45  ;;  %v10001_v15 = vld [vmem:[#allocation35_spill] sm:$0xff] }
 0x215   :  { %v1293_v61 = vadd.f32 %v1229_v4, %v1100_v32  ;;  %v7604_v46 = vld [vmem:[#allocation2 + $0x1c7] sm:$0xff]  ;;  %v2696_v19 = vmax.f32 %v2441_v60, 0.0  ;;  %v4271_v47 = vadd.f32 %v4207_v0, %v4078_v39  ;;  %v3466_v51 = vmul.f32 %v10001_v15, %v7147_v62  ;;  %v7616_v4 = vld [vmem:[#allocation3 + $0x2af] sm:$0xff]  ;;  %v2347_v39 = vpop.f32.mrf.mxu0 }
 0x216   :  { %9997 = vst [vmem:[#allocation28_spill] sm:$0xff] %v7604_v46  ;;  %v7606_v33 = vld [vmem:[#allocation2 + $0x1c8] sm:$0xff]  ;;  %v1616_v26 = vmul.f32 %v5308_v30, %v7604_v46  ;;  %v3144_v11 = vadd.f32 %v3080_v6, %v2887_v36  ;;  %v1132_v37 = vadd.f32 %v1068_v57, %v939_v48  ;;  %v7623_v0 = vld [vmem:[#allocation3 + $0x2b0] sm:$0xff]  ;;  %v10008_v48 = vld [vmem:[#allocation39_spill] sm:$0xff] }
 0x217   :  { %9998 = vst [vmem:[#allocation29_spill] sm:$0xff] %v7606_v33  ;;  %v7612_v27 = vld [vmem:[#allocation2 + $0x1c9] sm:$0xff]  ;;  %v1486_v32 = vadd.f32 %v1422_v59, %v1293_v61  ;;  %v1809_v41 = vmul.f32 %v5318_v34, %v7606_v33  ;;  %v4464_v50 = vadd.f32 %v4400_v38, %v4271_v47 }
 0x218   :  { %10000 = vst [vmem:[#allocation30_spill] sm:$0xff] %v7612_v27  ;;  %v10003_v60 = vld [vmem:[#allocation40_spill] sm:$0xff]  ;;  %v2002_v36 = vmul.f32 %v7433_v44, %v7612_v27  ;;  %v3337_v6 = vadd.f32 %v3273_v54, %v3144_v11  ;;  %v1325_v10 = vadd.f32 %v1261_v58, %v1132_v37  ;;  %v4239_v58 = vmul.f32 %v7195_v13, %v7623_v0 }
 0x219   :  { %10002 = vst [vmem:[#allocation31_spill] sm:$0xff] %v7616_v4  ;;  %v1454_v35 = vmul.f32 %v10003_v60, %v5292_v24  ;;  %v10005_v15 = vld [vmem:[#allocation36_spill] sm:$0xff]  ;;  %v1680_v61 = vadd.f32 %v1616_v26, %v1486_v32  ;;  %v4046_v60 = vmul.f32 %v7185_v1, %v7616_v4  ;;  %5081 = vmatmul.msk.f32.gmra.mxu1 %vm27_vm0, %v4464_v50  ;;  %v7644_v26 = vld [vmem:[#allocation3 + $0x2b1] sm:$0xff]  ;;  %v10011_v50 = vld [vmem:[#allocation19_spill] sm:$0xff] }
 0x21a   :  { %2761 = vst.msk [vmem:[#allocation3 + $0x2e8] sm:$0xff] %vm27_vm0, %v2696_v19  ;;  %v3659_v59 = vmul.f32 %v10005_v15, %v7170_v2  ;;  %v7629_v56 = vld [vmem:[#allocation2 + $0x407] sm:$0xff]  ;;  %v3852_v19 = vmul.f32 %v10008_v48, %v7164_v14  ;;  %v3530_v47 = vadd.f32 %v3466_v51, %v3337_v6  ;;  %v2348_v11 = vadd.f32 %v7415_v42, %v2347_v39  ;;  %v10013_v6 = vld [vmem:[#allocation21_spill] sm:$0xff] }
 0x21b   :  { %10004 = vst [vmem:[#allocation32_spill] sm:$0xff] %v7623_v0  ;;  %v7631_v57 = vld [vmem:[#allocation2 + $0x408] sm:$0xff]  ;;  %v1648_v38 = vmul.f32 %v5308_v30, %v7629_v56  ;;  %v1873_v32 = vadd.f32 %v1809_v41, %v1680_v61  ;;  %v1518_v37 = vadd.f32 %v1454_v35, %v1325_v10  ;;  %v2856_v48 = vmul.f32 %v10011_v50, %v7131_v17  ;;  %v10015_v61 = vld [vmem:[#allocation15_spill] sm:$0xff] }
 0x21c   :  { %10006 = vst [vmem:[#allocation14_spill] sm:$0xff] %v7629_v56  ;;  %v7640_v54 = vld [vmem:[#allocation2 + $0x409] sm:$0xff]  ;;  %v1841_v4 = vmul.f32 %v5318_v34, %v7631_v57  ;;  %v3723_v15 = vadd.f32 %v3659_v59, %v3530_v47  ;;  %v2665_v56 = vmax.f32 %v2348_v11, 0.0  ;;  %v3242_v0 = vmul.f32 %v10013_v6, %v7144_v45  ;;  %v10021_v6 = vld [vmem:[#allocation23_spill] sm:$0xff] }
 0x21d   :  { %10007 = vst [vmem:[#allocation18_spill] sm:$0xff] %v7631_v57  ;;  %v10012_v27 = vld [vmem:[#allocation20_spill] sm:$0xff]  ;;  %v2066_v46 = vadd.f32 %v2002_v36, %v1873_v32  ;;  %v1712_v39 = vadd.f32 %v1648_v38, %v1518_v37  ;;  %v2034_v10 = vmul.f32 %v7433_v44, %v7640_v54  ;;  %v4432_v41 = vmul.f32 %v7200_v7, %v7644_v26  ;;  %v10016_v47 = vld [vmem:[#allocation41_spill] sm:$0xff]  ;;  %v10019_v32 = vld [vmem:[#allocation42_spill] sm:$0xff] }
 0x21e   :  { %10009 = vst [vmem:[#allocation16_spill] sm:$0xff] %v7640_v54  ;;  %v3049_v51 = vmul.f32 %v10012_v27, %v7134_v52  ;;  %v7655_v33 = vld [vmem:[#allocation3 + $0x87] sm:$0xff]  ;;  %v3916_v35 = vadd.f32 %v3852_v19, %v3723_v15  ;;  %v3435_v27 = vmul.f32 %v10015_v61, %v7147_v62  ;;  %v3628_v11 = vmul.f32 %v10016_v47, %v7170_v2  ;;  %v10020_v15 = vld [vmem:[#allocation22_spill] sm:$0xff]  ;;  %v7681_v54 = vld [vmem:[#allocation2 + $0x1cf] sm:$0xff] }
 0x21f   :  { %10010 = vst [vmem:[#allocation33_spill] sm:$0xff] %v7644_v26  ;;  %v7666_v50 = vld [vmem:[#allocation3 + $0x88] sm:$0xff]  ;;  %5038 = vmatmul.msk.f32.gmra.mxu0 %vm27_vm0, %v2066_v46  ;;  %v1905_v38 = vadd.f32 %v1841_v4, %v1712_v39  ;;  %v3821_v37 = vmul.f32 %v10019_v32, %v7164_v14  ;;  %v651_v47 = vmul.f32 %v10021_v6, %v5267_v9  ;;  %v7691_v32 = vld [vmem:[#allocation2 + $0x1d0] sm:$0xff] }
 0x220   :  { %10014 = vst [vmem:[#allocation34_spill] sm:$0xff] %v7655_v33  ;;  %v3113_v59 = vadd.f32 %v3049_v51, %v2856_v48  ;;  %v7668_v36 = vld [vmem:[#allocation3 + $0x89] sm:$0xff]  ;;  %v458_v48 = vmul.f32 %v10020_v15, %v5263_v8  ;;  %v4110_v19 = vadd.f32 %v4046_v60, %v3916_v35  ;;  %v4208_v4 = vmul.f32 %v7195_v13, %v7666_v50 }
 0x221   :  { %2730 = vst.msk [vmem:[#allocation3 + $0xb0] sm:$0xff] %vm27_vm0, %v2665_v56  ;;  %v4015_v56 = vmul.f32 %v7185_v1, %v7655_v33  ;;  %v10022_v61 = vld [vmem:[#allocation24_spill] sm:$0xff]  ;;  %v2098_v46 = vadd.f32 %v2034_v10, %v1905_v38  ;;  %v4401_v39 = vmul.f32 %v7200_v7, %v7668_v36  ;;  %v10024_v33 = vld [vmem:[#allocation7_spill] sm:$0xff]  ;;  %v10028_v10 = vld [vmem:[#allocation9_spill] sm:$0xff] }
 0x222   :  { %10017 = vst [vmem:[#allocation19_spill] sm:$0xff] %v7666_v50  ;;  %v3306_v51 = vadd.f32 %v3242_v0, %v3113_v59  ;;  %v844_v26 = vmul.f32 %v10022_v61, %v5273_v12  ;;  %v1037_v15 = vmul.f32 %v10024_v33, %v5284_v21  ;;  %v4303_v60 = vadd.f32 %v4239_v58, %v4110_v19  ;;  %v10025_v59 = vld [vmem:[#allocation8_spill] sm:$0xff]  ;;  %v7693_v61 = vld [vmem:[#allocation2 + $0x1d1] sm:$0xff] }
 0x223   :  { %10018 = vst [vmem:[#allocation20_spill] sm:$0xff] %v7668_v36  ;;  %v715_v35 = vadd.f32 %v651_v47, %v458_v48  ;;  %v1230_v6 = vmul.f32 %v10025_v59, %v5286_v22  ;;  %5070 = vmatmul.msk.f32.gmra.mxu2 %vm27_vm0, %v2098_v46  ;;  %v1423_v38 = vmul.f32 %v10028_v10, %v5292_v24  ;;  %v10029_v33 = vld [vmem:[#allocation25_spill] sm:$0xff]  ;;  %v10031_v59 = vld [vmem:[#allocation27_spill] sm:$0xff]  ;;  %v2443_v46 = vpop.f32.mrf.mxu2 }
 0x224   :  { %10023 = vst [vmem:[#allocation21_spill] sm:$0xff] %v7681_v54  ;;  %v3499_v0 = vadd.f32 %v3435_v27, %v3306_v51  ;;  %v1617_v36 = vmul.f32 %v5308_v30, %v7681_v54  ;;  %v490_v58 = vmul.f32 %v10029_v33, %v5263_v8  ;;  %v10030_v27 = vld [vmem:[#allocation26_spill] sm:$0xff]  ;;  %v4496_v48 = vadd.f32 %v4432_v41, %v4303_v60  ;;  %v7706_v57 = vld [vmem:[#allocation2 + $0x40f] sm:$0xff]  ;;  %v10033_v33 = vld [vmem:[#allocation11_spill] sm:$0xff] }
 0x225   :  { %10026 = vst [vmem:[#allocation22_spill] sm:$0xff] %v7691_v32  ;;  %v683_v47 = vmul.f32 %v10030_v27, %v5267_v9  ;;  %v908_v51 = vadd.f32 %v844_v26, %v715_v35  ;;  %v876_v50 = vmul.f32 %v10031_v59, %v5273_v12  ;;  %v1810_v10 = vmul.f32 %v5318_v34, %v7691_v32  ;;  %v7721_v35 = vld [vmem:[#allocation2 + $0x411] sm:$0xff] }
 0x226   :  { %10027 = vst [vmem:[#allocation23_spill] sm:$0xff] %v7693_v61  ;;  %v3692_v19 = vadd.f32 %v3628_v11, %v3499_v0  ;;  %v2003_v54 = vmul.f32 %v7433_v44, %v7693_v61  ;;  %v1069_v20 = vmul.f32 %v10033_v33, %v5284_v21  ;;  %5113 = vmatmul.msk.f32.gmra.mxu3 %vm27_vm0, %v4496_v48  ;;  %v7719_v0 = vld [vmem:[#allocation2 + $0x410] sm:$0xff] }
 0x227   :  { %10032 = vst [vmem:[#allocation24_spill] sm:$0xff] %v7706_v57  ;;  %v747_v3 = vadd.f32 %v683_v47, %v490_v58  ;;  %v1101_v26 = vadd.f32 %v1037_v15, %v908_v51  ;;  %v1262_v11 = vmul.f32 %v7494_v18, %v5286_v22  ;;  %v1455_v60 = vmul.f32 %v7496_v55, %v5292_v24  ;;  %v7732_v51 = vld [vmem:[#allocation3 + $0x2c7] sm:$0xff] }
 0x228   :  { %v3885_v41 = vadd.f32 %v3821_v37, %v3692_v19  ;;  %v1649_v58 = vmul.f32 %v5308_v30, %v7706_v57  ;;  %v2444_v27 = vadd.f32 %v7415_v42, %v2443_v46  ;;  %v2888_v37 = vmul.f32 %v9988_v49, %v7131_v17  ;;  %10034 = vst [vmem:[#allocation25_spill] sm:$0xff] %v7732_v51  ;;  %v2350_v57 = vpop.f32.mrf.mxu0 }
 0x229   :  { %v940_v59 = vadd.f32 %v876_v50, %v747_v3  ;;  %v1294_v47 = vadd.f32 %v1230_v6, %v1101_v26  ;;  %v3081_v48 = vmul.f32 %v7280_v16, %v7134_v52  ;;  %v3274_v19 = vmul.f32 %v7289_v28, %v7144_v45 }
 0x22a   :  { %v4079_v15 = vadd.f32 %v4015_v56, %v3885_v41  ;;  %v1842_v3 = vmul.f32 %v5318_v34, %v7719_v0  ;;  %v2035_v50 = vmul.f32 %v7433_v44, %v7721_v35  ;;  %v2697_v46 = vmax.f32 %v2444_v27, 0.0  ;;  %v10035_v41 = vld [vmem:[#allocation13_spill] sm:$0xff]  ;;  %v7747_v27 = vld [vmem:[#allocation3 + $0x2c8] sm:$0xff] }
 0x22b   :  { %v1133_v55 = vadd.f32 %v1069_v20, %v940_v59  ;;  %v1487_v56 = vadd.f32 %v1423_v38, %v1294_v47  ;;  %v3145_v6 = vadd.f32 %v3081_v48, %v2888_v37  ;;  %v3467_v16 = vmul.f32 %v10035_v41, %v7147_v62 }
 0x22c   :  { %v4272_v49 = vadd.f32 %v4208_v4, %v4079_v15  ;;  %2762 = vst.msk [vmem:[#allocation3 + $0x2f0] sm:$0xff] %vm27_vm0, %v2697_v46  ;;  %v3660_v28 = vmul.f32 %v7523_v29, %v7170_v2  ;;  %v3853_v20 = vmul.f32 %v7525_v53, %v7164_v14  ;;  %v4047_v59 = vmul.f32 %v7185_v1, %v7732_v51  ;;  %v7749_v15 = vld [vmem:[#allocation3 + $0x2c9] sm:$0xff] }
 0x22d   :  { %v1326_v26 = vadd.f32 %v1262_v11, %v1133_v55  ;;  %v1681_v38 = vadd.f32 %v1617_v36, %v1487_v56  ;;  %v3338_v37 = vadd.f32 %v3274_v19, %v3145_v6  ;;  %v2351_v55 = vadd.f32 %v7415_v42, %v2350_v57 }
 0x22e   :  { %v4465_v4 = vadd.f32 %v4401_v39, %v4272_v49  ;;  %v2857_v47 = vmul.f32 %v7299_v25, %v7131_v17  ;;  %v3050_v48 = vmul.f32 %v7314_v31, %v7134_v52  ;;  %v3243_v46 = vmul.f32 %v9989_v5, %v7144_v45  ;;  %v7761_v49 = vld [vmem:[#allocation3 + $0x8f] sm:$0xff]  ;;  %v201_v25 = vld [vmem:[%s9731_s0 + $0xe0] sm:$0xff] }
 0x22f   :  { %v1519_v11 = vadd.f32 %v1455_v60, %v1326_v26  ;;  %v1874_v51 = vadd.f32 %v1810_v10, %v1681_v38  ;;  %v3531_v39 = vadd.f32 %v3467_v16, %v3338_v37  ;;  %v4240_v36 = vmul.f32 %v7195_v13, %v7747_v27  ;;  %v202_v10 = vld [vmem:[%s9731_s0 + $0xe8] sm:$0xff]  ;;  %v7778_v26 = vld [vmem:[#allocation3 + $0x90] sm:$0xff] }
 0x230   :  { %5082 = vmatmul.msk.f32.gmra.mxu1 %vm27_vm0, %v4465_v4  ;;  %v2666_v19 = vmax.f32 %v2351_v55, 0.0  ;;  %v4433_v31 = vmul.f32 %v7200_v7, %v7749_v15  ;;  %v3114_v60 = vadd.f32 %v3050_v48, %v2857_v47  ;;  %v3436_v5 = vmul.f32 %v7537_v23, %v7147_v62  ;;  %v10036_v55 = vld [vmem:[#allocation10_spill] sm:$0xff]  ;;  %v233_v47 = vld [vmem:[%s9731_s0 + $0x1e0] sm:$0xff] }
 0x231   :  { %v1713_v57 = vadd.f32 %v1649_v58, %v1519_v11  ;;  %v2067_v56 = vadd.f32 %v2003_v54, %v1874_v51  ;;  %v3724_v6 = vadd.f32 %v3660_v28, %v3531_v39  ;;  %v3629_v16 = vmul.f32 %v7554_v40, %v7170_v2 }
 0x232   :  { %2731 = vst.msk [vmem:[#allocation3 + $0xc8] sm:$0xff] %vm27_vm0, %v2666_v19  ;;  %v3822_v58 = vmul.f32 %v7574_v43, %v7164_v14  ;;  %v3307_v4 = vadd.f32 %v3243_v46, %v3114_v60  ;;  %v4016_v38 = vmul.f32 %v7185_v1, %v7761_v49  ;;  %v265_v37 = vmax.f32 %v201_v25, 0.0  ;;  %v7798_v25 = vld [vmem:[#allocation3 + $0x91] sm:$0xff]  ;;  %v10039_v60 = vld [vmem:[#allocation28_spill] sm:$0xff] }
 0x233   :  { %v1906_v7 = vadd.f32 %v1842_v3, %v1713_v57  ;;  %5039 = vmatmul.msk.f32.gmra.mxu0 %vm27_vm0, %v2067_v56  ;;  %v3917_v54 = vadd.f32 %v3853_v20, %v3724_v6  ;;  %v266_v51 = vmax.f32 %v202_v10, 0.0  ;;  %v459_v28 = vmul.f32 %v7348_v63, %v5263_v8  ;;  %v234_v3 = vld [vmem:[%s9731_s0 + $0x1e8] sm:$0xff]  ;;  %v10037_v63 = vld [vmem:[#allocation17_spill] sm:$0xff]  ;;  %10038 = vst [vmem:[#allocation26_spill] sm:$0xff] %v7798_v25 }
 0x234   :  { %v652_v11 = vmul.f32 %v10036_v55, %v5267_v9  ;;  %v3500_v46 = vadd.f32 %v3436_v5, %v3307_v4  ;;  %v4209_v20 = vmul.f32 %v7195_v13, %v7778_v26  ;;  %330 = vst.msk [vmem:[#allocation2 + $0x1e8] sm:$0xff] %vm27_vm0, %v265_v37  ;;  %v845_v39 = vmul.f32 %v10037_v63, %v5273_v12  ;;  %v10041_v4 = vld [vmem:[#allocation37_spill] sm:$0xff] }
 0x235   :  { %v2099_v48 = vadd.f32 %v2035_v50, %v1906_v7  ;;  %v4111_v19 = vadd.f32 %v4047_v59, %v3917_v54  ;;  %331 = vst.msk [vmem:[#allocation2 + $0x1f0] sm:$0xff] %vm27_vm0, %v266_v51  ;;  %v1038_v10 = vmul.f32 %v10039_v60, %v5284_v21  ;;  %v10040_v50 = vld [vmem:[#allocation29_spill] sm:$0xff]  ;;  %v297_v6 = vmax.f32 %v233_v47, 0.0  ;;  %v2446_v59 = vpop.f32.mrf.mxu2  ;;  %v10042_v51 = vld [vmem:[#allocation38_spill] sm:$0xff] }
 0x236   :  { %v716_v57 = vadd.f32 %v652_v11, %v459_v28  ;;  %v1231_v5 = vmul.f32 %v10040_v50, %v5286_v22  ;;  %v3693_v56 = vadd.f32 %v3629_v16, %v3500_v46  ;;  %v298_v7 = vmax.f32 %v234_v3, 0.0  ;;  %v10043_v11 = vld [vmem:[#allocation40_spill] sm:$0xff]  ;;  %v10044_v47 = vld [vmem:[#allocation30_spill] sm:$0xff] }
 0x237   :  { %5071 = vmatmul.msk.f32.gmra.mxu2 %vm27_vm0, %v2099_v48  ;;  %v491_v37 = vmul.f32 %v10041_v4, %v5263_v8  ;;  %v4304_v54 = vadd.f32 %v4240_v36, %v4111_v19  ;;  %v684_v28 = vmul.f32 %v10042_v51, %v5267_v9  ;;  %v877_v63 = vmul.f32 %v10043_v11, %v5273_v12  ;;  %v7815_v48 = vld [vmem:[%s9735_s4 + $0x8] ss:$0 sm:$0xff]  ;;  %v10045_v36 = vld [vmem:[#allocation14_spill] sm:$0xff]  ;;  %v10047_v11 = vld [vmem:[#allocation35_spill] sm:$0xff] }
 0x238   :  { %v909_v55 = vadd.f32 %v845_v39, %v716_v57  ;;  %v3886_v60 = vadd.f32 %v3822_v58, %v3693_v56  ;;  %v4402_v16 = vmul.f32 %v7815_v48, %v7798_v25  ;;  %v1424_v3 = vmul.f32 %v10044_v47, %v5292_v24  ;;  %362 = vst.msk [vmem:[#allocation2 + $0x428] sm:$0xff] %vm27_vm0, %v297_v6  ;;  %v10046_v4 = vld [vmem:[#allocation18_spill] sm:$0xff]  ;;  %v10048_v47 = vld [vmem:[#allocation36_spill] sm:$0xff] }
 0x239   :  { %v1070_v46 = vmul.f32 %v10045_v36, %v5284_v21  ;;  %v4497_v39 = vadd.f32 %v4433_v31, %v4304_v54  ;;  %363 = vst.msk [vmem:[#allocation2 + $0x430] sm:$0xff] %vm27_vm0, %v298_v7  ;;  %v748_v58 = vadd.f32 %v684_v28, %v491_v37  ;;  %v2447_v57 = vadd.f32 %v7415_v42, %v2446_v59 }
 0x23a   :  { %v1102_v19 = vadd.f32 %v1038_v10, %v909_v55  ;;  %v4080_v56 = vadd.f32 %v4016_v38, %v3886_v60  ;;  %v1263_v51 = vmul.f32 %v10046_v4, %v5286_v22  ;;  %v2889_v50 = vmul.f32 %v10047_v11, %v7131_v17  ;;  %v10051_v38 = vld [vmem:[#allocation39_spill] sm:$0xff] }
 0x23b   :  { %v3082_v6 = vmul.f32 %v10048_v47, %v7134_v52  ;;  %5114 = vmatmul.msk.f32.gmra.mxu3 %vm27_vm0, %v4497_v39  ;;  %v7833_v31 = vld [vmem:[#allocation2 + $0x1e7] sm:$0xff]  ;;  %v941_v7 = vadd.f32 %v877_v63, %v748_v58  ;;  %v2698_v37 = vmax.f32 %v2447_v57, 0.0  ;;  %v3275_v60 = vmul.f32 %v10051_v38, %v7144_v45 }
 0x23c   :  { %v1295_v36 = vadd.f32 %v1231_v5, %v1102_v19  ;;  %10049 = vst [vmem:[#allocation27_spill] sm:$0xff] %v7833_v31  ;;  %v7835_v10 = vld [vmem:[#allocation2 + $0x1e8] sm:$0xff]  ;;  %v4273_v59 = vadd.f32 %v4209_v20, %v4080_v56  ;;  %v1618_v54 = vmul.f32 %v5308_v30, %v7833_v31  ;;  %v10053_v47 = vld [vmem:[#allocation31_spill] sm:$0xff]  ;;  %v7852_v20 = vld [vmem:[#allocation3 + $0x2d0] sm:$0xff]  ;;  %v2353_v56 = vpop.f32.mrf.mxu0 }
 0x23d   :  { %10050 = vst [vmem:[#allocation11_spill] sm:$0xff] %v7835_v10  ;;  %v7841_v55 = vld [vmem:[#allocation2 + $0x1e9] sm:$0xff]  ;;  %v3146_v28 = vadd.f32 %v3082_v6, %v2889_v50  ;;  %v3468_v39 = vmul.f32 %v10053_v47, %v7147_v62  ;;  %v1811_v63 = vmul.f32 %v5318_v34, %v7835_v10  ;;  %v1134_v58 = vadd.f32 %v1070_v46, %v941_v7 }
 0x23e   :  { %10052 = vst [vmem:[#allocation13_spill] sm:$0xff] %v7841_v55  ;;  %v7845_v5 = vld [vmem:[#allocation3 + $0x2cf] sm:$0xff]  ;;  %v1488_v19 = vadd.f32 %v1424_v3, %v1295_v36  ;;  %v4466_v38 = vadd.f32 %v4402_v16, %v4273_v59  ;;  %v2004_v50 = vmul.f32 %v7433_v44, %v7841_v55  ;;  %v7884_v31 = vld [vmem:[#allocation3 + $0xa7] sm:$0xff] }
 0x23f   :  { %10054 = vst [vmem:[#allocation10_spill] sm:$0xff] %v7845_v5  ;;  %v10055_v57 = vld [vmem:[#allocation16_spill] sm:$0xff]  ;;  %v3339_v6 = vadd.f32 %v3275_v60, %v3146_v28  ;;  %v1327_v4 = vadd.f32 %v1263_v51, %v1134_v58  ;;  %v10060_v7 = vld [vmem:[#allocation33_spill] sm:$0xff]  ;;  %v4241_v51 = vmul.f32 %v7195_v13, %v7852_v20  ;;  %v2354_v28 = vadd.f32 %v7415_v42, %v2353_v56 }
 0x240   :  { %v1456_v11 = vmul.f32 %v10055_v57, %v5292_v24  ;;  %2763 = vst.msk [vmem:[#allocation3 + $0x308] sm:$0xff] %vm27_vm0, %v2698_v37  ;;  %v10057_v47 = vld [vmem:[#allocation32_spill] sm:$0xff]  ;;  %v1682_v36 = vadd.f32 %v1618_v54, %v1488_v19  ;;  %v3854_v37 = vmul.f32 %v10060_v7, %v7164_v14  ;;  %v4048_v57 = vmul.f32 %v7185_v1, %v7845_v5  ;;  %v7873_v54 = vld [vmem:[#allocation3 + $0x2d1] sm:$0xff] }
 0x241   :  { %10056 = vst [vmem:[#allocation17_spill] sm:$0xff] %v7852_v20  ;;  %v3661_v3 = vmul.f32 %v10057_v47, %v7170_v2  ;;  %v7858_v10 = vld [vmem:[#allocation2 + $0x427] sm:$0xff]  ;;  %5083 = vmatmul.msk.f32.gmra.mxu1 %vm27_vm0, %v4466_v38  ;;  %v3532_v59 = vadd.f32 %v3468_v39, %v3339_v6  ;;  %v10064_v55 = vld [vmem:[#allocation41_spill] sm:$0xff]  ;;  %v10065_v6 = vld [vmem:[#allocation42_spill] sm:$0xff] }
 0x242   :  { %10058 = vst [vmem:[#allocation37_spill] sm:$0xff] %v7858_v10  ;;  %v7860_v46 = vld [vmem:[#allocation2 + $0x428] sm:$0xff]  ;;  %v1650_v16 = vmul.f32 %v5308_v30, %v7858_v10  ;;  %v1875_v19 = vadd.f32 %v1811_v63, %v1682_v36  ;;  %v1520_v58 = vadd.f32 %v1456_v11, %v1327_v4  ;;  %v10063_v38 = vld [vmem:[#allocation15_spill] sm:$0xff]  ;;  %v2667_v10 = vmax.f32 %v2354_v28, 0.0  ;;  %v10067_v36 = vld [vmem:[#allocation34_spill] sm:$0xff] }
 0x243   :  { %10059 = vst [vmem:[#allocation38_spill] sm:$0xff] %v7860_v46  ;;  %v7869_v60 = vld [vmem:[#allocation2 + $0x429] sm:$0xff]  ;;  %v1843_v5 = vmul.f32 %v5318_v34, %v7860_v46  ;;  %v2858_v7 = vmul.f32 %v10063_v38, %v7131_v17  ;;  %v3725_v47 = vadd.f32 %v3661_v3, %v3532_v59  ;;  %v3051_v39 = vmul.f32 %v10064_v55, %v7134_v52  ;;  %v10068_v59 = vld [vmem:[#allocation19_spill] sm:$0xff] }
 0x244   :  { %10061 = vst [vmem:[#allocation40_spill] sm:$0xff] %v7869_v60  ;;  %v3244_v20 = vmul.f32 %v10065_v6, %v7144_v45  ;;  %v2068_v25 = vadd.f32 %v2004_v50, %v1875_v19  ;;  %v1714_v56 = vadd.f32 %v1650_v16, %v1520_v58  ;;  %v2036_v4 = vmul.f32 %v7433_v44, %v7869_v60  ;;  %v7895_v38 = vld [vmem:[#allocation3 + $0xa8] sm:$0xff] }
 0x245   :  { %10062 = vst [vmem:[#allocation35_spill] sm:$0xff] %v7873_v54  ;;  %v4434_v63 = vmul.f32 %v7815_v48, %v7873_v54  ;;  %v3918_v11 = vadd.f32 %v3854_v37, %v3725_v47  ;;  %v3115_v3 = vadd.f32 %v3051_v39, %v2858_v7  ;;  %v3437_v55 = vmul.f32 %v10067_v36, %v7147_v62  ;;  %v7897_v50 = vld [vmem:[#allocation3 + $0xa9] sm:$0xff]  ;;  %v10072_v47 = vld [vmem:[#allocation7_spill] sm:$0xff] }
 0x246   :  { %10066 = vst [vmem:[#allocation36_spill] sm:$0xff] %v7884_v31  ;;  %v3630_v28 = vmul.f32 %v10068_v59, %v7170_v2  ;;  %5040 = vmatmul.msk.f32.gmra.mxu0 %vm27_vm0, %v2068_v25  ;;  %v1907_v16 = vadd.f32 %v1843_v5, %v1714_v56  ;;  %v10071_v19 = vld [vmem:[#allocation20_spill] sm:$0xff]  ;;  %v460_v7 = vmul.f32 %v10072_v47, %v5263_v8  ;;  %v10074_v36 = vld [vmem:[#allocation9_spill] sm:$0xff] }
 0x247   :  { %2732 = vst.msk [vmem:[#allocation3 + $0xd0] sm:$0xff] %vm27_vm0, %v2667_v10  ;;  %v3823_v58 = vmul.f32 %v10071_v19, %v7164_v14  ;;  %v4017_v10 = vmul.f32 %v7185_v1, %v7884_v31  ;;  %v4112_v37 = vadd.f32 %v4048_v57, %v3918_v11  ;;  %v3308_v39 = vadd.f32 %v3244_v20, %v3115_v3  ;;  %v10073_v6 = vld [vmem:[#allocation8_spill] sm:$0xff]  ;;  %v10076_v31 = vld [vmem:[#allocation21_spill] sm:$0xff] }
 0x248   :  { %10069 = vst [vmem:[#allocation39_spill] sm:$0xff] %v7895_v38  ;;  %v653_v59 = vmul.f32 %v10073_v6, %v5267_v9  ;;  %v846_v54 = vmul.f32 %v10074_v36, %v5273_v12  ;;  %v7910_v60 = vld [vmem:[#allocation2 + $0x1ef] sm:$0xff]  ;;  %v2100_v25 = vadd.f32 %v2036_v4, %v1907_v16  ;;  %v4210_v5 = vmul.f32 %v7195_v13, %v7895_v38 }
 0x249   :  { %10070 = vst [vmem:[#allocation15_spill] sm:$0xff] %v7897_v50  ;;  %v4403_v56 = vmul.f32 %v7815_v48, %v7897_v50  ;;  %v1039_v47 = vmul.f32 %v10076_v31, %v5284_v21  ;;  %v4305_v57 = vadd.f32 %v4241_v51, %v4112_v37  ;;  %v3501_v20 = vadd.f32 %v3437_v55, %v3308_v39  ;;  %v7920_v6 = vld [vmem:[#allocation2 + $0x1f0] sm:$0xff]  ;;  %v10079_v39 = vld [vmem:[#allocation12_spill] sm:$0xff] }
 0x24a   :  { %10075 = vst [vmem:[#allocation41_spill] sm:$0xff] %v7910_v60  ;;  %v717_v11 = vadd.f32 %v653_v59, %v460_v7  ;;  %v1232_v3 = vmul.f32 %v7691_v32, %v5286_v22  ;;  %v7922_v36 = vld [vmem:[#allocation2 + $0x1f1] sm:$0xff]  ;;  %5072 = vmatmul.msk.f32.gmra.mxu2 %vm27_vm0, %v2100_v25  ;;  %v1425_v4 = vmul.f32 %v7693_v61, %v5292_v24  ;;  %v2449_v25 = vpop.f32.mrf.mxu2 }
 0x24b   :  { %10077 = vst [vmem:[#allocation42_spill] sm:$0xff] %v7920_v6  ;;  %v1619_v16 = vmul.f32 %v5308_v30, %v7910_v60  ;;  %v492_v51 = vmul.f32 %v10033_v33, %v5263_v8  ;;  %v685_v55 = vmul.f32 %v7494_v18, %v5267_v9  ;;  %v4498_v59 = vadd.f32 %v4434_v63, %v4305_v57  ;;  %v7935_v32 = vld [vmem:[#allocation2 + $0x42f] sm:$0xff] }
 0x24c   :  { %10078 = vst [vmem:[#allocation20_spill] sm:$0xff] %v7922_v36  ;;  %v3694_v7 = vadd.f32 %v3630_v28, %v3501_v20  ;;  %v910_v37 = vadd.f32 %v846_v54, %v717_v11  ;;  %v878_v50 = vmul.f32 %v10079_v39, %v5273_v12  ;;  %v1812_v61 = vmul.f32 %v5318_v34, %v7920_v6  ;;  %v10081_v33 = vld [vmem:[#allocation24_spill] sm:$0xff]  ;;  %v7948_v57 = vld [vmem:[#allocation2 + $0x430] sm:$0xff] }
 0x24d   :  { %10080 = vst [vmem:[#allocation7_spill] sm:$0xff] %v7935_v32  ;;  %v2005_v60 = vmul.f32 %v7433_v44, %v7922_v36  ;;  %v749_v31 = vadd.f32 %v685_v55, %v492_v51  ;;  %v1071_v38 = vmul.f32 %v10081_v33, %v5284_v21  ;;  %5115 = vmatmul.msk.f32.gmra.mxu3 %vm27_vm0, %v4498_v59  ;;  %v7950_v20 = vld [vmem:[#allocation2 + $0x431] sm:$0xff]  ;;  %v7961_v39 = vld [vmem:[#allocation3 + $0x2e7] sm:$0xff] }
 0x24e   :  { %v3887_v18 = vadd.f32 %v3823_v58, %v3694_v7  ;;  %v1103_v54 = vadd.f32 %v1039_v47, %v910_v37  ;;  %v1264_v63 = vmul.f32 %v7719_v0, %v5286_v22  ;;  %v1457_v28 = vmul.f32 %v7721_v35, %v5292_v24  ;;  %10082 = vst [vmem:[#allocation8_spill] sm:$0xff] %v7948_v57 }
 0x24f   :  { %v942_v11 = vadd.f32 %v878_v50, %v749_v31  ;;  %v1651_v51 = vmul.f32 %v5308_v30, %v7935_v32  ;;  %v2450_v55 = vadd.f32 %v7415_v42, %v2449_v25  ;;  %v2890_v58 = vmul.f32 %v10035_v41, %v7131_v17  ;;  %v2356_v32 = vpop.f32.mrf.mxu0 }
 0x250   :  { %v4081_v47 = vadd.f32 %v4017_v10, %v3887_v18  ;;  %v1296_v59 = vadd.f32 %v1232_v3, %v1103_v54  ;;  %v3083_v7 = vmul.f32 %v7523_v29, %v7134_v52  ;;  %v3276_v37 = vmul.f32 %v7525_v53, %v7144_v45  ;;  %v10083_v18 = vld [vmem:[#allocation25_spill] sm:$0xff] }
 0x251   :  { %v1135_v36 = vadd.f32 %v1071_v38, %v942_v11  ;;  %v1844_v31 = vmul.f32 %v5318_v34, %v7948_v57  ;;  %v2037_v50 = vmul.f32 %v7433_v44, %v7950_v20  ;;  %v2699_v25 = vmax.f32 %v2450_v55, 0.0  ;;  %v7976_v11 = vld [vmem:[#allocation3 + $0x2e8] sm:$0xff] }
 0x252   :  { %v4274_v41 = vadd.f32 %v4210_v5, %v4081_v47  ;;  %v1489_v10 = vadd.f32 %v1425_v4, %v1296_v59  ;;  %v3147_v3 = vadd.f32 %v3083_v7, %v2890_v58  ;;  %v3469_v29 = vmul.f32 %v10083_v18, %v7147_v62  ;;  %v7978_v58 = vld [vmem:[#allocation3 + $0x2e9] sm:$0xff] }
 0x253   :  { %v1328_v54 = vadd.f32 %v1264_v63, %v1135_v36  ;;  %2764 = vst.msk [vmem:[#allocation3 + $0x310] sm:$0xff] %vm27_vm0, %v2699_v25  ;;  %v3662_v53 = vmul.f32 %v7747_v27, %v7170_v2  ;;  %v3855_v38 = vmul.f32 %v7749_v15, %v7164_v14  ;;  %v4049_v44 = vmul.f32 %v7185_v1, %v7961_v39 }
 0x254   :  { %v4467_v5 = vadd.f32 %v4403_v56, %v4274_v41  ;;  %v1683_v4 = vadd.f32 %v1619_v16, %v1489_v10  ;;  %v3340_v55 = vadd.f32 %v3276_v37, %v3147_v3  ;;  %v2357_v36 = vadd.f32 %v7415_v42, %v2356_v32  ;;  %v7990_v41 = vld [vmem:[#allocation3 + $0xaf] sm:$0xff] }
 0x255   :  { %v1521_v63 = vadd.f32 %v1457_v28, %v1328_v54  ;;  %v2859_v47 = vmul.f32 %v7537_v23, %v7131_v17  ;;  %v3052_v59 = vmul.f32 %v7554_v40, %v7134_v52  ;;  %v3245_v7 = vmul.f32 %v7574_v43, %v7144_v45  ;;  %10084 = vst [vmem:[#allocation9_spill] sm:$0xff] %v7990_v41  ;;  %v203_v42 = vld [vmem:[%s9731_s0 + $0xf0] sm:$0xff] }
 0x256   :  { %5084 = vmatmul.msk.f32.gmra.mxu1 %vm27_vm0, %v4467_v5  ;;  %v1876_v25 = vadd.f32 %v1812_v61, %v1683_v4  ;;  %v3533_v56 = vadd.f32 %v3469_v29, %v3340_v55  ;;  %v4242_v16 = vmul.f32 %v7195_v13, %v7976_v11  ;;  %v2668_v37 = vmax.f32 %v2357_v36, 0.0  ;;  %v204_v61 = vld [vmem:[%s9731_s0 + $0xf8] sm:$0xff]  ;;  %v8007_v54 = vld [vmem:[#allocation3 + $0xb0] sm:$0xff] }
 0x257   :  { %v1715_v23 = vadd.f32 %v1651_v51, %v1521_v63  ;;  %v4435_v40 = vmul.f32 %v7815_v48, %v7978_v58  ;;  %v3116_v32 = vadd.f32 %v3052_v59, %v2859_v47  ;;  %v3438_v43 = vmul.f32 %v7761_v49, %v7147_v62  ;;  %v10085_v51 = vld [vmem:[#allocation26_spill] sm:$0xff]  ;;  %10086 = vst [vmem:[#allocation12_spill] sm:$0xff] %v8007_v54  ;;  %v10087_v63 = vld [vmem:[#allocation28_spill] sm:$0xff]  ;;  %v10088_v59 = vld [vmem:[#allocation29_spill] sm:$0xff] }
 0x258   :  { %v2069_v28 = vadd.f32 %v2005_v60, %v1876_v25  ;;  %v3726_v10 = vadd.f32 %v3662_v53, %v3533_v56  ;;  %2733 = vst.msk [vmem:[#allocation3 + $0xe8] sm:$0xff] %vm27_vm0, %v2668_v37  ;;  %v3631_v3 = vmul.f32 %v7778_v26, %v7170_v2  ;;  %v3824_v29 = vmul.f32 %v10085_v51, %v7164_v14  ;;  %v235_v56 = vld [vmem:[%s9731_s0 + $0x1f0] sm:$0xff] }
 0x259   :  { %v1908_v5 = vadd.f32 %v1844_v31, %v1715_v23  ;;  %v3309_v4 = vadd.f32 %v3245_v7, %v3116_v32  ;;  %v4018_v55 = vmul.f32 %v7185_v1, %v7990_v41  ;;  %v267_v36 = vmax.f32 %v203_v42, 0.0  ;;  %v236_v31 = vld [vmem:[%s9731_s0 + $0x1f8] sm:$0xff] }
 0x25a   :  { %5041 = vmatmul.msk.f32.gmra.mxu0 %vm27_vm0, %v2069_v28  ;;  %v3919_v60 = vadd.f32 %v3855_v38, %v3726_v10  ;;  %v268_v53 = vmax.f32 %v204_v61, 0.0  ;;  %v461_v47 = vmul.f32 %v10087_v63, %v5263_v8  ;;  %v654_v25 = vmul.f32 %v10088_v59, %v5267_v9  ;;  %v10089_v42 = vld [vmem:[#allocation30_spill] sm:$0xff]  ;;  %v10091_v10 = vld [vmem:[#allocation27_spill] sm:$0xff] }
 0x25b   :  { %v2101_v7 = vadd.f32 %v2037_v50, %v1908_v5  ;;  %v3502_v37 = vadd.f32 %v3438_v43, %v3309_v4  ;;  %v4211_v38 = vmul.f32 %v7195_v13, %v8007_v54  ;;  %332 = vst.msk [vmem:[#allocation2 + $0x208] sm:$0xff] %vm27_vm0, %v267_v36  ;;  %v847_v23 = vmul.f32 %v10089_v42, %v5273_v12  ;;  %v8027_v61 = vld [vmem:[#allocation3 + $0xb1] sm:$0xff]  ;;  %v10092_v50 = vld [vmem:[#allocation11_spill] sm:$0xff] }
 0x25c   :  { %v4113_v32 = vadd.f32 %v4049_v44, %v3919_v60  ;;  %10090 = vst [vmem:[#allocation24_spill] sm:$0xff] %v8027_v61  ;;  %v718_v28 = vadd.f32 %v654_v25, %v461_v47  ;;  %v1040_v63 = vmul.f32 %v10091_v10, %v5284_v21  ;;  %v1233_v43 = vmul.f32 %v10092_v50, %v5286_v22  ;;  %v10093_v59 = vld [vmem:[#allocation14_spill] sm:$0xff]  ;;  %v2452_v44 = vpop.f32.mrf.mxu2  ;;  %v10095_v25 = vld [vmem:[#allocation16_spill] sm:$0xff] }
 0x25d   :  { %333 = vst.msk [vmem:[#allocation2 + $0x210] sm:$0xff] %vm27_vm0, %v268_v53  ;;  %5073 = vmatmul.msk.f32.gmra.mxu2 %vm27_vm0, %v2101_v7  ;;  %v3695_v5 = vadd.f32 %v3631_v3, %v3502_v37  ;;  %v299_v4 = vmax.f32 %v235_v56, 0.0  ;;  %v300_v36 = vmax.f32 %v236_v31, 0.0  ;;  %v493_v42 = vmul.f32 %v10093_v59, %v5263_v8  ;;  %v10094_v53 = vld [vmem:[#allocation18_spill] sm:$0xff]  ;;  %v10096_v3 = vld [vmem:[#allocation13_spill] sm:$0xff] }
 0x25e   :  { %v4306_v60 = vadd.f32 %v4242_v16, %v4113_v32  ;;  %v911_v54 = vadd.f32 %v847_v23, %v718_v28  ;;  %v686_v47 = vmul.f32 %v10094_v53, %v5267_v9  ;;  %v879_v10 = vmul.f32 %v10095_v25, %v5273_v12  ;;  %v10097_v31 = vld [vmem:[#allocation37_spill] sm:$0xff] }
 0x25f   :  { %v3888_v41 = vadd.f32 %v3824_v29, %v3695_v5  ;;  %v4404_v50 = vmul.f32 %v7815_v48, %v8027_v61  ;;  %v1426_v56 = vmul.f32 %v10096_v3, %v5292_v24  ;;  %364 = vst.msk [vmem:[#allocation2 + $0x448] sm:$0xff] %vm27_vm0, %v299_v4  ;;  %v1072_v7 = vmul.f32 %v10097_v31, %v5284_v21  ;;  %v8052_v29 = vld [vmem:[%s9734_s3] ss:$0 sm:$0xff] }
 0x260   :  { %v4499_v16 = vadd.f32 %v4435_v40, %v4306_v60  ;;  %v1104_v37 = vadd.f32 %v1040_v63, %v911_v54  ;;  %365 = vst.msk [vmem:[#allocation2 + $0x450] sm:$0xff] %vm27_vm0, %v300_v36  ;;  %v750_v23 = vadd.f32 %v686_v47, %v493_v42  ;;  %v2453_v32 = vadd.f32 %v8052_v29, %v2452_v44  ;;  %v10098_v4 = vld [vmem:[#allocation31_spill] sm:$0xff]  ;;  %v10099_v40 = vld [vmem:[#allocation32_spill] sm:$0xff] }
 0x261   :  { %v4082_v28 = vadd.f32 %v4018_v55, %v3888_v41  ;;  %v1265_v5 = vmul.f32 %v7860_v46, %v5286_v22  ;;  %v2891_v59 = vmul.f32 %v10098_v4, %v7131_v17  ;;  %v3084_v54 = vmul.f32 %v10099_v40, %v7134_v52  ;;  %v10101_v41 = vld [vmem:[#allocation33_spill] sm:$0xff]  ;;  %v10103_v40 = vld [vmem:[#allocation10_spill] sm:$0xff] }
 0x262   :  { %5116 = vmatmul.msk.f32.gmra.mxu3 %vm27_vm0, %v4499_v16  ;;  %v1297_v63 = vadd.f32 %v1233_v43, %v1104_v37  ;;  %v8062_v36 = vld [vmem:[#allocation2 + $0x207] sm:$0xff]  ;;  %v943_v60 = vadd.f32 %v879_v10, %v750_v23  ;;  %v2700_v53 = vmax.f32 %v2453_v32, 0.0  ;;  %v3277_v55 = vmul.f32 %v10101_v41, %v7144_v45  ;;  %v2359_v32 = vpop.f32.mrf.mxu0 }
 0x263   :  { %v8064_v42 = vld [vmem:[#allocation2 + $0x208] sm:$0xff]  ;;  %v4275_v44 = vadd.f32 %v4211_v38, %v4082_v28  ;;  %v1620_v47 = vmul.f32 %v5308_v30, %v8062_v36  ;;  %v3148_v4 = vadd.f32 %v3084_v54, %v2891_v59  ;;  %v3470_v16 = vmul.f32 %v10103_v40, %v7147_v62 }
 0x264   :  { %10100 = vst [vmem:[#allocation25_spill] sm:$0xff] %v8064_v42  ;;  %v8070_v25 = vld [vmem:[#allocation2 + $0x209] sm:$0xff]  ;;  %v1490_v43 = vadd.f32 %v1426_v56, %v1297_v63  ;;  %v1813_v37 = vmul.f32 %v5318_v34, %v8064_v42  ;;  %v1136_v46 = vadd.f32 %v1072_v7, %v943_v60  ;;  %v8084_v59 = vld [vmem:[%s9732_s1 + $0x8] ss:$0 sm:$0xff] }
 0x265   :  { %10102 = vst [vmem:[#allocation26_spill] sm:$0xff] %v8070_v25  ;;  %v10104_v10 = vld [vmem:[#allocation40_spill] sm:$0xff]  ;;  %v4468_v28 = vadd.f32 %v4404_v50, %v4275_v44  ;;  %v2006_v56 = vmul.f32 %v8084_v59, %v8070_v25  ;;  %v3341_v54 = vadd.f32 %v3277_v55, %v3148_v4  ;;  %v10108_v50 = vld [vmem:[#allocation35_spill] sm:$0xff] }
 0x266   :  { %v1458_v23 = vmul.f32 %v10104_v10, %v5292_v24  ;;  %2765 = vst.msk [vmem:[#allocation3 + $0x328] sm:$0xff] %vm27_vm0, %v2700_v53  ;;  %v8079_v38 = vld [vmem:[#allocation3 + $0x2ef] sm:$0xff]  ;;  %v1684_v63 = vadd.f32 %v1620_v47, %v1490_v43  ;;  %v1329_v7 = vadd.f32 %v1265_v5, %v1136_v46  ;;  %v8088_v60 = vld [vmem:[#allocation2 + $0x447] sm:$0xff]  ;;  %v3856_v44 = vmul.f32 %v10108_v50, %v7164_v14 }
 0x267   :  { %10105 = vst [vmem:[#allocation28_spill] sm:$0xff] %v8079_v38  ;;  %v8090_v41 = vld [vmem:[#allocation2 + $0x448] sm:$0xff]  ;;  %v10107_v53 = vld [vmem:[#allocation17_spill] sm:$0xff]  ;;  %5085 = vmatmul.msk.f32.gmra.mxu1 %vm27_vm0, %v4468_v28  ;;  %v1652_v10 = vmul.f32 %v5308_v30, %v8088_v60  ;;  %v3534_v55 = vadd.f32 %v3470_v16, %v3341_v54  ;;  %v4050_v46 = vmul.f32 %v7185_v1, %v8079_v38  ;;  %v10111_v28 = vld [vmem:[#allocation34_spill] sm:$0xff] }
 0x268   :  { %10106 = vst [vmem:[#allocation29_spill] sm:$0xff] %v8088_v60  ;;  %v3663_v40 = vmul.f32 %v10107_v53, %v7170_v2  ;;  %v8099_v31 = vld [vmem:[#allocation2 + $0x449] sm:$0xff]  ;;  %v2360_v5 = vadd.f32 %v8052_v29, %v2359_v32  ;;  %v1877_v47 = vadd.f32 %v1813_v37, %v1684_v63  ;;  %v1522_v4 = vadd.f32 %v1458_v23, %v1329_v7  ;;  %v8110_v60 = vld [vmem:[#allocation3 + $0x2f1] sm:$0xff]  ;;  %v10113_v16 = vld [vmem:[#allocation19_spill] sm:$0xff] }
 0x269   :  { %10109 = vst [vmem:[#allocation30_spill] sm:$0xff] %v8099_v31  ;;  %v1845_v43 = vmul.f32 %v5318_v34, %v8090_v41  ;;  %v8106_v53 = vld [vmem:[#allocation3 + $0x2f0] sm:$0xff]  ;;  %v2860_v50 = vmul.f32 %v10111_v28, %v7131_v17  ;;  %v3053_v54 = vmul.f32 %v10113_v16, %v7134_v52  ;;  %v3246_v32 = vmul.f32 %v10071_v19, %v7144_v45  ;;  %v8123_v28 = vld [vmem:[#allocation3 + $0xc7] sm:$0xff] }
 0x26a   :  { %10110 = vst [vmem:[#allocation14_spill] sm:$0xff] %v8106_v53  ;;  %v3727_v25 = vadd.f32 %v3663_v40, %v3534_v55  ;;  %v2669_v42 = vmax.f32 %v2360_v5, 0.0  ;;  %v2070_v37 = vadd.f32 %v2006_v56, %v1877_v47  ;;  %v1716_v23 = vadd.f32 %v1652_v10, %v1522_v4  ;;  %v10114_v55 = vld [vmem:[#allocation36_spill] sm:$0xff] }
 0x26b   :  { %10112 = vst [vmem:[#allocation18_spill] sm:$0xff] %v8110_v60  ;;  %v2038_v63 = vmul.f32 %v8084_v59, %v8099_v31  ;;  %v4243_v38 = vmul.f32 %v7195_v13, %v8106_v53  ;;  %v3117_v40 = vadd.f32 %v3053_v54, %v2860_v50  ;;  %v3439_v5 = vmul.f32 %v10114_v55, %v7147_v62  ;;  %v8125_v16 = vld [vmem:[#allocation3 + $0xc8] sm:$0xff]  ;;  %v10120_v54 = vld [vmem:[#allocation22_spill] sm:$0xff]  ;;  %v10121_v53 = vld [vmem:[#allocation23_spill] sm:$0xff] }
 0x26c   :  { %v3920_v7 = vadd.f32 %v3856_v44, %v3727_v25  ;;  %2734 = vst.msk [vmem:[#allocation3 + $0xf0] sm:$0xff] %vm27_vm0, %v2669_v42  ;;  %5042 = vmatmul.msk.f32.gmra.mxu0 %vm27_vm0, %v2070_v37  ;;  %v1909_v19 = vadd.f32 %v1845_v43, %v1716_v23  ;;  %v4436_v10 = vmul.f32 %v7815_v48, %v8110_v60  ;;  %v10117_v25 = vld [vmem:[#allocation39_spill] sm:$0xff]  ;;  %v10118_v44 = vld [vmem:[#allocation21_spill] sm:$0xff] }
 0x26d   :  { %10115 = vst [vmem:[#allocation16_spill] sm:$0xff] %v8123_v28  ;;  %v3632_v56 = vmul.f32 %v10117_v25, %v7170_v2  ;;  %v462_v42 = vmul.f32 %v10118_v44, %v5263_v8  ;;  %v3310_v47 = vadd.f32 %v3246_v32, %v3117_v40  ;;  %v8134_v4 = vld [vmem:[#allocation3 + $0xc9] sm:$0xff]  ;;  %v655_v55 = vmul.f32 %v10120_v54, %v5267_v9  ;;  %v10122_v23 = vld [vmem:[#allocation15_spill] sm:$0xff] }
 0x26e   :  { %10116 = vst [vmem:[#allocation13_spill] sm:$0xff] %v8125_v16  ;;  %v4114_v50 = vadd.f32 %v4050_v46, %v3920_v7  ;;  %v848_v37 = vmul.f32 %v10121_v53, %v5273_v12  ;;  %v2102_v43 = vadd.f32 %v2038_v63, %v1909_v19  ;;  %v3825_v60 = vmul.f32 %v10122_v23, %v7164_v14  ;;  %v10123_v40 = vld [vmem:[#allocation41_spill] sm:$0xff]  ;;  %v10126_v23 = vld [vmem:[#allocation7_spill] sm:$0xff] }
 0x26f   :  { %10119 = vst [vmem:[#allocation31_spill] sm:$0xff] %v8134_v4  ;;  %v4019_v25 = vmul.f32 %v7185_v1, %v8123_v28  ;;  %v4212_v44 = vmul.f32 %v7195_v13, %v8125_v16  ;;  %v3503_v32 = vadd.f32 %v3439_v5, %v3310_v47  ;;  %v719_v7 = vadd.f32 %v655_v55, %v462_v42  ;;  %v8148_v54 = vld [vmem:[#allocation2 + $0x20f] sm:$0xff] }
 0x270   :  { %v4307_v46 = vadd.f32 %v4243_v38, %v4114_v50  ;;  %v1041_v31 = vmul.f32 %v10123_v40, %v5284_v21  ;;  %5074 = vmatmul.msk.f32.gmra.mxu2 %vm27_vm0, %v2102_v43  ;;  %v4405_v53 = vmul.f32 %v7815_v48, %v8134_v4  ;;  %v1234_v63 = vmul.f32 %v7920_v6, %v5286_v22  ;;  %v8155_v19 = vld [vmem:[#allocation2 + $0x210] sm:$0xff]  ;;  %v2455_v43 = vpop.f32.mrf.mxu2  ;;  %v10125_v4 = vld [vmem:[#allocation20_spill] sm:$0xff] }
 0x271   :  { %v8157_v28 = vld [vmem:[#allocation2 + $0x211] sm:$0xff]  ;;  %v494_v38 = vmul.f32 %v10081_v33, %v5263_v8  ;;  %v687_v55 = vmul.f32 %v7719_v0, %v5267_v9  ;;  %v3696_v42 = vadd.f32 %v3632_v56, %v3503_v32  ;;  %v912_v50 = vadd.f32 %v848_v37, %v719_v7 }
 0x272   :  { %10124 = vst [vmem:[#allocation32_spill] sm:$0xff] %v8157_v28  ;;  %v4500_v5 = vadd.f32 %v4436_v10, %v4307_v46  ;;  %v880_v47 = vmul.f32 %v7721_v35, %v5273_v12  ;;  %v1427_v6 = vmul.f32 %v10125_v4, %v5292_v24  ;;  %v1621_v40 = vmul.f32 %v5308_v30, %v8148_v54  ;;  %v8176_v37 = vld [vmem:[#allocation2 + $0x44f] sm:$0xff] }
 0x273   :  { %v751_v16 = vadd.f32 %v687_v55, %v494_v38  ;;  %v1073_v33 = vmul.f32 %v10126_v23, %v5284_v21  ;;  %v3889_v0 = vadd.f32 %v3825_v60, %v3696_v42  ;;  %v1105_v10 = vadd.f32 %v1041_v31, %v912_v50  ;;  %v8183_v31 = vld [vmem:[#allocation2 + $0x450] sm:$0xff] }
 0x274   :  { %5117 = vmatmul.msk.f32.gmra.mxu3 %vm27_vm0, %v4500_v5  ;;  %v1814_v56 = vmul.f32 %v5318_v34, %v8155_v19  ;;  %v2007_v35 = vmul.f32 %v8084_v59, %v8157_v28  ;;  %v1266_v32 = vmul.f32 %v7948_v57, %v5286_v22  ;;  %v2456_v7 = vadd.f32 %v8052_v29, %v2455_v43  ;;  %v8185_v5 = vld [vmem:[#allocation2 + $0x451] sm:$0xff] }
 0x275   :  { %v944_v46 = vadd.f32 %v880_v47, %v751_v16  ;;  %v2892_v38 = vmul.f32 %v10083_v18, %v7131_v17  ;;  %v4083_v55 = vadd.f32 %v4019_v25, %v3889_v0  ;;  %v1298_v60 = vadd.f32 %v1234_v63, %v1105_v10  ;;  %v2362_v25 = vpop.f32.mrf.mxu0 }
 0x276   :  { %v3085_v42 = vmul.f32 %v7747_v27, %v7134_v52  ;;  %v3278_v16 = vmul.f32 %v7749_v15, %v7144_v45  ;;  %v1459_v47 = vmul.f32 %v7950_v20, %v5292_v24  ;;  %v1653_v43 = vmul.f32 %v5308_v30, %v8176_v37 }
 0x277   :  { %v1137_v50 = vadd.f32 %v1073_v33, %v944_v46  ;;  %v2701_v18 = vmax.f32 %v2456_v7, 0.0  ;;  %v4276_v63 = vadd.f32 %v4212_v44, %v4083_v55  ;;  %v1491_v0 = vadd.f32 %v1427_v6, %v1298_v60  ;;  %v8204_v6 = vld [vmem:[#allocation3 + $0x307] sm:$0xff] }
 0x278   :  { %v3149_v10 = vadd.f32 %v3085_v42, %v2892_v38  ;;  %v3471_v28 = vmul.f32 %v7961_v39, %v7147_v62  ;;  %v1846_v27 = vmul.f32 %v5318_v34, %v8183_v31  ;;  %v2039_v15 = vmul.f32 %v8084_v59, %v8185_v5  ;;  %v8209_v60 = vld [vmem:[#allocation3 + $0x309] sm:$0xff] }
 0x279   :  { %v1330_v57 = vadd.f32 %v1266_v32, %v1137_v50  ;;  %2766 = vst.msk [vmem:[#allocation3 + $0x330] sm:$0xff] %vm27_vm0, %v2701_v18  ;;  %v3664_v33 = vmul.f32 %v7976_v11, %v7170_v2  ;;  %v4469_v46 = vadd.f32 %v4405_v53, %v4276_v63  ;;  %v1685_v7 = vadd.f32 %v1621_v40, %v1491_v0  ;;  %v8207_v32 = vld [vmem:[#allocation3 + $0x308] sm:$0xff] }
 0x27a   :  { %v3342_v44 = vadd.f32 %v3278_v16, %v3149_v10  ;;  %v2363_v38 = vadd.f32 %v8052_v29, %v2362_v25  ;;  %10127 = vst [vmem:[#allocation33_spill] sm:$0xff] %v8207_v32  ;;  %v2861_v42 = vmul.f32 %v7761_v49, %v7131_v17  ;;  %v3054_v50 = vmul.f32 %v7778_v26, %v7134_v52  ;;  %v10129_v49 = vld [vmem:[#allocation9_spill] sm:$0xff] }
 0x27b   :  { %v1523_v55 = vadd.f32 %v1459_v47, %v1330_v57  ;;  %10128 = vst [vmem:[#allocation34_spill] sm:$0xff] %v8209_v60  ;;  %v3247_v53 = vmul.f32 %v10085_v51, %v7144_v45  ;;  %5086 = vmatmul.msk.f32.gmra.mxu1 %vm27_vm0, %v4469_v46  ;;  %v1878_v40 = vadd.f32 %v1814_v56, %v1685_v7  ;;  %v8229_v56 = vld [vmem:[#allocation3 + $0xcf] sm:$0xff] }
 0x27c   :  { %v3535_v16 = vadd.f32 %v3471_v28, %v3342_v44  ;;  %v3857_v57 = vmul.f32 %v7978_v58, %v7164_v14  ;;  %v2670_v47 = vmax.f32 %v2363_v38, 0.0  ;;  %v4051_v25 = vmul.f32 %v7185_v1, %v8204_v6  ;;  %10130 = vst [vmem:[#allocation19_spill] sm:$0xff] %v8229_v56  ;;  %v10132_v44 = vld [vmem:[#allocation12_spill] sm:$0xff] }
 0x27d   :  { %v1717_v18 = vadd.f32 %v1653_v43, %v1523_v55  ;;  %v3118_v63 = vadd.f32 %v3054_v50, %v2861_v42  ;;  %v3440_v0 = vmul.f32 %v10129_v49, %v7147_v62  ;;  %v2071_v26 = vadd.f32 %v2007_v35, %v1878_v40  ;;  %v8231_v43 = vld [vmem:[#allocation3 + $0xd0] sm:$0xff]  ;;  %v10134_v35 = vld [vmem:[#allocation27_spill] sm:$0xff] }
 0x27e   :  { %v3728_v10 = vadd.f32 %v3664_v33, %v3535_v16  ;;  %v4244_v51 = vmul.f32 %v7195_v13, %v8207_v32  ;;  %v4437_v28 = vmul.f32 %v7815_v48, %v8209_v60  ;;  %2735 = vst.msk [vmem:[#allocation3 + $0x108] sm:$0xff] %vm27_vm0, %v2670_v47  ;;  %v3633_v38 = vmul.f32 %v10132_v44, %v7170_v2  ;;  %v8235_v55 = vld [vmem:[#allocation3 + $0xd1] sm:$0xff]  ;;  %v10135_v40 = vld [vmem:[#allocation11_spill] sm:$0xff]  ;;  %v10140_v60 = vld [vmem:[#allocation40_spill] sm:$0xff] }
 0x27f   :  { %10131 = vst [vmem:[#allocation21_spill] sm:$0xff] %v8231_v43  ;;  %v1910_v46 = vadd.f32 %v1846_v27, %v1717_v18  ;;  %v3311_v7 = vadd.f32 %v3247_v53, %v3118_v63  ;;  %v463_v33 = vmul.f32 %v10134_v35, %v5263_v8  ;;  %5043 = vmatmul.msk.f32.gmra.mxu0 %vm27_vm0, %v2071_v26  ;;  %v10141_v44 = vld [vmem:[#allocation29_spill] sm:$0xff] }
 0x280   :  { %10133 = vst [vmem:[#allocation22_spill] sm:$0xff] %v8235_v55  ;;  %v3921_v42 = vadd.f32 %v3857_v57, %v3728_v10  ;;  %v3826_v50 = vmul.f32 %v8027_v61, %v7164_v14  ;;  %v656_v16 = vmul.f32 %v10135_v40, %v5267_v9  ;;  %v849_v27 = vmul.f32 %v10096_v3, %v5273_v12  ;;  %v1557_v40 = vld [vmem:[#allocation2 + $0x227] sm:$0xff] }
 0x281   :  { %v2103_v53 = vadd.f32 %v2039_v15, %v1910_v46  ;;  %v3504_v47 = vadd.f32 %v3440_v0, %v3311_v7  ;;  %v4020_v18 = vmul.f32 %v7185_v1, %v8229_v56  ;;  %v4213_v63 = vmul.f32 %v7195_v13, %v8231_v43  ;;  %v10136_v15 = vld [vmem:[#allocation25_spill] sm:$0xff]  ;;  %v1750_v46 = vld [vmem:[#allocation2 + $0x228] sm:$0xff] }
 0x282   :  { %v4115_v35 = vadd.f32 %v4051_v25, %v3921_v42  ;;  %v4406_v57 = vmul.f32 %v7815_v48, %v8235_v55  ;;  %v720_v26 = vadd.f32 %v656_v16, %v463_v33  ;;  %v1042_v10 = vmul.f32 %v8062_v36, %v5284_v21  ;;  %v1943_v7 = vld [vmem:[#allocation2 + $0x229] sm:$0xff]  ;;  %v10138_v25 = vld [vmem:[#allocation38_spill] sm:$0xff] }
 0x283   :  { %5075 = vmatmul.msk.f32.gmra.mxu2 %vm27_vm0, %v2103_v53  ;;  %v3697_v3 = vadd.f32 %v3633_v38, %v3504_v47  ;;  %v1235_v0 = vmul.f32 %v10136_v15, %v5286_v22  ;;  %v10137_v56 = vld [vmem:[#allocation37_spill] sm:$0xff]  ;;  %v688_v42 = vmul.f32 %v10138_v25, %v5267_v9  ;;  %v10139_v16 = vld [vmem:[#allocation26_spill] sm:$0xff]  ;;  %v881_v53 = vmul.f32 %v10140_v60, %v5273_v12  ;;  %v2458_v38 = vpop.f32.mrf.mxu2 }
 0x284   :  { %v495_v43 = vmul.f32 %v10137_v56, %v5263_v8  ;;  %v4308_v55 = vadd.f32 %v4244_v51, %v4115_v35  ;;  %v913_v33 = vadd.f32 %v849_v27, %v720_v26  ;;  %v1428_v36 = vmul.f32 %v10139_v16, %v5292_v24  ;;  %v1589_v27 = vld [vmem:[#allocation2 + $0x467] sm:$0xff] }
 0x285   :  { %v3890_v47 = vadd.f32 %v3826_v50, %v3697_v3  ;;  %v1622_v15 = vmul.f32 %v5308_v30, %v1557_v40  ;;  %v1074_v49 = vmul.f32 %v10141_v44, %v5284_v21  ;;  %v1815_v25 = vmul.f32 %v5318_v34, %v1750_v46  ;;  %v10142_v40 = vld [vmem:[#allocation30_spill] sm:$0xff]  ;;  %v10144_v46 = vld [vmem:[#allocation17_spill] sm:$0xff] }
 0x286   :  { %v752_v61 = vadd.f32 %v688_v42, %v495_v43  ;;  %v4501_v56 = vadd.f32 %v4437_v28, %v4308_v55  ;;  %v1106_v32 = vadd.f32 %v1042_v10, %v913_v33  ;;  %v2008_v51 = vmul.f32 %v8084_v59, %v1943_v7  ;;  %v1782_v28 = vld [vmem:[#allocation2 + $0x468] sm:$0xff]  ;;  %v10143_v10 = vld [vmem:[#allocation10_spill] sm:$0xff]  ;;  %v2365_v33 = vpop.f32.mrf.mxu0 }
 0x287   :  { %v4084_v35 = vadd.f32 %v4020_v18, %v3890_v47  ;;  %v1267_v60 = vmul.f32 %v8090_v41, %v5286_v22  ;;  %v2459_v50 = vadd.f32 %v8052_v29, %v2458_v38  ;;  %v1460_v44 = vmul.f32 %v10142_v40, %v5292_v24  ;;  %v1975_v55 = vld [vmem:[#allocation2 + $0x469] sm:$0xff] }
 0x288   :  { %v945_v26 = vadd.f32 %v881_v53, %v752_v61  ;;  %5118 = vmatmul.msk.f32.gmra.mxu3 %vm27_vm0, %v4501_v56  ;;  %v1299_v43 = vadd.f32 %v1235_v0, %v1106_v32  ;;  %v2893_v3 = vmul.f32 %v10143_v10, %v7131_v17  ;;  %v3086_v18 = vmul.f32 %v10144_v46, %v7134_v52  ;;  %v10145_v32 = vld [vmem:[#allocation35_spill] sm:$0xff]  ;;  %v10146_v38 = vld [vmem:[#allocation28_spill] sm:$0xff] }
 0x289   :  { %v4277_v61 = vadd.f32 %v4213_v63, %v4084_v35  ;;  %v1654_v41 = vmul.f32 %v5308_v30, %v1589_v27  ;;  %v2702_v42 = vmax.f32 %v2459_v50, 0.0  ;;  %v3279_v0 = vmul.f32 %v10145_v32, %v7144_v45  ;;  %v10147_v27 = vld [vmem:[#allocation14_spill] sm:$0xff]  ;;  %v8290_v35 = vld [vmem:[#allocation3 + $0x30f] sm:$0xff] }
 0x28a   :  { %v1138_v7 = vadd.f32 %v1074_v49, %v945_v26  ;;  %v1492_v16 = vadd.f32 %v1428_v36, %v1299_v43  ;;  %v3150_v53 = vadd.f32 %v3086_v18, %v2893_v3  ;;  %v3472_v47 = vmul.f32 %v10146_v38, %v7147_v62  ;;  %v10149_v43 = vld [vmem:[#allocation36_spill] sm:$0xff]  ;;  %v10151_v3 = vld [vmem:[#allocation15_spill] sm:$0xff] }
 0x28b   :  { %v4470_v56 = vadd.f32 %v4406_v57, %v4277_v61  ;;  %v1847_v10 = vmul.f32 %v5318_v34, %v1782_v28  ;;  %v2040_v46 = vmul.f32 %v8084_v59, %v1975_v55  ;;  %2767 = vst.msk [vmem:[#allocation3 + $0x348] sm:$0xff] %vm27_vm0, %v2702_v42  ;;  %v3665_v36 = vmul.f32 %v10147_v27, %v7170_v2  ;;  %v8294_v57 = vld [vmem:[#allocation3 + $0x310] sm:$0xff]  ;;  %v10152_v42 = vld [vmem:[#allocation18_spill] sm:$0xff] }
 0x28c   :  { %v1331_v40 = vadd.f32 %v1267_v60, %v1138_v7  ;;  %v1686_v49 = vadd.f32 %v1622_v15, %v1492_v16  ;;  %v3343_v63 = vadd.f32 %v3279_v0, %v3150_v53  ;;  %v2366_v26 = vadd.f32 %v8052_v29, %v2365_v33  ;;  %v8296_v60 = vld [vmem:[#allocation3 + $0x311] sm:$0xff]  ;;  %v10150_v15 = vld [vmem:[#allocation39_spill] sm:$0xff]  ;;  %v10153_v0 = vld [vmem:[#allocation16_spill] sm:$0xff] }
 0x28d   :  { %5087 = vmatmul.msk.f32.gmra.mxu1 %vm27_vm0, %v4470_v56  ;;  %10148 = vst [vmem:[#allocation23_spill] sm:$0xff] %v8296_v60  ;;  %v2862_v28 = vmul.f32 %v10149_v43, %v7131_v17  ;;  %v3055_v55 = vmul.f32 %v10150_v15, %v7134_v52  ;;  %v3248_v18 = vmul.f32 %v10151_v3, %v7144_v45  ;;  %v10158_v3 = vld [vmem:[#allocation31_spill] sm:$0xff] }
 0x28e   :  { %v1524_v50 = vadd.f32 %v1460_v44, %v1331_v40  ;;  %v1879_v61 = vadd.f32 %v1815_v25, %v1686_v49  ;;  %v3536_v7 = vadd.f32 %v3472_v47, %v3343_v63  ;;  %v3858_v33 = vmul.f32 %v10152_v42, %v7164_v14  ;;  %v8315_v47 = vld [vmem:[#allocation3 + $0xe7] sm:$0xff] }
 0x28f   :  { %v2671_v16 = vmax.f32 %v2366_v26, 0.0  ;;  %v4052_v53 = vmul.f32 %v7185_v1, %v8290_v35  ;;  %v3119_v32 = vadd.f32 %v3055_v55, %v2862_v28  ;;  %v3441_v56 = vmul.f32 %v10153_v0, %v7147_v62  ;;  %v10155_v26 = vld [vmem:[#allocation13_spill] sm:$0xff] }
 0x290   :  { %v1718_v44 = vadd.f32 %v1654_v41, %v1524_v50  ;;  %v2072_v40 = vadd.f32 %v2008_v51, %v1879_v61  ;;  %v3729_v43 = vadd.f32 %v3665_v36, %v3536_v7  ;;  %v4245_v15 = vmul.f32 %v7195_v13, %v8294_v57  ;;  %v8317_v41 = vld [vmem:[#allocation3 + $0xe8] sm:$0xff]  ;;  %v10157_v51 = vld [vmem:[#allocation41_spill] sm:$0xff]  ;;  %v10159_v7 = vld [vmem:[#allocation42_spill] sm:$0xff] }
 0x291   :  { %v4438_v25 = vmul.f32 %v7815_v48, %v8296_v60  ;;  %2736 = vst.msk [vmem:[#allocation3 + $0x110] sm:$0xff] %vm27_vm0, %v2671_v16  ;;  %v3312_v63 = vadd.f32 %v3248_v18, %v3119_v32  ;;  %v3634_v50 = vmul.f32 %v10155_v26, %v7170_v2  ;;  %v8321_v28 = vld [vmem:[#allocation3 + $0xe9] sm:$0xff]  ;;  %v464_v36 = vmul.f32 %v10157_v51, %v5263_v8 }
 0x292   :  { %10154 = vst [vmem:[#allocation20_spill] sm:$0xff] %v8317_v41  ;;  %v1911_v49 = vadd.f32 %v1847_v10, %v1718_v44  ;;  %5044 = vmatmul.msk.f32.gmra.mxu0 %vm27_vm0, %v2072_v40  ;;  %v3922_v55 = vadd.f32 %v3858_v33, %v3729_v43  ;;  %v3827_v61 = vmul.f32 %v10158_v3, %v7164_v14 }
 0x293   :  { %10156 = vst [vmem:[#allocation7_spill] sm:$0xff] %v8321_v28  ;;  %v657_v16 = vmul.f32 %v10159_v7, %v5267_v9  ;;  %v850_v10 = vmul.f32 %v10125_v4, %v5273_v12  ;;  %v3505_v44 = vadd.f32 %v3441_v56, %v3312_v63  ;;  %v4021_v32 = vmul.f32 %v7185_v1, %v8315_v47  ;;  %v1558_v7 = vld [vmem:[#allocation2 + $0x22f] sm:$0xff] }
 0x294   :  { %v2104_v18 = vadd.f32 %v2040_v46, %v1911_v49  ;;  %v4214_v51 = vmul.f32 %v7195_v13, %v8317_v41  ;;  %v4116_v60 = vadd.f32 %v4052_v53, %v3922_v55  ;;  %v4407_v33 = vmul.f32 %v7815_v48, %v8321_v28  ;;  %v1751_v56 = vld [vmem:[#allocation2 + $0x230] sm:$0xff]  ;;  %v10160_v53 = vld [vmem:[#allocation8_spill] sm:$0xff] }
 0x295   :  { %v721_v40 = vadd.f32 %v657_v16, %v464_v36  ;;  %v1043_v43 = vmul.f32 %v8148_v54, %v5284_v21  ;;  %v3698_v4 = vadd.f32 %v3634_v50, %v3505_v44  ;;  %v1236_v46 = vmul.f32 %v8155_v19, %v5286_v22  ;;  %v1944_v49 = vld [vmem:[#allocation2 + $0x231] sm:$0xff]  ;;  %v10161_v16 = vld [vmem:[#allocation32_spill] sm:$0xff]  ;;  %v2461_v50 = vpop.f32.mrf.mxu2 }
 0x296   :  { %5076 = vmatmul.msk.f32.gmra.mxu2 %vm27_vm0, %v2104_v18  ;;  %v496_v63 = vmul.f32 %v10126_v23, %v5263_v8  ;;  %v689_v55 = vmul.f32 %v10160_v53, %v5267_v9  ;;  %v4309_v48 = vadd.f32 %v4245_v15, %v4116_v60  ;;  %v1429_v54 = vmul.f32 %v10161_v16, %v5292_v24  ;;  %v10164_v16 = vld [vmem:[#allocation12_spill] sm:$0xff] }
 0x297   :  { %v914_v36 = vadd.f32 %v850_v10, %v721_v40  ;;  %v882_v18 = vmul.f32 %v7950_v20, %v5273_v12  ;;  %v3891_v44 = vadd.f32 %v3827_v61, %v3698_v4  ;;  %v1623_v19 = vmul.f32 %v5308_v30, %v1558_v7  ;;  %v1590_v12 = vld [vmem:[#allocation2 + $0x46f] sm:$0xff] }
 0x298   :  { %v753_v28 = vadd.f32 %v689_v55, %v496_v63  ;;  %v1075_v41 = vmul.f32 %v8176_v37, %v5284_v21  ;;  %v4502_v8 = vadd.f32 %v4438_v25, %v4309_v48  ;;  %v1816_v9 = vmul.f32 %v5318_v34, %v1751_v56  ;;  %v1783_v7 = vld [vmem:[#allocation2 + $0x470] sm:$0xff]  ;;  %v8376_v55 = vld [vmem:[#allocation3 + $0x327] sm:$0xff] }
 0x299   :  { %v1107_v23 = vadd.f32 %v1043_v43, %v914_v36  ;;  %v2009_v60 = vmul.f32 %v8084_v59, %v1944_v49  ;;  %v4085_v15 = vadd.f32 %v4021_v32, %v3891_v44  ;;  %v1268_v40 = vmul.f32 %v8183_v31, %v5286_v22  ;;  %v1976_v4 = vld [vmem:[#allocation2 + $0x471] sm:$0xff]  ;;  %v2368_v43 = vpop.f32.mrf.mxu0  ;;  %v8382_v36 = vld [vmem:[#allocation3 + $0x329] sm:$0xff] }
 0x29a   :  { %v946_v10 = vadd.f32 %v882_v18, %v753_v28  ;;  %v2462_v20 = vadd.f32 %v8052_v29, %v2461_v50  ;;  %5119 = vmatmul.msk.f32.gmra.mxu3 %vm27_vm0, %v4502_v8  ;;  %v2894_v21 = vmul.f32 %v7961_v39, %v7131_v17  ;;  %v3087_v37 = vmul.f32 %v7976_v11, %v7134_v52  ;;  %v10165_v18 = vld [vmem:[#allocation24_spill] sm:$0xff]  ;;  %v10166_v8 = vld [vmem:[#allocation34_spill] sm:$0xff] }
 0x29b   :  { %v1300_v61 = vadd.f32 %v1236_v46, %v1107_v23  ;;  %v3280_v25 = vmul.f32 %v7978_v58, %v7144_v45  ;;  %v4278_v28 = vadd.f32 %v4214_v51, %v4085_v15  ;;  %v1461_v22 = vmul.f32 %v8185_v5, %v5292_v24  ;;  %v10162_v24 = vld [vmem:[#allocation33_spill] sm:$0xff] }
 0x29c   :  { %v1139_v32 = vadd.f32 %v1075_v41, %v946_v10  ;;  %v2703_v31 = vmax.f32 %v2462_v20, 0.0  ;;  %v1655_v46 = vmul.f32 %v5308_v30, %v1590_v12  ;;  %v3151_v49 = vadd.f32 %v3087_v37, %v2894_v21 }
 0x29d   :  { %v1493_v56 = vadd.f32 %v1429_v54, %v1300_v61  ;;  %v3473_v39 = vmul.f32 %v8204_v6, %v7147_v62  ;;  %v4471_v63 = vadd.f32 %v4407_v33, %v4278_v28  ;;  %v1848_v11 = vmul.f32 %v5318_v34, %v1783_v7  ;;  %v8380_v33 = vld [vmem:[#allocation3 + $0x328] sm:$0xff]  ;;  %v10163_v34 = vld [vmem:[#allocation9_spill] sm:$0xff]  ;;  %v2464_v10 = vpop.f32.mrf.mxu2  ;;  %v10167_v61 = vld [vmem:[#allocation19_spill] sm:$0xff] }
 0x29e   :  { %v1332_v53 = vadd.f32 %v1268_v40, %v1139_v32  ;;  %v2041_v58 = vmul.f32 %v8084_v59, %v1976_v4  ;;  %2768 = vst.msk [vmem:[#allocation3 + $0x350] sm:$0xff] %vm27_vm0, %v2703_v31  ;;  %v3344_v51 = vadd.f32 %v3280_v25, %v3151_v49  ;;  %v3666_v5 = vmul.f32 %v10162_v24, %v7170_v2  ;;  %v8406_v28 = vld [vmem:[#allocation3 + $0xef] sm:$0xff] }
 0x29f   :  { %v1687_v41 = vadd.f32 %v1623_v19, %v1493_v56  ;;  %v2369_v30 = vadd.f32 %v8052_v29, %v2368_v43  ;;  %5088 = vmatmul.msk.f32.gmra.mxu1 %vm27_vm0, %v4471_v63  ;;  %v2863_v59 = vmul.f32 %v10163_v34, %v7131_v17  ;;  %v3056_v54 = vmul.f32 %v10164_v16, %v7134_v52  ;;  %v8416_v63 = vld [vmem:[#allocation3 + $0xf1] sm:$0xff] }
 0x2a0   :  { %v1525_v48 = vadd.f32 %v1461_v22, %v1332_v53  ;;  %v3249_v50 = vmul.f32 %v10165_v18, %v7144_v45  ;;  %v3537_v19 = vadd.f32 %v3473_v39, %v3344_v51  ;;  %v3859_v23 = vmul.f32 %v10166_v8, %v7164_v14  ;;  %v8414_v39 = vld [vmem:[#allocation3 + $0xf0] sm:$0xff] }
 0x2a1   :  { %v1880_v44 = vadd.f32 %v1816_v9, %v1687_v41  ;;  %v2672_v15 = vmax.f32 %v2369_v30, 0.0  ;;  %v4053_v12 = vmul.f32 %v7185_v1, %v8376_v55  ;;  %v3120_v20 = vadd.f32 %v3056_v54, %v2863_v59  ;;  %v8401_v9 = vld [vmem:[%s9735_s4 + $0x8] ss:$0 sm:$0xff] }
 0x2a2   :  { %v1719_v40 = vadd.f32 %v1655_v46, %v1525_v48  ;;  %v3442_v7 = vmul.f32 %v10167_v61, %v7147_v62  ;;  %v3730_v21 = vadd.f32 %v3666_v5, %v3537_v19  ;;  %v4246_v37 = vmul.f32 %v7195_v13, %v8380_v33  ;;  %v10169_v46 = vld [vmem:[#allocation22_spill] sm:$0xff]  ;;  %v2371_v48 = vpop.f32.mrf.mxu0 }
 0x2a3   :  { %v2073_v4 = vadd.f32 %v2009_v60, %v1880_v44  ;;  %v4439_v25 = vmul.f32 %v8401_v9, %v8382_v36  ;;  %2737 = vst.msk [vmem:[#allocation3 + $0x128] sm:$0xff] %vm27_vm0, %v2672_v15  ;;  %v3313_v22 = vadd.f32 %v3249_v50, %v3120_v20  ;;  %v10168_v60 = vld [vmem:[#allocation21_spill] sm:$0xff]  ;;  %v2465_v43 = vadd.f32 %v8052_v29, %v2464_v10 }
 0x2a4   :  { %v1912_v32 = vadd.f32 %v1848_v11, %v1719_v40  ;;  %v3635_v31 = vmul.f32 %v10168_v60, %v7170_v2  ;;  %v3923_v56 = vadd.f32 %v3859_v23, %v3730_v21  ;;  %v3828_v49 = vmul.f32 %v10169_v46, %v7164_v14  ;;  %v8439_v15 = vld [vmem:[#allocation3 + $0x330] sm:$0xff]  ;;  %v10170_v21 = vld [vmem:[#allocation23_spill] sm:$0xff] }
 0x2a5   :  { %5045 = vmatmul.msk.f32.gmra.mxu0 %vm27_vm0, %v2073_v4  ;;  %v2895_v53 = vmul.f32 %v10146_v38, %v7131_v17  ;;  %v3088_v11 = vmul.f32 %v10147_v27, %v7134_v52  ;;  %v3506_v51 = vadd.f32 %v3442_v7, %v3313_v22  ;;  %v4022_v5 = vmul.f32 %v7185_v1, %v8406_v28  ;;  %v8441_v10 = vld [vmem:[#allocation3 + $0x331] sm:$0xff]  ;;  %v2467_v22 = vpop.f32.mrf.mxu2 }
 0x2a6   :  { %v2105_v41 = vadd.f32 %v2041_v58, %v1912_v32  ;;  %v2704_v30 = vmax.f32 %v2465_v43, 0.0  ;;  %v4117_v34 = vadd.f32 %v4053_v12, %v3923_v56  ;;  %v3281_v16 = vmul.f32 %v10152_v42, %v7144_v45  ;;  %v8436_v42 = vld [vmem:[#allocation3 + $0x32f] sm:$0xff] }
 0x2a7   :  { %v3152_v59 = vadd.f32 %v3088_v11, %v2895_v53  ;;  %v3474_v54 = vmul.f32 %v8290_v35, %v7147_v62  ;;  %v3699_v38 = vadd.f32 %v3635_v31, %v3506_v51  ;;  %v4215_v27 = vmul.f32 %v7195_v13, %v8414_v39  ;;  %v10171_v11 = vld [vmem:[#allocation20_spill] sm:$0xff] }
 0x2a8   :  { %5077 = vmatmul.msk.f32.gmra.mxu2 %vm27_vm0, %v2105_v41  ;;  %v4408_v58 = vmul.f32 %v8401_v9, %v8416_v63  ;;  %2769 = vst.msk [vmem:[#allocation3 + $0x368] sm:$0xff] %vm27_vm0, %v2704_v30  ;;  %v4310_v18 = vadd.f32 %v4246_v37, %v4117_v34  ;;  %v3667_v44 = vmul.f32 %v8294_v57, %v7170_v2  ;;  %v8463_v51 = vld [vmem:[#allocation3 + $0x107] sm:$0xff] }
 0x2a9   :  { %v3345_v50 = vadd.f32 %v3281_v16, %v3152_v59  ;;  %v2372_v19 = vadd.f32 %v8052_v29, %v2371_v48  ;;  %v3892_v23 = vadd.f32 %v3828_v49, %v3699_v38  ;;  %v2864_v40 = vmul.f32 %v10153_v0, %v7131_v17  ;;  %v8466_v48 = vld [vmem:[#allocation3 + $0x108] sm:$0xff] }
 0x2aa   :  { %v3057_v12 = vmul.f32 %v10155_v26, %v7134_v52  ;;  %v3250_v20 = vmul.f32 %v10158_v3, %v7144_v45  ;;  %v4503_v7 = vadd.f32 %v4439_v25, %v4310_v18  ;;  %v3860_v37 = vmul.f32 %v10170_v21, %v7164_v14  ;;  %v8468_v34 = vld [vmem:[#allocation3 + $0x109] sm:$0xff]  ;;  %v10172_v18 = vld [vmem:[#allocation7_spill] sm:$0xff] }
 0x2ab   :  { %v3538_v4 = vadd.f32 %v3474_v54, %v3345_v50  ;;  %v2673_v32 = vmax.f32 %v2372_v19, 0.0  ;;  %v4086_v31 = vadd.f32 %v4022_v5, %v3892_v23  ;;  %v4054_v43 = vmul.f32 %v7185_v1, %v8436_v42  ;;  %v2374_v19 = vpop.f32.mrf.mxu0 }
 0x2ac   :  { %v3121_v56 = vadd.f32 %v3057_v12, %v2864_v40  ;;  %v3443_v0 = vmul.f32 %v8315_v47, %v7147_v62  ;;  %5120 = vmatmul.msk.f32.gmra.mxu3 %vm27_vm0, %v4503_v7  ;;  %v4247_v3 = vmul.f32 %v7195_v13, %v8439_v15  ;;  %v4440_v25 = vmul.f32 %v8401_v9, %v8441_v10 }
 0x2ad   :  { %v3731_v26 = vadd.f32 %v3667_v44, %v3538_v4  ;;  %2738 = vst.msk [vmem:[#allocation3 + $0x130] sm:$0xff] %vm27_vm0, %v2673_v32  ;;  %v4279_v49 = vadd.f32 %v4215_v27, %v4086_v31  ;;  %v3636_v41 = vmul.f32 %v10171_v11, %v7170_v2  ;;  %v2468_v5 = vadd.f32 %v8052_v29, %v2467_v22  ;;  %v8493_v31 = vld [vmem:[#allocation3 + $0x348] sm:$0xff] }
 0x2ae   :  { %v3314_v53 = vadd.f32 %v3250_v20, %v3121_v56  ;;  %v2896_v59 = vmul.f32 %v8204_v6, %v7131_v17  ;;  %v3089_v16 = vmul.f32 %v10162_v24, %v7134_v52  ;;  %v3282_v54 = vmul.f32 %v10166_v8, %v7144_v45 }
 0x2af   :  { %v3924_v30 = vadd.f32 %v3860_v37, %v3731_v26  ;;  %v4472_v38 = vadd.f32 %v4408_v58, %v4279_v49  ;;  %v3829_v50 = vmul.f32 %v10172_v18, %v7164_v14  ;;  %v2705_v44 = vmax.f32 %v2468_v5, 0.0  ;;  %v8490_v37 = vld [vmem:[#allocation3 + $0x347] sm:$0xff]  ;;  %v2470_v5 = vpop.f32.mrf.mxu2 }
 0x2b0   :  { %v3507_v27 = vadd.f32 %v3443_v0, %v3314_v53  ;;  %v4023_v40 = vmul.f32 %v7185_v1, %v8463_v51  ;;  %v3153_v12 = vadd.f32 %v3089_v16, %v2896_v59  ;;  %v3475_v6 = vmul.f32 %v8376_v55, %v7147_v62 }
 0x2b1   :  { %v4118_v23 = vadd.f32 %v4054_v43, %v3924_v30  ;;  %5089 = vmatmul.msk.f32.gmra.mxu1 %vm27_vm0, %v4472_v38  ;;  %v4216_v8 = vmul.f32 %v7195_v13, %v8466_v48  ;;  %v4409_v58 = vmul.f32 %v8401_v9, %v8468_v34  ;;  %2770 = vst.msk [vmem:[#allocation3 + $0x370] sm:$0xff] %vm27_vm0, %v2705_v44  ;;  %v8495_v43 = vld [vmem:[#allocation3 + $0x349] sm:$0xff] }
 0x2b2   :  { %v3700_v24 = vadd.f32 %v3636_v41, %v3507_v27  ;;  %v3346_v7 = vadd.f32 %v3282_v54, %v3153_v12  ;;  %v3668_v4 = vmul.f32 %v8380_v33, %v7170_v2  ;;  %v2375_v32 = vadd.f32 %v8052_v29, %v2374_v19  ;;  %v8515_v54 = vld [vmem:[#allocation3 + $0x10f] sm:$0xff] }
 0x2b3   :  { %v4311_v20 = vadd.f32 %v4247_v3, %v4118_v23  ;;  %v2865_v56 = vmul.f32 %v10167_v61, %v7131_v17  ;;  %v3058_v0 = vmul.f32 %v10168_v60, %v7134_v52  ;;  %v3251_v26 = vmul.f32 %v10169_v46, %v7144_v45  ;;  %v8524_v12 = vld [vmem:[#allocation3 + $0x111] sm:$0xff] }
 0x2b4   :  { %v3893_v22 = vadd.f32 %v3829_v50, %v3700_v24  ;;  %v3539_v49 = vadd.f32 %v3475_v6, %v3346_v7  ;;  %v3861_v53 = vmul.f32 %v8382_v36, %v7164_v14  ;;  %v2674_v41 = vmax.f32 %v2375_v32, 0.0  ;;  %v2377_v32 = vpop.f32.mrf.mxu0 }
 0x2b5   :  { %v4504_v3 = vadd.f32 %v4440_v25, %v4311_v20  ;;  %v4055_v59 = vmul.f32 %v7185_v1, %v8490_v37  ;;  %v3122_v16 = vadd.f32 %v3058_v0, %v2865_v56  ;;  %v3444_v61 = vmul.f32 %v8406_v28, %v7147_v62 }
 0x2b6   :  { %v4087_v30 = vadd.f32 %v4023_v40, %v3893_v22  ;;  %v3732_v60 = vadd.f32 %v3668_v4, %v3539_v49  ;;  %v4248_v46 = vmul.f32 %v7195_v13, %v8493_v31  ;;  %v4441_v25 = vmul.f32 %v8401_v9, %v8495_v43  ;;  %2739 = vst.msk [vmem:[#allocation3 + $0x148] sm:$0xff] %vm27_vm0, %v2674_v41  ;;  %v8522_v40 = vld [vmem:[#allocation3 + $0x110] sm:$0xff] }
 0x2b7   :  { %5121 = vmatmul.msk.f32.gmra.mxu3 %vm27_vm0, %v4504_v3  ;;  %v3315_v27 = vadd.f32 %v3251_v26, %v3122_v16  ;;  %v3637_v50 = vmul.f32 %v8414_v39, %v7170_v2  ;;  %v2471_v44 = vadd.f32 %v8052_v29, %v2470_v5  ;;  %v3830_v23 = vmul.f32 %v8416_v63, %v7164_v14 }
 0x2b8   :  { %v4280_v38 = vadd.f32 %v4216_v8, %v4087_v30  ;;  %v3925_v19 = vadd.f32 %v3861_v53, %v3732_v60  ;;  %v2897_v6 = vmul.f32 %v8290_v35, %v7131_v17  ;;  %v3090_v24 = vmul.f32 %v8294_v57, %v7134_v52  ;;  %v8547_v30 = vld [vmem:[#allocation3 + $0x350] sm:$0xff] }
 0x2b9   :  { %v3508_v20 = vadd.f32 %v3444_v61, %v3315_v27  ;;  %v4024_v7 = vmul.f32 %v7185_v1, %v8515_v54  ;;  %v2706_v4 = vmax.f32 %v2471_v44, 0.0  ;;  %v3283_v0 = vmul.f32 %v10170_v21, %v7144_v45  ;;  %v8544_v21 = vld [vmem:[#allocation3 + $0x34f] sm:$0xff]  ;;  %v2473_v44 = vpop.f32.mrf.mxu2 }
 0x2ba   :  { %v4473_v8 = vadd.f32 %v4409_v58, %v4280_v38  ;;  %v4119_v22 = vadd.f32 %v4055_v59, %v3925_v19  ;;  %v3154_v56 = vadd.f32 %v3090_v24, %v2897_v6  ;;  %v3476_v26 = vmul.f32 %v8436_v42, %v7147_v62  ;;  %v8549_v59 = vld [vmem:[#allocation3 + $0x351] sm:$0xff]  ;;  %v4739_v24 = vpop.f32.mrf.mxu1 }
 0x2bb   :  { %v3701_v35 = vadd.f32 %v3637_v50, %v3508_v20  ;;  %v4217_v57 = vmul.f32 %v7195_v13, %v8522_v40  ;;  %v4410_v58 = vmul.f32 %v8401_v9, %v8524_v12  ;;  %2771 = vst.msk [vmem:[#allocation3 + $0x388] sm:$0xff] %vm27_vm0, %v2706_v4  ;;  %v3669_v53 = vmul.f32 %v8439_v15, %v7170_v2  ;;  %v8571_v4 = vld [vmem:[#allocation3 + $0x127] sm:$0xff] }
 0x2bc   :  { %5090 = vmatmul.msk.f32.gmra.mxu1 %vm27_vm0, %v4473_v8  ;;  %v4312_v3 = vadd.f32 %v4248_v46, %v4119_v22  ;;  %v3347_v49 = vadd.f32 %v3283_v0, %v3154_v56  ;;  %v2378_v41 = vadd.f32 %v8052_v29, %v2377_v32  ;;  %v2866_v16 = vmul.f32 %v8315_v47, %v7131_v17  ;;  %v8574_v56 = vld [vmem:[#allocation3 + $0x128] sm:$0xff] }
 0x2bd   :  { %v3894_v5 = vadd.f32 %v3830_v23, %v3701_v35  ;;  %v3059_v61 = vmul.f32 %v10171_v11, %v7134_v52  ;;  %v3252_v60 = vmul.f32 %v10172_v18, %v7144_v45  ;;  %v3862_v27 = vmul.f32 %v8441_v10, %v7164_v14  ;;  %v8576_v0 = vld [vmem:[#allocation3 + $0x129] sm:$0xff] }
 0x2be   :  { %v4505_v46 = vadd.f32 %v4441_v25, %v4312_v3  ;;  %v3540_v38 = vadd.f32 %v3476_v26, %v3347_v49  ;;  %v2675_v50 = vmax.f32 %v2378_v41, 0.0  ;;  %v4056_v23 = vmul.f32 %v7185_v1, %v8544_v21  ;;  %v2380_v41 = vpop.f32.mrf.mxu0 }
 0x2bf   :  { %v4088_v19 = vadd.f32 %v4024_v7, %v3894_v5  ;;  %v3123_v6 = vadd.f32 %v3059_v61, %v2866_v16  ;;  %v3445_v47 = vmul.f32 %v8463_v51, %v7147_v62  ;;  %v4249_v18 = vmul.f32 %v7195_v13, %v8547_v30 }
 0x2c0   :  { %5122 = vmatmul.msk.f32.gmra.mxu3 %vm27_vm0, %v4505_v46  ;;  %v3733_v11 = vadd.f32 %v3669_v53, %v3540_v38  ;;  %v4442_v25 = vmul.f32 %v8401_v9, %v8549_v59  ;;  %2740 = vst.msk [vmem:[#allocation3 + $0x150] sm:$0xff] %vm27_vm0, %v2675_v50  ;;  %v3638_v7 = vmul.f32 %v8466_v48, %v7170_v2  ;;  %v8603_v50 = vld [vmem:[%s9734_s3] ss:$0 sm:$0xff] }
 0x2c1   :  { %v4281_v8 = vadd.f32 %v4217_v57, %v4088_v19  ;;  %v3316_v20 = vadd.f32 %v3252_v60, %v3123_v6  ;;  %v2474_v32 = vadd.f32 %v8052_v29, %v2473_v44  ;;  %v2898_v26 = vmul.f32 %v8376_v55, %v7131_v17  ;;  %v8608_v6 = vld [vmem:[#allocation3 + $0x369] sm:$0xff] }
 0x2c2   :  { %v3926_v22 = vadd.f32 %v3862_v27, %v3733_v11  ;;  %v3091_v35 = vmul.f32 %v8380_v33, %v7134_v52  ;;  %v3284_v57 = vmul.f32 %v8382_v36, %v7144_v45  ;;  %v3831_v53 = vmul.f32 %v8468_v34, %v7164_v14  ;;  %v8598_v27 = vld [vmem:[#allocation3 + $0x367] sm:$0xff] }
 0x2c3   :  { %v4474_v3 = vadd.f32 %v4410_v58, %v4281_v8  ;;  %v3509_v49 = vadd.f32 %v3445_v47, %v3316_v20  ;;  %v2707_v29 = vmax.f32 %v2474_v32, 0.0  ;;  %v4025_v16 = vmul.f32 %v7185_v1, %v8571_v4 }
 0x2c4   :  { %v4120_v5 = vadd.f32 %v4056_v23, %v3926_v22  ;;  %v3155_v61 = vadd.f32 %v3091_v35, %v2898_v26  ;;  %v3477_v55 = vmul.f32 %v8490_v37, %v7147_v62  ;;  %v4218_v36 = vmul.f32 %v7195_v13, %v8574_v56  ;;  %v8606_v23 = vld [vmem:[#allocation3 + $0x368] sm:$0xff]  ;;  %v2476_v22 = vpop.f32.mrf.mxu2  ;;  %v8621_v26 = vld [vmem:[%s9737_s6] ss:$0 sm:$0xff] }
 0x2c5   :  { %5091 = vmatmul.msk.f32.gmra.mxu1 %vm27_vm0, %v4474_v3  ;;  %v3702_v33 = vadd.f32 %v3638_v7, %v3509_v49  ;;  %v4411_v58 = vmul.f32 %v8401_v9, %v8576_v0  ;;  %2772 = vst.msk [vmem:[#allocation3 + $0x390] sm:$0xff] %vm27_vm0, %v2707_v29  ;;  %v3670_v38 = vmul.f32 %v8493_v31, %v7170_v2  ;;  %v4742_v49 = vpop.f32.mrf.mxu1 }
 0x2c6   :  { %v4313_v60 = vadd.f32 %v4249_v18, %v4120_v5  ;;  %v3348_v46 = vadd.f32 %v3284_v57, %v3155_v61  ;;  %v2381_v44 = vadd.f32 %v8603_v50, %v2380_v41  ;;  %v2867_v47 = vmul.f32 %v8406_v28, %v7131_v17  ;;  %v8636_v61 = vld [vmem:[#allocation3 + $0x12f] sm:$0xff] }
 0x2c7   :  { %v3895_v19 = vadd.f32 %v3831_v53, %v3702_v33  ;;  %v3060_v11 = vmul.f32 %v8414_v39, %v7134_v52  ;;  %v3253_v18 = vmul.f32 %v8416_v63, %v7144_v45  ;;  %v3863_v7 = vmul.f32 %v8495_v43, %v7164_v14 }
 0x2c8   :  { %v4506_v8 = vadd.f32 %v4442_v25, %v4313_v60  ;;  %v3541_v20 = vadd.f32 %v3477_v55, %v3348_v46  ;;  %v2676_v32 = vmax.f32 %v2381_v44, 0.0  ;;  %v4057_v28 = vmul.f32 %v7185_v1, %v8598_v27  ;;  %v8638_v55 = vld [vmem:[#allocation3 + $0x130] sm:$0xff] }
 0x2c9   :  { %v4089_v35 = vadd.f32 %v4025_v16, %v3895_v19  ;;  %v3124_v39 = vadd.f32 %v3060_v11, %v2867_v47  ;;  %v3446_v63 = vmul.f32 %v8515_v54, %v7147_v62  ;;  %v4250_v57 = vmul.f32 %v7195_v13, %v8606_v23  ;;  %v8647_v19 = vld [vmem:[#allocation3 + $0x131] sm:$0xff]  ;;  %v2383_v11 = vpop.f32.mrf.mxu0 }
 0x2ca   :  { %5123 = vmatmul.msk.f32.gmra.mxu3 %vm27_vm0, %v4506_v8  ;;  %v3734_v25 = vadd.f32 %v3670_v38, %v3541_v20  ;;  %v4443_v3 = vmul.f32 %v8401_v9, %v8608_v6  ;;  %2741 = vst.msk [vmem:[#allocation3 + $0x168] sm:$0xff] %vm27_vm0, %v2676_v32  ;;  %v3639_v41 = vmul.f32 %v8522_v40, %v7170_v2 }
 0x2cb   :  { %v4282_v53 = vadd.f32 %v4218_v36, %v4089_v35  ;;  %v3317_v29 = vadd.f32 %v3253_v18, %v3124_v39  ;;  %v2477_v5 = vadd.f32 %v8603_v50, %v2476_v22  ;;  %v4740_v33 = vadd.f32 %v8621_v26, %v4739_v24  ;;  %v8666_v39 = vld [vmem:[#allocation3 + $0x370] sm:$0xff] }
 0x2cc   :  { %v3927_v16 = vadd.f32 %v3863_v7, %v3734_v25  ;;  %v2899_v60 = vmul.f32 %v8436_v42, %v7131_v17  ;;  %v3092_v46 = vmul.f32 %v8439_v15, %v7134_v52  ;;  %v3832_v44 = vmul.f32 %v8524_v12, %v7164_v14 }
 0x2cd   :  { %v4475_v36 = vadd.f32 %v4411_v58, %v4282_v53  ;;  %v3510_v38 = vadd.f32 %v3446_v63, %v3317_v29  ;;  %v2708_v47 = vmax.f32 %v2477_v5, 0.0  ;;  %4932 = vst.msk [vmem:[#allocation4] sm:$0xff] %vm4931_vm2, %v4740_v33  ;;  %v3285_v24 = vmul.f32 %v8441_v10, %v7144_v45  ;;  %v8677_v33 = vpop.f32.mrf.mxu3 }
 0x2ce   :  { %v4121_v18 = vadd.f32 %v4057_v28, %v3927_v16  ;;  %v3156_v8 = vadd.f32 %v3092_v46, %v2899_v60  ;;  %v3478_v42 = vmul.f32 %v8544_v21, %v7147_v62  ;;  %v4026_v58 = vmul.f32 %v7185_v1, %v8636_v61  ;;  %v8664_v28 = vld [vmem:[#allocation3 + $0x36f] sm:$0xff]  ;;  %v2479_v16 = vpop.f32.mrf.mxu2 }
 0x2cf   :  { %5092 = vmatmul.msk.f32.gmra.mxu1 %vm27_vm0, %v4475_v36  ;;  %v3703_v15 = vadd.f32 %v3639_v41, %v3510_v38  ;;  %v4219_v20 = vmul.f32 %v7195_v13, %v8638_v55  ;;  %2773 = vst.msk [vmem:[#allocation3 + $0x3a8] sm:$0xff] %vm27_vm0, %v2708_v47  ;;  %v4412_v32 = vmul.f32 %v8401_v9, %v8647_v19 }
 0x2d0   :  { %v4314_v7 = vadd.f32 %v4250_v57, %v4121_v18  ;;  %v3349_v22 = vadd.f32 %v3285_v24, %v3156_v8  ;;  %v3671_v10 = vmul.f32 %v8547_v30, %v7170_v2  ;;  %v2384_v63 = vadd.f32 %v8603_v50, %v2383_v11  ;;  %v8690_v11 = vld [vmem:[#allocation3 + $0x371] sm:$0xff] }
 0x2d1   :  { %v3896_v35 = vadd.f32 %v3832_v44, %v3703_v15  ;;  %v2868_v25 = vmul.f32 %v8463_v51, %v7131_v17  ;;  %v3061_v57 = vmul.f32 %v8466_v48, %v7134_v52  ;;  %v3864_v41 = vmul.f32 %v8549_v59, %v7164_v14  ;;  %v8688_v44 = vpop.f32.mrf.mxu1  ;;  %v8696_v15 = vld [vmem:[#allocation3 + $0x147] sm:$0xff] }
 0x2d2   :  { %v4507_v53 = vadd.f32 %v4443_v3, %v4314_v7  ;;  %v3542_v29 = vadd.f32 %v3478_v42, %v3349_v22  ;;  %v3254_v5 = vmul.f32 %v8468_v34, %v7144_v45  ;;  %v2677_v46 = vmax.f32 %v2384_v63, 0.0  ;;  %v8705_v63 = vld [vmem:[#allocation3 + $0x149] sm:$0xff] }
 0x2d3   :  { %v4090_v60 = vadd.f32 %v4026_v58, %v3896_v35  ;;  %v3125_v36 = vadd.f32 %v3061_v57, %v2868_v25  ;;  %v3447_v51 = vmul.f32 %v8571_v4, %v7147_v62  ;;  %v4058_v3 = vmul.f32 %v7185_v1, %v8664_v28  ;;  %v8698_v58 = vld [vmem:[#allocation3 + $0x148] sm:$0xff] }
 0x2d4   :  { %5124 = vmatmul.msk.f32.gmra.mxu3 %vm27_vm0, %v4507_v53  ;;  %v3735_v48 = vadd.f32 %v3671_v10, %v3542_v29  ;;  %v4251_v38 = vmul.f32 %v7195_v13, %v8666_v39  ;;  %v3640_v34 = vmul.f32 %v8574_v56, %v7170_v2  ;;  %2742 = vst.msk [vmem:[#allocation3 + $0x170] sm:$0xff] %vm27_vm0, %v2677_v46  ;;  %v2386_v53 = vpop.f32.mrf.mxu0 }
 0x2d5   :  { %v4283_v47 = vadd.f32 %v4219_v20, %v4090_v60  ;;  %v3318_v18 = vadd.f32 %v3254_v5, %v3125_v36  ;;  %v3833_v8 = vmul.f32 %v8576_v0, %v7164_v14  ;;  %v2480_v24 = vadd.f32 %v8603_v50, %v2479_v16 }
 0x2d6   :  { %v3928_v42 = vadd.f32 %v3864_v41, %v3735_v48  ;;  %v4743_v7 = vadd.f32 %v8621_v26, %v4742_v49  ;;  %v2900_v20 = vmul.f32 %v8490_v37, %v7131_v17  ;;  %v3093_v22 = vmul.f32 %v8493_v31, %v7134_v52  ;;  %v8726_v48 = vld [vmem:[#allocation3 + $0x388] sm:$0xff] }
 0x2d7   :  { %v4476_v10 = vadd.f32 %v4412_v32, %v4283_v47  ;;  %v3511_v35 = vadd.f32 %v3447_v51, %v3318_v18  ;;  %v2709_v25 = vmax.f32 %v2480_v24, 0.0  ;;  %v3286_v57 = vmul.f32 %v8495_v43, %v7144_v45  ;;  %v8724_v51 = vld [vmem:[#allocation3 + $0x387] sm:$0xff] }
 0x2d8   :  { %v4122_v29 = vadd.f32 %v4058_v3, %v3928_v42  ;;  %v4444_v41 = vmul.f32 %v8401_v9, %v8690_v11  ;;  %4933 = vst.msk [vmem:[#allocation4 + $0x8] sm:$0xff] %vm4931_vm2, %v4743_v7  ;;  %v3157_v49 = vadd.f32 %v3093_v22, %v2900_v20  ;;  %v3479_v37 = vmul.f32 %v8598_v27, %v7147_v62  ;;  %v8728_v3 = vld [vmem:[#allocation3 + $0x389] sm:$0xff]  ;;  %v8739_v7 = vpop.f32.mrf.mxu3 }
 0x2d9   :  { %5093 = vmatmul.msk.f32.gmra.mxu1 %vm27_vm0, %v4476_v10  ;;  %v3704_v31 = vadd.f32 %v3640_v34, %v3511_v35  ;;  %v4027_v32 = vmul.f32 %v7185_v1, %v8696_v15  ;;  %v4220_v43 = vmul.f32 %v7195_v13, %v8698_v58  ;;  %2774 = vst.msk [vmem:[#allocation3 + $0x3b0] sm:$0xff] %vm27_vm0, %v2709_v25 }
 0x2da   :  { %v4315_v5 = vadd.f32 %v4251_v38, %v4122_v29  ;;  %v4413_v16 = vmul.f32 %v8401_v9, %v8705_v63  ;;  %v3350_v60 = vadd.f32 %v3286_v57, %v3157_v49  ;;  %v3672_v46 = vmul.f32 %v8606_v23, %v7170_v2 }
 0x2db   :  { %v3897_v36 = vadd.f32 %v3833_v8, %v3704_v31  ;;  %v2387_v34 = vadd.f32 %v8603_v50, %v2386_v53  ;;  %v2869_v47 = vmul.f32 %v8515_v54, %v7131_v17  ;;  %v3062_v38 = vmul.f32 %v8522_v40, %v7134_v52  ;;  %v2482_v54 = vpop.f32.mrf.mxu2  ;;  %v8750_v53 = vpop.f32.mrf.mxu1  ;;  %v8757_v31 = vld [vmem:[#allocation3 + $0x150] sm:$0xff] }
 0x2dc   :  { %v4508_v18 = vadd.f32 %v4444_v41, %v4315_v5  ;;  %v3543_v24 = vadd.f32 %v3479_v37, %v3350_v60  ;;  %v3865_v42 = vmul.f32 %v8608_v6, %v7164_v14  ;;  %v3255_v8 = vmul.f32 %v8524_v12, %v7144_v45  ;;  %v8755_v37 = vld [vmem:[#allocation3 + $0x14f] sm:$0xff] }
 0x2dd   :  { %v4091_v20 = vadd.f32 %v4027_v32, %v3897_v36  ;;  %v2678_v22 = vmax.f32 %v2387_v34, 0.0  ;;  %v3126_v10 = vadd.f32 %v3062_v38, %v2869_v47  ;;  %v3448_v35 = vmul.f32 %v8636_v61, %v7147_v62  ;;  %v8768_v38 = vld [vmem:[#allocation3 + $0x151] sm:$0xff] }
 0x2de   :  { %5125 = vmatmul.msk.f32.gmra.mxu3 %vm27_vm0, %v4508_v18  ;;  %v3736_v40 = vadd.f32 %v3672_v46, %v3543_v24  ;;  %v4059_v25 = vmul.f32 %v7185_v1, %v8724_v51  ;;  %v4252_v57 = vmul.f32 %v7195_v13, %v8726_v48  ;;  %v4445_v12 = vmul.f32 %v8401_v9, %v8728_v3  ;;  %v2389_v18 = vpop.f32.mrf.mxu0 }
 0x2df   :  { %v4284_v29 = vadd.f32 %v4220_v43, %v4091_v20  ;;  %2743 = vst.msk [vmem:[#allocation3 + $0x188] sm:$0xff] %vm27_vm0, %v2678_v22  ;;  %v3319_v41 = vadd.f32 %v3255_v8, %v3126_v10  ;;  %v3641_v49 = vmul.f32 %v8638_v55, %v7170_v2  ;;  %v4836_v32 = vadd.f32 %v8621_v26, %v8677_v33 }
 0x2e0   :  { %v3929_v5 = vadd.f32 %v3865_v42, %v3736_v40  ;;  %v2483_v60 = vadd.f32 %v8603_v50, %v2482_v54  ;;  %v4746_v46 = vadd.f32 %v8621_v26, %v8688_v44  ;;  %v2901_v43 = vmul.f32 %v8544_v21, %v7131_v17 }
 0x2e1   :  { %v4477_v36 = vadd.f32 %v4413_v16, %v4284_v29  ;;  %v3512_v34 = vadd.f32 %v3448_v35, %v3319_v41  ;;  %v3834_v47 = vmul.f32 %v8647_v19, %v7164_v14  ;;  %4964 = vst.msk [vmem:[#allocation4 + $0x100] sm:$0xff] %vm4931_vm2, %v4836_v32  ;;  %v3094_v33 = vmul.f32 %v8547_v30, %v7134_v52  ;;  %v8789_v29 = vld [vmem:[#allocation3 + $0x38f] sm:$0xff] }
 0x2e2   :  { %v4123_v24 = vadd.f32 %v4059_v25, %v3929_v5  ;;  %v4028_v44 = vmul.f32 %v7185_v1, %v8755_v37  ;;  %v4221_v21 = vmul.f32 %v7195_v13, %v8757_v31  ;;  %v2710_v16 = vmax.f32 %v2483_v60, 0.0  ;;  %4934 = vst.msk [vmem:[#allocation4 + $0x10] sm:$0xff] %vm4931_vm2, %v4746_v46  ;;  %v8791_v41 = vld [vmem:[#allocation3 + $0x390] sm:$0xff]  ;;  %v8801_v46 = vpop.f32.mrf.mxu3 }
 0x2e3   :  { %5094 = vmatmul.msk.f32.gmra.mxu1 %vm27_vm0, %v4477_v36  ;;  %v3705_v42 = vadd.f32 %v3641_v49, %v3512_v34  ;;  %v3158_v8 = vadd.f32 %v3094_v33, %v2901_v43  ;;  %v3287_v20 = vmul.f32 %v8549_v59, %v7144_v45  ;;  %v3480_v30 = vmul.f32 %v8664_v28, %v7147_v62  ;;  %v8813_v33 = vpop.f32.mrf.mxu1 }
 0x2e4   :  { %v4316_v22 = vadd.f32 %v4252_v57, %v4123_v24  ;;  %v4414_v10 = vmul.f32 %v8401_v9, %v8768_v38  ;;  %2775 = vst.msk [vmem:[#allocation3 + $0x3c8] sm:$0xff] %vm27_vm0, %v2710_v16  ;;  %v3673_v35 = vmul.f32 %v8666_v39, %v7170_v2  ;;  %v2390_v54 = vadd.f32 %v8603_v50, %v2389_v18 }
 0x2e5   :  { %v3898_v40 = vadd.f32 %v3834_v47, %v3705_v42  ;;  %v3351_v25 = vadd.f32 %v3287_v20, %v3158_v8  ;;  %v2870_v59 = vmul.f32 %v8571_v4, %v7131_v17  ;;  %v3063_v57 = vmul.f32 %v8574_v56, %v7134_v52  ;;  %v2485_v4 = vpop.f32.mrf.mxu2  ;;  %v8817_v42 = vld [vmem:[#allocation3 + $0x167] sm:$0xff] }
 0x2e6   :  { %v4509_v49 = vadd.f32 %v4445_v12, %v4316_v22  ;;  %v3866_v32 = vmul.f32 %v8690_v11, %v7164_v14  ;;  %v2679_v5 = vmax.f32 %v2390_v54, 0.0  ;;  %v3256_v60 = vmul.f32 %v8576_v0, %v7144_v45 }
 0x2e7   :  { %v4092_v43 = vadd.f32 %v4028_v44, %v3898_v40  ;;  %v3544_v36 = vadd.f32 %v3480_v30, %v3351_v25  ;;  %v3127_v34 = vadd.f32 %v3063_v57, %v2870_v59  ;;  %v3449_v47 = vmul.f32 %v8696_v15, %v7147_v62  ;;  %v8828_v25 = vld [vmem:[#allocation3 + $0x168] sm:$0xff] }
 0x2e8   :  { %5126 = vmatmul.msk.f32.gmra.mxu3 %vm27_vm0, %v4509_v49  ;;  %v4060_v56 = vmul.f32 %v7185_v1, %v8789_v29  ;;  %v4253_v12 = vmul.f32 %v7195_v13, %v8791_v41  ;;  %2744 = vst.msk [vmem:[#allocation3 + $0x190] sm:$0xff] %vm27_vm0, %v2679_v5  ;;  %v3642_v0 = vmul.f32 %v8698_v58, %v7170_v2  ;;  %v8830_v59 = vld [vmem:[#allocation3 + $0x169] sm:$0xff]  ;;  %v2392_v49 = vpop.f32.mrf.mxu0 }
 0x2e9   :  { %v4285_v18 = vadd.f32 %v4221_v21, %v4092_v43  ;;  %v3737_v24 = vadd.f32 %v3673_v35, %v3544_v36  ;;  %v3320_v44 = vadd.f32 %v3256_v60, %v3127_v34  ;;  %v3835_v16 = vmul.f32 %v8705_v63, %v7164_v14  ;;  %v8826_v35 = vld [vmem:[#allocation3 + $0x391] sm:$0xff] }
 0x2ea   :  { %v4839_v8 = vadd.f32 %v8621_v26, %v8739_v7  ;;  %v2486_v20 = vadd.f32 %v8603_v50, %v2485_v4  ;;  %v4749_v30 = vadd.f32 %v8621_v26, %v8750_v53  ;;  %v2902_v22 = vmul.f32 %v8598_v27, %v7131_v17 }
 0x2eb   :  { %v4478_v54 = vadd.f32 %v4414_v10, %v4285_v18  ;;  %v3930_v21 = vadd.f32 %v3866_v32, %v3737_v24  ;;  %v3513_v40 = vadd.f32 %v3449_v47, %v3320_v44  ;;  %v3095_v7 = vmul.f32 %v8606_v23, %v7134_v52  ;;  %v8859_v44 = vld [vmem:[#allocation3 + $0x3a9] sm:$0xff] }
 0x2ec   :  { %v4029_v57 = vmul.f32 %v7185_v1, %v8817_v42  ;;  %4965 = vst.msk [vmem:[#allocation4 + $0x108] sm:$0xff] %vm4931_vm2, %v4839_v8  ;;  %v2711_v53 = vmax.f32 %v2486_v20, 0.0  ;;  %v3288_v27 = vmul.f32 %v8608_v6, %v7144_v45  ;;  %v3481_v10 = vmul.f32 %v8724_v51, %v7147_v62 }
 0x2ed   :  { %5095 = vmatmul.msk.f32.gmra.mxu1 %vm27_vm0, %v4478_v54  ;;  %v4124_v32 = vadd.f32 %v4060_v56, %v3930_v21  ;;  %v3706_v5 = vadd.f32 %v3642_v0, %v3513_v40  ;;  %4935 = vst.msk [vmem:[#allocation4 + $0x18] sm:$0xff] %vm4931_vm2, %v4749_v30  ;;  %v3159_v23 = vadd.f32 %v3095_v7, %v2902_v22  ;;  %v8852_v56 = vld [vmem:[#allocation3 + $0x3a7] sm:$0xff]  ;;  %v2488_v40 = vpop.f32.mrf.mxu2 }
 0x2ee   :  { %v4446_v60 = vmul.f32 %v8401_v9, %v8826_v35  ;;  %v4222_v43 = vmul.f32 %v7195_v13, %v8828_v25  ;;  %v4415_v6 = vmul.f32 %v8401_v9, %v8830_v59  ;;  %2776 = vst.msk [vmem:[#allocation3 + $0x3d0] sm:$0xff] %vm27_vm0, %v2711_v53  ;;  %v3674_v36 = vmul.f32 %v8726_v48, %v7170_v2  ;;  %v8854_v0 = vld [vmem:[#allocation3 + $0x3a8] sm:$0xff] }
 0x2ef   :  { %v4317_v34 = vadd.f32 %v4253_v12, %v4124_v32  ;;  %v3899_v47 = vadd.f32 %v3835_v16, %v3706_v5  ;;  %v3352_v4 = vadd.f32 %v3288_v27, %v3159_v23  ;;  %v2393_v18 = vadd.f32 %v8603_v50, %v2392_v49  ;;  %v8867_v16 = vpop.f32.mrf.mxu3  ;;  %v8875_v27 = vpop.f32.mrf.mxu1  ;;  %v8883_v5 = vld [vmem:[#allocation3 + $0x16f] sm:$0xff] }
 0x2f0   :  { %v3867_v24 = vmul.f32 %v8728_v3, %v7164_v14  ;;  %v2871_v8 = vmul.f32 %v8636_v61, %v7131_v17  ;;  %v3064_v20 = vmul.f32 %v8638_v55, %v7134_v52  ;;  %v3257_v12 = vmul.f32 %v8647_v19, %v7144_v45  ;;  %v8885_v23 = vld [vmem:[#allocation3 + $0x170] sm:$0xff] }
 0x2f1   :  { %v4510_v30 = vadd.f32 %v4446_v60, %v4317_v34  ;;  %v4093_v22 = vadd.f32 %v4029_v57, %v3899_v47  ;;  %v3545_v54 = vadd.f32 %v3481_v10, %v3352_v4  ;;  %v2680_v21 = vmax.f32 %v2393_v18, 0.0 }
 0x2f2   :  { %v4061_v7 = vmul.f32 %v7185_v1, %v8852_v56  ;;  %v4254_v53 = vmul.f32 %v7195_v13, %v8854_v0  ;;  %v3128_v61 = vadd.f32 %v3064_v20, %v2871_v8  ;;  %v3450_v55 = vmul.f32 %v8755_v37, %v7147_v62  ;;  %v8896_v20 = vld [vmem:[#allocation3 + $0x171] sm:$0xff] }
 0x2f3   :  { %5127 = vmatmul.msk.f32.gmra.mxu3 %vm27_vm0, %v4510_v30  ;;  %v4286_v19 = vadd.f32 %v4222_v43, %v4093_v22  ;;  %v3738_v49 = vadd.f32 %v3674_v36, %v3545_v54  ;;  %v4447_v57 = vmul.f32 %v8401_v9, %v8859_v44  ;;  %2745 = vst.msk [vmem:[#allocation3 + $0x1a8] sm:$0xff] %vm27_vm0, %v2680_v21 }
 0x2f4   :  { %v3321_v10 = vadd.f32 %v3257_v12, %v3128_v61  ;;  %v3643_v32 = vmul.f32 %v8757_v31, %v7170_v2  ;;  %v4842_v60 = vadd.f32 %v8621_v26, %v8801_v46  ;;  %v2489_v34 = vadd.f32 %v8603_v50, %v2488_v40 }
 0x2f5   :  { %v4479_v43 = vadd.f32 %v4415_v6, %v4286_v19  ;;  %v3931_v36 = vadd.f32 %v3867_v24, %v3738_v49  ;;  %v4752_v47 = vadd.f32 %v8621_v26, %v8813_v33  ;;  %v2903_v4 = vmul.f32 %v8664_v28, %v7131_v17  ;;  %v2395_v6 = vpop.f32.mrf.mxu0  ;;  %v8917_v49 = vld [vmem:[#allocation3 + $0x3af] sm:$0xff] }
 0x2f6   :  { %v3514_v18 = vadd.f32 %v3450_v55, %v3321_v10  ;;  %v3836_v8 = vmul.f32 %v8768_v38, %v7164_v14  ;;  %4966 = vst.msk [vmem:[#allocation4 + $0x110] sm:$0xff] %vm4931_vm2, %v4842_v60  ;;  %v2712_v12 = vmax.f32 %v2489_v34, 0.0  ;;  %v3096_v46 = vmul.f32 %v8666_v39, %v7134_v52  ;;  %v8919_v10 = vld [vmem:[#allocation3 + $0x3b0] sm:$0xff] }
 0x2f7   :  { %5096 = vmatmul.msk.f32.gmra.mxu1 %vm27_vm0, %v4479_v43  ;;  %v4125_v24 = vadd.f32 %v4061_v7, %v3931_v36  ;;  %v4030_v33 = vmul.f32 %v7185_v1, %v8883_v5  ;;  %v4223_v28 = vmul.f32 %v7195_v13, %v8885_v23  ;;  %4936 = vst.msk [vmem:[#allocation4 + $0x20] sm:$0xff] %vm4931_vm2, %v4752_v47 }
 0x2f8   :  { %v3707_v30 = vadd.f32 %v3643_v32, %v3514_v18  ;;  %2777 = vst.msk [vmem:[#allocation3 + $0x3e8] sm:$0xff] %vm27_vm0, %v2712_v12  ;;  %v3160_v22 = vadd.f32 %v3096_v46, %v2903_v4  ;;  %v3289_v54 = vmul.f32 %v8690_v11, %v7144_v45  ;;  %v3482_v39 = vmul.f32 %v8789_v29, %v7147_v62  ;;  %v8925_v32 = vpop.f32.mrf.mxu3  ;;  %v8933_v12 = vpop.f32.mrf.mxu1 }
 0x2f9   :  { %v4318_v21 = vadd.f32 %v4254_v53, %v4125_v24  ;;  %v4416_v40 = vmul.f32 %v8401_v9, %v8896_v20  ;;  %v3675_v7 = vmul.f32 %v8791_v41, %v7170_v2  ;;  %v2396_v61 = vadd.f32 %v8603_v50, %v2395_v6 }
 0x2fa   :  { %v3900_v55 = vadd.f32 %v3836_v8, %v3707_v30  ;;  %v3353_v19 = vadd.f32 %v3289_v54, %v3160_v22  ;;  %v2872_v11 = vmul.f32 %v8696_v15, %v7131_v17  ;;  %v3065_v53 = vmul.f32 %v8698_v58, %v7134_v52  ;;  %v2491_v15 = vpop.f32.mrf.mxu2  ;;  %v8945_v30 = vld [vmem:[#allocation3 + $0x187] sm:$0xff] }
 0x2fb   :  { %v4511_v60 = vadd.f32 %v4447_v57, %v4318_v21  ;;  %v3868_v34 = vmul.f32 %v8826_v35, %v7164_v14  ;;  %v2681_v43 = vmax.f32 %v2396_v61, 0.0  ;;  %v3258_v36 = vmul.f32 %v8705_v63, %v7144_v45 }
 0x2fc   :  { %v4094_v47 = vadd.f32 %v4030_v33, %v3900_v55  ;;  %v3546_v4 = vadd.f32 %v3482_v39, %v3353_v19  ;;  %v3129_v18 = vadd.f32 %v3065_v53, %v2872_v11  ;;  %v3451_v8 = vmul.f32 %v8817_v42, %v7147_v62  ;;  %v8956_v19 = vld [vmem:[#allocation3 + $0x188] sm:$0xff] }
 0x2fd   :  { %5128 = vmatmul.msk.f32.gmra.mxu3 %vm27_vm0, %v4511_v60  ;;  %v4062_v58 = vmul.f32 %v7185_v1, %v8917_v49  ;;  %v4255_v57 = vmul.f32 %v7195_v13, %v8919_v10  ;;  %2746 = vst.msk [vmem:[#allocation3 + $0x1b0] sm:$0xff] %vm27_vm0, %v2681_v43  ;;  %v3644_v63 = vmul.f32 %v8828_v25, %v7170_v2  ;;  %v8958_v11 = vld [vmem:[#allocation3 + $0x189] sm:$0xff]  ;;  %v2398_v60 = vpop.f32.mrf.mxu0 }
 0x2fe   :  { %v4287_v46 = vadd.f32 %v4223_v28, %v4094_v47  ;;  %v3739_v6 = vadd.f32 %v3675_v7, %v3546_v4  ;;  %v3322_v24 = vadd.f32 %v3258_v36, %v3129_v18  ;;  %v3837_v33 = vmul.f32 %v8830_v59, %v7164_v14  ;;  %v8954_v7 = vld [vmem:[#allocation3 + $0x3b1] sm:$0xff] }
 0x2ff   :  { %v4845_v22 = vadd.f32 %v8621_v26, %v8867_v16  ;;  %v2492_v54 = vadd.f32 %v8603_v50, %v2491_v15  ;;  %v4755_v39 = vadd.f32 %v8621_v26, %v8875_v27  ;;  %v2904_v21 = vmul.f32 %v8724_v51, %v7131_v17 }
 0x300   :  { %v4480_v61 = vadd.f32 %v4416_v40, %v4287_v46  ;;  %v3932_v28 = vadd.f32 %v3868_v34, %v3739_v6  ;;  %v3515_v55 = vadd.f32 %v3451_v8, %v3322_v24  ;;  %v3097_v16 = vmul.f32 %v8726_v48, %v7134_v52  ;;  %v8985_v6 = vpop.f32.mrf.mxu3 }
 0x301   :  { %v4031_v53 = vmul.f32 %v7185_v1, %v8945_v30  ;;  %4967 = vst.msk [vmem:[#allocation4 + $0x118] sm:$0xff] %vm4931_vm2, %v4845_v22  ;;  %v2713_v27 = vmax.f32 %v2492_v54, 0.0  ;;  %v3290_v51 = vmul.f32 %v8728_v3, %v7144_v45  ;;  %v3483_v40 = vmul.f32 %v8852_v56, %v7147_v62 }
 0x302   :  { %5097 = vmatmul.msk.f32.gmra.mxu1 %vm27_vm0, %v4480_v61  ;;  %v4126_v34 = vadd.f32 %v4062_v58, %v3932_v28  ;;  %v3708_v43 = vadd.f32 %v3644_v63, %v3515_v55  ;;  %4937 = vst.msk [vmem:[#allocation4 + $0x28] sm:$0xff] %vm4931_vm2, %v4755_v39  ;;  %v3161_v48 = vadd.f32 %v3097_v16, %v2904_v21  ;;  %v8980_v58 = vld [vmem:[#allocation3 + $0x3c7] sm:$0xff]  ;;  %v2494_v28 = vpop.f32.mrf.mxu2  ;;  %v8997_v55 = vpop.f32.mrf.mxu1 }
 0x303   :  { %v4448_v36 = vmul.f32 %v8401_v9, %v8954_v7  ;;  %v4224_v47 = vmul.f32 %v7195_v13, %v8956_v19  ;;  %v4417_v3 = vmul.f32 %v8401_v9, %v8958_v11  ;;  %2778 = vst.msk [vmem:[#allocation3 + $0x3f0] sm:$0xff] %vm27_vm0, %v2713_v27  ;;  %v3676_v4 = vmul.f32 %v8854_v0, %v7170_v2  ;;  %v8982_v63 = vld [vmem:[#allocation3 + $0x3c8] sm:$0xff] }
 0x304   :  { %v4319_v18 = vadd.f32 %v4255_v57, %v4126_v34  ;;  %v3901_v8 = vadd.f32 %v3837_v33, %v3708_v43  ;;  %v3354_v15 = vadd.f32 %v3290_v51, %v3161_v48  ;;  %v2399_v46 = vadd.f32 %v8603_v50, %v2398_v60  ;;  %v8989_v9 = vld [vmem:[#allocation3 + $0x3c9] sm:$0xff] }
 0x305   :  { %v3869_v24 = vmul.f32 %v8859_v44, %v7164_v14  ;;  %v2873_v22 = vmul.f32 %v8755_v37, %v7131_v17  ;;  %v3066_v57 = vmul.f32 %v8757_v31, %v7134_v52  ;;  %v3259_v33 = vmul.f32 %v8768_v38, %v7144_v45  ;;  %v9016_v43 = vld [vmem:[#allocation3 + $0x18f] sm:$0xff] }
 0x306   :  { %v4512_v54 = vadd.f32 %v4448_v36, %v4319_v18  ;;  %v4095_v39 = vadd.f32 %v4031_v53, %v3901_v8  ;;  %v3547_v21 = vadd.f32 %v3483_v40, %v3354_v15  ;;  %v2682_v61 = vmax.f32 %v2399_v46, 0.0  ;;  %v9009_v53 = vld [vmem:[%s9735_s4 + $0x8] ss:$0 sm:$0xff]  ;;  %v9018_v48 = vld [vmem:[#allocation3 + $0x190] sm:$0xff] }
 0x307   :  { %v4063_v16 = vmul.f32 %v7185_v1, %v8980_v58  ;;  %v4256_v27 = vmul.f32 %v7195_v13, %v8982_v63  ;;  %v3130_v37 = vadd.f32 %v3066_v57, %v2873_v22  ;;  %v3452_v31 = vmul.f32 %v8883_v5, %v7147_v62  ;;  %v9029_v57 = vld [vmem:[#allocation3 + $0x191] sm:$0xff] }
 0x308   :  { %5129 = vmatmul.msk.f32.gmra.mxu3 %vm27_vm0, %v4512_v54  ;;  %v4288_v38 = vadd.f32 %v4224_v47, %v4095_v39  ;;  %v3740_v51 = vadd.f32 %v3676_v4, %v3547_v21  ;;  %v4449_v40 = vmul.f32 %v9009_v53, %v8989_v9  ;;  %2747 = vst.msk [vmem:[#allocation3 + $0x1c8] sm:$0xff] %vm27_vm0, %v2682_v61 }
 0x309   :  { %v3323_v60 = vadd.f32 %v3259_v33, %v3130_v37  ;;  %v3645_v34 = vmul.f32 %v8885_v23, %v7170_v2  ;;  %v4848_v36 = vadd.f32 %v8621_v26, %v8925_v32  ;;  %v2495_v47 = vadd.f32 %v8603_v50, %v2494_v28 }
 0x30a   :  { %v4481_v4 = vadd.f32 %v4417_v3, %v4288_v38  ;;  %v3933_v18 = vadd.f32 %v3869_v24, %v3740_v51  ;;  %v4758_v8 = vadd.f32 %v8621_v26, %v8933_v12  ;;  %v2905_v15 = vmul.f32 %v8789_v29, %v7131_v17  ;;  %v2401_v3 = vpop.f32.mrf.mxu0 }
 0x30b   :  { %v3516_v46 = vadd.f32 %v3452_v31, %v3323_v60  ;;  %v3838_v22 = vmul.f32 %v8896_v20, %v7164_v14  ;;  %4968 = vst.msk [vmem:[#allocation4 + $0x120] sm:$0xff] %vm4931_vm2, %v4848_v36  ;;  %v2714_v33 = vmax.f32 %v2495_v47, 0.0  ;;  %v3098_v32 = vmul.f32 %v8791_v41, %v7134_v52  ;;  %v9050_v31 = vpop.f32.mrf.mxu3  ;;  %v9052_v60 = vld [vmem:[#allocation3 + $0x3cf] sm:$0xff] }
 0x30c   :  { %5098 = vmatmul.msk.f32.gmra.mxu1 %vm27_vm0, %v4481_v4  ;;  %v4127_v24 = vadd.f32 %v4063_v16, %v3933_v18  ;;  %v4032_v12 = vmul.f32 %v7185_v1, %v9016_v43  ;;  %v4225_v29 = vmul.f32 %v7195_v13, %v9018_v48  ;;  %4938 = vst.msk [vmem:[#allocation4 + $0x30] sm:$0xff] %vm4931_vm2, %v4758_v8  ;;  %v9064_v8 = vpop.f32.mrf.mxu1 }
 0x30d   :  { %v3709_v54 = vadd.f32 %v3645_v34, %v3516_v46  ;;  %2779 = vst.msk [vmem:[#allocation3 + $0x408] sm:$0xff] %vm27_vm0, %v2714_v33  ;;  %v3162_v39 = vadd.f32 %v3098_v32, %v2905_v15  ;;  %v3291_v21 = vmul.f32 %v8826_v35, %v7144_v45  ;;  %v3484_v41 = vmul.f32 %v8917_v49, %v7147_v62  ;;  %v9054_v34 = vld [vmem:[#allocation3 + $0x3d0] sm:$0xff] }
 0x30e   :  { %v4320_v61 = vadd.f32 %v4256_v27, %v4127_v24  ;;  %v4418_v28 = vmul.f32 %v9009_v53, %v9029_v57  ;;  %v3677_v16 = vmul.f32 %v8919_v10, %v7170_v2  ;;  %v2402_v37 = vadd.f32 %v8603_v50, %v2401_v3 }
 0x30f   :  { %v3902_v38 = vadd.f32 %v3838_v22, %v3709_v54  ;;  %v3355_v51 = vadd.f32 %v3291_v21, %v3162_v39  ;;  %v2874_v35 = vmul.f32 %v8817_v42, %v7131_v17  ;;  %v3067_v27 = vmul.f32 %v8828_v25, %v7134_v52  ;;  %v2497_v42 = vpop.f32.mrf.mxu2  ;;  %v9078_v54 = vld [vmem:[#allocation3 + $0x1a7] sm:$0xff] }
 0x310   :  { %v4513_v36 = vadd.f32 %v4449_v40, %v4320_v61  ;;  %v3870_v47 = vmul.f32 %v8954_v7, %v7164_v14  ;;  %v2683_v4 = vmax.f32 %v2402_v37, 0.0  ;;  %v3260_v18 = vmul.f32 %v8830_v59, %v7144_v45 }
 0x311   :  { %v4096_v15 = vadd.f32 %v4032_v12, %v3902_v38  ;;  %v3548_v46 = vadd.f32 %v3484_v41, %v3355_v51  ;;  %v3131_v22 = vadd.f32 %v3067_v27, %v2874_v35  ;;  %v3453_v33 = vmul.f32 %v8945_v30, %v7147_v62  ;;  %v9089_v51 = vld [vmem:[#allocation3 + $0x1a8] sm:$0xff] }
 0x312   :  { %5130 = vmatmul.msk.f32.gmra.mxu3 %vm27_vm0, %v4513_v36  ;;  %v4064_v25 = vmul.f32 %v7185_v1, %v9052_v60  ;;  %v4257_v40 = vmul.f32 %v7195_v13, %v9054_v34  ;;  %2748 = vst.msk [vmem:[#allocation3 + $0x1d0] sm:$0xff] %vm27_vm0, %v2683_v4  ;;  %v3646_v59 = vmul.f32 %v8956_v19, %v7170_v2  ;;  %v9091_v35 = vld [vmem:[#allocation3 + $0x1a9] sm:$0xff]  ;;  %v2404_v36 = vpop.f32.mrf.mxu0 }
 0x313   :  { %v4289_v32 = vadd.f32 %v4225_v29, %v4096_v15  ;;  %v3741_v3 = vadd.f32 %v3677_v16, %v3548_v46  ;;  %v3324_v24 = vadd.f32 %v3260_v18, %v3131_v22  ;;  %v3839_v12 = vmul.f32 %v8958_v11, %v7164_v14  ;;  %v9087_v16 = vld [vmem:[#allocation3 + $0x3d1] sm:$0xff]  ;;  %v9113_v22 = vpop.f32.mrf.mxu3 }
 0x314   :  { %v4851_v39 = vadd.f32 %v8621_v26, %v8985_v6  ;;  %v2498_v21 = vadd.f32 %v8603_v50, %v2497_v42  ;;  %v4761_v41 = vadd.f32 %v8621_v26, %v8997_v55  ;;  %v2906_v61 = vmul.f32 %v8852_v56, %v7131_v17 }
 0x315   :  { %v4482_v37 = vadd.f32 %v4418_v28, %v4289_v32  ;;  %v3934_v29 = vadd.f32 %v3870_v47, %v3741_v3  ;;  %v3517_v38 = vadd.f32 %v3453_v33, %v3324_v24  ;;  %v3099_v6 = vmul.f32 %v8854_v0, %v7134_v52  ;;  %v9117_v32 = vld [vmem:[#allocation3 + $0x3e8] sm:$0xff] }
 0x316   :  { %v4033_v27 = vmul.f32 %v7185_v1, %v9078_v54  ;;  %4969 = vst.msk [vmem:[#allocation4 + $0x128] sm:$0xff] %vm4931_vm2, %v4851_v39  ;;  %v2715_v55 = vmax.f32 %v2498_v21, 0.0  ;;  %v3292_v56 = vmul.f32 %v8859_v44, %v7144_v45  ;;  %v3485_v28 = vmul.f32 %v8980_v58, %v7147_v62  ;;  %v9122_v39 = vld [vmem:[#allocation3 + $0x3e9] sm:$0xff] }
 0x317   :  { %5099 = vmatmul.msk.f32.gmra.mxu1 %vm27_vm0, %v4482_v37  ;;  %v4128_v47 = vadd.f32 %v4064_v25, %v3934_v29  ;;  %v3710_v4 = vadd.f32 %v3646_v59, %v3517_v38  ;;  %4939 = vst.msk [vmem:[#allocation4 + $0x38] sm:$0xff] %vm4931_vm2, %v4761_v41  ;;  %v3163_v0 = vadd.f32 %v3099_v6, %v2906_v61  ;;  %v9115_v59 = vld [vmem:[#allocation3 + $0x3e7] sm:$0xff]  ;;  %v2500_v6 = vpop.f32.mrf.mxu2 }
 0x318   :  { %v4450_v18 = vmul.f32 %v9009_v53, %v9087_v16  ;;  %v4226_v15 = vmul.f32 %v7195_v13, %v9089_v51  ;;  %v4419_v44 = vmul.f32 %v9009_v53, %v9091_v35  ;;  %2780 = vst.msk [vmem:[#allocation3 + $0x410] sm:$0xff] %vm27_vm0, %v2715_v55  ;;  %v3678_v46 = vmul.f32 %v8982_v63, %v7170_v2 }
 0x319   :  { %v4321_v33 = vadd.f32 %v4257_v40, %v4128_v47  ;;  %v3903_v42 = vadd.f32 %v3839_v12, %v3710_v4  ;;  %v3356_v25 = vadd.f32 %v3292_v56, %v3163_v0  ;;  %v2405_v3 = vadd.f32 %v8603_v50, %v2404_v36  ;;  %v9130_v12 = vpop.f32.mrf.mxu1  ;;  %v9144_v4 = vld [vmem:[#allocation3 + $0x1af] sm:$0xff] }
 0x31a   :  { %v3871_v24 = vmul.f32 %v8989_v9, %v7164_v14  ;;  %v2875_v21 = vmul.f32 %v8883_v5, %v7131_v17  ;;  %v3068_v41 = vmul.f32 %v8885_v23, %v7134_v52  ;;  %v3261_v40 = vmul.f32 %v8896_v20, %v7144_v45  ;;  %v9146_v0 = vld [vmem:[#allocation3 + $0x1b0] sm:$0xff] }
 0x31b   :  { %v4514_v61 = vadd.f32 %v4450_v18, %v4321_v33  ;;  %v4097_v37 = vadd.f32 %v4033_v27, %v3903_v42  ;;  %v3549_v29 = vadd.f32 %v3485_v28, %v3356_v25  ;;  %v2684_v38 = vmax.f32 %v2405_v3, 0.0 }
 0x31c   :  { %v4065_v55 = vmul.f32 %v7185_v1, %v9115_v59  ;;  %v4258_v56 = vmul.f32 %v7195_v13, %v9117_v32  ;;  %v3132_v5 = vadd.f32 %v3068_v41, %v2875_v21  ;;  %v3454_v23 = vmul.f32 %v9016_v43, %v7147_v62  ;;  %v9157_v41 = vld [vmem:[#allocation3 + $0x1b1] sm:$0xff] }
 0x31d   :  { %5131 = vmatmul.msk.f32.gmra.mxu3 %vm27_vm0, %v4514_v61  ;;  %v4290_v20 = vadd.f32 %v4226_v15, %v4097_v37  ;;  %v3742_v36 = vadd.f32 %v3678_v46, %v3549_v29  ;;  %v4451_v27 = vmul.f32 %v9009_v53, %v9122_v39  ;;  %2749 = vst.msk [vmem:[#allocation3 + $0x1e8] sm:$0xff] %vm27_vm0, %v2684_v38  ;;  %v9173_v29 = vpop.f32.mrf.mxu3 }
 0x31e   :  { %v3325_v28 = vadd.f32 %v3261_v40, %v3132_v5  ;;  %v3647_v47 = vmul.f32 %v9018_v48, %v7170_v2  ;;  %v4854_v18 = vadd.f32 %v8621_v26, %v9050_v31  ;;  %v2501_v33 = vadd.f32 %v8603_v50, %v2500_v6 }
 0x31f   :  { %v4483_v15 = vadd.f32 %v4419_v44, %v4290_v20  ;;  %v3935_v46 = vadd.f32 %v3871_v24, %v3742_v36  ;;  %v4764_v42 = vadd.f32 %v8621_v26, %v9064_v8  ;;  %v2907_v25 = vmul.f32 %v8917_v49, %v7131_v17  ;;  %v2407_v44 = vpop.f32.mrf.mxu0  ;;  %v9180_v36 = vld [vmem:[#allocation3 + $0x3ef] sm:$0xff] }
 0x320   :  { %v3518_v3 = vadd.f32 %v3454_v23, %v3325_v28  ;;  %v3840_v21 = vmul.f32 %v9029_v57, %v7164_v14  ;;  %4970 = vst.msk [vmem:[#allocation4 + $0x130] sm:$0xff] %vm4931_vm2, %v4854_v18  ;;  %v2716_v40 = vmax.f32 %v2501_v33, 0.0  ;;  %v3100_v31 = vmul.f32 %v8919_v10, %v7134_v52  ;;  %v9182_v28 = vld [vmem:[#allocation3 + $0x3f0] sm:$0xff] }
 0x321   :  { %5100 = vmatmul.msk.f32.gmra.mxu1 %vm27_vm0, %v4483_v15  ;;  %v4129_v24 = vadd.f32 %v4065_v55, %v3935_v46  ;;  %v4034_v26 = vmul.f32 %v7185_v1, %v9144_v4  ;;  %v4227_v49 = vmul.f32 %v7195_v13, %v9146_v0  ;;  %4940 = vst.msk [vmem:[#allocation4 + $0x40] sm:$0xff] %vm4931_vm2, %v4764_v42 }
 0x322   :  { %v3711_v8 = vadd.f32 %v3647_v47, %v3518_v3  ;;  %2781 = vst.msk [vmem:[#allocation3 + $0x428] sm:$0xff] %vm27_vm0, %v2716_v40  ;;  %v3164_v61 = vadd.f32 %v3100_v31, %v2907_v25  ;;  %v3293_v37 = vmul.f32 %v8954_v7, %v7144_v45  ;;  %v3486_v10 = vmul.f32 %v9052_v60, %v7147_v62  ;;  %v9188_v47 = vpop.f32.mrf.mxu1 }
 0x323   :  { %v4322_v38 = vadd.f32 %v4258_v56, %v4129_v24  ;;  %v4420_v6 = vmul.f32 %v9009_v53, %v9157_v41  ;;  %v3679_v55 = vmul.f32 %v9054_v34, %v7170_v2  ;;  %v2408_v5 = vadd.f32 %v8603_v50, %v2407_v44  ;;  %v9206_v24 = vld [vmem:[#allocation3 + $0x1c7] sm:$0xff] }
 0x324   :  { %v3904_v23 = vadd.f32 %v3840_v21, %v3711_v8  ;;  %v3357_v20 = vadd.f32 %v3293_v37, %v3164_v61  ;;  %v2876_v7 = vmul.f32 %v8945_v30, %v7131_v17  ;;  %v3069_v56 = vmul.f32 %v8956_v19, %v7134_v52  ;;  %v2503_v30 = vpop.f32.mrf.mxu2  ;;  %v9218_v61 = vld [vmem:[%s9734_s3] ss:$0 sm:$0xff] }
 0x325   :  { %v4515_v18 = vadd.f32 %v4451_v27, %v4322_v38  ;;  %v3872_v33 = vmul.f32 %v9087_v16, %v7164_v14  ;;  %v2685_v15 = vmax.f32 %v2408_v5, 0.0  ;;  %v3262_v50 = vmul.f32 %v8958_v11, %v7144_v45  ;;  %v9225_v5 = vld [vmem:[#allocation3 + $0x3f1] sm:$0xff] }
 0x326   :  { %v4098_v46 = vadd.f32 %v4034_v26, %v3904_v23  ;;  %v3550_v42 = vadd.f32 %v3486_v10, %v3357_v20  ;;  %v3133_v25 = vadd.f32 %v3069_v56, %v2876_v7  ;;  %v3455_v3 = vmul.f32 %v9078_v54, %v7147_v62  ;;  %v9211_v26 = vld [vmem:[%s9737_s6] ss:$0 sm:$0xff]  ;;  %v9227_v20 = vld [vmem:[#allocation3 + $0x1c8] sm:$0xff] }
 0x327   :  { %5132 = vmatmul.msk.f32.gmra.mxu3 %vm27_vm0, %v4515_v18  ;;  %v4066_v19 = vmul.f32 %v7185_v1, %v9180_v36  ;;  %v4259_v27 = vmul.f32 %v7195_v13, %v9182_v28  ;;  %2750 = vst.msk [vmem:[#allocation3 + $0x1f0] sm:$0xff] %vm27_vm0, %v2685_v15  ;;  %v3648_v11 = vmul.f32 %v9089_v51, %v7170_v2  ;;  %v2410_v18 = vpop.f32.mrf.mxu0 }
 0x328   :  { %v4291_v21 = vadd.f32 %v4227_v49, %v4098_v46  ;;  %v3743_v40 = vadd.f32 %v3679_v55, %v3550_v42  ;;  %v3326_v31 = vadd.f32 %v3262_v50, %v3133_v25  ;;  %v3841_v44 = vmul.f32 %v9091_v35, %v7164_v14  ;;  %v9242_v50 = vpop.f32.mrf.mxu3 }
 0x329   :  { %v4857_v8 = vadd.f32 %v9211_v26, %v9113_v22  ;;  %v2504_v49 = vadd.f32 %v9218_v61, %v2503_v30  ;;  %v4767_v37 = vadd.f32 %v9211_v26, %v9130_v12  ;;  %v2908_v10 = vmul.f32 %v8980_v58, %v7131_v17  ;;  %v9229_v22 = vld [vmem:[#allocation3 + $0x1c9] sm:$0xff] }
 0x32a   :  { %v4484_v38 = vadd.f32 %v4420_v6, %v4291_v21  ;;  %v3936_v55 = vadd.f32 %v3872_v33, %v3743_v40  ;;  %v3519_v23 = vadd.f32 %v3455_v3, %v3326_v31  ;;  %v3101_v7 = vmul.f32 %v8982_v63, %v7134_v52  ;;  %v9255_v21 = vld [vmem:[#allocation3 + $0x408] sm:$0xff] }
 0x32b   :  { %v4035_v56 = vmul.f32 %v7185_v1, %v9206_v24  ;;  %4971 = vst.msk [vmem:[#allocation4 + $0x138] sm:$0xff] %vm4931_vm2, %v4857_v8  ;;  %v2717_v12 = vmax.f32 %v2504_v49, 0.0  ;;  %v3294_v58 = vmul.f32 %v8989_v9, %v7144_v45  ;;  %v3487_v6 = vmul.f32 %v9115_v59, %v7147_v62  ;;  %v9262_v49 = vld [vmem:[#allocation3 + $0x409] sm:$0xff] }
 0x32c   :  { %5101 = vmatmul.msk.f32.gmra.mxu1 %vm27_vm0, %v4484_v38  ;;  %v4130_v33 = vadd.f32 %v4066_v19, %v3936_v55  ;;  %v3712_v15 = vadd.f32 %v3648_v11, %v3519_v23  ;;  %4941 = vst.msk [vmem:[#allocation4 + $0x48] sm:$0xff] %vm4931_vm2, %v4767_v37  ;;  %v3165_v63 = vadd.f32 %v3101_v7, %v2908_v10  ;;  %v9253_v11 = vld [vmem:[#allocation3 + $0x407] sm:$0xff]  ;;  %v2506_v7 = vpop.f32.mrf.mxu2 }
 0x32d   :  { %v4452_v46 = vmul.f32 %v9009_v53, %v9225_v5  ;;  %v4228_v42 = vmul.f32 %v7195_v13, %v9227_v20  ;;  %v4421_v9 = vmul.f32 %v9009_v53, %v9229_v22  ;;  %2782 = vst.msk [vmem:[#allocation3 + $0x430] sm:$0xff] %vm27_vm0, %v2717_v12  ;;  %v3680_v25 = vmul.f32 %v9117_v32, %v7170_v2 }
 0x32e   :  { %v4323_v3 = vadd.f32 %v4259_v27, %v4130_v33  ;;  %v3905_v30 = vadd.f32 %v3841_v44, %v3712_v15  ;;  %v3358_v19 = vadd.f32 %v3294_v58, %v3165_v63  ;;  %v2411_v40 = vadd.f32 %v9218_v61, %v2410_v18  ;;  %v9258_v31 = vpop.f32.mrf.mxu1  ;;  %v9282_v15 = vld [vmem:[#allocation3 + $0x1cf] sm:$0xff] }
 0x32f   :  { %v3873_v8 = vmul.f32 %v9122_v39, %v7164_v14  ;;  %v2877_v37 = vmul.f32 %v9016_v43, %v7131_v17  ;;  %v3070_v27 = vmul.f32 %v9018_v48, %v7134_v52  ;;  %v3263_v44 = vmul.f32 %v9029_v57, %v7144_v45  ;;  %v9284_v63 = vld [vmem:[#allocation3 + $0x1d0] sm:$0xff] }
 0x330   :  { %v4516_v10 = vadd.f32 %v4452_v46, %v4323_v3  ;;  %v4099_v38 = vadd.f32 %v4035_v56, %v3905_v30  ;;  %v3551_v55 = vadd.f32 %v3487_v6, %v3358_v19  ;;  %v2686_v23 = vmax.f32 %v2411_v40, 0.0 }
 0x331   :  { %v4067_v12 = vmul.f32 %v7185_v1, %v9253_v11  ;;  %v4260_v58 = vmul.f32 %v7195_v13, %v9255_v21  ;;  %v3134_v18 = vadd.f32 %v3070_v27, %v2877_v37  ;;  %v3456_v43 = vmul.f32 %v9144_v4, %v7147_v62  ;;  %v9295_v27 = vld [vmem:[#allocation3 + $0x1d1] sm:$0xff] }
 0x332   :  { %5133 = vmatmul.msk.f32.gmra.mxu3 %vm27_vm0, %v4516_v10  ;;  %v4292_v48 = vadd.f32 %v4228_v42, %v4099_v38  ;;  %v3744_v33 = vadd.f32 %v3680_v25, %v3551_v55  ;;  %v4453_v57 = vmul.f32 %v9009_v53, %v9262_v49  ;;  %2751 = vst.msk [vmem:[#allocation3 + $0x208] sm:$0xff] %vm27_vm0, %v2686_v23  ;;  %v9306_v10 = vpop.f32.mrf.mxu3 }
 0x333   :  { %v3327_v56 = vadd.f32 %v3263_v44, %v3134_v18  ;;  %v3649_v6 = vmul.f32 %v9146_v0, %v7170_v2  ;;  %v4860_v46 = vadd.f32 %v9211_v26, %v9173_v29  ;;  %v2507_v3 = vadd.f32 %v9218_v61, %v2506_v7 }
 0x334   :  { %v4485_v42 = vadd.f32 %v4421_v9, %v4292_v48  ;;  %v3937_v25 = vadd.f32 %v3873_v8, %v3744_v33  ;;  %v4770_v30 = vadd.f32 %v9211_v26, %v9188_v47  ;;  %v2909_v19 = vmul.f32 %v9052_v60, %v7131_v17  ;;  %v2413_v9 = vpop.f32.mrf.mxu0 }
 0x335   :  { %v3520_v40 = vadd.f32 %v3456_v43, %v3327_v56  ;;  %v3842_v37 = vmul.f32 %v9157_v41, %v7164_v14  ;;  %4972 = vst.msk [vmem:[#allocation4 + $0x140] sm:$0xff] %vm4931_vm2, %v4860_v46  ;;  %v2718_v44 = vmax.f32 %v2507_v3, 0.0  ;;  %v3102_v29 = vmul.f32 %v9054_v34, %v7134_v52  ;;  %v9322_v46 = vld [vmem:[#allocation3 + $0x410] sm:$0xff] }
 0x336   :  { %5102 = vmatmul.msk.f32.gmra.mxu1 %vm27_vm0, %v4485_v42  ;;  %v4131_v8 = vadd.f32 %v4067_v12, %v3937_v25  ;;  %v4036_v47 = vmul.f32 %v7185_v1, %v9282_v15  ;;  %v4229_v60 = vmul.f32 %v7195_v13, %v9284_v63  ;;  %4942 = vst.msk [vmem:[#allocation4 + $0x50] sm:$0xff] %vm4931_vm2, %v4770_v30 }
 0x337   :  { %v3713_v38 = vadd.f32 %v3649_v6, %v3520_v40  ;;  %2783 = vst.msk [vmem:[#allocation3 + $0x448] sm:$0xff] %vm27_vm0, %v2718_v44  ;;  %v3166_v55 = vadd.f32 %v3102_v29, %v2909_v19  ;;  %v3295_v34 = vmul.f32 %v9087_v16, %v7144_v45  ;;  %v3488_v23 = vmul.f32 %v9180_v36, %v7147_v62  ;;  %v9320_v6 = vld [vmem:[#allocation3 + $0x40f] sm:$0xff]  ;;  %v2509_v29 = vpop.f32.mrf.mxu2 }
 0x338   :  { %v4324_v7 = vadd.f32 %v4260_v58, %v4131_v8  ;;  %v4422_v12 = vmul.f32 %v9009_v53, %v9295_v27  ;;  %v3681_v18 = vmul.f32 %v9182_v28, %v7170_v2  ;;  %v2414_v43 = vadd.f32 %v9218_v61, %v2413_v9 }
 0x339   :  { %v9318_v48 = vpop.f32.mrf.mxu1  ;;  %v3906_v33 = vadd.f32 %v3842_v37, %v3713_v38  ;;  %v3359_v56 = vadd.f32 %v3295_v34, %v3166_v55  ;;  %v2878_v16 = vmul.f32 %v9078_v54, %v7131_v17  ;;  %v3071_v58 = vmul.f32 %v9089_v51, %v7134_v52  ;;  %v9344_v38 = vld [vmem:[#allocation3 + $0x1e7] sm:$0xff] }
 0x33a   :  { %v4517_v3 = vadd.f32 %v4453_v57, %v4324_v7  ;;  %v3874_v42 = vmul.f32 %v9225_v5, %v7164_v14  ;;  %v2687_v25 = vmax.f32 %v2414_v43, 0.0  ;;  %v3264_v30 = vmul.f32 %v9091_v35, %v7144_v45  ;;  %v9353_v43 = vpop.f32.mrf.mxu3 }
 0x33b   :  { %v4100_v19 = vadd.f32 %v4036_v47, %v3906_v33  ;;  %v3552_v40 = vadd.f32 %v3488_v23, %v3359_v56  ;;  %v3135_v37 = vadd.f32 %v3071_v58, %v2878_v16  ;;  %v3457_v44 = vmul.f32 %v9206_v24, %v7147_v62  ;;  %v9355_v33 = vld [vmem:[#allocation3 + $0x411] sm:$0xff]  ;;  %v9357_v16 = vld [vmem:[#allocation3 + $0x1e8] sm:$0xff] }
 0x33c   :  { %5134 = vmatmul.msk.f32.gmra.mxu3 %vm27_vm0, %v4517_v3  ;;  %v4068_v54 = vmul.f32 %v7185_v1, %v9320_v6  ;;  %v4261_v51 = vmul.f32 %v7195_v13, %v9322_v46  ;;  %2752 = vst.msk [vmem:[#allocation3 + $0x210] sm:$0xff] %vm27_vm0, %v2687_v25  ;;  %v3650_v35 = vmul.f32 %v9227_v20, %v7170_v2 }
 0x33d   :  { %v4293_v57 = vadd.f32 %v4229_v60, %v4100_v19  ;;  %v3745_v9 = vadd.f32 %v3681_v18, %v3552_v40  ;;  %v3328_v8 = vadd.f32 %v3264_v30, %v3135_v37  ;;  %v3843_v47 = vmul.f32 %v9229_v22, %v7164_v14 }
 0x33e   :  { %v4863_v55 = vadd.f32 %v9211_v26, %v9242_v50  ;;  %v2510_v34 = vadd.f32 %v9218_v61, %v2509_v29  ;;  %v4773_v23 = vadd.f32 %v9211_v26, %v9258_v31  ;;  %v2910_v7 = vmul.f32 %v9115_v59, %v7131_v17  ;;  %v9381_v29 = vld [vmem:[#allocation3 + $0x428] sm:$0xff] }
 0x33f   :  { %v4486_v60 = vadd.f32 %v4422_v12, %v4293_v57  ;;  %v3938_v18 = vadd.f32 %v3874_v42, %v3745_v9  ;;  %v3521_v56 = vadd.f32 %v3457_v44, %v3328_v8  ;;  %v3103_v50 = vmul.f32 %v9117_v32, %v7134_v52  ;;  %v9369_v42 = vld [vmem:[#allocation3 + $0x1e9] sm:$0xff] }
 0x340   :  { %v4037_v61 = vmul.f32 %v7185_v1, %v9344_v38  ;;  %4973 = vst.msk [vmem:[#allocation4 + $0x148] sm:$0xff] %vm4931_vm2, %v4863_v55  ;;  %v2719_v31 = vmax.f32 %v2510_v34, 0.0  ;;  %v3296_v59 = vmul.f32 %v9122_v39, %v7144_v45  ;;  %v3489_v12 = vmul.f32 %v9253_v11, %v7147_v62  ;;  %v9379_v44 = vld [vmem:[#allocation3 + $0x427] sm:$0xff] }
 0x341   :  { %5103 = vmatmul.msk.f32.gmra.mxu1 %vm27_vm0, %v4486_v60  ;;  %v4132_v58 = vadd.f32 %v4068_v54, %v3938_v18  ;;  %v3714_v3 = vadd.f32 %v3650_v35, %v3521_v56  ;;  %4943 = vst.msk [vmem:[#allocation4 + $0x58] sm:$0xff] %vm4931_vm2, %v4773_v23  ;;  %v3167_v32 = vadd.f32 %v3103_v50, %v2910_v7  ;;  %v9399_v7 = vld [vmem:[#allocation3 + $0x429] sm:$0xff] }
 0x342   :  { %v4454_v25 = vmul.f32 %v9009_v53, %v9355_v33  ;;  %v4230_v30 = vmul.f32 %v7195_v13, %v9357_v16  ;;  %2784 = vst.msk [vmem:[#allocation3 + $0x450] sm:$0xff] %vm27_vm0, %v2719_v31  ;;  %v9377_v39 = vpop.f32.mrf.mxu1  ;;  %v2879_v54 = vmul.f32 %v9144_v4, %v7131_v17  ;;  %v4423_v35 = vmul.f32 %v9009_v53, %v9369_v42 }
 0x343   :  { %v4325_v19 = vadd.f32 %v4261_v51, %v4132_v58  ;;  %v3907_v40 = vadd.f32 %v3843_v47, %v3714_v3  ;;  %v3360_v37 = vadd.f32 %v3296_v59, %v3167_v32  ;;  %v3682_v57 = vmul.f32 %v9255_v21, %v7170_v2  ;;  %v9414_v58 = vld [vmem:[#allocation3 + $0x1f0] sm:$0xff] }
 0x344   :  { %v3072_v9 = vmul.f32 %v9146_v0, %v7134_v52  ;;  %v3265_v51 = vmul.f32 %v9157_v41, %v7144_v45  ;;  %v3875_v34 = vmul.f32 %v9262_v49, %v7164_v14  ;;  %v4069_v4 = vmul.f32 %v7185_v1, %v9379_v44 }
 0x345   :  { %v4518_v8 = vadd.f32 %v4454_v25, %v4325_v19  ;;  %v4101_v47 = vadd.f32 %v4037_v61, %v3907_v40  ;;  %v3553_v55 = vadd.f32 %v3489_v12, %v3360_v37  ;;  %v4262_v23 = vmul.f32 %v7195_v13, %v9381_v29  ;;  %v9408_v61 = vpop.f32.mrf.mxu3  ;;  %v9412_v12 = vld [vmem:[#allocation3 + $0x1ef] sm:$0xff] }
 0x346   :  { %v3136_v60 = vadd.f32 %v3072_v9, %v2879_v54  ;;  %v3458_v0 = vmul.f32 %v9282_v15, %v7147_v62  ;;  %v4866_v56 = vadd.f32 %v9211_v26, %v9306_v10  ;;  %v4776_v50 = vadd.f32 %v9211_v26, %v9318_v48  ;;  %v9425_v40 = vld [vmem:[#allocation3 + $0x1f1] sm:$0xff] }
 0x347   :  { %5135 = vmatmul.msk.f32.gmra.mxu3 %vm27_vm0, %v4518_v8  ;;  %v4294_v41 = vadd.f32 %v4230_v30, %v4101_v47  ;;  %v3746_v18 = vadd.f32 %v3682_v57, %v3553_v55  ;;  %v3651_v59 = vmul.f32 %v9284_v63, %v7170_v2  ;;  %v2911_v3 = vmul.f32 %v9180_v36, %v7131_v17  ;;  %v9439_v47 = vld [vmem:[#allocation3 + $0x42f] sm:$0xff] }
 0x348   :  { %v3329_v31 = vadd.f32 %v3265_v51, %v3136_v60  ;;  %v3104_v32 = vmul.f32 %v9182_v28, %v7134_v52  ;;  %v4455_v48 = vmul.f32 %v9009_v53, %v9399_v7  ;;  %v3844_v30 = vmul.f32 %v9295_v27, %v7164_v14  ;;  %4974 = vst.msk [vmem:[#allocation4 + $0x150] sm:$0xff] %vm4931_vm2, %v4866_v56 }
 0x349   :  { %v4487_v10 = vadd.f32 %v4423_v35, %v4294_v41  ;;  %v3939_v25 = vadd.f32 %v3875_v34, %v3746_v18  ;;  %4944 = vst.msk [vmem:[#allocation4 + $0x60] sm:$0xff] %vm4931_vm2, %v4776_v50  ;;  %v3297_v36 = vmul.f32 %v9225_v5, %v7144_v45  ;;  %v3490_v28 = vmul.f32 %v9320_v6, %v7147_v62 }
 0x34a   :  { %v3522_v19 = vadd.f32 %v3458_v0, %v3329_v31  ;;  %v3168_v37 = vadd.f32 %v3104_v32, %v2911_v3  ;;  %v4038_v35 = vmul.f32 %v7185_v1, %v9412_v12  ;;  %v4231_v57 = vmul.f32 %v7195_v13, %v9414_v58  ;;  %v9461_v32 = vld [vmem:[#allocation3 + $0x430] sm:$0xff] }
 0x34b   :  { %5104 = vmatmul.msk.f32.gmra.mxu1 %vm27_vm0, %v4487_v10  ;;  %v4133_v54 = vadd.f32 %v4069_v4, %v3939_v25  ;;  %v2880_v9 = vmul.f32 %v9206_v24, %v7131_v17  ;;  %v3073_v5 = vmul.f32 %v9227_v20, %v7134_v52  ;;  %v3266_v55 = vmul.f32 %v9229_v22, %v7144_v45  ;;  %v9463_v10 = vld [vmem:[#allocation3 + $0x431] sm:$0xff] }
 0x34c   :  { %v3715_v51 = vadd.f32 %v3651_v59, %v3522_v19  ;;  %v3361_v8 = vadd.f32 %v3297_v36, %v3168_v37  ;;  %v9445_v34 = vpop.f32.mrf.mxu1  ;;  %v4424_v60 = vmul.f32 %v9009_v53, %v9425_v40  ;;  %v3683_v0 = vmul.f32 %v9322_v46, %v7170_v2  ;;  %v9470_v19 = vld [vmem:[#allocation3 + $0x207] sm:$0xff] }
 0x34d   :  { %v4326_v4 = vadd.f32 %v4262_v23, %v4133_v54  ;;  %v3876_v24 = vmul.f32 %v9355_v33, %v7164_v14  ;;  %v3137_v56 = vadd.f32 %v3073_v5, %v2880_v9  ;;  %v3459_v20 = vmul.f32 %v9344_v38, %v7147_v62  ;;  %v9481_v9 = vld [vmem:[#allocation3 + $0x208] sm:$0xff] }
 0x34e   :  { %v3908_v41 = vadd.f32 %v3844_v30, %v3715_v51  ;;  %v3554_v18 = vadd.f32 %v3490_v28, %v3361_v8  ;;  %v4070_v22 = vmul.f32 %v7185_v1, %v9439_v47  ;;  %v3652_v23 = vmul.f32 %v9357_v16, %v7170_v2 }
 0x34f   :  { %v4519_v50 = vadd.f32 %v4455_v48, %v4326_v4  ;;  %v4869_v31 = vadd.f32 %v9211_v26, %v9353_v43  ;;  %v3330_v25 = vadd.f32 %v3266_v55, %v3137_v56  ;;  %v4779_v30 = vadd.f32 %v9211_v26, %v9377_v39  ;;  %v9467_v48 = vpop.f32.mrf.mxu3 }
 0x350   :  { %v4102_v59 = vadd.f32 %v4038_v35, %v3908_v41  ;;  %v3747_v3 = vadd.f32 %v3683_v0, %v3554_v18  ;;  %v2912_v43 = vmul.f32 %v9253_v11, %v7131_v17  ;;  %v3105_v37 = vmul.f32 %v9255_v21, %v7134_v52  ;;  %v9494_v0 = vld [vmem:[#allocation3 + $0x209] sm:$0xff] }
 0x351   :  { %5136 = vmatmul.msk.f32.gmra.mxu3 %vm27_vm0, %v4519_v50  ;;  %4975 = vst.msk [vmem:[#allocation4 + $0x158] sm:$0xff] %vm4931_vm2, %v4869_v31  ;;  %v3298_v36 = vmul.f32 %v9262_v49, %v7144_v45  ;;  %v3523_v39 = vadd.f32 %v3459_v20, %v3330_v25  ;;  %v3845_v35 = vmul.f32 %v9369_v42, %v7164_v14  ;;  %v9496_v41 = vld [vmem:[#allocation3 + $0x447] sm:$0xff] }
 0x352   :  { %v4295_v28 = vadd.f32 %v4231_v57, %v4102_v59  ;;  %v3940_v54 = vadd.f32 %v3876_v24, %v3747_v3  ;;  %4945 = vst.msk [vmem:[#allocation4 + $0x68] sm:$0xff] %vm4931_vm2, %v4779_v30  ;;  %v4263_v51 = vmul.f32 %v7195_v13, %v9461_v32  ;;  %v4456_v11 = vmul.f32 %v9009_v53, %v9463_v10 }
 0x353   :  { %v3169_v21 = vadd.f32 %v3105_v37, %v2912_v43  ;;  %v3491_v49 = vmul.f32 %v9379_v44, %v7147_v62  ;;  %v3716_v5 = vadd.f32 %v3652_v23, %v3523_v39  ;;  %v4039_v55 = vmul.f32 %v7185_v1, %v9470_v19  ;;  %v9517_v37 = vld [vmem:[#allocation3 + $0x448] sm:$0xff] }
 0x354   :  { %v4488_v57 = vadd.f32 %v4424_v60, %v4295_v28  ;;  %v4134_v8 = vadd.f32 %v4070_v22, %v3940_v54  ;;  %v4232_v4 = vmul.f32 %v7195_v13, %v9481_v9  ;;  %v2881_v18 = vmul.f32 %v9282_v15, %v7131_v17 }
 0x355   :  { %v3362_v24 = vadd.f32 %v3298_v36, %v3169_v21  ;;  %v3074_v56 = vmul.f32 %v9284_v63, %v7134_v52  ;;  %v3909_v20 = vadd.f32 %v3845_v35, %v3716_v5  ;;  %v3684_v50 = vmul.f32 %v9381_v29, %v7170_v2 }
 0x356   :  { %5105 = vmatmul.msk.f32.gmra.mxu1 %vm27_vm0, %v4488_v57  ;;  %v4327_v60 = vadd.f32 %v4263_v51, %v4134_v8  ;;  %v3267_v22 = vmul.f32 %v9295_v27, %v7144_v45  ;;  %v9507_v23 = vpop.f32.mrf.mxu1  ;;  %v3877_v59 = vmul.f32 %v9399_v7, %v7164_v14  ;;  %v3460_v63 = vmul.f32 %v9412_v12, %v7147_v62  ;;  %v9526_v51 = vld [vmem:[#allocation3 + $0x449] sm:$0xff] }
 0x357   :  { %v3555_v31 = vadd.f32 %v3491_v49, %v3362_v24  ;;  %v3138_v15 = vadd.f32 %v3074_v56, %v2881_v18  ;;  %v4103_v25 = vadd.f32 %v4039_v55, %v3909_v20  ;;  %v4425_v30 = vmul.f32 %v9009_v53, %v9494_v0  ;;  %v9523_v39 = vpop.f32.mrf.mxu3 }
 0x358   :  { %v4520_v3 = vadd.f32 %v4456_v11, %v4327_v60  ;;  %v4071_v43 = vmul.f32 %v7185_v1, %v9496_v41  ;;  %v3653_v28 = vmul.f32 %v9414_v58, %v7170_v2  ;;  %v4872_v54 = vadd.f32 %v9211_v26, %v9408_v61  ;;  %v9528_v11 = vld [vmem:[#allocation3 + $0x20f] sm:$0xff] }
 0x359   :  { %v3748_v27 = vadd.f32 %v3684_v50, %v3555_v31  ;;  %v3331_v36 = vadd.f32 %v3267_v22, %v3138_v15  ;;  %v4296_v35 = vadd.f32 %v4232_v4, %v4103_v25  ;;  %v4782_v21 = vadd.f32 %v9211_v26, %v9445_v34  ;;  %v9540_v4 = vld [vmem:[#allocation3 + $0x210] sm:$0xff] }
 0x35a   :  { %5137 = vmatmul.msk.f32.gmra.mxu3 %vm27_vm0, %v4520_v3  ;;  %v2913_v49 = vmul.f32 %v9320_v6, %v7131_v17  ;;  %v3106_v57 = vmul.f32 %v9322_v46, %v7134_v52  ;;  %v4264_v61 = vmul.f32 %v7195_v13, %v9517_v37  ;;  %v3846_v55 = vmul.f32 %v9425_v40, %v7164_v14  ;;  %v9543_v34 = vld [vmem:[#allocation3 + $0x211] sm:$0xff] }
 0x35b   :  { %v3941_v8 = vadd.f32 %v3877_v59, %v3748_v27  ;;  %v3524_v5 = vadd.f32 %v3460_v63, %v3331_v36  ;;  %4976 = vst.msk [vmem:[#allocation4 + $0x160] sm:$0xff] %vm4931_vm2, %v4872_v54  ;;  %v4489_v24 = vadd.f32 %v4425_v30, %v4296_v35  ;;  %v3299_v46 = vmul.f32 %v9355_v33, %v7144_v45  ;;  %v9557_v59 = vld [vmem:[#allocation3 + $0x44f] sm:$0xff] }
 0x35c   :  { %4946 = vst.msk [vmem:[#allocation4 + $0x70] sm:$0xff] %vm4931_vm2, %v4782_v21  ;;  %v3170_v6 = vadd.f32 %v3106_v57, %v2913_v49  ;;  %v3492_v18 = vmul.f32 %v9439_v47, %v7147_v62  ;;  %v4457_v60 = vmul.f32 %v9009_v53, %v9526_v51  ;;  %v4040_v50 = vmul.f32 %v7185_v1, %v9528_v11 }
 0x35d   :  { %v4135_v56 = vadd.f32 %v4071_v43, %v3941_v8  ;;  %v3717_v20 = vadd.f32 %v3653_v28, %v3524_v5  ;;  %v4233_v22 = vmul.f32 %v7195_v13, %v9540_v4  ;;  %v2882_v33 = vmul.f32 %v9344_v38, %v7131_v17 }
 0x35e   :  { %5106 = vmatmul.msk.f32.gmra.mxu1 %vm27_vm0, %v4489_v24  ;;  %v3363_v31 = vadd.f32 %v3299_v46, %v3170_v6  ;;  %v3075_v15 = vmul.f32 %v9357_v16, %v7134_v52  ;;  %v4426_v25 = vmul.f32 %v9009_v53, %v9543_v34  ;;  %v3268_v30 = vmul.f32 %v9369_v42, %v7144_v45  ;;  %v9577_v42 = vld [vmem:[#allocation3 + $0x450] sm:$0xff]  ;;  %v3976_v24 = vld [vmem:[#allocation3 + $0x227] sm:$0xff] }
 0x35f   :  { %v4328_v63 = vadd.f32 %v4264_v61, %v4135_v56  ;;  %v3910_v3 = vadd.f32 %v3846_v55, %v3717_v20  ;;  %v3685_v27 = vmul.f32 %v9461_v32, %v7170_v2  ;;  %v3461_v28 = vmul.f32 %v9470_v19, %v7147_v62  ;;  %v9586_v55 = vld [vmem:[#allocation3 + $0x451] sm:$0xff] }
 0x360   :  { %v3556_v43 = vadd.f32 %v3492_v18, %v3363_v31  ;;  %v3139_v36 = vadd.f32 %v3075_v15, %v2882_v33  ;;  %v9571_v38 = vpop.f32.mrf.mxu1  ;;  %v3878_v35 = vmul.f32 %v9463_v10, %v7164_v14  ;;  %v4072_v21 = vmul.f32 %v7185_v1, %v9557_v59  ;;  %v4362_v15 = vld [vmem:[#allocation3 + $0x229] sm:$0xff] }
 0x361   :  { %v4521_v54 = vadd.f32 %v4457_v60, %v4328_v63  ;;  %v4104_v16 = vadd.f32 %v4040_v50, %v3910_v3  ;;  %v3654_v8 = vmul.f32 %v9481_v9, %v7170_v2  ;;  %v4875_v19 = vadd.f32 %v9211_v26, %v9467_v48  ;;  %v9583_v61 = vpop.f32.mrf.mxu3  ;;  %v4169_v60 = vld [vmem:[#allocation3 + $0x228] sm:$0xff] }
 0x362   :  { %v3749_v49 = vadd.f32 %v3685_v27, %v3556_v43  ;;  %v3332_v57 = vadd.f32 %v3268_v30, %v3139_v36  ;;  %v4785_v6 = vadd.f32 %v9211_v26, %v9507_v23  ;;  %v2914_v46 = vmul.f32 %v9379_v44, %v7131_v17  ;;  %v4008_v3 = vld [vmem:[#allocation3 + $0x467] sm:$0xff] }
 0x363   :  { %5138 = vmatmul.msk.f32.gmra.mxu3 %vm27_vm0, %v4521_v54  ;;  %v4297_v5 = vadd.f32 %v4233_v22, %v4104_v16  ;;  %v3107_v9 = vmul.f32 %v9381_v29, %v7134_v52  ;;  %v3847_v48 = vmul.f32 %v9494_v0, %v7164_v14  ;;  %4977 = vst.msk [vmem:[#allocation4 + $0x168] sm:$0xff] %vm4931_vm2, %v4875_v19 }
 0x364   :  { %v3942_v18 = vadd.f32 %v3878_v35, %v3749_v49  ;;  %v3525_v56 = vadd.f32 %v3461_v28, %v3332_v57  ;;  %v3300_v20 = vmul.f32 %v9399_v7, %v7144_v45  ;;  %v4265_v23 = vmul.f32 %v7195_v13, %v9577_v42  ;;  %4947 = vst.msk [vmem:[#allocation4 + $0x78] sm:$0xff] %vm4931_vm2, %v4785_v6 }
 0x365   :  { %v4490_v50 = vadd.f32 %v4426_v25, %v4297_v5  ;;  %v3171_v44 = vadd.f32 %v3107_v9, %v2914_v46  ;;  %v3493_v29 = vmul.f32 %v9496_v41, %v7147_v62  ;;  %v4458_v0 = vmul.f32 %v9009_v53, %v9586_v55  ;;  %v4394_v5 = vld [vmem:[#allocation3 + $0x469] sm:$0xff] }
 0x366   :  { %v4136_v22 = vadd.f32 %v4072_v21, %v3942_v18  ;;  %v3718_v31 = vadd.f32 %v3654_v8, %v3525_v56  ;;  %v4041_v33 = vmul.f32 %v7185_v1, %v3976_v24  ;;  %v4234_v7 = vmul.f32 %v7195_v13, %v4169_v60  ;;  %v3977_v24 = vld [vmem:[#allocation3 + $0x22f] sm:$0xff] }
 0x367   :  { %5107 = vmatmul.msk.f32.gmra.mxu1 %vm27_vm0, %v4490_v50  ;;  %v3364_v63 = vadd.f32 %v3300_v20, %v3171_v44  ;;  %v2883_v25 = vmul.f32 %v9412_v12, %v7131_v17  ;;  %v3076_v41 = vmul.f32 %v9414_v58, %v7134_v52  ;;  %v3686_v53 = vmul.f32 %v9517_v37, %v7170_v2  ;;  %v9624_v58 = vld [vmem:[%s9735_s4 + $0x8] ss:$0 sm:$0xff]  ;;  %v4170_v20 = vld [vmem:[#allocation3 + $0x230] sm:$0xff]  ;;  %s5192_s4 = smov [#allocation4]  }
 0x368   :  { %v4329_v30 = vadd.f32 %v4265_v23, %v4136_v22  ;;  %v3911_v43 = vadd.f32 %v3847_v48, %v3718_v31  ;;  %v3269_v27 = vmul.f32 %v9425_v40, %v7144_v45  ;;  %v3879_v28 = vmul.f32 %v9526_v51, %v7164_v14  ;;  %v4201_v40 = vld [vmem:[#allocation3 + $0x468] sm:$0xff]  ;;  %s5000_s19 = sshll.u32 %s5192_s4, 4  ;;  %s5001_s19 = int_to_ptr.vmem [resolvable:$true] %s5000_s19 }
 0x369   :  { %v3557_v36 = vadd.f32 %v3493_v29, %v3364_v63  ;;  %v3140_v54 = vadd.f32 %v3076_v41, %v2883_v25  ;;  %v3462_v16 = vmul.f32 %v9528_v11, %v7147_v62  ;;  %v4427_v37 = vmul.f32 %v9624_v58, %v4362_v15 }
 0x36a   :  { %v4522_v12 = vadd.f32 %v4458_v0, %v4329_v30  ;;  %v4105_v35 = vadd.f32 %v4041_v33, %v3911_v43  ;;  %v4073_v21 = vmul.f32 %v7185_v1, %v4008_v3  ;;  %v4790_v49 = vpop.f32.mrf.mxu1  ;;  %v3655_v51 = vmul.f32 %v9540_v4, %v7170_v2 }
 0x36b   :  { %v3750_v57 = vadd.f32 %v3686_v53, %v3557_v36  ;;  %v3333_v8 = vadd.f32 %v3269_v27, %v3140_v54  ;;  %v4878_v11 = vadd.f32 %v9211_v26, %v9523_v39  ;;  %v4788_v6 = vadd.f32 %v9211_v26, %v9571_v38  ;;  %v4883_v18 = vpop.f32.mrf.mxu3 }
 0x36c   :  { %5139 = vmatmul.msk.f32.gmra.mxu3 %vm27_vm0, %v4522_v12  ;;  %v4298_v19 = vadd.f32 %v4234_v7, %v4105_v35  ;;  %v2915_v46 = vmul.f32 %v9439_v47, %v7131_v17  ;;  %v3108_v9 = vmul.f32 %v9461_v32, %v7134_v52  ;;  %v4266_v4 = vmul.f32 %v7195_v13, %v4201_v40 }
 0x36d   :  { %v3943_v56 = vadd.f32 %v3879_v28, %v3750_v57  ;;  %v3526_v48 = vadd.f32 %v3462_v16, %v3333_v8  ;;  %v3848_v39 = vmul.f32 %v9543_v34, %v7164_v14  ;;  %4978 = vst.msk [vmem:[#allocation4 + $0x170] sm:$0xff] %vm4931_vm2, %v4878_v11  ;;  %v3301_v17 = vmul.f32 %v9463_v10, %v7144_v45  ;;  %v4363_v34 = vld [vmem:[#allocation3 + $0x231] sm:$0xff] }
 0x36e   :  { %v4491_v60 = vadd.f32 %v4427_v37, %v4298_v19  ;;  %4948 = vst.msk [vmem:[#allocation4 + $0x80] sm:$0xff] %vm4931_vm2, %v4788_v6  ;;  %v3172_v38 = vadd.f32 %v3108_v9, %v2915_v46  ;;  %v3494_v52 = vmul.f32 %v9557_v59, %v7147_v62  ;;  %v4459_v32 = vmul.f32 %v9624_v58, %v4394_v5  ;;  %v4009_v62 = vld [vmem:[#allocation3 + $0x46f] sm:$0xff] }
 0x36f   :  { %v4137_v47 = vadd.f32 %v4073_v21, %v3943_v56  ;;  %v3719_v50 = vadd.f32 %v3655_v51, %v3526_v48  ;;  %v4042_v23 = vmul.f32 %v7185_v1, %v3977_v24  ;;  %v4881_v29 = vadd.f32 %v9211_v26, %v9583_v61  ;;  %v4202_v61 = vld [vmem:[#allocation3 + $0x470] sm:$0xff] }
 0x370   :  { %5108 = vmatmul.msk.f32.gmra.mxu1 %vm27_vm0, %v4491_v60  ;;  %v3365_v44 = vadd.f32 %v3301_v17, %v3172_v38  ;;  %v4791_v22 = vadd.f32 %v9211_v26, %v4790_v49  ;;  %v4235_v10 = vmul.f32 %v7195_v13, %v4170_v20  ;;  %v4884_v59 = vadd.f32 %v9211_v26, %v4883_v18 }
 0x371   :  { %v4330_v0 = vadd.f32 %v4266_v4, %v4137_v47  ;;  %v3912_v45 = vadd.f32 %v3848_v39, %v3719_v50  ;;  %v3687_v33 = vmul.f32 %v9577_v42, %v7170_v2  ;;  %4979 = vst.msk [vmem:[#allocation4 + $0x178] sm:$0xff] %vm4931_vm2, %v4881_v29  ;;  %v4428_v63 = vmul.f32 %v9624_v58, %v4363_v34  ;;  %v4395_v42 = vld [vmem:[#allocation3 + $0x471] sm:$0xff] }
 0x372   :  { %v3558_v31 = vadd.f32 %v3494_v52, %v3365_v44  ;;  %4949 = vst.msk [vmem:[#allocation4 + $0x88] sm:$0xff] %vm4931_vm2, %v4791_v22  ;;  %v3880_v25 = vmul.f32 %v9586_v55, %v7164_v14  ;;  %v4074_v41 = vmul.f32 %v7185_v1, %v4009_v62  ;;  %v4267_v27 = vmul.f32 %v7195_v13, %v4202_v61 }
 0x373   :  { %v4523_v7 = vadd.f32 %v4459_v32, %v4330_v0  ;;  %v4106_v15 = vadd.f32 %v4042_v23, %v3912_v45  ;;  %4980 = vst.msk [vmem:[#allocation4 + $0x180] sm:$0xff] %vm4931_vm2, %v4884_v59  ;;  %v4460_v1 = vmul.f32 %v9624_v58, %v4395_v42 }
 0x374   :  { %v3751_v3 = vadd.f32 %v3687_v33, %v3558_v31  ;;  %v4793_v30 = vpop.f32.mrf.mxu1 }
 0x375   :  { %5140 = vmatmul.msk.f32.gmra.mxu3 %vm27_vm0, %v4523_v7  ;;  %v4299_v2 = vadd.f32 %v4235_v10, %v4106_v15  ;;  %v4794_v43 = vadd.f32 %v9211_v26, %v4793_v30 }
 0x376   :  { %v3944_v53 = vadd.f32 %v3880_v25, %v3751_v3  ;;  %v4886_v36 = vpop.f32.mrf.mxu3 }
 0x377   :  { %v4492_v28 = vadd.f32 %v4428_v63, %v4299_v2  ;;  %4950 = vst.msk [vmem:[#allocation4 + $0x90] sm:$0xff] %vm4931_vm2, %v4794_v43  ;;  %v4887_v14 = vadd.f32 %v9211_v26, %v4886_v36 }
 0x378   :  { %v4138_v55 = vadd.f32 %v4074_v41, %v3944_v53 }
 0x379   :  { %5109 = vmatmul.msk.f32.gmra.mxu1 %vm27_vm0, %v4492_v28  ;;  %4981 = vst.msk [vmem:[#allocation4 + $0x188] sm:$0xff] %vm4931_vm2, %v4887_v14 }
 0x37a   :  { %v4331_v54 = vadd.f32 %v4267_v27, %v4138_v55 }
 0x37c   :  { %v4524_v16 = vadd.f32 %v4460_v1, %v4331_v54 }
 0x37e   :  { %5141 = vmatmul.msk.f32.gmra.mxu3 %vm27_vm0, %v4524_v16 }
 0x37f   :  { %v4796_v12 = vpop.f32.mrf.mxu1 }
 0x380   :  { %v4797_v13 = vadd.f32 %v9211_v26, %v4796_v12  ;;  %v4889_v35 = vpop.f32.mrf.mxu3 }
 0x381   :  { %v4890_v37 = vadd.f32 %v9211_v26, %v4889_v35 }
 0x382   :  { %4951 = vst.msk [vmem:[#allocation4 + $0x98] sm:$0xff] %vm4931_vm2, %v4797_v13 }
 0x383   :  { %4982 = vst.msk [vmem:[#allocation4 + $0x190] sm:$0xff] %vm4931_vm2, %v4890_v37 }
 0x389   :  { %v4799_v21 = vpop.f32.mrf.mxu1 }
 0x38a   :  { %v4800_v58 = vadd.f32 %v9211_v26, %v4799_v21 }
 0x38b   :  { %v4892_v40 = vpop.f32.mrf.mxu3 }
 0x38c   :  { %4952 = vst.msk [vmem:[#allocation4 + $0xa0] sm:$0xff] %vm4931_vm2, %v4800_v58  ;;  %v4893_v49 = vadd.f32 %v9211_v26, %v4892_v40 }
 0x38e   :  { %4983 = vst.msk [vmem:[#allocation4 + $0x198] sm:$0xff] %vm4931_vm2, %v4893_v49 }
 0x394   :  { %v4802_v57 = vpop.f32.mrf.mxu1 }
 0x395   :  { %v4803_v8 = vadd.f32 %v9211_v26, %v4802_v57  ;;  %v4895_v51 = vpop.f32.mrf.mxu3 }
 0x396   :  { %v4896_v11 = vadd.f32 %v9211_v26, %v4895_v51 }
 0x397   :  { %4953 = vst.msk [vmem:[#allocation4 + $0xa8] sm:$0xff] %vm4931_vm2, %v4803_v8 }
 0x398   :  { %4984 = vst.msk [vmem:[#allocation4 + $0x1a0] sm:$0xff] %vm4931_vm2, %v4896_v11 }
 0x39e   :  { %v4805_v19 = vpop.f32.mrf.mxu1 }
 0x39f   :  { %v4806_v5 = vadd.f32 %v9211_v26, %v4805_v19 }
 0x3a0   :  { %v4898_v24 = vpop.f32.mrf.mxu3 }
 0x3a1   :  { %4954 = vst.msk [vmem:[#allocation4 + $0xb0] sm:$0xff] %vm4931_vm2, %v4806_v5  ;;  %v4899_v6 = vadd.f32 %v9211_v26, %v4898_v24 }
 0x3a3   :  { %4985 = vst.msk [vmem:[#allocation4 + $0x1a8] sm:$0xff] %vm4931_vm2, %v4899_v6 }
 0x3a9   :  { %v4808_v46 = vpop.f32.mrf.mxu1 }
 0x3aa   :  { %v4809_v9 = vadd.f32 %v9211_v26, %v4808_v46  ;;  %v4901_v18 = vpop.f32.mrf.mxu3 }
 0x3ab   :  { %v4902_v56 = vadd.f32 %v9211_v26, %v4901_v18 }
 0x3ac   :  { %4955 = vst.msk [vmem:[#allocation4 + $0xb8] sm:$0xff] %vm4931_vm2, %v4809_v9 }
 0x3ad   :  { %4986 = vst.msk [vmem:[#allocation4 + $0x1b0] sm:$0xff] %vm4931_vm2, %v4902_v56 }
 0x3b3   :  { %v4811_v4 = vpop.f32.mrf.mxu1 }
 0x3b4   :  { %v4812_v48 = vadd.f32 %v9211_v26, %v4811_v4 }
 0x3b5   :  { %v4904_v39 = vpop.f32.mrf.mxu3 }
 0x3b6   :  { %4956 = vst.msk [vmem:[#allocation4 + $0xc0] sm:$0xff] %vm4931_vm2, %v4812_v48  ;;  %v4905_v60 = vadd.f32 %v9211_v26, %v4904_v39 }
 0x3b8   :  { %4987 = vst.msk [vmem:[#allocation4 + $0x1b8] sm:$0xff] %vm4931_vm2, %v4905_v60 }
 0x3be   :  { %v4814_v20 = vpop.f32.mrf.mxu1 }
 0x3bf   :  { %v4815_v38 = vadd.f32 %v9211_v26, %v4814_v20  ;;  %v4907_v17 = vpop.f32.mrf.mxu3 }
 0x3c0   :  { %v4908_v52 = vadd.f32 %v9211_v26, %v4907_v17 }
 0x3c1   :  { %4957 = vst.msk [vmem:[#allocation4 + $0xc8] sm:$0xff] %vm4931_vm2, %v4815_v38 }
 0x3c2   :  { %4988 = vst.msk [vmem:[#allocation4 + $0x1c0] sm:$0xff] %vm4931_vm2, %v4908_v52 }
 0x3c8   :  { %v4817_v47 = vpop.f32.mrf.mxu1 }
 0x3c9   :  { %v4818_v32 = vadd.f32 %v9211_v26, %v4817_v47 }
 0x3ca   :  { %v4910_v50 = vpop.f32.mrf.mxu3 }
 0x3cb   :  { %4958 = vst.msk [vmem:[#allocation4 + $0xd0] sm:$0xff] %vm4931_vm2, %v4818_v32  ;;  %v4911_v23 = vadd.f32 %v9211_v26, %v4910_v50 }
 0x3cd   :  { %4989 = vst.msk [vmem:[#allocation4 + $0x1c8] sm:$0xff] %vm4931_vm2, %v4911_v23 }
 0x3d3   :  { %v4820_v34 = vpop.f32.mrf.mxu1 }
 0x3d4   :  { %v4821_v44 = vadd.f32 %v9211_v26, %v4820_v34  ;;  %v4913_v29 = vpop.f32.mrf.mxu3 }
 0x3d5   :  { %v4914_v22 = vadd.f32 %v9211_v26, %v4913_v29 }
 0x3d6   :  { %4959 = vst.msk [vmem:[#allocation4 + $0xd8] sm:$0xff] %vm4931_vm2, %v4821_v44 }
 0x3d7   :  { %4990 = vst.msk [vmem:[#allocation4 + $0x1d0] sm:$0xff] %vm4931_vm2, %v4914_v22 }
 0x3db   :  { %v4823_v0 = vpop.f32.mrf.mxu1 }
 0x3dc   :  { %v4824_v45 = vadd.f32 %v9211_v26, %v4823_v0 }
 0x3dd   :  { %v4916_v10 = vpop.f32.mrf.mxu3 }
 0x3de   :  { %4960 = vst.msk [vmem:[#allocation4 + $0xe0] sm:$0xff] %vm4931_vm2, %v4824_v45  ;;  %v4917_v62 = vadd.f32 %v9211_v26, %v4916_v10 }
 0x3e0   :  { %4991 = vst.msk [vmem:[#allocation4 + $0x1d8] sm:$0xff] %vm4931_vm2, %v4917_v62 }
 0x3e4   :  { %v4826_v59 = vpop.f32.mrf.mxu1 }
 0x3e5   :  { %v4827_v31 = vadd.f32 %v9211_v26, %v4826_v59 }
 0x3e6   :  { %v4919_v33 = vpop.f32.mrf.mxu3 }
 0x3e7   :  { %4961 = vst.msk [vmem:[#allocation4 + $0xe8] sm:$0xff] %vm4931_vm2, %v4827_v31  ;;  %v4920_v7 = vadd.f32 %v9211_v26, %v4919_v33 }
 0x3e9   :  { %4992 = vst.msk [vmem:[#allocation4 + $0x1e0] sm:$0xff] %vm4931_vm2, %v4920_v7 }
 0x3ed   :  { %v4829_v15 = vpop.f32.mrf.mxu1 }
 0x3ee   :  { %v4830_v63 = vadd.f32 %v9211_v26, %v4829_v15 }
 0x3ef   :  { %v4922_v61 = vpop.f32.mrf.mxu3 }
 0x3f0   :  { %4962 = vst.msk [vmem:[#allocation4 + $0xf0] sm:$0xff] %vm4931_vm2, %v4830_v63  ;;  %v4923_v3 = vadd.f32 %v9211_v26, %v4922_v61 }
 0x3f2   :  { %4993 = vst.msk [vmem:[#allocation4 + $0x1e8] sm:$0xff] %vm4931_vm2, %v4923_v3 }
 0x3f6   :  { %v4832_v25 = vpop.f32.mrf.mxu1 }
 0x3f7   :  { %v4833_v41 = vadd.f32 %v9211_v26, %v4832_v25 }
 0x3f8   :  { %v4925_v30 = vpop.f32.mrf.mxu3 }
 0x3f9   :  { %4963 = vst.msk [vmem:[#allocation4 + $0xf8] sm:$0xff] %vm4931_vm2, %v4833_v41  ;;  %v4926_v2 = vadd.f32 %v9211_v26, %v4925_v30 }
 0x3fb   :  { %4994 = vst.msk [vmem:[#allocation4 + $0x1f0] sm:$0xff] %vm4931_vm2, %v4926_v2 }
 0x401   :  { %v4928_v42 = vpop.f32.mrf.mxu3 }
 0x402   :  { %v4929_v43 = vadd.f32 %v9211_v26, %v4928_v42 }
 0x404   :  { %4995 = vst.msk [vmem:[#allocation4 + $0x1f8] sm:$0xff] %vm4931_vm2, %v4929_v43 }
 0x405   :  { %5008 = dma.vmem_to_hbm [thread:$0]  %s5001_s19, 8192, %s5003_s22, [#allocation5], %s5193_s23, %s5193_s23, %s5194_s24  }
 0x406   :  { %5189 = dma.done.wait [#allocation5], 8192  }
 0x407   :  { %5190 = vsyncadd [#allocation5], 4294959104 }
 0x408   :  { %5013 = vsyncpa [#allocation5], 1 }

</bundles_post_ra>
